<compile_context>
chip_gen: v6e
topology: v6e:2x2x1
jax: 0.10.0
libtpu: 0.0.40
codegen_flags: <defaults>
</compile_context>

<pallas_src>
import functools

import jax
import jax.numpy as jnp
from jax.experimental import pallas as pl
from jax.experimental.pallas import tpu as pltpu
from jax.scipy.stats import norm as jnorm

NUM_ACTIONS = 6   # env.action_space.n (Atari, e.g. Pong)
FRAMES = 4        # stacked frames


def _round_up(x, m):
    return (x + m - 1) // m * m


def _choose_m_tile(m):
    """Pick an M tile (multiple of 8) and the padded M it implies."""
    mp8 = _round_up(m, 8)
    if mp8 <= 512:
        return mp8, mp8
    for tm in (512, 448, 400, 384, 320, 256, 200, 160, 128):
        if mp8 % tm == 0:
            return tm, mp8
    return 512, _round_up(mp8, 512)


# ----------------------------------------------------------------------------
# Pallas kernels
# ----------------------------------------------------------------------------
def _matmul_bias_relu_kernel(x_ref, w_ref, b_ref, o_ref, *, relu):
    y = jnp.dot(x_ref[...], w_ref[...], preferred_element_type=jnp.float32)
    y = y + b_ref[...]
    if relu:
        y = jnp.maximum(y, 0.0)
    o_ref[...] = y.astype(o_ref.dtype)


def pallas_linear_tiled(x, w, b, *, relu, out_dtype):
    """y = relu?(x @ w + b), x:(M,K) bf16, w:(K,N) bf16, b:(N,) f32.

    M is tiled into 128-512 row blocks (parallel grid axis); K and N stay full
    per block so the MXU/lane dimension is never sliced below the full width.
    """
    M, K = x.shape
    K2, N = w.shape
    assert K == K2
    tm, mp = _choose_m_tile(M)
    if mp != M:
        x = jnp.pad(x, ((0, mp - M), (0, 0)))
    b2 = b.reshape(1, N).astype(jnp.float32)
    kernel = functools.partial(_matmul_bias_relu_kernel, relu=relu)
    out = pl.pallas_call(
        kernel,
        out_shape=jax.ShapeDtypeStruct((mp, N), out_dtype),
        grid=(mp // tm,),
        in_specs=[
            pl.BlockSpec((tm, K), lambda i: (i, 0)),
            pl.BlockSpec((K, N), lambda i: (0, 0)),
            pl.BlockSpec((1, N), lambda i: (0, 0)),
        ],
        out_specs=pl.BlockSpec((tm, N), lambda i: (i, 0)),
        compiler_params=pltpu.CompilerParams(
            dimension_semantics=("parallel",)),
    )(x, w, b2)
    return out if mp == M else out[:M]


def _head_kernel(z_ref, fcw_ref, fcb_ref,
                 m1w_ref, m1b_ref, m2w_ref, m2b_ref,
                 qzw_ref, qnw_ref, qb_ref,
                 noise_ref, nprev_ref,
                 q_ref, zout_ref, n_ref, mu_ref, sc_ref):
    # fc 3136 -> 512 (+ReLU); z stays resident for everything downstream.
    z = jnp.dot(z_ref[...], fcw_ref[...], preferred_element_type=jnp.float32)
    z = jnp.maximum(z + fcb_ref[...], 0.0)                 # (TB, 512) f32
    zout_ref[...] = z
    zb = z.astype(jnp.bfloat16)

    # mu1 || sc1 fused into a single (512, 256) matmul (+ReLU).
    h = jnp.dot(zb, m1w_ref[...], preferred_element_type=jnp.float32)
    h = jnp.maximum(h + m1b_ref[...], 0.0)                 # (TB, 256)

    # mu2 / sc2 as a block-diagonal (256, 2) matmul (+ReLU).
    g = jnp.dot(h.astype(jnp.bfloat16), m2w_ref[...],
                preferred_element_type=jnp.float32)
    g = jnp.maximum(g + m2b_ref[...], 0.0)                 # (TB, 2)
    mu = g[:, 0:1]
    sc = g[:, 1:2]
    mu_ref[...] = mu
    sc_ref[...] = sc

    # LevySampler epilogue.
    mu_c = jnp.clip(mu, 1.0, 10.0)
    sc_c = jnp.clip(sc, 1e-5, 100.0)
    n_new = mu_c + sc_c * noise_ref[...]
    n_prev = nprev_ref[...]
    n_out = jnp.where(n_prev > 0.0, n_prev, n_new)
    n_ref[...] = n_out

    # q head on [z, n_out]: split weight so no in-kernel concat is needed.
    q = jnp.dot(zb, qzw_ref[...], preferred_element_type=jnp.float32)
    q_ref[...] = q + n_out * qnw_ref[...] + qb_ref[...]


def pallas_head(z_flat, kp, noise, n_prev, num_actions):
    """Fused fc + levy_mu/scale heads + LevySampler + q head. One launch."""
    B, K = z_flat.shape
    assert K == 3136
    tb = min(256, _round_up(B, 8))
    bp = _round_up(B, tb)
    if bp != B:
        pad = ((0, bp - B), (0, 0))
        z_flat = jnp.pad(z_flat, pad)
        noise = jnp.pad(noise, pad)
        n_prev = jnp.pad(n_prev, pad)

    def full(shape):
        return pl.BlockSpec(shape, lambda i: (0, 0))

    def row(ncols):
        return pl.BlockSpec((tb, ncols), lambda i: (i, 0))

    out_shape = (
        jax.ShapeDtypeStruct((bp, num_actions), jnp.float32),   # q
        jax.ShapeDtypeStruct((bp, 512), jnp.float32),           # z (pre-cat)
        jax.ShapeDtypeStruct((bp, 1), jnp.float32),             # n_out
        jax.ShapeDtypeStruct((bp, 1), jnp.float32),             # mu
        jax.ShapeDtypeStruct((bp, 1), jnp.float32),             # scale
    )
    q, z512, n_out, mu, scale = pl.pallas_call(
        _head_kernel,
        out_shape=out_shape,
        grid=(bp // tb,),
        in_specs=[
            row(3136),
            full((3136, 512)), full((1, 512)),
            full((512, 256)), full((1, 256)),
            full((256, 2)), full((1, 2)),
            full((512, num_actions)), full((1, num_actions)),
            full((1, num_actions)),
            row(1), row(1),
        ],
        out_specs=(row(num_actions), row(512), row(1), row(1), row(1)),
        compiler_params=pltpu.CompilerParams(
            dimension_semantics=("parallel",)),
    )(z_flat, kp["fc_w"], kp["fc_b"],
      kp["musc1_w"], kp["musc1_b"], kp["musc2_w"], kp["musc2_b"],
      kp["qz_w"], kp["qn_w"], kp["q_b"],
      noise, n_prev)
    if bp != B:
        q, z512, n_out, mu, scale = (a[:B] for a in (q, z512, n_out, mu, scale))
    return q, z512, n_out, mu, scale


# ----------------------------------------------------------------------------
# Conv2d = NHWC im2col (XLA layout glue) + tiled Pallas matmul kernel
# ----------------------------------------------------------------------------
def _im2col_nhwc(x, kh, kw, stride):
    B, H, W, C = x.shape
    Ho = (H - kh) // stride + 1
    Wo = (W - kw) // stride + 1
    taps = []
    for i in range(kh):
        for j in range(kw):
            taps.append(x[:, i:i + stride * Ho:stride,
                          j:j + stride * Wo:stride, :])       # (B,Ho,Wo,C)
    p = jnp.stack(taps, axis=3)                               # (B,Ho,Wo,kh*kw,C)
    return p.reshape(B * Ho * Wo, kh * kw * C), Ho, Wo


def conv2d_nhwc(x, w_mat, b, kh, kw, stride, *, out_dtype=jnp.bfloat16):
    """x: (B,H,W,C) NHWC; w_mat: (kh*kw*C, Co) pre-packed; b: (Co,)."""
    B = x.shape[0]
    patches, Ho, Wo = _im2col_nhwc(x, kh, kw, stride)
    Co = w_mat.shape[1]
    y = pallas_linear_tiled(patches, w_mat, b, relu=True, out_dtype=out_dtype)
    return y.reshape(B, Ho, Wo, Co)


# ----------------------------------------------------------------------------
# Parameters: PyTorch-layout synthetic init + one-time conversion to the
# kernel layout (pre-transposed, NHWC flatten order, bf16, 1/255 folded).
# ----------------------------------------------------------------------------
def init_params(key):
    ks = jax.random.split(key, 18)

    def rnd(k, shape, scale=0.05):
        return (scale * jax.random.normal(k, shape)).astype(jnp.float32)

    return {
        "conv1_w": rnd(ks[0], (32, FRAMES, 8, 8)),
        "conv1_b": rnd(ks[1], (32,)),
        "conv2_w": rnd(ks[2], (64, 32, 4, 4)),
        "conv2_b": rnd(ks[3], (64,)),
        "conv3_w": rnd(ks[4], (64, 64, 3, 3)),
        "conv3_b": rnd(ks[5], (64,)),
        "fc_w":    rnd(ks[6], (512, 3136), 0.02),   # nn.Linear(3136, 512)
        "fc_b":    rnd(ks[7], (512,)),
        "q_w":     rnd(ks[8], (NUM_ACTIONS, 512 + 1)),
        "q_b":     rnd(ks[9], (NUM_ACTIONS,)),
        "mu1_w":   rnd(ks[10], (128, 512)),
        "mu1_b":   rnd(ks[11], (128,)),
        "mu2_w":   rnd(ks[12], (1, 128)),
        "mu2_b":   rnd(ks[13], (1,)),
        "sc1_w":   rnd(ks[14], (128, 512)),
        "sc1_b":   rnd(ks[15], (128,)),
        "sc2_w":   rnd(ks[16], (1, 128)),
        "sc2_b":   rnd(ks[17], (1,)),
    }


def prepare_params(p, num_actions=NUM_ACTIONS):
    f32, bf16 = jnp.float32, jnp.bfloat16

    def conv_mat(w):  # (Co,Ci,kh,kw) -> (kh*kw*Ci, Co), matches _im2col_nhwc
        Co, Ci, kh, kw = w.shape
        return jnp.transpose(w, (2, 3, 1, 0)).reshape(kh * kw * Ci, Co)

    # fc weight: PyTorch flatten is NCHW (c*49 + h*7 + w); our activations are
    # NHWC, flatten ((h*7 + w)*64 + c) -> permute once here.
    fc_w = (p["fc_w"].reshape(512, 64, 7, 7)
            .transpose(2, 3, 1, 0).reshape(3136, 512))

    # mu/scale heads: first layers concatenated, second layers block-diagonal.
    musc1_w = jnp.concatenate([p["mu1_w"].T, p["sc1_w"].T], axis=1)   # (512,256)
    musc1_b = jnp.concatenate([p["mu1_b"], p["sc1_b"]])               # (256,)
    z128 = jnp.zeros((128, 1), f32)
    musc2_w = jnp.concatenate([
        jnp.concatenate([p["mu2_w"].T, z128], axis=1),                # (128,2)
        jnp.concatenate([z128, p["sc2_w"].T], axis=1),                # (128,2)
    ], axis=0)                                                        # (256,2)
    musc2_b = jnp.concatenate([p["mu2_b"], p["sc2_b"]])               # (2,)

    q_w = p["q_w"].T                                                  # (513,NA)

    return {
        # Scale(1/255) folded into conv1 weights.
        "conv1_w": conv_mat(p["conv1_w"] / 255.0).astype(bf16),
        "conv1_b": p["conv1_b"].astype(f32),
        "conv2_w": conv_mat(p["conv2_w"]).astype(bf16),
        "conv2_b": p["conv2_b"].astype(f32),
        "conv3_w": conv_mat(p["conv3_w"]).astype(bf16),
        "conv3_b": p["conv3_b"].astype(f32),
        "fc_w":    fc_w.astype(bf16),
        "fc_b":    p["fc_b"].reshape(1, 512).astype(f32),
        "musc1_w": musc1_w.astype(bf16),
        "musc1_b": musc1_b.reshape(1, 256).astype(f32),
        "musc2_w": musc2_w.astype(bf16),
        "musc2_b": musc2_b.reshape(1, 2).astype(f32),
        "qz_w":    q_w[:512].astype(bf16),
        "qn_w":    q_w[512:513].astype(f32),            # (1, NA), weight of n_out
        "q_b":     p["q_b"].reshape(1, num_actions).astype(f32),
    }


# ----------------------------------------------------------------------------
# Forward pass (matches QNetworkGuidedLevy.forward semantics)
# ----------------------------------------------------------------------------
def qnetwork_forward(kp, x, n_prev, noise):
    # x arrives NCHW (PyTorch contract); convert once to NHWC and bf16.
    x = jnp.transpose(x, (0, 2, 3, 1)).astype(jnp.bfloat16)          # (B,84,84,4)

    # embedding: (Scale folded) conv8s4 -> conv4s2 -> conv3s1, NHWC throughout.
    z = conv2d_nhwc(x, kp["conv1_w"], kp["conv1_b"], 8, 8, 4)        # (B,20,20,32)
    z = conv2d_nhwc(z, kp["conv2_w"], kp["conv2_b"], 4, 4, 2)        # (B,9,9,64)
    z = conv2d_nhwc(z, kp["conv3_w"], kp["conv3_b"], 3, 3, 1)        # (B,7,7,64)

    B = x.shape[0]
    z_flat = z.reshape(B, 7 * 7 * 64)                                # NHWC flatten

    # fused head: fc512 + levy heads + sampler + q head in one Pallas kernel.
    q, z512, n_out, mu, scale = pallas_head(z_flat, kp, noise, n_prev,
                                            NUM_ACTIONS)
    z_cat = jnp.concatenate([z512, n_out], axis=1)                   # (B, 513)
    return q, z_cat, n_out, mu, scale


# ----------------------------------------------------------------------------
if __name__ == "__main__":
    key = jax.random.PRNGKey(0)
    pkey, xkey, ukey = jax.random.split(key, 3)

    params = prepare_params(init_params(pkey))

    # Small batch; spatial must be 84x84 so Flatten yields 3136 features.
    B = 2
    x = jax.random.uniform(xkey, (B, FRAMES, 84, 84), dtype=jnp.float32,
                           minval=0.0, maxval=255.0)      # raw uint8-like frames
    n_prev = jnp.array([[0.0], [3.0]], dtype=jnp.float32)

    # TODO(synk): LevySampler draws noise with host-side numpy RNG
    # (norm.ppf(1 - rand())**-2); reproduced here deterministically with
    # jax.random in the wrapper and passed into the kernel.
    u = jax.random.uniform(ukey, (B,), dtype=jnp.float32,
                           minval=1e-6, maxval=1.0 - 1e-6)
    noise = (jnorm.ppf(1.0 - u) ** (-2)).reshape(B, 1).astype(jnp.float32)

    fwd = jax.jit(qnetwork_forward)
    q, z, n_out, mu, scale = fwd(params, x, n_prev, noise)
    jax.block_until_ready((q, z, n_out, mu, scale))

    assert q.shape == (B, NUM_ACTIONS)
    assert z.shape == (B, 513)
    assert n_out.shape == (B, 1) and mu.shape == (B, 1) and scale.shape == (B, 1)
    print("KERNEL_OK")
</pallas_src>

<mosaic_0001>
module attributes {stable_mosaic.version = 11 : i64} {
  func.func @_matmul_bias_relu_kernel(%arg0: i32, %arg1: memref<400x256xbf16, #tpu.memory_space<vmem>>, %arg2: memref<256x32xbf16, #tpu.memory_space<vmem>>, %arg3: memref<1x32xf32, #tpu.memory_space<vmem>>, %arg4: memref<400x32xbf16, #tpu.memory_space<vmem>>) attributes {dimension_semantics = [#tpu.dimension_semantics<parallel>], iteration_bounds = array<i64: 2>, scalar_prefetch = 0 : i64, scratch_operands = 0 : i64, tpu.core_type = #tpu.core_type<tc>, window_params = [{transform_indices = @transform_0, window_bounds = array<i64: 400, 256>}, {pipeline_mode = #tpu.pipeline_mode<synchronous>, transform_indices = @transform_1, window_bounds = array<i64: 256, 32>}, {pipeline_mode = #tpu.pipeline_mode<synchronous>, transform_indices = @transform_2, window_bounds = array<i64: 1, 32>}, {transform_indices = @transform_3, window_bounds = array<i64: 400, 32>}]} {
    %c0 = arith.constant 0 : index
    %c0_0 = arith.constant 0 : index
    %0 = vector.load %arg1[%c0, %c0_0] : memref<400x256xbf16, #tpu.memory_space<vmem>>, vector<400x256xbf16>
    %c0_1 = arith.constant 0 : index
    %c0_2 = arith.constant 0 : index
    %1 = vector.load %arg2[%c0_1, %c0_2] : memref<256x32xbf16, #tpu.memory_space<vmem>>, vector<256x32xbf16>
    %cst = arith.constant dense<0.000000e+00> : vector<400x32xf32>
    %2 = tpu.matmul %0, %1, %cst {dimension_numbers = #tpu.dot_dimension_numbers<[1], [0], [0], [1], [0, 0, 1, 1], [], []>} : vector<400x256xbf16>, vector<256x32xbf16>, vector<400x32xf32> -> vector<400x32xf32>
    %c0_3 = arith.constant 0 : index
    %c0_4 = arith.constant 0 : index
    %3 = vector.load %arg3[%c0_3, %c0_4] : memref<1x32xf32, #tpu.memory_space<vmem>>, vector<1x32xf32>
    %4 = vector.broadcast %3 : vector<1x32xf32> to vector<400x32xf32>
    %5 = arith.addf %2, %4 : vector<400x32xf32>
    %cst_5 = arith.constant 0.000000e+00 : f32
    %6 = vector.broadcast %cst_5 : f32 to vector<400x32xf32>
    %7 = arith.maximumf %5, %6 : vector<400x32xf32>
    %8 = arith.truncf %7 : vector<400x32xf32> to vector<400x32xbf16>
    %c0_6 = arith.constant 0 : index
    %c0_7 = arith.constant 0 : index
    %9 = vector.load %arg4[%c0_6, %c0_7] : memref<400x32xbf16, #tpu.memory_space<vmem>>, vector<400x32xbf16>
    tpu.vector_store %arg4[%c0_6, %c0_7], %8 {strides = array<i32>} : memref<400x32xbf16, #tpu.memory_space<vmem>>, vector<400x32xbf16>,
    return
  }
  func.func @transform_0(%arg0: i32) -> (i32, i32) {
    %c0_i32 = arith.constant 0 : i32
    %c0_i32_0 = arith.constant 0 : i32
    return %arg0, %c0_i32 : i32, i32
  }
  func.func @transform_1(%arg0: i32) -> (i32, i32) {
    %c0_i32 = arith.constant 0 : i32
    %c0_i32_0 = arith.constant 0 : i32
    %c0_i32_1 = arith.constant 0 : i32
    return %c0_i32, %c0_i32_0 : i32, i32
  }
  func.func @transform_2(%arg0: i32) -> (i32, i32) {
    %c0_i32 = arith.constant 0 : i32
    %c0_i32_0 = arith.constant 0 : i32
    %c0_i32_1 = arith.constant 0 : i32
    return %c0_i32, %c0_i32_0 : i32, i32
  }
  func.func @transform_3(%arg0: i32) -> (i32, i32) {
    %c0_i32 = arith.constant 0 : i32
    %c0_i32_0 = arith.constant 0 : i32
    return %arg0, %c0_i32 : i32, i32
  }
}

module attributes {stable_mosaic.version = 11 : i64} {
  func.func @_matmul_bias_relu_kernel(%arg0: i32, %arg1: memref<168x512xbf16, #tpu.memory_space<vmem>>, %arg2: memref<512x64xbf16, #tpu.memory_space<vmem>>, %arg3: memref<1x64xf32, #tpu.memory_space<vmem>>, %arg4: memref<168x64xbf16, #tpu.memory_space<vmem>>) attributes {dimension_semantics = [#tpu.dimension_semantics<parallel>], iteration_bounds = array<i64: 1>, scalar_prefetch = 0 : i64, scratch_operands = 0 : i64, tpu.core_type = #tpu.core_type<tc>, window_params = [{transform_indices = @transform_0, window_bounds = array<i64: 168, 512>}, {pipeline_mode = #tpu.pipeline_mode<synchronous>, transform_indices = @transform_1, window_bounds = array<i64: 512, 64>}, {pipeline_mode = #tpu.pipeline_mode<synchronous>, transform_indices = @transform_2, window_bounds = array<i64: 1, 64>}, {transform_indices = @transform_3, window_bounds = array<i64: 168, 64>}]} {
    %c0 = arith.constant 0 : index
    %c0_0 = arith.constant 0 : index
    %0 = vector.load %arg1[%c0, %c0_0] : memref<168x512xbf16, #tpu.memory_space<vmem>>, vector<168x512xbf16>
    %c0_1 = arith.constant 0 : index
    %c0_2 = arith.constant 0 : index
    %1 = vector.load %arg2[%c0_1, %c0_2] : memref<512x64xbf16, #tpu.memory_space<vmem>>, vector<512x64xbf16>
    %cst = arith.constant dense<0.000000e+00> : vector<168x64xf32>
    %2 = tpu.matmul %0, %1, %cst {dimension_numbers = #tpu.dot_dimension_numbers<[1], [0], [0], [1], [0, 0, 1, 1], [], []>} : vector<168x512xbf16>, vector<512x64xbf16>, vector<168x64xf32> -> vector<168x64xf32>
    %c0_3 = arith.constant 0 : index
    %c0_4 = arith.constant 0 : index
    %3 = vector.load %arg3[%c0_3, %c0_4] : memref<1x64xf32, #tpu.memory_space<vmem>>, vector<1x64xf32>
    %4 = vector.broadcast %3 : vector<1x64xf32> to vector<168x64xf32>
    %5 = arith.addf %2, %4 : vector<168x64xf32>
    %cst_5 = arith.constant 0.000000e+00 : f32
    %6 = vector.broadcast %cst_5 : f32 to vector<168x64xf32>
    %7 = arith.maximumf %5, %6 : vector<168x64xf32>
    %8 = arith.truncf %7 : vector<168x64xf32> to vector<168x64xbf16>
    %c0_6 = arith.constant 0 : index
    %c0_7 = arith.constant 0 : index
    %9 = vector.load %arg4[%c0_6, %c0_7] : memref<168x64xbf16, #tpu.memory_space<vmem>>, vector<168x64xbf16>
    tpu.vector_store %arg4[%c0_6, %c0_7], %8 {strides = array<i32>} : memref<168x64xbf16, #tpu.memory_space<vmem>>, vector<168x64xbf16>,
    return
  }
  func.func @transform_0(%arg0: i32) -> (i32, i32) {
    %c0_i32 = arith.constant 0 : i32
    %c0_i32_0 = arith.constant 0 : i32
    return %arg0, %c0_i32 : i32, i32
  }
  func.func @transform_1(%arg0: i32) -> (i32, i32) {
    %c0_i32 = arith.constant 0 : i32
    %c0_i32_0 = arith.constant 0 : i32
    %c0_i32_1 = arith.constant 0 : i32
    return %c0_i32, %c0_i32_0 : i32, i32
  }
  func.func @transform_2(%arg0: i32) -> (i32, i32) {
    %c0_i32 = arith.constant 0 : i32
    %c0_i32_0 = arith.constant 0 : i32
    %c0_i32_1 = arith.constant 0 : i32
    return %c0_i32, %c0_i32_0 : i32, i32
  }
  func.func @transform_3(%arg0: i32) -> (i32, i32) {
    %c0_i32 = arith.constant 0 : i32
    %c0_i32_0 = arith.constant 0 : i32
    return %arg0, %c0_i32 : i32, i32
  }
}

module attributes {stable_mosaic.version = 11 : i64} {
  func.func @_matmul_bias_relu_kernel(%arg0: i32, %arg1: memref<104x576xbf16, #tpu.memory_space<vmem>>, %arg2: memref<576x64xbf16, #tpu.memory_space<vmem>>, %arg3: memref<1x64xf32, #tpu.memory_space<vmem>>, %arg4: memref<104x64xbf16, #tpu.memory_space<vmem>>) attributes {dimension_semantics = [#tpu.dimension_semantics<parallel>], iteration_bounds = array<i64: 1>, scalar_prefetch = 0 : i64, scratch_operands = 0 : i64, tpu.core_type = #tpu.core_type<tc>, window_params = [{transform_indices = @transform_0, window_bounds = array<i64: 104, 576>}, {pipeline_mode = #tpu.pipeline_mode<synchronous>, transform_indices = @transform_1, window_bounds = array<i64: 576, 64>}, {pipeline_mode = #tpu.pipeline_mode<synchronous>, transform_indices = @transform_2, window_bounds = array<i64: 1, 64>}, {transform_indices = @transform_3, window_bounds = array<i64: 104, 64>}]} {
    %c0 = arith.constant 0 : index
    %c0_0 = arith.constant 0 : index
    %0 = vector.load %arg1[%c0, %c0_0] : memref<104x576xbf16, #tpu.memory_space<vmem>>, vector<104x576xbf16>
    %c0_1 = arith.constant 0 : index
    %c0_2 = arith.constant 0 : index
    %1 = vector.load %arg2[%c0_1, %c0_2] : memref<576x64xbf16, #tpu.memory_space<vmem>>, vector<576x64xbf16>
    %cst = arith.constant dense<0.000000e+00> : vector<104x64xf32>
    %2 = tpu.matmul %0, %1, %cst {dimension_numbers = #tpu.dot_dimension_numbers<[1], [0], [0], [1], [0, 0, 1, 1], [], []>} : vector<104x576xbf16>, vector<576x64xbf16>, vector<104x64xf32> -> vector<104x64xf32>
    %c0_3 = arith.constant 0 : index
    %c0_4 = arith.constant 0 : index
    %3 = vector.load %arg3[%c0_3, %c0_4] : memref<1x64xf32, #tpu.memory_space<vmem>>, vector<1x64xf32>
    %4 = vector.broadcast %3 : vector<1x64xf32> to vector<104x64xf32>
    %5 = arith.addf %2, %4 : vector<104x64xf32>
    %cst_5 = arith.constant 0.000000e+00 : f32
    %6 = vector.broadcast %cst_5 : f32 to vector<104x64xf32>
    %7 = arith.maximumf %5, %6 : vector<104x64xf32>
    %8 = arith.truncf %7 : vector<104x64xf32> to vector<104x64xbf16>
    %c0_6 = arith.constant 0 : index
    %c0_7 = arith.constant 0 : index
    %9 = vector.load %arg4[%c0_6, %c0_7] : memref<104x64xbf16, #tpu.memory_space<vmem>>, vector<104x64xbf16>
    tpu.vector_store %arg4[%c0_6, %c0_7], %8 {strides = array<i32>} : memref<104x64xbf16, #tpu.memory_space<vmem>>, vector<104x64xbf16>,
    return
  }
  func.func @transform_0(%arg0: i32) -> (i32, i32) {
    %c0_i32 = arith.constant 0 : i32
    %c0_i32_0 = arith.constant 0 : i32
    return %arg0, %c0_i32 : i32, i32
  }
  func.func @transform_1(%arg0: i32) -> (i32, i32) {
    %c0_i32 = arith.constant 0 : i32
    %c0_i32_0 = arith.constant 0 : i32
    %c0_i32_1 = arith.constant 0 : i32
    return %c0_i32, %c0_i32_0 : i32, i32
  }
  func.func @transform_2(%arg0: i32) -> (i32, i32) {
    %c0_i32 = arith.constant 0 : i32
    %c0_i32_0 = arith.constant 0 : i32
    %c0_i32_1 = arith.constant 0 : i32
    return %c0_i32, %c0_i32_0 : i32, i32
  }
  func.func @transform_3(%arg0: i32) -> (i32, i32) {
    %c0_i32 = arith.constant 0 : i32
    %c0_i32_0 = arith.constant 0 : i32
    return %arg0, %c0_i32 : i32, i32
  }
}

module attributes {stable_mosaic.version = 11 : i64} {
  func.func @_head_kernel(%arg0: i32, %arg1: memref<8x3136xbf16, #tpu.memory_space<vmem>>, %arg2: memref<3136x512xbf16, #tpu.memory_space<vmem>>, %arg3: memref<1x512xf32, #tpu.memory_space<vmem>>, %arg4: memref<512x256xbf16, #tpu.memory_space<vmem>>, %arg5: memref<1x256xf32, #tpu.memory_space<vmem>>, %arg6: memref<256x2xbf16, #tpu.memory_space<vmem>>, %arg7: memref<1x2xf32, #tpu.memory_space<vmem>>, %arg8: memref<512x6xbf16, #tpu.memory_space<vmem>>, %arg9: memref<1x6xf32, #tpu.memory_space<vmem>>, %arg10: memref<1x6xf32, #tpu.memory_space<vmem>>, %arg11: memref<8x1xf32, #tpu.memory_space<vmem>>, %arg12: memref<8x1xf32, #tpu.memory_space<vmem>>, %arg13: memref<8x6xf32, #tpu.memory_space<vmem>>, %arg14: memref<8x512xf32, #tpu.memory_space<vmem>>, %arg15: memref<8x1xf32, #tpu.memory_space<vmem>>, %arg16: memref<8x1xf32, #tpu.memory_space<vmem>>, %arg17: memref<8x1xf32, #tpu.memory_space<vmem>>) attributes {dimension_semantics = [#tpu.dimension_semantics<parallel>], iteration_bounds = array<i64: 1>, scalar_prefetch = 0 : i64, scratch_operands = 0 : i64, tpu.core_type = #tpu.core_type<tc>, window_params = [{transform_indices = @transform_0, window_bounds = array<i64: 8, 3136>}, {pipeline_mode = #tpu.pipeline_mode<synchronous>, transform_indices = @transform_1, window_bounds = array<i64: 3136, 512>}, {pipeline_mode = #tpu.pipeline_mode<synchronous>, transform_indices = @transform_2, window_bounds = array<i64: 1, 512>}, {pipeline_mode = #tpu.pipeline_mode<synchronous>, transform_indices = @transform_3, window_bounds = array<i64: 512, 256>}, {pipeline_mode = #tpu.pipeline_mode<synchronous>, transform_indices = @transform_4, window_bounds = array<i64: 1, 256>}, {pipeline_mode = #tpu.pipeline_mode<synchronous>, transform_indices = @transform_5, window_bounds = array<i64: 256, 2>}, {pipeline_mode = #tpu.pipeline_mode<synchronous>, transform_indices = @transform_6, window_bounds = array<i64: 1, 2>}, {pipeline_mode = #tpu.pipeline_mode<synchronous>, transform_indices = @transform_7, window_bounds = array<i64: 512, 6>}, {pipeline_mode = #tpu.pipeline_mode<synchronous>, transform_indices = @transform_8, window_bounds = array<i64: 1, 6>}, {pipeline_mode = #tpu.pipeline_mode<synchronous>, transform_indices = @transform_9, window_bounds = array<i64: 1, 6>}, {transform_indices = @transform_10, window_bounds = array<i64: 8, 1>}, {transform_indices = @transform_11, window_bounds = array<i64: 8, 1>}, {transform_indices = @transform_12, window_bounds = array<i64: 8, 6>}, {transform_indices = @transform_13, window_bounds = array<i64: 8, 512>}, {transform_indices = @transform_14, window_bounds = array<i64: 8, 1>}, {transform_indices = @transform_15, window_bounds = array<i64: 8, 1>}, {transform_indices = @transform_16, window_bounds = array<i64: 8, 1>}]} {
    %c0 = arith.constant 0 : index
    %c0_0 = arith.constant 0 : index
    %0 = vector.load %arg1[%c0, %c0_0] : memref<8x3136xbf16, #tpu.memory_space<vmem>>, vector<8x3136xbf16>
    %c0_1 = arith.constant 0 : index
    %c0_2 = arith.constant 0 : index
    %1 = vector.load %arg2[%c0_1, %c0_2] : memref<3136x512xbf16, #tpu.memory_space<vmem>>, vector<3136x512xbf16>
    %cst = arith.constant dense<0.000000e+00> : vector<8x512xf32>
    %2 = tpu.matmul %0, %1, %cst {dimension_numbers = #tpu.dot_dimension_numbers<[1], [0], [0], [1], [0, 0, 1, 1], [], []>} : vector<8x3136xbf16>, vector<3136x512xbf16>, vector<8x512xf32> -> vector<8x512xf32>
    %c0_3 = arith.constant 0 : index
    %c0_4 = arith.constant 0 : index
    %3 = vector.load %arg3[%c0_3, %c0_4] : memref<1x512xf32, #tpu.memory_space<vmem>>, vector<1x512xf32>
    %4 = vector.broadcast %3 : vector<1x512xf32> to vector<8x512xf32>
    %5 = arith.addf %2, %4 : vector<8x512xf32>
    %cst_5 = arith.constant 0.000000e+00 : f32
    %6 = vector.broadcast %cst_5 : f32 to vector<8x512xf32>
    %7 = arith.maximumf %5, %6 : vector<8x512xf32>
    %c0_6 = arith.constant 0 : index
    %c0_7 = arith.constant 0 : index
    %8 = vector.load %arg14[%c0_6, %c0_7] : memref<8x512xf32, #tpu.memory_space<vmem>>, vector<8x512xf32>
    tpu.vector_store %arg14[%c0_6, %c0_7], %7 {strides = array<i32>} : memref<8x512xf32, #tpu.memory_space<vmem>>, vector<8x512xf32>,
    %9 = arith.truncf %7 : vector<8x512xf32> to vector<8x512xbf16>
    %c0_8 = arith.constant 0 : index
    %c0_9 = arith.constant 0 : index
    %10 = vector.load %arg4[%c0_8, %c0_9] : memref<512x256xbf16, #tpu.memory_space<vmem>>, vector<512x256xbf16>
    %cst_10 = arith.constant dense<0.000000e+00> : vector<8x256xf32>
    %11 = tpu.matmul %9, %10, %cst_10 {dimension_numbers = #tpu.dot_dimension_numbers<[1], [0], [0], [1], [0, 0, 1, 1], [], []>} : vector<8x512xbf16>, vector<512x256xbf16>, vector<8x256xf32> -> vector<8x256xf32>
    %c0_11 = arith.constant 0 : index
    %c0_12 = arith.constant 0 : index
    %12 = vector.load %arg5[%c0_11, %c0_12] : memref<1x256xf32, #tpu.memory_space<vmem>>, vector<1x256xf32>
    %13 = vector.broadcast %12 : vector<1x256xf32> to vector<8x256xf32>
    %14 = arith.addf %11, %13 : vector<8x256xf32>
    %cst_13 = arith.constant 0.000000e+00 : f32
    %15 = vector.broadcast %cst_13 : f32 to vector<8x256xf32>
    %16 = arith.maximumf %14, %15 : vector<8x256xf32>
    %17 = arith.truncf %16 : vector<8x256xf32> to vector<8x256xbf16>
    %c0_14 = arith.constant 0 : index
    %c0_15 = arith.constant 0 : index
    %18 = vector.load %arg6[%c0_14, %c0_15] : memref<256x2xbf16, #tpu.memory_space<vmem>>, vector<256x2xbf16>
    %cst_16 = arith.constant dense<0.000000e+00> : vector<8x2xf32>
    %19 = tpu.matmul %17, %18, %cst_16 {dimension_numbers = #tpu.dot_dimension_numbers<[1], [0], [0], [1], [0, 0, 1, 1], [], []>} : vector<8x256xbf16>, vector<256x2xbf16>, vector<8x2xf32> -> vector<8x2xf32>
    %c0_17 = arith.constant 0 : index
    %c0_18 = arith.constant 0 : index
    %20 = vector.load %arg7[%c0_17, %c0_18] : memref<1x2xf32, #tpu.memory_space<vmem>>, vector<1x2xf32>
    %21 = vector.broadcast %20 : vector<1x2xf32> to vector<8x2xf32>
    %22 = arith.addf %19, %21 : vector<8x2xf32>
    %cst_19 = arith.constant 0.000000e+00 : f32
    %23 = vector.broadcast %cst_19 : f32 to vector<8x2xf32>
    %24 = arith.maximumf %22, %23 : vector<8x2xf32>
    %25 = vector.extract_strided_slice %24 {offsets = [0, 0], sizes = [8, 1], strides = [1, 1]} : vector<8x2xf32> to vector<8x1xf32>
    %26 = vector.extract_strided_slice %24 {offsets = [0, 1], sizes = [8, 1], strides = [1, 1]} : vector<8x2xf32> to vector<8x1xf32>
    %c0_20 = arith.constant 0 : index
    %c0_21 = arith.constant 0 : index
    %27 = vector.load %arg16[%c0_20, %c0_21] : memref<8x1xf32, #tpu.memory_space<vmem>>, vector<8x1xf32>
    tpu.vector_store %arg16[%c0_20, %c0_21], %25 {strides = array<i32>} : memref<8x1xf32, #tpu.memory_space<vmem>>, vector<8x1xf32>,
    %c0_22 = arith.constant 0 : index
    %c0_23 = arith.constant 0 : index
    %28 = vector.load %arg17[%c0_22, %c0_23] : memref<8x1xf32, #tpu.memory_space<vmem>>, vector<8x1xf32>
    tpu.vector_store %arg17[%c0_22, %c0_23], %26 {strides = array<i32>} : memref<8x1xf32, #tpu.memory_space<vmem>>, vector<8x1xf32>,
    %cst_24 = arith.constant 1.000000e+00 : f32
    %cst_25 = arith.constant 1.000000e+01 : f32
    %29 = vector.broadcast %cst_24 : f32 to vector<8x1xf32>
    %30 = arith.maximumf %29, %25 : vector<8x1xf32>
    %31 = vector.broadcast %cst_25 : f32 to vector<8x1xf32>
    %32 = arith.minimumf %31, %30 : vector<8x1xf32>
    %cst_26 = arith.constant 9.99999974E-6 : f32
    %cst_27 = arith.constant 1.000000e+02 : f32
    %33 = vector.broadcast %cst_26 : f32 to vector<8x1xf32>
    %34 = arith.maximumf %33, %26 : vector<8x1xf32>
    %35 = vector.broadcast %cst_27 : f32 to vector<8x1xf32>
    %36 = arith.minimumf %35, %34 : vector<8x1xf32>
    %c0_28 = arith.constant 0 : index
    %c0_29 = arith.constant 0 : index
    %37 = vector.load %arg11[%c0_28, %c0_29] : memref<8x1xf32, #tpu.memory_space<vmem>>, vector<8x1xf32>
    %38 = arith.mulf %36, %37 : vector<8x1xf32>
    %39 = arith.addf %32, %38 : vector<8x1xf32>
    %c0_30 = arith.constant 0 : index
    %c0_31 = arith.constant 0 : index
    %40 = vector.load %arg12[%c0_30, %c0_31] : memref<8x1xf32, #tpu.memory_space<vmem>>, vector<8x1xf32>
    %cst_32 = arith.constant 0.000000e+00 : f32
    %41 = vector.broadcast %cst_32 : f32 to vector<8x1xf32>
    %42 = arith.cmpf ogt, %40, %41 : vector<8x1xf32>
    %43 = arith.select %42, %40, %39 : vector<8x1xi1>, vector<8x1xf32>
    %c0_33 = arith.constant 0 : index
    %c0_34 = arith.constant 0 : index
    %44 = vector.load %arg15[%c0_33, %c0_34] : memref<8x1xf32, #tpu.memory_space<vmem>>, vector<8x1xf32>
    tpu.vector_store %arg15[%c0_33, %c0_34], %43 {strides = array<i32>} : memref<8x1xf32, #tpu.memory_space<vmem>>, vector<8x1xf32>,
    %c0_35 = arith.constant 0 : index
    %c0_36 = arith.constant 0 : index
    %45 = vector.load %arg8[%c0_35, %c0_36] : memref<512x6xbf16, #tpu.memory_space<vmem>>, vector<512x6xbf16>
    %cst_37 = arith.constant dense<0.000000e+00> : vector<8x6xf32>
    %46 = tpu.matmul %9, %45, %cst_37 {dimension_numbers = #tpu.dot_dimension_numbers<[1], [0], [0], [1], [0, 0, 1, 1], [], []>} : vector<8x512xbf16>, vector<512x6xbf16>, vector<8x6xf32> -> vector<8x6xf32>
    %c0_38 = arith.constant 0 : index
    %c0_39 = arith.constant 0 : index
    %47 = vector.load %arg9[%c0_38, %c0_39] : memref<1x6xf32, #tpu.memory_space<vmem>>, vector<1x6xf32>
    %48 = vector.broadcast %43 : vector<8x1xf32> to vector<8x6xf32>
    %49 = vector.broadcast %47 : vector<1x6xf32> to vector<8x6xf32>
    %50 = arith.mulf %48, %49 : vector<8x6xf32>
    %51 = arith.addf %46, %50 : vector<8x6xf32>
    %c0_40 = arith.constant 0 : index
    %c0_41 = arith.constant 0 : index
    %52 = vector.load %arg10[%c0_40, %c0_41] : memref<1x6xf32, #tpu.memory_space<vmem>>, vector<1x6xf32>
    %53 = vector.broadcast %52 : vector<1x6xf32> to vector<8x6xf32>
    %54 = arith.addf %51, %53 : vector<8x6xf32>
    %c0_42 = arith.constant 0 : index
    %c0_43 = arith.constant 0 : index
    %55 = vector.load %arg13[%c0_42, %c0_43] : memref<8x6xf32, #tpu.memory_space<vmem>>, vector<8x6xf32>
    tpu.vector_store %arg13[%c0_42, %c0_43], %54 {strides = array<i32>} : memref<8x6xf32, #tpu.memory_space<vmem>>, vector<8x6xf32>,
    return
  }
  func.func @transform_0(%arg0: i32) -> (i32, i32) {
    %c0_i32 = arith.constant 0 : i32
    %c0_i32_0 = arith.constant 0 : i32
    return %arg0, %c0_i32 : i32, i32
  }
  func.func @transform_1(%arg0: i32) -> (i32, i32) {
    %c0_i32 = arith.constant 0 : i32
    %c0_i32_0 = arith.constant 0 : i32
    %c0_i32_1 = arith.constant 0 : i32
    return %c0_i32, %c0_i32_0 : i32, i32
  }
  func.func @transform_2(%arg0: i32) -> (i32, i32) {
    %c0_i32 = arith.constant 0 : i32
    %c0_i32_0 = arith.constant 0 : i32
    %c0_i32_1 = arith.constant 0 : i32
    return %c0_i32, %c0_i32_0 : i32, i32
  }
  func.func @transform_3(%arg0: i32) -> (i32, i32) {
    %c0_i32 = arith.constant 0 : i32
    %c0_i32_0 = arith.constant 0 : i32
    %c0_i32_1 = arith.constant 0 : i32
    return %c0_i32, %c0_i32_0 : i32, i32
  }
  func.func @transform_4(%arg0: i32) -> (i32, i32) {
    %c0_i32 = arith.constant 0 : i32
    %c0_i32_0 = arith.constant 0 : i32
    %c0_i32_1 = arith.constant 0 : i32
    return %c0_i32, %c0_i32_0 : i32, i32
  }
  func.func @transform_5(%arg0: i32) -> (i32, i32) {
    %c0_i32 = arith.constant 0 : i32
    %c0_i32_0 = arith.constant 0 : i32
    %c0_i32_1 = arith.constant 0 : i32
    return %c0_i32, %c0_i32_0 : i32, i32
  }
  func.func @transform_6(%arg0: i32) -> (i32, i32) {
    %c0_i32 = arith.constant 0 : i32
    %c0_i32_0 = arith.constant 0 : i32
    %c0_i32_1 = arith.constant 0 : i32
    return %c0_i32, %c0_i32_0 : i32, i32
  }
  func.func @transform_7(%arg0: i32) -> (i32, i32) {
    %c0_i32 = arith.constant 0 : i32
    %c0_i32_0 = arith.constant 0 : i32
    %c0_i32_1 = arith.constant 0 : i32
    return %c0_i32, %c0_i32_0 : i32, i32
  }
  func.func @transform_8(%arg0: i32) -> (i32, i32) {
    %c0_i32 = arith.constant 0 : i32
    %c0_i32_0 = arith.constant 0 : i32
    %c0_i32_1 = arith.constant 0 : i32
    return %c0_i32, %c0_i32_0 : i32, i32
  }
  func.func @transform_9(%arg0: i32) -> (i32, i32) {
    %c0_i32 = arith.constant 0 : i32
    %c0_i32_0 = arith.constant 0 : i32
    %c0_i32_1 = arith.constant 0 : i32
    return %c0_i32, %c0_i32_0 : i32, i32
  }
  func.func @transform_10(%arg0: i32) -> (i32, i32) {
    %c0_i32 = arith.constant 0 : i32
    %c0_i32_0 = arith.constant 0 : i32
    return %arg0, %c0_i32 : i32, i32
  }
  func.func @transform_11(%arg0: i32) -> (i32, i32) {
    %c0_i32 = arith.constant 0 : i32
    %c0_i32_0 = arith.constant 0 : i32
    return %arg0, %c0_i32 : i32, i32
  }
  func.func @transform_12(%arg0: i32) -> (i32, i32) {
    %c0_i32 = arith.constant 0 : i32
    %c0_i32_0 = arith.constant 0 : i32
    return %arg0, %c0_i32 : i32, i32
  }
  func.func @transform_13(%arg0: i32) -> (i32, i32) {
    %c0_i32 = arith.constant 0 : i32
    %c0_i32_0 = arith.constant 0 : i32
    return %arg0, %c0_i32 : i32, i32
  }
  func.func @transform_14(%arg0: i32) -> (i32, i32) {
    %c0_i32 = arith.constant 0 : i32
    %c0_i32_0 = arith.constant 0 : i32
    return %arg0, %c0_i32 : i32, i32
  }
  func.func @transform_15(%arg0: i32) -> (i32, i32) {
    %c0_i32 = arith.constant 0 : i32
    %c0_i32_0 = arith.constant 0 : i32
    return %arg0, %c0_i32 : i32, i32
  }
  func.func @transform_16(%arg0: i32) -> (i32, i32) {
    %c0_i32 = arith.constant 0 : i32
    %c0_i32_0 = arith.constant 0 : i32
    return %arg0, %c0_i32 : i32, i32
  }
}

</mosaic_0001>

<bundles_post_ra>
// kernel: qnetwork_forward.4
= control target key start
LH: loop header
LB: loop body
LE: loop exit
PB: predicated region body
PF: predicated region fallthrough
CT: control target
= control target key end

     0   :  { %s1542_s12 = smov 0   ;;  %s1852_s0 = inlined_call_operand.vmem [shape: bf16[800,256], index: 0, kind: input, shape index: {}]   ;;  %s1853_s1 = inlined_call_operand.vmem [shape: bf16[256,32], index: 1, kind: input, shape index: {}]   ;;  %s1854_s2 = inlined_call_operand.vmem [shape: f32[1,32], index: 2, kind: input, shape index: {}]   ;;  %s1855_s3 = inlined_call_operand.vmem [shape: bf16[800,32], index: 3, kind: output, shape index: {}]  }
   0x1 LB: > { %s1203_s13 = sadd.s32 4294967295, %s1519_s12   ;;  %p1207_p0 = scmp.ge.s32.totalorder %s1519_s12, 1  ;;  %s1519_s12 = sphi %s1542_s12, %s13_s12  }
   0x2   : > { %p139_p1 = scmp.lt.s32.totalorder %s1519_s12, 3 }
   0x4   : > { %p140_p2 = pnand %p1207_p0, %p139_p1 }
   0x5   : > { %s164_s16 = smul.u32 (!%p140_p2), 50, %s1203_s13 }
   0x6   : > { %143 = sbr.rel (%p140_p2) target bundleno = 376 (0x178), region = 32 }
   0x7   : > { %p165_p3 = scmp.lt.s32.totalorder (!%p140_p2), %s164_s16, 99 }
   0xb   : > { %v1422_v0 = vld [vmem:[%s1853_s1 + $0x38] sm:$0xff]   ;;  %v1521_v1 = vmov 0   ;;  %v1423_v2 = vld [vmem:[%s1853_s1 + $0x30] sm:$0xff]   ;;  %v1424_v3 = vld [vmem:[%s1853_s1 + $0x28] sm:$0xff]   ;;  %s1857_s16 = smov (!%p165_p3, %s164_s16), 99  ;;  %vm1096_vm0 = vcmask 257024  }
   0xc   : > { %613 = vmatprep.subr.bf16.mxu0 %v1521_v1  ;;  %1381 = vmatprep.subr.bf16.mxu1 %v1521_v1  ;;  %v1425_v4 = vld [vmem:[%s1853_s1 + $0x20] sm:$0xff]   ;;  %s1330_s23 = sshll.u32 %s1857_s16, 3  ;;  %v1426_v5 = vld [vmem:[%s1853_s1 + $0x18] sm:$0xff]   ;;  %v1427_v7 = vld [vmem:[%s1853_s1 + $0x10] sm:$0xff]   ;;  %s1210_s29 = sshll.u32 %s1857_s16, 2 }
   0xd   : > { %614 = vmatpush1.bf16.msra.mxu0 %v1422_v0  ;;  %1397 = vmatpush1.bf16.msra.mxu1 %v1422_v0  ;;  %s1579_s28 = scalar_lea.vmem %s1852_s0, %s1330_s23  ;;  %v1428_v9 = vld [vmem:[%s1853_s1 + $0x8] sm:$0xff]   ;;  %v1429_v10 = vld [vmem:[%s1853_s1] sm:$0xff]   ;;  %v1430_v11 = vld [vmem:[%s1853_s1 + $0x78] sm:$0xff]  }
   0xe   : > { %615 = vmatprep.subr.bf16.mxu0 %v1521_v1  ;;  %1382 = vmatprep.subr.bf16.mxu1 %v1521_v1  ;;  %v1440_v6 = vld [vmem:[%s1579_s28 + $0x4] ss:$8 sps:$4 sm:$0xff]   ;;  %v1443_v8 = vld [vmem:[%s1579_s28 + $0xd4] ss:$8 sps:$4 sm:$0xff]   ;;  %v1438_v19 = vld [vmem:[%s1579_s28] ss:$8 sps:$4 sm:$0xff]  }
   0xf   : > { %645 = vmatprep.mubr.bf16.mxu0 %v1440_v6  ;;  %749 = vmatprep.mubr.bf16.mxu1 %v1443_v8  ;;  %v1431_v12 = vld [vmem:[%s1853_s1 + $0x70] sm:$0xff]   ;;  %v1432_v13 = vld [vmem:[%s1853_s1 + $0x68] sm:$0xff]   ;;  %v1433_v14 = vld [vmem:[%s1853_s1 + $0x60] sm:$0xff]  }
  0x10   : > { %v1434_v15 = vld [vmem:[%s1853_s1 + $0x58] sm:$0xff]   ;;  %v1435_v16 = vld [vmem:[%s1853_s1 + $0x50] sm:$0xff]   ;;  %v1436_v17 = vld [vmem:[%s1853_s1 + $0x48] sm:$0xff]  }
  0x11   : > { %616 = vmatpush1.bf16.msra.mxu0 %v1423_v2  ;;  %1398 = vmatpush1.bf16.msra.mxu1 %v1423_v2  ;;  %v1437_v18 = vld [vmem:[%s1853_s1 + $0x40] sm:$0xff]   ;;  %v1441_v20 = vld [vmem:[%s1579_s28 + $0xd0] ss:$8 sps:$4 sm:$0xff]   ;;  %v1444_v21 = vld [vmem:[%s1579_s28 + $0x14] ss:$8 sps:$4 sm:$0xff]  }
  0x12   : > { %617 = vmatprep.subr.bf16.mxu0 %v1521_v1  ;;  %1383 = vmatprep.subr.bf16.mxu1 %v1521_v1  ;;  %v1447_v22 = vld [vmem:[%s1579_s28 + $0xe4] ss:$8 sps:$4 sm:$0xff]   ;;  %v1446_v23 = vld [vmem:[%s1579_s28 + $0x10] ss:$8 sps:$4 sm:$0xff]   ;;  %v1449_v24 = vld [vmem:[%s1579_s28 + $0xe0] ss:$8 sps:$4 sm:$0xff]  }
  0x13   : > { %v1450_v25 = vld [vmem:[%s1579_s28 + $0x24] ss:$8 sps:$4 sm:$0xff]   ;;  %v1453_v26 = vld [vmem:[%s1579_s28 + $0xf4] ss:$8 sps:$4 sm:$0xff]   ;;  %v1452_v27 = vld [vmem:[%s1579_s28 + $0x20] ss:$8 sps:$4 sm:$0xff]  }
  0x14   : > { %v1455_v28 = vld [vmem:[%s1579_s28 + $0xf0] ss:$8 sps:$4 sm:$0xff]   ;;  %v1456_v29 = vld [vmem:[%s1579_s28 + $0x34] ss:$8 sps:$4 sm:$0xff]   ;;  %v1459_v30 = vld [vmem:[%s1579_s28 + $0x104] ss:$8 sps:$4 sm:$0xff]  }
  0x15   : > { %618 = vmatpush1.bf16.msra.mxu0 %v1424_v3  ;;  %1399 = vmatpush1.bf16.msra.mxu1 %v1424_v3  ;;  %v1458_v31 = vld [vmem:[%s1579_s28 + $0x30] ss:$8 sps:$4 sm:$0xff]   ;;  %v1461_v32 = vld [vmem:[%s1579_s28 + $0x100] ss:$8 sps:$4 sm:$0xff]   ;;  %v1462_v33 = vld [vmem:[%s1579_s28 + $0x44] ss:$8 sps:$4 sm:$0xff]  }
  0x16   : > { %619 = vmatprep.subr.bf16.mxu0 %v1521_v1  ;;  %1384 = vmatprep.subr.bf16.mxu1 %v1521_v1  ;;  %v1465_v34 = vld [vmem:[%s1579_s28 + $0x114] ss:$8 sps:$4 sm:$0xff]   ;;  %v1464_v35 = vld [vmem:[%s1579_s28 + $0x40] ss:$8 sps:$4 sm:$0xff]   ;;  %v1467_v36 = vld [vmem:[%s1579_s28 + $0x110] ss:$8 sps:$4 sm:$0xff]  }
  0x17   : > { %v1468_v37 = vld [vmem:[%s1579_s28 + $0x54] ss:$8 sps:$4 sm:$0xff]   ;;  %v1471_v38 = vld [vmem:[%s1579_s28 + $0x124] ss:$8 sps:$4 sm:$0xff]   ;;  %v1470_v39 = vld [vmem:[%s1579_s28 + $0x50] ss:$8 sps:$4 sm:$0xff]  }
  0x18   : > { %v1473_v40 = vld [vmem:[%s1579_s28 + $0x120] ss:$8 sps:$4 sm:$0xff]   ;;  %v1474_v41 = vld [vmem:[%s1579_s28 + $0x64] ss:$8 sps:$4 sm:$0xff]   ;;  %v1477_v42 = vld [vmem:[%s1579_s28 + $0x134] ss:$8 sps:$4 sm:$0xff]  }
  0x19   : > { %620 = vmatpush1.bf16.msra.mxu0 %v1425_v4  ;;  %1400 = vmatpush1.bf16.msra.mxu1 %v1425_v4  ;;  %v1476_v43 = vld [vmem:[%s1579_s28 + $0x60] ss:$8 sps:$4 sm:$0xff]   ;;  %v1479_v44 = vld [vmem:[%s1579_s28 + $0x130] ss:$8 sps:$4 sm:$0xff]   ;;  %v1480_v45 = vld [vmem:[%s1579_s28 + $0x74] ss:$8 sps:$4 sm:$0xff]  }
  0x1a   : > { %621 = vmatprep.subr.bf16.mxu0 %v1521_v1  ;;  %1385 = vmatprep.subr.bf16.mxu1 %v1521_v1  ;;  %v1483_v46 = vld [vmem:[%s1579_s28 + $0x144] ss:$8 sps:$4 sm:$0xff]   ;;  %v1482_v47 = vld [vmem:[%s1579_s28 + $0x70] ss:$8 sps:$4 sm:$0xff]   ;;  %v1485_v48 = vld [vmem:[%s1579_s28 + $0x140] ss:$8 sps:$4 sm:$0xff]  }
  0x1b   : > { %v1486_v49 = vld [vmem:[%s1579_s28 + $0x84] ss:$8 sps:$4 sm:$0xff]   ;;  %v1489_v50 = vld [vmem:[%s1579_s28 + $0x154] ss:$8 sps:$4 sm:$0xff]   ;;  %v1488_v51 = vld [vmem:[%s1579_s28 + $0x80] ss:$8 sps:$4 sm:$0xff]  }
  0x1c   : > { %v1491_v52 = vld [vmem:[%s1579_s28 + $0x150] ss:$8 sps:$4 sm:$0xff]   ;;  %v1492_v53 = vld [vmem:[%s1579_s28 + $0x94] ss:$8 sps:$4 sm:$0xff]   ;;  %v1495_v54 = vld [vmem:[%s1579_s28 + $0x164] ss:$8 sps:$4 sm:$0xff]  }
  0x1d   : > { %622 = vmatpush1.bf16.msra.mxu0 %v1426_v5  ;;  %1401 = vmatpush1.bf16.msra.mxu1 %v1426_v5  ;;  %v1494_v55 = vld [vmem:[%s1579_s28 + $0x90] ss:$8 sps:$4 sm:$0xff]   ;;  %v1497_v56 = vld [vmem:[%s1579_s28 + $0x160] ss:$8 sps:$4 sm:$0xff]   ;;  %v1498_v57 = vld [vmem:[%s1579_s28 + $0xa4] ss:$8 sps:$4 sm:$0xff]  }
  0x1e   : > { %623 = vmatprep.subr.bf16.mxu0 %v1521_v1  ;;  %1386 = vmatprep.subr.bf16.mxu1 %v1521_v1  ;;  %v1501_v58 = vld [vmem:[%s1579_s28 + $0x174] ss:$8 sps:$4 sm:$0xff]   ;;  %v1500_v59 = vld [vmem:[%s1579_s28 + $0xa0] ss:$8 sps:$4 sm:$0xff]   ;;  %v1503_v60 = vld [vmem:[%s1579_s28 + $0x170] ss:$8 sps:$4 sm:$0xff]  }
  0x1f   : > { %v1504_v61 = vld [vmem:[%s1579_s28 + $0xb4] ss:$8 sps:$4 sm:$0xff]   ;;  %v1507_v62 = vld [vmem:[%s1579_s28 + $0x184] ss:$8 sps:$4 sm:$0xff]   ;;  %v1506_v63 = vld [vmem:[%s1579_s28 + $0xb0] ss:$8 sps:$4 sm:$0xff]  }
  0x20   : > { %v1509_v0 = vld [vmem:[%s1579_s28 + $0x180] ss:$8 sps:$4 sm:$0xff]  }
  0x21   : > { %624 = vmatpush1.bf16.msra.mxu0 %v1427_v7  ;;  %1402 = vmatpush1.bf16.msra.mxu1 %v1427_v7  ;;  %v1512_v2 = vld [vmem:[%s1579_s28 + $0xc0] ss:$8 sps:$4 sm:$0xff]  }
  0x22   : > { %625 = vmatprep.subr.bf16.mxu0 %v1521_v1  ;;  %1387 = vmatprep.subr.bf16.mxu1 %v1521_v1  ;;  %v1691_v3 = vld [vmem:[%s1854_s2] ss:$0 sm:$0xff] }
  0x25   : > { %626 = vmatpush1.bf16.msra.mxu0 %v1428_v9  ;;  %1403 = vmatpush1.bf16.msra.mxu1 %v1428_v9 }
  0x26   : > { %627 = vmatprep.subr.bf16.mxu0 %v1521_v1  ;;  %1388 = vmatprep.subr.bf16.mxu1 %v1521_v1 }
  0x29   : > { %628 = vmatpush1.bf16.msra.mxu0 %v1429_v10  ;;  %1404 = vmatpush1.bf16.msra.mxu1 %v1429_v10 }
  0x2a   : > { %629 = vmatprep.subr.bf16.mxu0 %v1521_v1  ;;  %1389 = vmatprep.subr.bf16.mxu1 %v1521_v1 }
  0x2d   : > { %630 = vmatpush2.bf16.msra.mxu0 %v1430_v11  ;;  %1405 = vmatpush2.bf16.msra.mxu1 %v1430_v11 }
  0x2e   : > { %631 = vmatprep.subr.bf16.mxu0 %v1521_v1  ;;  %1390 = vmatprep.subr.bf16.mxu1 %v1521_v1 }
  0x31   : > { %632 = vmatpush2.bf16.msra.mxu0 %v1431_v12  ;;  %1406 = vmatpush2.bf16.msra.mxu1 %v1431_v12 }
  0x32   : > { %633 = vmatprep.subr.bf16.mxu0 %v1521_v1  ;;  %1391 = vmatprep.subr.bf16.mxu1 %v1521_v1 }
  0x35   : > { %634 = vmatpush2.bf16.msra.mxu0 %v1432_v13  ;;  %1407 = vmatpush2.bf16.msra.mxu1 %v1432_v13 }
  0x36   : > { %635 = vmatprep.subr.bf16.mxu0 %v1521_v1  ;;  %1392 = vmatprep.subr.bf16.mxu1 %v1521_v1 }
  0x39   : > { %636 = vmatpush2.bf16.msra.mxu0 %v1433_v14  ;;  %1408 = vmatpush2.bf16.msra.mxu1 %v1433_v14 }
  0x3a   : > { %637 = vmatprep.subr.bf16.mxu0 %v1521_v1  ;;  %1393 = vmatprep.subr.bf16.mxu1 %v1521_v1 }
  0x3d   : > { %638 = vmatpush2.bf16.msra.mxu0 %v1434_v15  ;;  %1409 = vmatpush2.bf16.msra.mxu1 %v1434_v15 }
  0x3e   : > { %639 = vmatprep.subr.bf16.mxu0 %v1521_v1  ;;  %1394 = vmatprep.subr.bf16.mxu1 %v1521_v1 }
  0x41   : > { %640 = vmatpush2.bf16.msra.mxu0 %v1435_v16  ;;  %1410 = vmatpush2.bf16.msra.mxu1 %v1435_v16 }
  0x42   : > { %641 = vmatprep.subr.bf16.mxu0 %v1521_v1  ;;  %1395 = vmatprep.subr.bf16.mxu1 %v1521_v1 }
  0x45   : > { %642 = vmatpush2.bf16.msra.mxu0 %v1436_v17  ;;  %1411 = vmatpush2.bf16.msra.mxu1 %v1436_v17 }
  0x46   : > { %643 = vmatprep.subr.bf16.mxu0 %v1521_v1  ;;  %1396 = vmatprep.subr.bf16.mxu1 %v1521_v1  ;;  %v1510_v1 = vld [vmem:[%s1579_s28 + $0xc4] ss:$8 sps:$4 sm:$0xff]   ;;  %s1699_s28 = scalar_lea.vmem %s1855_s3, %s1210_s29 }
  0x49   : > { %644 = vmatpush2.bf16.msra.mxu0 %v1437_v18  ;;  %1412 = vmatpush2.bf16.msra.mxu1 %v1437_v18 }
  0x4c   : > { %646 = vmatmul.mubr.bf16.vlgmr.msra.gmra.mxu0 %v1438_v19  ;;  %750 = vmatmul.mubr.bf16.vlgmr.msra.gmra.mxu1 %v1441_v20 }
  0x4d   : > { %653 = vmatprep.mubr.bf16.mxu0 %v1444_v21  ;;  %757 = vmatprep.mubr.bf16.mxu1 %v1447_v22 }
  0x54   : > { %654 = vmatmul.mubr.bf16.gmra.mxu0 %v1446_v23  ;;  %758 = vmatmul.mubr.bf16.gmra.mxu1 %v1449_v24 }
  0x55   : > { %661 = vmatprep.mubr.bf16.mxu0 %v1450_v25  ;;  %765 = vmatprep.mubr.bf16.mxu1 %v1453_v26 }
  0x5c   : > { %662 = vmatmul.mubr.bf16.gmra.mxu0 %v1452_v27  ;;  %766 = vmatmul.mubr.bf16.gmra.mxu1 %v1455_v28 }
  0x5d   : > { %669 = vmatprep.mubr.bf16.mxu0 %v1456_v29  ;;  %773 = vmatprep.mubr.bf16.mxu1 %v1459_v30 }
  0x64   : > { %670 = vmatmul.mubr.bf16.gmra.mxu0 %v1458_v31  ;;  %774 = vmatmul.mubr.bf16.gmra.mxu1 %v1461_v32 }
  0x65   : > { %677 = vmatprep.mubr.bf16.mxu0 %v1462_v33  ;;  %781 = vmatprep.mubr.bf16.mxu1 %v1465_v34 }
  0x6c   : > { %678 = vmatmul.mubr.bf16.gmra.mxu0 %v1464_v35  ;;  %782 = vmatmul.mubr.bf16.gmra.mxu1 %v1467_v36 }
  0x6d   : > { %685 = vmatprep.mubr.bf16.mxu0 %v1468_v37  ;;  %789 = vmatprep.mubr.bf16.mxu1 %v1471_v38 }
  0x74   : > { %686 = vmatmul.mubr.bf16.gmra.mxu0 %v1470_v39  ;;  %790 = vmatmul.mubr.bf16.gmra.mxu1 %v1473_v40 }
  0x75   : > { %693 = vmatprep.mubr.bf16.mxu0 %v1474_v41  ;;  %797 = vmatprep.mubr.bf16.mxu1 %v1477_v42 }
  0x7c   : > { %694 = vmatmul.mubr.bf16.gmra.mxu0 %v1476_v43  ;;  %798 = vmatmul.mubr.bf16.gmra.mxu1 %v1479_v44 }
  0x7d   : > { %701 = vmatprep.mubr.bf16.mxu0 %v1480_v45  ;;  %805 = vmatprep.mubr.bf16.mxu1 %v1483_v46 }
  0x84   : > { %702 = vmatmul.mubr.bf16.gmra.mxu0 %v1482_v47  ;;  %806 = vmatmul.mubr.bf16.gmra.mxu1 %v1485_v48 }
  0x85   : > { %709 = vmatprep.mubr.bf16.mxu0 %v1486_v49  ;;  %813 = vmatprep.mubr.bf16.mxu1 %v1489_v50 }
  0x8c   : > { %710 = vmatmul.mubr.bf16.gmra.mxu0 %v1488_v51  ;;  %814 = vmatmul.mubr.bf16.gmra.mxu1 %v1491_v52 }
  0x8d   : > { %717 = vmatprep.mubr.bf16.mxu0 %v1492_v53  ;;  %821 = vmatprep.mubr.bf16.mxu1 %v1495_v54 }
  0x94   : > { %718 = vmatmul.mubr.bf16.gmra.mxu0 %v1494_v55  ;;  %822 = vmatmul.mubr.bf16.gmra.mxu1 %v1497_v56 }
  0x95   : > { %725 = vmatprep.mubr.bf16.mxu0 %v1498_v57  ;;  %829 = vmatprep.mubr.bf16.mxu1 %v1501_v58 }
  0x9c   : > { %726 = vmatmul.mubr.bf16.gmra.mxu0 %v1500_v59  ;;  %830 = vmatmul.mubr.bf16.gmra.mxu1 %v1503_v60 }
  0x9d   : > { %733 = vmatprep.mubr.bf16.mxu0 %v1504_v61  ;;  %837 = vmatprep.mubr.bf16.mxu1 %v1507_v62 }
  0xa4   : > { %734 = vmatmul.mubr.bf16.gmra.mxu0 %v1506_v63  ;;  %838 = vmatmul.mubr.bf16.gmra.mxu1 %v1509_v0 }
  0xa5   : > { %741 = vmatprep.mubr.bf16.mxu0 %v1510_v1 }
  0xac   : > { %742 = vmatmul.mubr.bf16.gmra.mxu0 %v1512_v2 }
 0x10c   : > { %v647_v4 = vpop.f32.mrf.mxu0  ;;  %v751_v5 = vpop.f32.mrf.mxu1 }
 0x10d   : > { %v648_v6 = vadd.f32 %v1691_v3, %v647_v4  ;;  %v752_v7 = vadd.f32 %v1691_v3, %v751_v5 }
 0x10e   : > { %v649_v8 = vpop.f32.mrf.mxu0  ;;  %v753_v9 = vpop.f32.mrf.mxu1 }
 0x10f   : > { %v846_v10 = vmax.f32 %v648_v6, 0.0  ;;  %v872_v11 = vmax.f32 %v752_v7, 0.0 }
 0x110   : > { %v650_v12 = vpop.f32.mrf.mxu0  ;;  %v754_v13 = vpop.f32.mrf.mxu1 }
 0x111   : > { %v1331_v14 = vpack.c.bf16 %v846_v10, %v846_v10  ;;  %v1357_v15 = vpack.c.bf16 %v872_v11, %v872_v11  ;;  %v651_v16 = vadd.f32 %v1691_v3, %v650_v12  ;;  %v755_v17 = vadd.f32 %v1691_v3, %v754_v13 }
 0x112   : > { %v652_v18 = vpop.f32.mrf.mxu0  ;;  %v756_v19 = vpop.f32.mrf.mxu1 }
 0x113   : > { %1097 = vst.msk [vmem:[%s1699_s28] sm:$0xf] %vm1096_vm0, %v1331_v14  ;;  %1123 = vst.msk [vmem:[%s1699_s28 + $0x68] sm:$0xf] %vm1096_vm0, %v1357_v15  ;;  %v847_v20 = vmax.f32 %v651_v16, 0.0  ;;  %v873_v21 = vmax.f32 %v755_v17, 0.0 }
 0x114   : > { %v655_v22 = vpop.f32.mrf.mxu0  ;;  %v759_v23 = vpop.f32.mrf.mxu1 }
 0x115   : > { %v1332_v24 = vpack.c.bf16 %v847_v20, %v847_v20  ;;  %v1358_v25 = vpack.c.bf16 %v873_v21, %v873_v21  ;;  %v656_v26 = vadd.f32 %v1691_v3, %v655_v22  ;;  %v760_v27 = vadd.f32 %v1691_v3, %v759_v23 }
 0x116   : > { %v657_v28 = vpop.f32.mrf.mxu0  ;;  %v761_v29 = vpop.f32.mrf.mxu1 }
 0x117   : > { %1098 = vst.msk [vmem:[%s1699_s28 + $0x4] sm:$0xf] %vm1096_vm0, %v1332_v24  ;;  %1124 = vst.msk [vmem:[%s1699_s28 + $0x6c] sm:$0xf] %vm1096_vm0, %v1358_v25  ;;  %v848_v30 = vmax.f32 %v656_v26, 0.0  ;;  %v874_v31 = vmax.f32 %v760_v27, 0.0 }
 0x118   : > { %v658_v32 = vpop.f32.mrf.mxu0  ;;  %v762_v33 = vpop.f32.mrf.mxu1 }
 0x119   : > { %v1333_v34 = vpack.c.bf16 %v848_v30, %v848_v30  ;;  %v1359_v35 = vpack.c.bf16 %v874_v31, %v874_v31  ;;  %v659_v36 = vadd.f32 %v1691_v3, %v658_v32  ;;  %v763_v37 = vadd.f32 %v1691_v3, %v762_v33 }
 0x11a   : > { %v660_v38 = vpop.f32.mrf.mxu0  ;;  %v764_v39 = vpop.f32.mrf.mxu1 }
 0x11b   : > { %1099 = vst.msk [vmem:[%s1699_s28 + $0x8] sm:$0xf] %vm1096_vm0, %v1333_v34  ;;  %1125 = vst.msk [vmem:[%s1699_s28 + $0x70] sm:$0xf] %vm1096_vm0, %v1359_v35  ;;  %v849_v40 = vmax.f32 %v659_v36, 0.0  ;;  %v875_v41 = vmax.f32 %v763_v37, 0.0 }
 0x11c   : > { %v663_v42 = vpop.f32.mrf.mxu0  ;;  %v767_v43 = vpop.f32.mrf.mxu1 }
 0x11d   : > { %v1334_v44 = vpack.c.bf16 %v849_v40, %v849_v40  ;;  %v1360_v45 = vpack.c.bf16 %v875_v41, %v875_v41  ;;  %v664_v46 = vadd.f32 %v1691_v3, %v663_v42  ;;  %v768_v47 = vadd.f32 %v1691_v3, %v767_v43 }
 0x11e   : > { %v665_v48 = vpop.f32.mrf.mxu0  ;;  %v769_v49 = vpop.f32.mrf.mxu1 }
 0x11f   : > { %1100 = vst.msk [vmem:[%s1699_s28 + $0xc] sm:$0xf] %vm1096_vm0, %v1334_v44  ;;  %1126 = vst.msk [vmem:[%s1699_s28 + $0x74] sm:$0xf] %vm1096_vm0, %v1360_v45  ;;  %v850_v50 = vmax.f32 %v664_v46, 0.0  ;;  %v876_v51 = vmax.f32 %v768_v47, 0.0 }
 0x120   : > { %v666_v52 = vpop.f32.mrf.mxu0  ;;  %v770_v53 = vpop.f32.mrf.mxu1 }
 0x121   : > { %v1335_v54 = vpack.c.bf16 %v850_v50, %v850_v50  ;;  %v1361_v55 = vpack.c.bf16 %v876_v51, %v876_v51  ;;  %v667_v56 = vadd.f32 %v1691_v3, %v666_v52  ;;  %v771_v57 = vadd.f32 %v1691_v3, %v770_v53 }
 0x122   : > { %v668_v58 = vpop.f32.mrf.mxu0  ;;  %v772_v59 = vpop.f32.mrf.mxu1 }
 0x123   : > { %1101 = vst.msk [vmem:[%s1699_s28 + $0x10] sm:$0xf] %vm1096_vm0, %v1335_v54  ;;  %1127 = vst.msk [vmem:[%s1699_s28 + $0x78] sm:$0xf] %vm1096_vm0, %v1361_v55  ;;  %v851_v60 = vmax.f32 %v667_v56, 0.0  ;;  %v877_v61 = vmax.f32 %v771_v57, 0.0 }
 0x124   : > { %v671_v62 = vpop.f32.mrf.mxu0  ;;  %v775_v63 = vpop.f32.mrf.mxu1 }
 0x125   : > { %v1336_v0 = vpack.c.bf16 %v851_v60, %v851_v60  ;;  %v1362_v1 = vpack.c.bf16 %v877_v61, %v877_v61  ;;  %v672_v2 = vadd.f32 %v1691_v3, %v671_v62  ;;  %v776_v4 = vadd.f32 %v1691_v3, %v775_v63 }
 0x126   : > { %v673_v5 = vpop.f32.mrf.mxu0  ;;  %v777_v6 = vpop.f32.mrf.mxu1 }
 0x127   : > { %1102 = vst.msk [vmem:[%s1699_s28 + $0x14] sm:$0xf] %vm1096_vm0, %v1336_v0  ;;  %1128 = vst.msk [vmem:[%s1699_s28 + $0x7c] sm:$0xf] %vm1096_vm0, %v1362_v1  ;;  %v852_v7 = vmax.f32 %v672_v2, 0.0  ;;  %v878_v8 = vmax.f32 %v776_v4, 0.0 }
 0x128   : > { %v674_v9 = vpop.f32.mrf.mxu0  ;;  %v778_v10 = vpop.f32.mrf.mxu1 }
 0x129   : > { %v1337_v11 = vpack.c.bf16 %v852_v7, %v852_v7  ;;  %v1363_v12 = vpack.c.bf16 %v878_v8, %v878_v8  ;;  %v675_v13 = vadd.f32 %v1691_v3, %v674_v9  ;;  %v779_v14 = vadd.f32 %v1691_v3, %v778_v10 }
 0x12a   : > { %v676_v15 = vpop.f32.mrf.mxu0  ;;  %v780_v16 = vpop.f32.mrf.mxu1 }
 0x12b   : > { %1103 = vst.msk [vmem:[%s1699_s28 + $0x18] sm:$0xf] %vm1096_vm0, %v1337_v11  ;;  %1129 = vst.msk [vmem:[%s1699_s28 + $0x80] sm:$0xf] %vm1096_vm0, %v1363_v12  ;;  %v853_v17 = vmax.f32 %v675_v13, 0.0  ;;  %v879_v18 = vmax.f32 %v779_v14, 0.0 }
 0x12c   : > { %v679_v19 = vpop.f32.mrf.mxu0  ;;  %v783_v20 = vpop.f32.mrf.mxu1 }
 0x12d   : > { %v1338_v21 = vpack.c.bf16 %v853_v17, %v853_v17  ;;  %v1364_v22 = vpack.c.bf16 %v879_v18, %v879_v18  ;;  %v680_v23 = vadd.f32 %v1691_v3, %v679_v19  ;;  %v784_v24 = vadd.f32 %v1691_v3, %v783_v20 }
 0x12e   : > { %v681_v25 = vpop.f32.mrf.mxu0  ;;  %v785_v26 = vpop.f32.mrf.mxu1 }
 0x12f   : > { %1104 = vst.msk [vmem:[%s1699_s28 + $0x1c] sm:$0xf] %vm1096_vm0, %v1338_v21  ;;  %1130 = vst.msk [vmem:[%s1699_s28 + $0x84] sm:$0xf] %vm1096_vm0, %v1364_v22  ;;  %v854_v27 = vmax.f32 %v680_v23, 0.0  ;;  %v880_v28 = vmax.f32 %v784_v24, 0.0 }
 0x130   : > { %v682_v29 = vpop.f32.mrf.mxu0  ;;  %v786_v30 = vpop.f32.mrf.mxu1 }
 0x131   : > { %v1339_v31 = vpack.c.bf16 %v854_v27, %v854_v27  ;;  %v1365_v32 = vpack.c.bf16 %v880_v28, %v880_v28  ;;  %v683_v33 = vadd.f32 %v1691_v3, %v682_v29  ;;  %v787_v34 = vadd.f32 %v1691_v3, %v786_v30 }
 0x132   : > { %v684_v35 = vpop.f32.mrf.mxu0  ;;  %v788_v36 = vpop.f32.mrf.mxu1 }
 0x133   : > { %1105 = vst.msk [vmem:[%s1699_s28 + $0x20] sm:$0xf] %vm1096_vm0, %v1339_v31  ;;  %1131 = vst.msk [vmem:[%s1699_s28 + $0x88] sm:$0xf] %vm1096_vm0, %v1365_v32  ;;  %v855_v37 = vmax.f32 %v683_v33, 0.0  ;;  %v881_v38 = vmax.f32 %v787_v34, 0.0 }
 0x134   : > { %v687_v39 = vpop.f32.mrf.mxu0  ;;  %v791_v40 = vpop.f32.mrf.mxu1 }
 0x135   : > { %v1340_v41 = vpack.c.bf16 %v855_v37, %v855_v37  ;;  %v1366_v42 = vpack.c.bf16 %v881_v38, %v881_v38  ;;  %v688_v43 = vadd.f32 %v1691_v3, %v687_v39  ;;  %v792_v44 = vadd.f32 %v1691_v3, %v791_v40 }
 0x136   : > { %v689_v45 = vpop.f32.mrf.mxu0  ;;  %v793_v46 = vpop.f32.mrf.mxu1 }
 0x137   : > { %1106 = vst.msk [vmem:[%s1699_s28 + $0x24] sm:$0xf] %vm1096_vm0, %v1340_v41  ;;  %1132 = vst.msk [vmem:[%s1699_s28 + $0x8c] sm:$0xf] %vm1096_vm0, %v1366_v42  ;;  %v856_v47 = vmax.f32 %v688_v43, 0.0  ;;  %v882_v48 = vmax.f32 %v792_v44, 0.0 }
 0x138   : > { %v690_v49 = vpop.f32.mrf.mxu0  ;;  %v794_v50 = vpop.f32.mrf.mxu1 }
 0x139   : > { %v1341_v51 = vpack.c.bf16 %v856_v47, %v856_v47  ;;  %v1367_v52 = vpack.c.bf16 %v882_v48, %v882_v48  ;;  %v691_v53 = vadd.f32 %v1691_v3, %v690_v49  ;;  %v795_v54 = vadd.f32 %v1691_v3, %v794_v50 }
 0x13a   : > { %v692_v55 = vpop.f32.mrf.mxu0  ;;  %v796_v56 = vpop.f32.mrf.mxu1 }
 0x13b   : > { %1107 = vst.msk [vmem:[%s1699_s28 + $0x28] sm:$0xf] %vm1096_vm0, %v1341_v51  ;;  %1133 = vst.msk [vmem:[%s1699_s28 + $0x90] sm:$0xf] %vm1096_vm0, %v1367_v52  ;;  %v857_v57 = vmax.f32 %v691_v53, 0.0  ;;  %v883_v58 = vmax.f32 %v795_v54, 0.0 }
 0x13c   : > { %v695_v59 = vpop.f32.mrf.mxu0  ;;  %v799_v60 = vpop.f32.mrf.mxu1 }
 0x13d   : > { %v1342_v61 = vpack.c.bf16 %v857_v57, %v857_v57  ;;  %v1368_v62 = vpack.c.bf16 %v883_v58, %v883_v58  ;;  %v696_v63 = vadd.f32 %v1691_v3, %v695_v59  ;;  %v800_v0 = vadd.f32 %v1691_v3, %v799_v60 }
 0x13e   : > { %v697_v1 = vpop.f32.mrf.mxu0  ;;  %v801_v2 = vpop.f32.mrf.mxu1 }
 0x13f   : > { %1108 = vst.msk [vmem:[%s1699_s28 + $0x2c] sm:$0xf] %vm1096_vm0, %v1342_v61  ;;  %1134 = vst.msk [vmem:[%s1699_s28 + $0x94] sm:$0xf] %vm1096_vm0, %v1368_v62  ;;  %v858_v4 = vmax.f32 %v696_v63, 0.0  ;;  %v884_v5 = vmax.f32 %v800_v0, 0.0 }
 0x140   : > { %v698_v6 = vpop.f32.mrf.mxu0  ;;  %v802_v7 = vpop.f32.mrf.mxu1 }
 0x141   : > { %v1343_v8 = vpack.c.bf16 %v858_v4, %v858_v4  ;;  %v1369_v9 = vpack.c.bf16 %v884_v5, %v884_v5  ;;  %v699_v10 = vadd.f32 %v1691_v3, %v698_v6  ;;  %v803_v11 = vadd.f32 %v1691_v3, %v802_v7 }
 0x142   : > { %v700_v12 = vpop.f32.mrf.mxu0  ;;  %v804_v13 = vpop.f32.mrf.mxu1 }
 0x143   : > { %1109 = vst.msk [vmem:[%s1699_s28 + $0x30] sm:$0xf] %vm1096_vm0, %v1343_v8  ;;  %1135 = vst.msk [vmem:[%s1699_s28 + $0x98] sm:$0xf] %vm1096_vm0, %v1369_v9  ;;  %v859_v14 = vmax.f32 %v699_v10, 0.0  ;;  %v885_v15 = vmax.f32 %v803_v11, 0.0 }
 0x144   : > { %v703_v16 = vpop.f32.mrf.mxu0  ;;  %v807_v17 = vpop.f32.mrf.mxu1 }
 0x145   : > { %v1344_v18 = vpack.c.bf16 %v859_v14, %v859_v14  ;;  %v1370_v19 = vpack.c.bf16 %v885_v15, %v885_v15  ;;  %v704_v20 = vadd.f32 %v1691_v3, %v703_v16  ;;  %v808_v21 = vadd.f32 %v1691_v3, %v807_v17 }
 0x146   : > { %v705_v22 = vpop.f32.mrf.mxu0  ;;  %v809_v23 = vpop.f32.mrf.mxu1 }
 0x147   : > { %1110 = vst.msk [vmem:[%s1699_s28 + $0x34] sm:$0xf] %vm1096_vm0, %v1344_v18  ;;  %1136 = vst.msk [vmem:[%s1699_s28 + $0x9c] sm:$0xf] %vm1096_vm0, %v1370_v19  ;;  %v860_v24 = vmax.f32 %v704_v20, 0.0  ;;  %v886_v25 = vmax.f32 %v808_v21, 0.0 }
 0x148   : > { %v706_v26 = vpop.f32.mrf.mxu0  ;;  %v810_v27 = vpop.f32.mrf.mxu1 }
 0x149   : > { %v1345_v28 = vpack.c.bf16 %v860_v24, %v860_v24  ;;  %v1371_v29 = vpack.c.bf16 %v886_v25, %v886_v25  ;;  %v707_v30 = vadd.f32 %v1691_v3, %v706_v26  ;;  %v811_v31 = vadd.f32 %v1691_v3, %v810_v27 }
 0x14a   : > { %v708_v32 = vpop.f32.mrf.mxu0  ;;  %v812_v33 = vpop.f32.mrf.mxu1 }
 0x14b   : > { %1111 = vst.msk [vmem:[%s1699_s28 + $0x38] sm:$0xf] %vm1096_vm0, %v1345_v28  ;;  %1137 = vst.msk [vmem:[%s1699_s28 + $0xa0] sm:$0xf] %vm1096_vm0, %v1371_v29  ;;  %v861_v34 = vmax.f32 %v707_v30, 0.0  ;;  %v887_v35 = vmax.f32 %v811_v31, 0.0 }
 0x14c   : > { %v711_v36 = vpop.f32.mrf.mxu0  ;;  %v815_v37 = vpop.f32.mrf.mxu1 }
 0x14d   : > { %v1346_v38 = vpack.c.bf16 %v861_v34, %v861_v34  ;;  %v1372_v39 = vpack.c.bf16 %v887_v35, %v887_v35  ;;  %v712_v40 = vadd.f32 %v1691_v3, %v711_v36  ;;  %v816_v41 = vadd.f32 %v1691_v3, %v815_v37 }
 0x14e   : > { %v713_v42 = vpop.f32.mrf.mxu0  ;;  %v817_v43 = vpop.f32.mrf.mxu1 }
 0x14f   : > { %1112 = vst.msk [vmem:[%s1699_s28 + $0x3c] sm:$0xf] %vm1096_vm0, %v1346_v38  ;;  %1138 = vst.msk [vmem:[%s1699_s28 + $0xa4] sm:$0xf] %vm1096_vm0, %v1372_v39  ;;  %v862_v44 = vmax.f32 %v712_v40, 0.0  ;;  %v888_v45 = vmax.f32 %v816_v41, 0.0 }
 0x150   : > { %v714_v46 = vpop.f32.mrf.mxu0  ;;  %v818_v47 = vpop.f32.mrf.mxu1 }
 0x151   : > { %v1347_v48 = vpack.c.bf16 %v862_v44, %v862_v44  ;;  %v1373_v49 = vpack.c.bf16 %v888_v45, %v888_v45  ;;  %v715_v50 = vadd.f32 %v1691_v3, %v714_v46  ;;  %v819_v51 = vadd.f32 %v1691_v3, %v818_v47 }
 0x152   : > { %v716_v52 = vpop.f32.mrf.mxu0  ;;  %v820_v53 = vpop.f32.mrf.mxu1 }
 0x153   : > { %1113 = vst.msk [vmem:[%s1699_s28 + $0x40] sm:$0xf] %vm1096_vm0, %v1347_v48  ;;  %1139 = vst.msk [vmem:[%s1699_s28 + $0xa8] sm:$0xf] %vm1096_vm0, %v1373_v49  ;;  %v863_v54 = vmax.f32 %v715_v50, 0.0  ;;  %v889_v55 = vmax.f32 %v819_v51, 0.0 }
 0x154   : > { %v719_v56 = vpop.f32.mrf.mxu0  ;;  %v823_v57 = vpop.f32.mrf.mxu1 }
 0x155   : > { %v1348_v58 = vpack.c.bf16 %v863_v54, %v863_v54  ;;  %v1374_v59 = vpack.c.bf16 %v889_v55, %v889_v55  ;;  %v720_v60 = vadd.f32 %v1691_v3, %v719_v56  ;;  %v824_v61 = vadd.f32 %v1691_v3, %v823_v57 }
 0x156   : > { %v721_v62 = vpop.f32.mrf.mxu0  ;;  %v825_v63 = vpop.f32.mrf.mxu1 }
 0x157   : > { %1114 = vst.msk [vmem:[%s1699_s28 + $0x44] sm:$0xf] %vm1096_vm0, %v1348_v58  ;;  %1140 = vst.msk [vmem:[%s1699_s28 + $0xac] sm:$0xf] %vm1096_vm0, %v1374_v59  ;;  %v864_v0 = vmax.f32 %v720_v60, 0.0  ;;  %v890_v1 = vmax.f32 %v824_v61, 0.0 }
 0x158   : > { %v722_v2 = vpop.f32.mrf.mxu0  ;;  %v826_v4 = vpop.f32.mrf.mxu1 }
 0x159   : > { %v1349_v5 = vpack.c.bf16 %v864_v0, %v864_v0  ;;  %v1375_v6 = vpack.c.bf16 %v890_v1, %v890_v1  ;;  %v723_v7 = vadd.f32 %v1691_v3, %v722_v2  ;;  %v827_v8 = vadd.f32 %v1691_v3, %v826_v4 }
 0x15a   : > { %v724_v9 = vpop.f32.mrf.mxu0  ;;  %v828_v10 = vpop.f32.mrf.mxu1 }
 0x15b   : > { %1115 = vst.msk [vmem:[%s1699_s28 + $0x48] sm:$0xf] %vm1096_vm0, %v1349_v5  ;;  %1141 = vst.msk [vmem:[%s1699_s28 + $0xb0] sm:$0xf] %vm1096_vm0, %v1375_v6  ;;  %v865_v11 = vmax.f32 %v723_v7, 0.0  ;;  %v891_v12 = vmax.f32 %v827_v8, 0.0 }
 0x15c   : > { %v727_v13 = vpop.f32.mrf.mxu0  ;;  %v831_v14 = vpop.f32.mrf.mxu1 }
 0x15d   : > { %v1350_v15 = vpack.c.bf16 %v865_v11, %v865_v11  ;;  %v1376_v16 = vpack.c.bf16 %v891_v12, %v891_v12  ;;  %v728_v17 = vadd.f32 %v1691_v3, %v727_v13  ;;  %v832_v18 = vadd.f32 %v1691_v3, %v831_v14 }
 0x15e   : > { %v729_v19 = vpop.f32.mrf.mxu0  ;;  %v833_v20 = vpop.f32.mrf.mxu1 }
 0x15f   : > { %1116 = vst.msk [vmem:[%s1699_s28 + $0x4c] sm:$0xf] %vm1096_vm0, %v1350_v15  ;;  %1142 = vst.msk [vmem:[%s1699_s28 + $0xb4] sm:$0xf] %vm1096_vm0, %v1376_v16  ;;  %v866_v21 = vmax.f32 %v728_v17, 0.0  ;;  %v892_v22 = vmax.f32 %v832_v18, 0.0 }
 0x160   : > { %v730_v23 = vpop.f32.mrf.mxu0  ;;  %v834_v24 = vpop.f32.mrf.mxu1 }
 0x161   : > { %v1351_v25 = vpack.c.bf16 %v866_v21, %v866_v21  ;;  %v1377_v26 = vpack.c.bf16 %v892_v22, %v892_v22  ;;  %v731_v27 = vadd.f32 %v1691_v3, %v730_v23  ;;  %v835_v28 = vadd.f32 %v1691_v3, %v834_v24 }
 0x162   : > { %v732_v29 = vpop.f32.mrf.mxu0  ;;  %v836_v30 = vpop.f32.mrf.mxu1 }
 0x163   : > { %1117 = vst.msk [vmem:[%s1699_s28 + $0x50] sm:$0xf] %vm1096_vm0, %v1351_v25  ;;  %1143 = vst.msk [vmem:[%s1699_s28 + $0xb8] sm:$0xf] %vm1096_vm0, %v1377_v26  ;;  %v867_v31 = vmax.f32 %v731_v27, 0.0  ;;  %v893_v32 = vmax.f32 %v835_v28, 0.0 }
 0x164   : > { %v735_v33 = vpop.f32.mrf.mxu0  ;;  %v839_v34 = vpop.f32.mrf.mxu1 }
 0x165   : > { %v1352_v35 = vpack.c.bf16 %v867_v31, %v867_v31  ;;  %v1378_v36 = vpack.c.bf16 %v893_v32, %v893_v32  ;;  %v736_v37 = vadd.f32 %v1691_v3, %v735_v33  ;;  %v840_v38 = vadd.f32 %v1691_v3, %v839_v34 }
 0x166   : > { %v737_v39 = vpop.f32.mrf.mxu0  ;;  %v841_v40 = vpop.f32.mrf.mxu1 }
 0x167   : > { %1118 = vst.msk [vmem:[%s1699_s28 + $0x54] sm:$0xf] %vm1096_vm0, %v1352_v35  ;;  %1144 = vst.msk [vmem:[%s1699_s28 + $0xbc] sm:$0xf] %vm1096_vm0, %v1378_v36  ;;  %v868_v41 = vmax.f32 %v736_v37, 0.0  ;;  %v894_v42 = vmax.f32 %v840_v38, 0.0 }
 0x168   : > { %v738_v43 = vpop.f32.mrf.mxu0  ;;  %v842_v44 = vpop.f32.mrf.mxu1 }
 0x169   : > { %v1353_v45 = vpack.c.bf16 %v868_v41, %v868_v41  ;;  %v1379_v46 = vpack.c.bf16 %v894_v42, %v894_v42  ;;  %v739_v47 = vadd.f32 %v1691_v3, %v738_v43  ;;  %v843_v48 = vadd.f32 %v1691_v3, %v842_v44 }
 0x16a   : > { %v740_v49 = vpop.f32.mrf.mxu0  ;;  %v844_v50 = vpop.f32.mrf.mxu1 }
 0x16b   : > { %1119 = vst.msk [vmem:[%s1699_s28 + $0x58] sm:$0xf] %vm1096_vm0, %v1353_v45  ;;  %1145 = vst.msk [vmem:[%s1699_s28 + $0xc0] sm:$0xf] %vm1096_vm0, %v1379_v46  ;;  %v869_v51 = vmax.f32 %v739_v47, 0.0  ;;  %v895_v52 = vmax.f32 %v843_v48, 0.0 }
 0x16c   : > { %v743_v53 = vpop.f32.mrf.mxu0 }
 0x16d   : > { %v1354_v54 = vpack.c.bf16 %v869_v51, %v869_v51  ;;  %v1380_v55 = vpack.c.bf16 %v895_v52, %v895_v52  ;;  %v744_v56 = vadd.f32 %v1691_v3, %v743_v53 }
 0x16e   : > { %v745_v57 = vpop.f32.mrf.mxu0 }
 0x16f   : > { %1120 = vst.msk [vmem:[%s1699_s28 + $0x5c] sm:$0xf] %vm1096_vm0, %v1354_v54  ;;  %1146 = vst.msk [vmem:[%s1699_s28 + $0xc4] sm:$0xf] %vm1096_vm0, %v1380_v55  ;;  %v870_v58 = vmax.f32 %v744_v56, 0.0 }
 0x170   : > { %v746_v59 = vpop.f32.mrf.mxu0 }
 0x171   : > { %v1355_v60 = vpack.c.bf16 %v870_v58, %v870_v58  ;;  %v747_v61 = vadd.f32 %v1691_v3, %v746_v59 }
 0x172   : > { %v748_v62 = vpop.f32.mrf.mxu0 }
 0x173   : > { %1121 = vst.msk [vmem:[%s1699_s28 + $0x60] sm:$0xf] %vm1096_vm0, %v1355_v60  ;;  %v871_v63 = vmax.f32 %v747_v61, 0.0 }
 0x175   : > { %v1356_v0 = vpack.c.bf16 %v871_v63, %v871_v63 }
 0x177   : > { %1122 = vst.msk [vmem:[%s1699_s28 + $0x64] sm:$0xf] %vm1096_vm0, %v1356_v0 }
 0x178 PF: > { %s13_s12 = sadd.s32 1, %s1519_s12  }
 0x179   : > { %p10_p4 = scmp.ge.s32.totalorder %s13_s12, 4  }
 0x17b   :  { %12 = sbr.rel (!%p10_p4) target bundleno = 1 (0x1), region = 62 }

// kernel: qnetwork_forward.5
= control target key start
LH: loop header
LB: loop body
LE: loop exit
PB: predicated region body
PF: predicated region fallthrough
CT: control target
= control target key end

     0   :  { %vm880_vm0 = vcmask 519168   ;;  %s1637_s1 = inlined_call_operand.vmem [shape: bf16[512,64], index: 1, kind: input, shape index: {}]   ;;  %s1638_s0 = inlined_call_operand.vmem [shape: bf16[168,512], index: 0, kind: input, shape index: {}]   ;;  %s1639_s2 = inlined_call_operand.vmem [shape: f32[1,64], index: 2, kind: input, shape index: {}]   ;;  %s1640_s3 = inlined_call_operand.vmem [shape: bf16[168,64], index: 3, kind: output, shape index: {}]  }
   0x1   :  { %v1189_v0 = vld [vmem:[%s1637_s1 + $0x78] sm:$0xff]   ;;  %v1193_v4 = vld [vmem:[%s1637_s1 + $0x70] sm:$0xff]   ;;  %v1197_v8 = vld [vmem:[%s1637_s1 + $0x68] sm:$0xff]  }
   0x2   :  { %v1190_v1 = vld [vmem:[%s1637_s1 + $0xf8] sm:$0xff]   ;;  %1025 = vmatprep.subr.bf16.mxu0 %v1189_v0  ;;  %v1194_v5 = vld [vmem:[%s1637_s1 + $0xf0] sm:$0xff]   ;;  %v1198_v9 = vld [vmem:[%s1637_s1 + $0xe8] sm:$0xff]  }
   0x3   :  { %v1191_v2 = vld [vmem:[%s1637_s1 + $0x38] sm:$0xff]   ;;  %1107 = vmatprep.subr.bf16.mxu1 %v1190_v1  ;;  %v1195_v6 = vld [vmem:[%s1637_s1 + $0x30] sm:$0xff]   ;;  %v1199_v10 = vld [vmem:[%s1637_s1 + $0x28] sm:$0xff]  }
   0x4   :  { %v1192_v3 = vld [vmem:[%s1637_s1 + $0xb8] sm:$0xff]   ;;  %1026 = vmatpush3.bf16.msra.mxu0 %v1191_v2  ;;  %v1196_v7 = vld [vmem:[%s1637_s1 + $0xb0] sm:$0xff]   ;;  %v1200_v11 = vld [vmem:[%s1637_s1 + $0xa8] sm:$0xff]  }
   0x5   :  { %1108 = vmatpush3.bf16.msra.mxu1 %v1192_v3  ;;  %1027 = vmatprep.subr.bf16.mxu0 %v1193_v4  ;;  %v1201_v12 = vld [vmem:[%s1637_s1 + $0x60] sm:$0xff]   ;;  %v1205_v16 = vld [vmem:[%s1637_s1 + $0x58] sm:$0xff]   ;;  %v1209_v20 = vld [vmem:[%s1637_s1 + $0x50] sm:$0xff]  }
   0x6   :  { %1109 = vmatprep.subr.bf16.mxu1 %v1194_v5  ;;  %v1202_v13 = vld [vmem:[%s1637_s1 + $0xe0] sm:$0xff]   ;;  %v1206_v17 = vld [vmem:[%s1637_s1 + $0xd8] sm:$0xff]   ;;  %v1210_v21 = vld [vmem:[%s1637_s1 + $0xd0] sm:$0xff]  }
   0x7   :  { %v1203_v14 = vld [vmem:[%s1637_s1 + $0x20] sm:$0xff]   ;;  %v1207_v18 = vld [vmem:[%s1637_s1 + $0x18] sm:$0xff]   ;;  %v1211_v22 = vld [vmem:[%s1637_s1 + $0x10] sm:$0xff]  }
   0x8   :  { %1028 = vmatpush3.bf16.msra.mxu0 %v1195_v6  ;;  %v1204_v15 = vld [vmem:[%s1637_s1 + $0xa0] sm:$0xff]   ;;  %v1208_v19 = vld [vmem:[%s1637_s1 + $0x98] sm:$0xff]   ;;  %v1212_v23 = vld [vmem:[%s1637_s1 + $0x90] sm:$0xff]  }
   0x9   :  { %1110 = vmatpush3.bf16.msra.mxu1 %v1196_v7  ;;  %1029 = vmatprep.subr.bf16.mxu0 %v1197_v8  ;;  %v1213_v24 = vld [vmem:[%s1637_s1 + $0x48] sm:$0xff]   ;;  %v1217_v28 = vld [vmem:[%s1637_s1 + $0x40] sm:$0xff]  }
   0xa   :  { %1111 = vmatprep.subr.bf16.mxu1 %v1198_v9  ;;  %v1214_v25 = vld [vmem:[%s1637_s1 + $0xc8] sm:$0xff]   ;;  %v1218_v29 = vld [vmem:[%s1637_s1 + $0xc0] sm:$0xff]  }
   0xb   :  { %v1215_v26 = vld [vmem:[%s1637_s1 + $0x8] sm:$0xff]   ;;  %v1219_v30 = vld [vmem:[%s1637_s1] sm:$0xff]  }
   0xc   :  { %1030 = vmatpush3.bf16.msra.mxu0 %v1199_v10  ;;  %v1216_v27 = vld [vmem:[%s1637_s1 + $0x88] sm:$0xff]   ;;  %v1220_v31 = vld [vmem:[%s1637_s1 + $0x80] sm:$0xff]  }
   0xd   :  { %1112 = vmatpush3.bf16.msra.mxu1 %v1200_v11  ;;  %1031 = vmatprep.subr.bf16.mxu0 %v1201_v12  ;;  %v1221_v32 = vld [vmem:[%s1638_s0] ss:$16 sps:$4 sm:$0xff]   ;;  %v1223_v33 = vld [vmem:[%s1638_s0 + $0x4] ss:$16 sps:$4 sm:$0xff]   ;;  %v1224_v34 = vld [vmem:[%s1638_s0 + $0x8] ss:$16 sps:$4 sm:$0xff]  }
   0xe   :  { %1113 = vmatprep.subr.bf16.mxu1 %v1202_v13  ;;  %v1226_v35 = vld [vmem:[%s1638_s0 + $0xc] ss:$16 sps:$4 sm:$0xff]   ;;  %566 = vmatprep.mubr.bf16.mxu0 %v1223_v33  ;;  %v1227_v36 = vld [vmem:[%s1638_s0 + $0x24] ss:$16 sps:$4 sm:$0xff]   ;;  %v1231_v38 = vld [vmem:[%s1638_s0 + $0x20] ss:$16 sps:$4 sm:$0xff]  }
   0xf   :  { %686 = vmatprep.mubr.bf16.mxu1 %v1226_v35  ;;  %v1229_v37 = vld [vmem:[%s1638_s0 + $0x2c] ss:$16 sps:$4 sm:$0xff]   ;;  %v1232_v39 = vld [vmem:[%s1638_s0 + $0x28] ss:$16 sps:$4 sm:$0xff]   ;;  %v1233_v40 = vld [vmem:[%s1638_s0 + $0x44] ss:$16 sps:$4 sm:$0xff]  }
  0x10   :  { %1032 = vmatpush3.bf16.msra.mxu0 %v1203_v14  ;;  %v1235_v41 = vld [vmem:[%s1638_s0 + $0x4c] ss:$16 sps:$4 sm:$0xff]   ;;  %v1237_v42 = vld [vmem:[%s1638_s0 + $0x40] ss:$16 sps:$4 sm:$0xff]   ;;  %v1238_v43 = vld [vmem:[%s1638_s0 + $0x48] ss:$16 sps:$4 sm:$0xff]  }
  0x11   :  { %1114 = vmatpush3.bf16.msra.mxu1 %v1204_v15  ;;  %1033 = vmatprep.subr.bf16.mxu0 %v1205_v16  ;;  %v1239_v44 = vld [vmem:[%s1638_s0 + $0x64] ss:$16 sps:$4 sm:$0xff]   ;;  %v1241_v45 = vld [vmem:[%s1638_s0 + $0x6c] ss:$16 sps:$4 sm:$0xff]   ;;  %v1243_v46 = vld [vmem:[%s1638_s0 + $0x60] ss:$16 sps:$4 sm:$0xff]  }
  0x12   :  { %1115 = vmatprep.subr.bf16.mxu1 %v1206_v17  ;;  %v1244_v47 = vld [vmem:[%s1638_s0 + $0x68] ss:$16 sps:$4 sm:$0xff]   ;;  %v1245_v48 = vld [vmem:[%s1638_s0 + $0x84] ss:$16 sps:$4 sm:$0xff]   ;;  %v1247_v49 = vld [vmem:[%s1638_s0 + $0x8c] ss:$16 sps:$4 sm:$0xff]  }
  0x13   :  { %v1249_v50 = vld [vmem:[%s1638_s0 + $0x80] ss:$16 sps:$4 sm:$0xff]   ;;  %v1250_v51 = vld [vmem:[%s1638_s0 + $0x88] ss:$16 sps:$4 sm:$0xff]   ;;  %v1251_v52 = vld [vmem:[%s1638_s0 + $0xa4] ss:$16 sps:$4 sm:$0xff]  }
  0x14   :  { %1034 = vmatpush3.bf16.msra.mxu0 %v1207_v18  ;;  %v1253_v53 = vld [vmem:[%s1638_s0 + $0xac] ss:$16 sps:$4 sm:$0xff]   ;;  %v1255_v54 = vld [vmem:[%s1638_s0 + $0xa0] ss:$16 sps:$4 sm:$0xff]   ;;  %v1256_v55 = vld [vmem:[%s1638_s0 + $0xa8] ss:$16 sps:$4 sm:$0xff]  }
  0x15   :  { %1116 = vmatpush3.bf16.msra.mxu1 %v1208_v19  ;;  %1035 = vmatprep.subr.bf16.mxu0 %v1209_v20  ;;  %v1257_v56 = vld [vmem:[%s1638_s0 + $0xc4] ss:$16 sps:$4 sm:$0xff]   ;;  %v1259_v57 = vld [vmem:[%s1638_s0 + $0xcc] ss:$16 sps:$4 sm:$0xff]   ;;  %v1261_v58 = vld [vmem:[%s1638_s0 + $0xc0] ss:$16 sps:$4 sm:$0xff]  }
  0x16   :  { %1117 = vmatprep.subr.bf16.mxu1 %v1210_v21  ;;  %v1262_v59 = vld [vmem:[%s1638_s0 + $0xc8] ss:$16 sps:$4 sm:$0xff]   ;;  %v1263_v60 = vld [vmem:[%s1638_s0 + $0xe4] ss:$16 sps:$4 sm:$0xff]   ;;  %v1265_v61 = vld [vmem:[%s1638_s0 + $0xec] ss:$16 sps:$4 sm:$0xff]  }
  0x17   :  { %v1267_v62 = vld [vmem:[%s1638_s0 + $0xe0] ss:$16 sps:$4 sm:$0xff]   ;;  %v1268_v63 = vld [vmem:[%s1638_s0 + $0xe8] ss:$16 sps:$4 sm:$0xff]   ;;  %v1269_v0 = vld [vmem:[%s1638_s0 + $0x104] ss:$16 sps:$4 sm:$0xff]  }
  0x18   :  { %1036 = vmatpush3.bf16.msra.mxu0 %v1211_v22  ;;  %v1271_v1 = vld [vmem:[%s1638_s0 + $0x10c] ss:$16 sps:$4 sm:$0xff]   ;;  %v1273_v2 = vld [vmem:[%s1638_s0 + $0x100] ss:$16 sps:$4 sm:$0xff]   ;;  %v1274_v3 = vld [vmem:[%s1638_s0 + $0x108] ss:$16 sps:$4 sm:$0xff]  }
  0x19   :  { %1118 = vmatpush3.bf16.msra.mxu1 %v1212_v23  ;;  %1037 = vmatprep.subr.bf16.mxu0 %v1213_v24  ;;  %v1275_v4 = vld [vmem:[%s1638_s0 + $0x124] ss:$16 sps:$4 sm:$0xff]   ;;  %v1277_v5 = vld [vmem:[%s1638_s0 + $0x12c] ss:$16 sps:$4 sm:$0xff]   ;;  %v1279_v8 = vld [vmem:[%s1638_s0 + $0x120] ss:$16 sps:$4 sm:$0xff]  }
  0x1a   :  { %1119 = vmatprep.subr.bf16.mxu1 %v1214_v25  ;;  %v55_v6 = vld [vmem:[%s1638_s0 + $0x140] sm:$0xff]  ;;  %v56_v7 = vld [vmem:[%s1638_s0 + $0x148] sm:$0xff] }
  0x1b   :  { %v1280_v9 = vld [vmem:[%s1638_s0 + $0x128] ss:$16 sps:$4 sm:$0xff]   ;;  %v948_v10 = vcombine.high %v55_v6, %v55_v6  ;;  %v950_v11 = vcombine.high %v56_v7, %v56_v7  ;;  %v947_v12 = vcombine.low %v55_v6, %v55_v6  ;;  %v949_v13 = vcombine.low %v56_v7, %v56_v7  ;;  %v1530_v16 = vld [vmem:[%s1639_s2] ss:$0 sm:$0xff] }
  0x1c   :  { %1038 = vmatpush3.bf16.msra.mxu0 %v1215_v26 }
  0x1d   :  { %1120 = vmatpush3.bf16.msra.mxu1 %v1216_v27  ;;  %1039 = vmatprep.subr.bf16.mxu0 %v1217_v28 }
  0x1e   :  { %1121 = vmatprep.subr.bf16.mxu1 %v1218_v29 }
  0x20   :  { %1040 = vmatpush3.bf16.msra.mxu0 %v1219_v30 }
  0x21   :  { %1122 = vmatpush3.bf16.msra.mxu1 %v1220_v31 }
  0x23   :  { %567 = vmatmul.mubr.bf16.vlgmr.msra.gmra.mxu0 %v1221_v32 }
  0x24   :  { %687 = vmatmul.mubr.bf16.vlgmr.msra.gmra.mxu1 %v1224_v34  ;;  %574 = vmatprep.mubr.bf16.mxu0 %v1227_v36 }
  0x25   :  { %694 = vmatprep.mubr.bf16.mxu1 %v1229_v37 }
  0x2b   :  { %575 = vmatmul.mubr.bf16.gmra.mxu0 %v1231_v38 }
  0x2c   :  { %695 = vmatmul.mubr.bf16.gmra.mxu1 %v1232_v39  ;;  %582 = vmatprep.mubr.bf16.mxu0 %v1233_v40 }
  0x2d   :  { %702 = vmatprep.mubr.bf16.mxu1 %v1235_v41 }
  0x33   :  { %583 = vmatmul.mubr.bf16.gmra.mxu0 %v1237_v42 }
  0x34   :  { %703 = vmatmul.mubr.bf16.gmra.mxu1 %v1238_v43  ;;  %590 = vmatprep.mubr.bf16.mxu0 %v1239_v44 }
  0x35   :  { %710 = vmatprep.mubr.bf16.mxu1 %v1241_v45 }
  0x3b   :  { %591 = vmatmul.mubr.bf16.gmra.mxu0 %v1243_v46 }
  0x3c   :  { %711 = vmatmul.mubr.bf16.gmra.mxu1 %v1244_v47  ;;  %598 = vmatprep.mubr.bf16.mxu0 %v1245_v48 }
  0x3d   :  { %718 = vmatprep.mubr.bf16.mxu1 %v1247_v49 }
  0x43   :  { %599 = vmatmul.mubr.bf16.gmra.mxu0 %v1249_v50 }
  0x44   :  { %719 = vmatmul.mubr.bf16.gmra.mxu1 %v1250_v51  ;;  %606 = vmatprep.mubr.bf16.mxu0 %v1251_v52 }
  0x45   :  { %726 = vmatprep.mubr.bf16.mxu1 %v1253_v53 }
  0x4b   :  { %607 = vmatmul.mubr.bf16.gmra.mxu0 %v1255_v54 }
  0x4c   :  { %727 = vmatmul.mubr.bf16.gmra.mxu1 %v1256_v55  ;;  %614 = vmatprep.mubr.bf16.mxu0 %v1257_v56 }
  0x4d   :  { %734 = vmatprep.mubr.bf16.mxu1 %v1259_v57 }
  0x53   :  { %615 = vmatmul.mubr.bf16.gmra.mxu0 %v1261_v58 }
  0x54   :  { %735 = vmatmul.mubr.bf16.gmra.mxu1 %v1262_v59  ;;  %622 = vmatprep.mubr.bf16.mxu0 %v1263_v60 }
  0x55   :  { %742 = vmatprep.mubr.bf16.mxu1 %v1265_v61 }
  0x5b   :  { %623 = vmatmul.mubr.bf16.gmra.mxu0 %v1267_v62 }
  0x5c   :  { %743 = vmatmul.mubr.bf16.gmra.mxu1 %v1268_v63  ;;  %630 = vmatprep.mubr.bf16.mxu0 %v1269_v0 }
  0x5d   :  { %750 = vmatprep.mubr.bf16.mxu1 %v1271_v1 }
  0x63   :  { %631 = vmatmul.mubr.bf16.gmra.mxu0 %v1273_v2 }
  0x64   :  { %751 = vmatmul.mubr.bf16.gmra.mxu1 %v1274_v3  ;;  %638 = vmatprep.mubr.bf16.mxu0 %v1275_v4 }
  0x65   :  { %758 = vmatprep.mubr.bf16.mxu1 %v1277_v5 }
  0x6b   :  { %639 = vmatmul.mubr.bf16.gmra.mxu0 %v1279_v8 }
  0x6c   :  { %759 = vmatmul.mubr.bf16.gmra.mxu1 %v1280_v9  ;;  %646 = vmatprep.mubr.bf16.mxu0 %v948_v10 }
  0x6d   :  { %766 = vmatprep.mubr.bf16.mxu1 %v950_v11 }
  0x73   :  { %647 = vmatmul.mubr.bf16.gmra.mxu0 %v947_v12 }
  0x74   :  { %767 = vmatmul.mubr.bf16.gmra.mxu1 %v949_v13 }
  0xe3   :  { %v1041_v14 = vpop.f32.mrf.mxu0 }
  0xe4   :  { %v1123_v15 = vpop.f32.mrf.mxu1 }
  0xe5   :  { %v1042_v17 = vpop.f32.mrf.mxu0 }
  0xe6   :  { %v1043_v18 = vadd.f32 %v1042_v17, %v1041_v14  ;;  %v1124_v19 = vpop.f32.mrf.mxu1 }
  0xe7   :  { %v1044_v20 = vpop.f32.mrf.mxu0  ;;  %v1125_v22 = vadd.f32 %v1124_v19, %v1123_v15 }
  0xe8   :  { %v569_v21 = vadd.f32 %v1043_v18, %v1530_v16  ;;  %v1126_v23 = vpop.f32.mrf.mxu1 }
  0xe9   :  { %v1045_v24 = vpop.f32.mrf.mxu0 }
  0xea   :  { %v689_v25 = vadd.f32 %v1125_v22, %v569_v21  ;;  %v1046_v26 = vadd.f32 %v1045_v24, %v1044_v20  ;;  %v1127_v27 = vpop.f32.mrf.mxu1 }
  0xeb   :  { %v1047_v28 = vpop.f32.mrf.mxu0  ;;  %v1128_v31 = vadd.f32 %v1127_v27, %v1126_v23 }
  0xec   :  { %v774_v29 = vmax.f32 %v689_v25, 0.0  ;;  %v572_v30 = vadd.f32 %v1046_v26, %v1530_v16  ;;  %v1129_v32 = vpop.f32.mrf.mxu1 }
  0xed   :  { %v1048_v33 = vpop.f32.mrf.mxu0 }
  0xee   :  { %v1004_v34 = vpack.c.bf16 %v774_v29, %v774_v29  ;;  %v692_v35 = vadd.f32 %v1128_v31, %v572_v30  ;;  %v1049_v36 = vadd.f32 %v1048_v33, %v1047_v28  ;;  %v1130_v37 = vpop.f32.mrf.mxu1 }
  0xef   :  { %v1050_v38 = vpop.f32.mrf.mxu0  ;;  %v1131_v41 = vadd.f32 %v1130_v37, %v1129_v32 }
  0xf0   :  { %881 = vst.msk [vmem:[%s1640_s3] sm:$0xf] %vm880_vm0, %v1004_v34  ;;  %v775_v39 = vmax.f32 %v692_v35, 0.0  ;;  %v577_v40 = vadd.f32 %v1049_v36, %v1530_v16  ;;  %v1132_v42 = vpop.f32.mrf.mxu1 }
  0xf1   :  { %v1051_v43 = vpop.f32.mrf.mxu0 }
  0xf2   :  { %v1005_v44 = vpack.c.bf16 %v775_v39, %v775_v39  ;;  %v697_v45 = vadd.f32 %v1131_v41, %v577_v40  ;;  %v1052_v46 = vadd.f32 %v1051_v43, %v1050_v38  ;;  %v1133_v47 = vpop.f32.mrf.mxu1 }
  0xf3   :  { %v1053_v48 = vpop.f32.mrf.mxu0  ;;  %v1134_v51 = vadd.f32 %v1133_v47, %v1132_v42 }
  0xf4   :  { %882 = vst.msk [vmem:[%s1640_s3 + $0x4] sm:$0xf] %vm880_vm0, %v1005_v44  ;;  %v776_v49 = vmax.f32 %v697_v45, 0.0  ;;  %v580_v50 = vadd.f32 %v1052_v46, %v1530_v16  ;;  %v1135_v52 = vpop.f32.mrf.mxu1 }
  0xf5   :  { %v1054_v53 = vpop.f32.mrf.mxu0 }
  0xf6   :  { %v1006_v54 = vpack.c.bf16 %v776_v49, %v776_v49  ;;  %v700_v55 = vadd.f32 %v1134_v51, %v580_v50  ;;  %v1055_v56 = vadd.f32 %v1054_v53, %v1053_v48  ;;  %v1136_v57 = vpop.f32.mrf.mxu1 }
  0xf7   :  { %v1056_v58 = vpop.f32.mrf.mxu0  ;;  %v1137_v61 = vadd.f32 %v1136_v57, %v1135_v52 }
  0xf8   :  { %883 = vst.msk [vmem:[%s1640_s3 + $0x8] sm:$0xf] %vm880_vm0, %v1006_v54  ;;  %v777_v59 = vmax.f32 %v700_v55, 0.0  ;;  %v585_v60 = vadd.f32 %v1055_v56, %v1530_v16  ;;  %v1138_v62 = vpop.f32.mrf.mxu1 }
  0xf9   :  { %v1057_v63 = vpop.f32.mrf.mxu0 }
  0xfa   :  { %v1007_v0 = vpack.c.bf16 %v777_v59, %v777_v59  ;;  %v705_v1 = vadd.f32 %v1137_v61, %v585_v60  ;;  %v1058_v2 = vadd.f32 %v1057_v63, %v1056_v58  ;;  %v1139_v3 = vpop.f32.mrf.mxu1 }
  0xfb   :  { %v1059_v4 = vpop.f32.mrf.mxu0  ;;  %v1140_v7 = vadd.f32 %v1139_v3, %v1138_v62 }
  0xfc   :  { %884 = vst.msk [vmem:[%s1640_s3 + $0xc] sm:$0xf] %vm880_vm0, %v1007_v0  ;;  %v778_v5 = vmax.f32 %v705_v1, 0.0  ;;  %v588_v6 = vadd.f32 %v1058_v2, %v1530_v16  ;;  %v1141_v8 = vpop.f32.mrf.mxu1 }
  0xfd   :  { %v1060_v9 = vpop.f32.mrf.mxu0 }
  0xfe   :  { %v1008_v10 = vpack.c.bf16 %v778_v5, %v778_v5  ;;  %v708_v11 = vadd.f32 %v1140_v7, %v588_v6  ;;  %v1061_v12 = vadd.f32 %v1060_v9, %v1059_v4  ;;  %v1142_v13 = vpop.f32.mrf.mxu1 }
  0xff   :  { %v1062_v14 = vpop.f32.mrf.mxu0  ;;  %v1143_v18 = vadd.f32 %v1142_v13, %v1141_v8 }
 0x100   :  { %885 = vst.msk [vmem:[%s1640_s3 + $0x10] sm:$0xf] %vm880_vm0, %v1008_v10  ;;  %v779_v15 = vmax.f32 %v708_v11, 0.0  ;;  %v593_v17 = vadd.f32 %v1061_v12, %v1530_v16  ;;  %v1144_v19 = vpop.f32.mrf.mxu1 }
 0x101   :  { %v1063_v20 = vpop.f32.mrf.mxu0 }
 0x102   :  { %v1009_v21 = vpack.c.bf16 %v779_v15, %v779_v15  ;;  %v713_v22 = vadd.f32 %v1143_v18, %v593_v17  ;;  %v1064_v23 = vadd.f32 %v1063_v20, %v1062_v14  ;;  %v1145_v24 = vpop.f32.mrf.mxu1 }
 0x103   :  { %v1065_v25 = vpop.f32.mrf.mxu0  ;;  %v1146_v28 = vadd.f32 %v1145_v24, %v1144_v19 }
 0x104   :  { %886 = vst.msk [vmem:[%s1640_s3 + $0x14] sm:$0xf] %vm880_vm0, %v1009_v21  ;;  %v780_v26 = vmax.f32 %v713_v22, 0.0  ;;  %v596_v27 = vadd.f32 %v1064_v23, %v1530_v16  ;;  %v1147_v29 = vpop.f32.mrf.mxu1 }
 0x105   :  { %v1066_v30 = vpop.f32.mrf.mxu0 }
 0x106   :  { %v1010_v31 = vpack.c.bf16 %v780_v26, %v780_v26  ;;  %v716_v32 = vadd.f32 %v1146_v28, %v596_v27  ;;  %v1067_v33 = vadd.f32 %v1066_v30, %v1065_v25  ;;  %v1148_v34 = vpop.f32.mrf.mxu1 }
 0x107   :  { %v1068_v35 = vpop.f32.mrf.mxu0  ;;  %v1149_v38 = vadd.f32 %v1148_v34, %v1147_v29 }
 0x108   :  { %887 = vst.msk [vmem:[%s1640_s3 + $0x18] sm:$0xf] %vm880_vm0, %v1010_v31  ;;  %v781_v36 = vmax.f32 %v716_v32, 0.0  ;;  %v601_v37 = vadd.f32 %v1067_v33, %v1530_v16  ;;  %v1150_v39 = vpop.f32.mrf.mxu1 }
 0x109   :  { %v1069_v40 = vpop.f32.mrf.mxu0 }
 0x10a   :  { %v1011_v41 = vpack.c.bf16 %v781_v36, %v781_v36  ;;  %v721_v42 = vadd.f32 %v1149_v38, %v601_v37  ;;  %v1070_v43 = vadd.f32 %v1069_v40, %v1068_v35  ;;  %v1151_v44 = vpop.f32.mrf.mxu1 }
 0x10b   :  { %v1071_v45 = vpop.f32.mrf.mxu0  ;;  %v1152_v48 = vadd.f32 %v1151_v44, %v1150_v39 }
 0x10c   :  { %888 = vst.msk [vmem:[%s1640_s3 + $0x1c] sm:$0xf] %vm880_vm0, %v1011_v41  ;;  %v782_v46 = vmax.f32 %v721_v42, 0.0  ;;  %v604_v47 = vadd.f32 %v1070_v43, %v1530_v16  ;;  %v1153_v49 = vpop.f32.mrf.mxu1 }
 0x10d   :  { %v1072_v50 = vpop.f32.mrf.mxu0 }
 0x10e   :  { %v1012_v51 = vpack.c.bf16 %v782_v46, %v782_v46  ;;  %v724_v52 = vadd.f32 %v1152_v48, %v604_v47  ;;  %v1073_v53 = vadd.f32 %v1072_v50, %v1071_v45  ;;  %v1154_v54 = vpop.f32.mrf.mxu1 }
 0x10f   :  { %v1074_v55 = vpop.f32.mrf.mxu0  ;;  %v1155_v58 = vadd.f32 %v1154_v54, %v1153_v49 }
 0x110   :  { %889 = vst.msk [vmem:[%s1640_s3 + $0x20] sm:$0xf] %vm880_vm0, %v1012_v51  ;;  %v783_v56 = vmax.f32 %v724_v52, 0.0  ;;  %v609_v57 = vadd.f32 %v1073_v53, %v1530_v16  ;;  %v1156_v59 = vpop.f32.mrf.mxu1 }
 0x111   :  { %v1075_v60 = vpop.f32.mrf.mxu0 }
 0x112   :  { %v1013_v61 = vpack.c.bf16 %v783_v56, %v783_v56  ;;  %v729_v62 = vadd.f32 %v1155_v58, %v609_v57  ;;  %v1076_v63 = vadd.f32 %v1075_v60, %v1074_v55  ;;  %v1157_v0 = vpop.f32.mrf.mxu1 }
 0x113   :  { %v1077_v1 = vpop.f32.mrf.mxu0  ;;  %v1158_v4 = vadd.f32 %v1157_v0, %v1156_v59 }
 0x114   :  { %890 = vst.msk [vmem:[%s1640_s3 + $0x24] sm:$0xf] %vm880_vm0, %v1013_v61  ;;  %v784_v2 = vmax.f32 %v729_v62, 0.0  ;;  %v612_v3 = vadd.f32 %v1076_v63, %v1530_v16  ;;  %v1159_v5 = vpop.f32.mrf.mxu1 }
 0x115   :  { %v1078_v6 = vpop.f32.mrf.mxu0 }
 0x116   :  { %v1014_v7 = vpack.c.bf16 %v784_v2, %v784_v2  ;;  %v732_v8 = vadd.f32 %v1158_v4, %v612_v3  ;;  %v1079_v9 = vadd.f32 %v1078_v6, %v1077_v1  ;;  %v1160_v10 = vpop.f32.mrf.mxu1 }
 0x117   :  { %v1080_v11 = vpop.f32.mrf.mxu0  ;;  %v1161_v14 = vadd.f32 %v1160_v10, %v1159_v5 }
 0x118   :  { %891 = vst.msk [vmem:[%s1640_s3 + $0x28] sm:$0xf] %vm880_vm0, %v1014_v7  ;;  %v785_v12 = vmax.f32 %v732_v8, 0.0  ;;  %v617_v13 = vadd.f32 %v1079_v9, %v1530_v16  ;;  %v1162_v15 = vpop.f32.mrf.mxu1 }
 0x119   :  { %v1081_v17 = vpop.f32.mrf.mxu0 }
 0x11a   :  { %v1015_v18 = vpack.c.bf16 %v785_v12, %v785_v12  ;;  %v737_v19 = vadd.f32 %v1161_v14, %v617_v13  ;;  %v1082_v20 = vadd.f32 %v1081_v17, %v1080_v11  ;;  %v1163_v21 = vpop.f32.mrf.mxu1 }
 0x11b   :  { %v1083_v22 = vpop.f32.mrf.mxu0  ;;  %v1164_v25 = vadd.f32 %v1163_v21, %v1162_v15 }
 0x11c   :  { %892 = vst.msk [vmem:[%s1640_s3 + $0x2c] sm:$0xf] %vm880_vm0, %v1015_v18  ;;  %v786_v23 = vmax.f32 %v737_v19, 0.0  ;;  %v620_v24 = vadd.f32 %v1082_v20, %v1530_v16  ;;  %v1165_v26 = vpop.f32.mrf.mxu1 }
 0x11d   :  { %v1084_v27 = vpop.f32.mrf.mxu0 }
 0x11e   :  { %v1016_v28 = vpack.c.bf16 %v786_v23, %v786_v23  ;;  %v740_v29 = vadd.f32 %v1164_v25, %v620_v24  ;;  %v1085_v30 = vadd.f32 %v1084_v27, %v1083_v22  ;;  %v1166_v31 = vpop.f32.mrf.mxu1 }
 0x11f   :  { %v1086_v32 = vpop.f32.mrf.mxu0  ;;  %v1167_v35 = vadd.f32 %v1166_v31, %v1165_v26 }
 0x120   :  { %893 = vst.msk [vmem:[%s1640_s3 + $0x30] sm:$0xf] %vm880_vm0, %v1016_v28  ;;  %v787_v33 = vmax.f32 %v740_v29, 0.0  ;;  %v625_v34 = vadd.f32 %v1085_v30, %v1530_v16  ;;  %v1168_v36 = vpop.f32.mrf.mxu1 }
 0x121   :  { %v1087_v37 = vpop.f32.mrf.mxu0 }
 0x122   :  { %v1017_v38 = vpack.c.bf16 %v787_v33, %v787_v33  ;;  %v745_v39 = vadd.f32 %v1167_v35, %v625_v34  ;;  %v1088_v40 = vadd.f32 %v1087_v37, %v1086_v32  ;;  %v1169_v41 = vpop.f32.mrf.mxu1 }
 0x123   :  { %v1089_v42 = vpop.f32.mrf.mxu0  ;;  %v1170_v45 = vadd.f32 %v1169_v41, %v1168_v36 }
 0x124   :  { %894 = vst.msk [vmem:[%s1640_s3 + $0x34] sm:$0xf] %vm880_vm0, %v1017_v38  ;;  %v788_v43 = vmax.f32 %v745_v39, 0.0  ;;  %v628_v44 = vadd.f32 %v1088_v40, %v1530_v16  ;;  %v1171_v46 = vpop.f32.mrf.mxu1 }
 0x125   :  { %v1090_v47 = vpop.f32.mrf.mxu0 }
 0x126   :  { %v1018_v48 = vpack.c.bf16 %v788_v43, %v788_v43  ;;  %v748_v49 = vadd.f32 %v1170_v45, %v628_v44  ;;  %v1091_v50 = vadd.f32 %v1090_v47, %v1089_v42  ;;  %v1172_v51 = vpop.f32.mrf.mxu1 }
 0x127   :  { %v1092_v52 = vpop.f32.mrf.mxu0  ;;  %v1173_v55 = vadd.f32 %v1172_v51, %v1171_v46 }
 0x128   :  { %895 = vst.msk [vmem:[%s1640_s3 + $0x38] sm:$0xf] %vm880_vm0, %v1018_v48  ;;  %v789_v53 = vmax.f32 %v748_v49, 0.0  ;;  %v633_v54 = vadd.f32 %v1091_v50, %v1530_v16  ;;  %v1174_v56 = vpop.f32.mrf.mxu1 }
 0x129   :  { %v1093_v57 = vpop.f32.mrf.mxu0 }
 0x12a   :  { %v1019_v58 = vpack.c.bf16 %v789_v53, %v789_v53  ;;  %v753_v59 = vadd.f32 %v1173_v55, %v633_v54  ;;  %v1094_v60 = vadd.f32 %v1093_v57, %v1092_v52  ;;  %v1175_v61 = vpop.f32.mrf.mxu1 }
 0x12b   :  { %v1095_v62 = vpop.f32.mrf.mxu0  ;;  %v1176_v1 = vadd.f32 %v1175_v61, %v1174_v56 }
 0x12c   :  { %896 = vst.msk [vmem:[%s1640_s3 + $0x3c] sm:$0xf] %vm880_vm0, %v1019_v58  ;;  %v790_v63 = vmax.f32 %v753_v59, 0.0  ;;  %v636_v0 = vadd.f32 %v1094_v60, %v1530_v16  ;;  %v1177_v2 = vpop.f32.mrf.mxu1 }
 0x12d   :  { %v1096_v3 = vpop.f32.mrf.mxu0 }
 0x12e   :  { %v1020_v4 = vpack.c.bf16 %v790_v63, %v790_v63  ;;  %v756_v5 = vadd.f32 %v1176_v1, %v636_v0  ;;  %v1097_v6 = vadd.f32 %v1096_v3, %v1095_v62  ;;  %v1178_v7 = vpop.f32.mrf.mxu1 }
 0x12f   :  { %v1098_v8 = vpop.f32.mrf.mxu0  ;;  %v1179_v11 = vadd.f32 %v1178_v7, %v1177_v2 }
 0x130   :  { %897 = vst.msk [vmem:[%s1640_s3 + $0x40] sm:$0xf] %vm880_vm0, %v1020_v4  ;;  %v791_v9 = vmax.f32 %v756_v5, 0.0  ;;  %v641_v10 = vadd.f32 %v1097_v6, %v1530_v16  ;;  %v1180_v12 = vpop.f32.mrf.mxu1 }
 0x131   :  { %v1099_v13 = vpop.f32.mrf.mxu0 }
 0x132   :  { %v1021_v14 = vpack.c.bf16 %v791_v9, %v791_v9  ;;  %v761_v15 = vadd.f32 %v1179_v11, %v641_v10  ;;  %v1100_v17 = vadd.f32 %v1099_v13, %v1098_v8  ;;  %v1181_v18 = vpop.f32.mrf.mxu1 }
 0x133   :  { %v1101_v19 = vpop.f32.mrf.mxu0  ;;  %v1182_v22 = vadd.f32 %v1181_v18, %v1180_v12 }
 0x134   :  { %898 = vst.msk [vmem:[%s1640_s3 + $0x44] sm:$0xf] %vm880_vm0, %v1021_v14  ;;  %v792_v20 = vmax.f32 %v761_v15, 0.0  ;;  %v644_v21 = vadd.f32 %v1100_v17, %v1530_v16  ;;  %v1183_v23 = vpop.f32.mrf.mxu1 }
 0x135   :  { %v1102_v24 = vpop.f32.mrf.mxu0 }
 0x136   :  { %v1022_v25 = vpack.c.bf16 %v792_v20, %v792_v20  ;;  %v764_v26 = vadd.f32 %v1182_v22, %v644_v21  ;;  %v1103_v27 = vadd.f32 %v1102_v24, %v1101_v19  ;;  %v1184_v28 = vpop.f32.mrf.mxu1 }
 0x137   :  { %v1104_v29 = vpop.f32.mrf.mxu0  ;;  %v1185_v32 = vadd.f32 %v1184_v28, %v1183_v23 }
 0x138   :  { %899 = vst.msk [vmem:[%s1640_s3 + $0x48] sm:$0xf] %vm880_vm0, %v1022_v25  ;;  %v793_v30 = vmax.f32 %v764_v26, 0.0  ;;  %v649_v31 = vadd.f32 %v1103_v27, %v1530_v16  ;;  %v1186_v33 = vpop.f32.mrf.mxu1 }
 0x139   :  { %v1105_v34 = vpop.f32.mrf.mxu0 }
 0x13a   :  { %v1023_v35 = vpack.c.bf16 %v793_v30, %v793_v30  ;;  %v769_v36 = vadd.f32 %v1185_v32, %v649_v31  ;;  %v1187_v37 = vpop.f32.mrf.mxu1 }
 0x13c   :  { %900 = vst.msk [vmem:[%s1640_s3 + $0x4c] sm:$0xf] %vm880_vm0, %v1023_v35  ;;  %v794_v38 = vmax.f32 %v769_v36, 0.0 }
 0x13e   :  { %v1024_v39 = vpack.c.bf16 %v794_v38, %v794_v38 }
 0x140   :  { %901 = vst.msk [vmem:[%s1640_s3 + $0x50] sm:$0xf] %vm880_vm0, %v1024_v39 }

// kernel: qnetwork_forward.6
= control target key start
LH: loop header
LB: loop body
LE: loop exit
PB: predicated region body
PF: predicated region fallthrough
CT: control target
= control target key end

     0   :  { %v1247_v34 = vmov 0.0   ;;  %vm1248_vm0 = vmmov 0   ;;  %vm516_vm1 = vcmask 523264   ;;  %vm868_vm2 = vcmask 519168   ;;  %s1647_s1 = inlined_call_operand.vmem [shape: bf16[576,64], index: 1, kind: input, shape index: {}]   ;;  %s1648_s0 = inlined_call_operand.vmem [shape: bf16[104,576], index: 0, kind: input, shape index: {}]   ;;  %s1649_s2 = inlined_call_operand.vmem [shape: f32[1,64], index: 2, kind: input, shape index: {}]   ;;  %s1650_s3 = inlined_call_operand.vmem [shape: bf16[104,64], index: 3, kind: output, shape index: {}]  }
   0x1   :  { %v1164_v0 = vld [vmem:[%s1647_s1 + $0x78] sm:$0xff]   ;;  %v1168_v4 = vld [vmem:[%s1647_s1 + $0x70] sm:$0xff]   ;;  %v1172_v8 = vld [vmem:[%s1647_s1 + $0x68] sm:$0xff]  }
   0x2   :  { %v1165_v1 = vld [vmem:[%s1647_s1 + $0xf8] sm:$0xff]   ;;  %991 = vmatprep.subr.bf16.mxu0 %v1164_v0  ;;  %v1169_v5 = vld [vmem:[%s1647_s1 + $0xf0] sm:$0xff]   ;;  %v1173_v9 = vld [vmem:[%s1647_s1 + $0xe8] sm:$0xff]  }
   0x3   :  { %v1166_v2 = vld [vmem:[%s1647_s1 + $0x38] sm:$0xff]   ;;  %1049 = vmatprep.subr.bf16.mxu1 %v1165_v1  ;;  %v1170_v6 = vld [vmem:[%s1647_s1 + $0x30] sm:$0xff]   ;;  %v1174_v10 = vld [vmem:[%s1647_s1 + $0x28] sm:$0xff]  }
   0x4   :  { %v1167_v3 = vld [vmem:[%s1647_s1 + $0xb8] sm:$0xff]   ;;  %992 = vmatpush3.bf16.msra.mxu0 %v1166_v2  ;;  %v1171_v7 = vld [vmem:[%s1647_s1 + $0xb0] sm:$0xff]   ;;  %v1175_v11 = vld [vmem:[%s1647_s1 + $0xa8] sm:$0xff]  }
   0x5   :  { %1050 = vmatpush3.bf16.msra.mxu1 %v1167_v3  ;;  %993 = vmatprep.subr.bf16.mxu0 %v1168_v4  ;;  %v1176_v12 = vld [vmem:[%s1647_s1 + $0x60] sm:$0xff]   ;;  %v1180_v16 = vld [vmem:[%s1647_s1 + $0x58] sm:$0xff]   ;;  %v1184_v20 = vld [vmem:[%s1647_s1 + $0x50] sm:$0xff]  }
   0x6   :  { %1051 = vmatprep.subr.bf16.mxu1 %v1169_v5  ;;  %v1177_v13 = vld [vmem:[%s1647_s1 + $0xe0] sm:$0xff]   ;;  %v1181_v17 = vld [vmem:[%s1647_s1 + $0xd8] sm:$0xff]   ;;  %v1185_v21 = vld [vmem:[%s1647_s1 + $0xd0] sm:$0xff]  }
   0x7   :  { %v1178_v14 = vld [vmem:[%s1647_s1 + $0x20] sm:$0xff]   ;;  %v1182_v18 = vld [vmem:[%s1647_s1 + $0x18] sm:$0xff]   ;;  %v1186_v22 = vld [vmem:[%s1647_s1 + $0x10] sm:$0xff]  }
   0x8   :  { %994 = vmatpush3.bf16.msra.mxu0 %v1170_v6  ;;  %v1179_v15 = vld [vmem:[%s1647_s1 + $0xa0] sm:$0xff]   ;;  %v1183_v19 = vld [vmem:[%s1647_s1 + $0x98] sm:$0xff]   ;;  %v1187_v23 = vld [vmem:[%s1647_s1 + $0x90] sm:$0xff]  }
   0x9   :  { %1052 = vmatpush3.bf16.msra.mxu1 %v1171_v7  ;;  %995 = vmatprep.subr.bf16.mxu0 %v1172_v8  ;;  %v1188_v24 = vld [vmem:[%s1647_s1 + $0x48] sm:$0xff]   ;;  %v1192_v28 = vld [vmem:[%s1647_s1 + $0x40] sm:$0xff]   ;;  %v1202_v37 = vld [vmem:[%s1647_s1 + $0x118] sm:$0xff]  }
   0xa   :  { %1053 = vmatprep.subr.bf16.mxu1 %v1173_v9  ;;  %v1189_v25 = vld [vmem:[%s1647_s1 + $0xc8] sm:$0xff]   ;;  %v1193_v29 = vld [vmem:[%s1647_s1 + $0xc0] sm:$0xff]   ;;  %v1213_v43 = vld [vmem:[%s1647_s1 + $0x110] sm:$0xff]  }
   0xb   :  { %v1190_v26 = vld [vmem:[%s1647_s1 + $0x8] sm:$0xff]   ;;  %v1194_v30 = vld [vmem:[%s1647_s1] sm:$0xff]   ;;  %v1211_v44 = vld [vmem:[%s1648_s0 + $0x5c] ss:$20 sps:$4 sm:$0xff]  }
   0xc   :  { %996 = vmatpush3.bf16.msra.mxu0 %v1174_v10  ;;  %v1191_v27 = vld [vmem:[%s1647_s1 + $0x88] sm:$0xff]   ;;  %v1195_v31 = vld [vmem:[%s1647_s1 + $0x80] sm:$0xff]   ;;  %v1216_v48 = vld [vmem:[%s1648_s0 + $0x7c] ss:$20 sps:$4 sm:$0xff]  }
   0xd   :  { %1054 = vmatpush3.bf16.msra.mxu1 %v1175_v11  ;;  %997 = vmatprep.subr.bf16.mxu0 %v1176_v12  ;;  %v1196_v32 = vld [vmem:[%s1648_s0] ss:$20 sps:$4 sm:$0xff]   ;;  %v1198_v33 = vld [vmem:[%s1648_s0 + $0x4] ss:$20 sps:$4 sm:$0xff]   ;;  %v1199_v35 = vld [vmem:[%s1648_s0 + $0x8] ss:$20 sps:$4 sm:$0xff]  }
   0xe   :  { %1055 = vmatprep.subr.bf16.mxu1 %v1177_v13  ;;  %v1201_v36 = vld [vmem:[%s1648_s0 + $0xc] ss:$20 sps:$4 sm:$0xff]   ;;  %570 = vmatprep.mubr.bf16.mxu0 %v1198_v33  ;;  %v1205_v39 = vld [vmem:[%s1648_s0 + $0x34] ss:$20 sps:$4 sm:$0xff]   ;;  %v1208_v41 = vld [vmem:[%s1648_s0 + $0x30] ss:$20 sps:$4 sm:$0xff]  }
   0xf   :  { %658 = vmatprep.mubr.bf16.mxu1 %v1201_v36  ;;  %v1203_v38 = vld [vmem:[%s1648_s0 + $0x2c] ss:$20 sps:$4 sm:$0xff]   ;;  %v1207_v40 = vld [vmem:[%s1648_s0 + $0x28] ss:$20 sps:$4 sm:$0xff]   ;;  %v1214_v46 = vld [vmem:[%s1648_s0 + $0x50] ss:$20 sps:$4 sm:$0xff]  }
  0x10   :  { %998 = vmatpush3.bf16.msra.mxu0 %v1178_v14  ;;  %v1209_v42 = vld [vmem:[%s1648_s0 + $0x54] ss:$20 sps:$4 sm:$0xff]   ;;  %v1215_v47 = vld [vmem:[%s1648_s0 + $0x58] ss:$20 sps:$4 sm:$0xff]   ;;  %v1235_v50 = vld [vmem:[%s1647_s1 + $0x100] sm:$0xff]  }
  0x11   :  { %1056 = vmatpush3.bf16.msra.mxu1 %v1179_v15  ;;  %999 = vmatprep.subr.bf16.mxu0 %v1180_v16  ;;  %v1222_v45 = vld [vmem:[%s1647_s1 + $0x108] sm:$0xff]   ;;  %v1218_v49 = vld [vmem:[%s1648_s0 + $0x84] ss:$20 sps:$4 sm:$0xff]   ;;  %v1221_v52 = vld [vmem:[%s1648_s0 + $0x80] ss:$20 sps:$4 sm:$0xff]  }
  0x12   :  { %1057 = vmatprep.subr.bf16.mxu1 %v1181_v17  ;;  %v1220_v51 = vld [vmem:[%s1648_s0 + $0x78] ss:$20 sps:$4 sm:$0xff]   ;;  %v1227_v55 = vld [vmem:[%s1648_s0 + $0xa0] ss:$20 sps:$4 sm:$0xff]   ;;  %v1228_v56 = vld [vmem:[%s1648_s0 + $0xa8] ss:$20 sps:$4 sm:$0xff]  }
  0x13   :  { %v1223_v53 = vld [vmem:[%s1648_s0 + $0xa4] ss:$20 sps:$4 sm:$0xff]   ;;  %v1225_v54 = vld [vmem:[%s1648_s0 + $0xac] ss:$20 sps:$4 sm:$0xff]   ;;  %v1231_v58 = vld [vmem:[%s1648_s0 + $0xd4] ss:$20 sps:$4 sm:$0xff]  }
  0x14   :  { %1000 = vmatpush3.bf16.msra.mxu0 %v1182_v18  ;;  %v1229_v57 = vld [vmem:[%s1648_s0 + $0xcc] ss:$20 sps:$4 sm:$0xff]   ;;  %v51_v59 = vld [vmem:[%s1648_s0 + $0xf0] sm:$0xff]  ;;  %v52_v60 = vld [vmem:[%s1648_s0 + $0xf8] sm:$0xff] }
  0x15   :  { %1058 = vmatpush3.bf16.msra.mxu1 %v1183_v19  ;;  %1001 = vmatprep.subr.bf16.mxu0 %v1184_v20  ;;  %v1233_v61 = vld [vmem:[%s1648_s0 + $0xc8] ss:$20 sps:$4 sm:$0xff]   ;;  %v1234_v62 = vld [vmem:[%s1648_s0 + $0xd0] ss:$20 sps:$4 sm:$0xff]   ;;  %v918_v63 = vcombine.high %v51_v59, %v51_v59  ;;  %v920_v0 = vcombine.high %v52_v60, %v52_v60  ;;  %v917_v1 = vcombine.low %v51_v59, %v51_v59  ;;  %v1242_v5 = vld [vmem:[%s1648_s0 + $0x38] ss:$20 sps:$4 sm:$0xff]  }
  0x16   :  { %1059 = vmatprep.subr.bf16.mxu1 %v1185_v21  ;;  %v919_v2 = vcombine.low %v52_v60, %v52_v60  ;;  %v1240_v3 = vld [vmem:[%s1648_s0 + $0x10] ss:$20 sps:$4 sm:$0xff]   ;;  %v1243_v6 = vld [vmem:[%s1648_s0 + $0xd8] ss:$20 sps:$4 sm:$0xff]   ;;  %v1244_v7 = vld [vmem:[%s1648_s0 + $0x60] ss:$20 sps:$4 sm:$0xff]  }
  0x17   :  { %v1241_v4 = vld [vmem:[%s1648_s0 + $0xb0] ss:$20 sps:$4 sm:$0xff]   ;;  %v1245_v8 = vld [vmem:[%s1648_s0 + $0x100] ss:$0 sps:$4 sm:$0xff]   ;;  %v1246_v9 = vld [vmem:[%s1648_s0 + $0x88] ss:$20 sps:$4 sm:$0xff]  }
  0x18   :  { %1002 = vmatpush3.bf16.msra.mxu0 %v1186_v22  ;;  %v1552_v59 = vld [vmem:[%s1649_s2] ss:$0 sm:$0xff] }
  0x19   :  { %1060 = vmatpush3.bf16.msra.mxu1 %v1187_v23  ;;  %1003 = vmatprep.subr.bf16.mxu0 %v1188_v24 }
  0x1a   :  { %1061 = vmatprep.subr.bf16.mxu1 %v1189_v25 }
  0x1c   :  { %1004 = vmatpush3.bf16.msra.mxu0 %v1190_v26 }
  0x1d   :  { %1062 = vmatpush3.bf16.msra.mxu1 %v1191_v27  ;;  %1005 = vmatprep.subr.bf16.mxu0 %v1192_v28 }
  0x1e   :  { %1063 = vmatprep.subr.bf16.mxu1 %v1193_v29 }
  0x20   :  { %1006 = vmatpush3.bf16.msra.mxu0 %v1194_v30 }
  0x21   :  { %1064 = vmatpush3.bf16.msra.mxu1 %v1195_v31  ;;  %1118 = vmatprep.subr.bf16.mxu0 %v1247_v34 }
  0x22   :  { %1154 = vmatprep.subr.bf16.mxu1 %v1247_v34 }
  0x23   :  { %571 = vmatmul.mubr.bf16.vlgmr.msra.gmra.mxu0 %v1196_v32 }
  0x24   :  { %659 = vmatmul.mubr.bf16.vlgmr.msra.gmra.mxu1 %v1199_v35  ;;  %1119 = vmatpush3.bf16.msra.mxu0 %v1202_v37 }
  0x25   :  { %578 = vmatprep.mubr.bf16.mxu0 %v1203_v38  ;;  %1158 = vmatpush3.bf16.msra.mxu1 %v1202_v37 }
  0x26   :  { %666 = vmatprep.mubr.bf16.mxu1 %v1205_v39  ;;  %1120 = vmatprep.subr.bf16.mxu0 %v1247_v34 }
  0x27   :  { %1155 = vmatprep.subr.bf16.mxu1 %v1247_v34 }
  0x28   :  { %1121 = vmatpush3.bf16.msra.mxu0 %v1213_v43 }
  0x29   :  { %1159 = vmatpush3.bf16.msra.mxu1 %v1213_v43  ;;  %1122 = vmatprep.subr.bf16.mxu0 %v1247_v34 }
  0x2a   :  { %1156 = vmatprep.subr.bf16.mxu1 %v1247_v34 }
  0x2b   :  { %579 = vmatmul.mubr.bf16.gmra.mxu0 %v1207_v40 }
  0x2c   :  { %667 = vmatmul.mubr.bf16.gmra.mxu1 %v1208_v41  ;;  %586 = vmatprep.mubr.bf16.mxu0 %v1209_v42 }
  0x2d   :  { %674 = vmatprep.mubr.bf16.mxu1 %v1211_v44  ;;  %1123 = vmatpush3.bf16.msra.mxu0 %v1222_v45 }
  0x2e   :  { %1160 = vmatpush3.bf16.msra.mxu1 %v1222_v45  ;;  %1124 = vmatprep.subr.bf16.mxu0 %v1247_v34 }
  0x2f   :  { %1157 = vmatprep.subr.bf16.mxu1 %v1247_v34 }
  0x31   :  { %1125 = vmatpush3.bf16.msra.mxu0 %v1235_v50 }
  0x32   :  { %1161 = vmatpush3.bf16.msra.mxu1 %v1235_v50 }
  0x33   :  { %587 = vmatmul.mubr.bf16.gmra.mxu0 %v1214_v46 }
  0x34   :  { %675 = vmatmul.mubr.bf16.gmra.mxu1 %v1215_v47  ;;  %594 = vmatprep.mubr.bf16.mxu0 %v1216_v48 }
  0x35   :  { %682 = vmatprep.mubr.bf16.mxu1 %v1218_v49 }
  0x3b   :  { %595 = vmatmul.mubr.bf16.gmra.mxu0 %v1220_v51 }
  0x3c   :  { %683 = vmatmul.mubr.bf16.gmra.mxu1 %v1221_v52  ;;  %602 = vmatprep.mubr.bf16.mxu0 %v1223_v53 }
  0x3d   :  { %690 = vmatprep.mubr.bf16.mxu1 %v1225_v54 }
  0x43   :  { %603 = vmatmul.mubr.bf16.gmra.mxu0 %v1227_v55 }
  0x44   :  { %691 = vmatmul.mubr.bf16.gmra.mxu1 %v1228_v56  ;;  %610 = vmatprep.mubr.bf16.mxu0 %v1229_v57 }
  0x45   :  { %698 = vmatprep.mubr.bf16.mxu1 %v1231_v58 }
  0x4b   :  { %611 = vmatmul.mubr.bf16.gmra.mxu0 %v1233_v61 }
  0x4c   :  { %699 = vmatmul.mubr.bf16.gmra.mxu1 %v1234_v62  ;;  %618 = vmatprep.mubr.bf16.mxu0 %v918_v63 }
  0x4d   :  { %706 = vmatprep.mubr.bf16.mxu1 %v920_v0 }
  0x53   :  { %619 = vmatmul.mubr.bf16.gmra.mxu0 %v917_v1 }
  0x54   :  { %707 = vmatmul.mubr.bf16.gmra.mxu1 %v919_v2  ;;  %1126 = vmatprep.mubr.msk.bf16.mxu0 %vm1248_vm0, %v1247_v34 }
  0x55   :  { %1142 = vmatprep.mubr.msk.bf16.mxu1 %vm1248_vm0, %v1247_v34 }
  0x5b   :  { %1127 = vmatmul.mubr.msk.bf16.vlgmr.msra.gmra.mxu0 %vm516_vm1, %v1240_v3 }
  0x5c   :  { %1143 = vmatmul.mubr.msk.bf16.vlgmr.msra.gmra.mxu1 %vm516_vm1, %v1241_v4  ;;  %1130 = vmatprep.mubr.msk.bf16.mxu0 %vm1248_vm0, %v1247_v34 }
  0x5d   :  { %1146 = vmatprep.mubr.msk.bf16.mxu1 %vm1248_vm0, %v1247_v34 }
  0x63   :  { %1131 = vmatmul.mubr.msk.bf16.gmra.mxu0 %vm516_vm1, %v1242_v5 }
  0x64   :  { %1147 = vmatmul.mubr.msk.bf16.gmra.mxu1 %vm516_vm1, %v1243_v6  ;;  %1134 = vmatprep.mubr.msk.bf16.mxu0 %vm1248_vm0, %v1247_v34 }
  0x65   :  { %1150 = vmatprep.mubr.msk.bf16.mxu1 %vm1248_vm0, %v1247_v34 }
  0x6b   :  { %1135 = vmatmul.mubr.msk.bf16.gmra.mxu0 %vm516_vm1, %v1244_v7 }
  0x6c   :  { %1151 = vmatmul.mubr.msk.bf16.gmra.mxu1 %vm516_vm1, %v1245_v8  ;;  %1138 = vmatprep.mubr.msk.bf16.mxu0 %vm1248_vm0, %v1247_v34 }
  0x73   :  { %1139 = vmatmul.mubr.msk.bf16.gmra.mxu0 %vm516_vm1, %v1246_v9 }
  0xe3   :  { %v1007_v10 = vpop.f32.mrf.mxu0 }
  0xe4   :  { %v1065_v11 = vpop.f32.mrf.mxu1 }
  0xe5   :  { %v1008_v12 = vpop.f32.mrf.mxu0 }
  0xe6   :  { %v1066_v13 = vpop.f32.mrf.mxu1  ;;  %v1009_v57 = vadd.f32 %v1008_v12, %v1007_v10 }
  0xe7   :  { %v1010_v14 = vpop.f32.mrf.mxu0  ;;  %v1067_v2 = vadd.f32 %v1066_v13, %v1065_v11 }
  0xe8   :  { %v1068_v15 = vpop.f32.mrf.mxu1  ;;  %v573_v1 = vadd.f32 %v1009_v57, %v1552_v59 }
  0xe9   :  { %v1011_v16 = vpop.f32.mrf.mxu0 }
  0xea   :  { %v1069_v17 = vpop.f32.mrf.mxu1  ;;  %v1012_v63 = vadd.f32 %v1011_v16, %v1010_v14  ;;  %v661_v14 = vadd.f32 %v1067_v2, %v573_v1 }
  0xeb   :  { %v1013_v18 = vpop.f32.mrf.mxu0  ;;  %v1070_v10 = vadd.f32 %v1069_v17, %v1068_v15 }
  0xec   :  { %v1505_v19 = vpop.f32.mrf.mxu1  ;;  %v576_v9 = vadd.f32 %v1012_v63, %v1552_v59 }
  0xed   :  { %v1014_v20 = vpop.f32.mrf.mxu0 }
  0xee   :  { %v1507_v21 = vpop.f32.mrf.mxu1  ;;  %v1015_v12 = vadd.f32 %v1014_v20, %v1013_v18  ;;  %v664_v15 = vadd.f32 %v1070_v10, %v576_v9 }
  0xef   :  { %v1509_v22 = vpop.f32.mrf.mxu0 }
  0xf0   :  { %v1511_v23 = vpop.f32.mrf.mxu1 }
  0xf1   :  { %v1513_v24 = vpop.f32.mrf.mxu0 }
  0xf2   :  { %v1515_v25 = vpop.f32.mrf.mxu1  ;;  %v1018_v17 = vadd.f32 %v1513_v24, %v1509_v22 }
  0xf3   :  { %v1517_v26 = vpop.f32.mrf.mxu0 }
  0xf4   :  { %v1519_v27 = vpop.f32.mrf.mxu1  ;;  %v584_v24 = vadd.f32 %v1018_v17, %v1552_v59 }
  0xf5   :  { %v1521_v28 = vpop.f32.mrf.mxu0 }
  0xf6   :  { %v1523_v29 = vpop.f32.mrf.mxu1 }
  0xf7   :  { %v1525_v30 = vpop.f32.mrf.mxu0 }
  0xf8   :  { %v1527_v31 = vpop.f32.mrf.mxu1 }
  0xf9   :  { %v1529_v32 = vpop.f32.mrf.mxu0 }
  0xfa   :  { %v1531_v33 = vpop.f32.mrf.mxu1 }
  0xfb   :  { %v1533_v34 = vpop.f32.mrf.mxu0 }
  0xfc   :  { %v1535_v35 = vpop.f32.mrf.mxu1 }
  0xfd   :  { %v1537_v36 = vpop.f32.mrf.mxu0 }
  0xfe   :  { %v1539_v37 = vpop.f32.mrf.mxu1 }
  0xff   :  { %v1541_v38 = vpop.f32.mrf.mxu0 }
 0x100   :  { %v1543_v39 = vpop.f32.mrf.mxu1 }
 0x101   :  { %1651 = vst [vmem:[#allocation2_spill] sm:$0xff] %v1543_v39  ;;  %v1545_v40 = vpop.f32.mrf.mxu0 }
 0x102   :  { %1652 = vst [vmem:[#allocation3_spill] sm:$0xff] %v1545_v40  ;;  %v1547_v41 = vpop.f32.mrf.mxu1 }
 0x103   :  { %1653 = vst [vmem:[#allocation4_spill] sm:$0xff] %v1547_v41  ;;  %v1031_v42 = vpop.f32.mrf.mxu0 }
 0x104   :  { %v1089_v43 = vpop.f32.mrf.mxu1 }
 0x105   :  { %v1032_v44 = vpop.f32.mrf.mxu0 }
 0x106   :  { %v1090_v45 = vpop.f32.mrf.mxu1  ;;  %v1033_v60 = vadd.f32 %v1032_v44, %v1031_v42 }
 0x107   :  { %v1034_v46 = vpop.f32.mrf.mxu0  ;;  %v1091_v5 = vadd.f32 %v1090_v45, %v1089_v43  ;;  %v581_v43 = vadd.f32 %v1015_v12, %v1552_v59  ;;  %v1073_v45 = vadd.f32 %v1507_v21, %v1505_v19  ;;  %v1076_v19 = vadd.f32 %v1515_v25, %v1511_v23 }
 0x108   :  { %v1092_v47 = vpop.f32.mrf.mxu1  ;;  %v605_v4 = vadd.f32 %v1033_v60, %v1552_v59 }
 0x109   :  { %v1035_v48 = vpop.f32.mrf.mxu0  ;;  %v669_v22 = vadd.f32 %v1073_v45, %v581_v43 }
 0x10a   :  { %v1093_v49 = vpop.f32.mrf.mxu1  ;;  %v1036_v6 = vadd.f32 %v1035_v48, %v1034_v46  ;;  %v693_v13 = vadd.f32 %v1091_v5, %v605_v4 }
 0x10b   :  { %v1037_v50 = vpop.f32.mrf.mxu0  ;;  %v1094_v57 = vadd.f32 %v1093_v49, %v1092_v47 }
 0x10c   :  { %v1095_v51 = vpop.f32.mrf.mxu1  ;;  %v608_v16 = vadd.f32 %v1036_v6, %v1552_v59 }
 0x10d   :  { %v1038_v52 = vpop.f32.mrf.mxu0 }
 0x10e   :  { %v1096_v53 = vpop.f32.mrf.mxu1  ;;  %v1039_v44 = vadd.f32 %v1038_v52, %v1037_v50  ;;  %v696_v60 = vadd.f32 %v1094_v57, %v608_v16 }
 0x10f   :  { %v1040_v54 = vpop.f32.mrf.mxu0  ;;  %v1097_v20 = vadd.f32 %v1096_v53, %v1095_v51 }
 0x110   :  { %v1098_v55 = vpop.f32.mrf.mxu1  ;;  %v613_v18 = vadd.f32 %v1039_v44, %v1552_v59 }
 0x111   :  { %v1041_v56 = vpop.f32.mrf.mxu0 }
 0x112   :  { %v1099_v58 = vpop.f32.mrf.mxu1  ;;  %v1042_v49 = vadd.f32 %v1041_v56, %v1040_v54  ;;  %v701_v54 = vadd.f32 %v1097_v20, %v613_v18 }
 0x113   :  { %v1043_v61 = vpop.f32.mrf.mxu0  ;;  %v1100_v23 = vadd.f32 %v1099_v58, %v1098_v55  ;;  %v1079_v55 = vadd.f32 %v1523_v29, %v1519_v27 }
 0x114   :  { %v1554_v62 = vpop.f32.mrf.mxu1  ;;  %v616_v56 = vadd.f32 %v1042_v49, %v1552_v59 }
 0x115   :  { %v1044_v0 = vpop.f32.mrf.mxu0 }
 0x116   :  { %v1557_v3 = vpop.f32.mrf.mxu1  ;;  %v1045_v25 = vadd.f32 %v1044_v0, %v1043_v61  ;;  %v672_v0 = vadd.f32 %v1076_v19, %v584_v24  ;;  %v704_v29 = vadd.f32 %v1100_v23, %v616_v56  ;;  %v1655_v24 = vld [vmem:[#allocation2_spill] sm:$0xff] }
 0x117   :  { %v1046_v7 = vpop.f32.mrf.mxu0 }
 0x118   :  { %v1104_v8 = vpop.f32.mrf.mxu1  ;;  %v621_v44 = vadd.f32 %v1045_v25, %v1552_v59 }
 0x119   :  { %v1047_v42 = vpop.f32.mrf.mxu0  ;;  %v1024_v8 = vadd.f32 %v1529_v32, %v1525_v30  ;;  %v1103_v30 = vadd.f32 %v1557_v3, %v1554_v62  ;;  %v1027_v62 = vadd.f32 %v1537_v36, %v1533_v34 }
 0x11a   :  { %v1105_v41 = vpop.f32.mrf.mxu1 }
 0x11b   :  { %v748_v11 = vpop.f32.mrf.mxu0  ;;  %v709_v17 = vadd.f32 %v1103_v30, %v621_v44 }
 0x11c   :  { %v749_v39 = vadd.f32 %v748_v11, %v661_v14  ;;  %v780_v40 = vpop.f32.mrf.mxu1  ;;  %v592_v11 = vadd.f32 %v1024_v8, %v1552_v59 }
 0x11d   :  { %v781_v46 = vadd.f32 %v780_v40, %v693_v13  ;;  %v1128_v48 = vpop.f32.mrf.mxu0  ;;  %v1082_v13 = vadd.f32 %v1531_v33, %v1527_v31 }
 0x11e   :  { %v802_v41 = vmax.f32 %v749_v39, 0.0  ;;  %v1144_v47 = vpop.f32.mrf.mxu1  ;;  %v1021_v39 = vadd.f32 %v1521_v28, %v1517_v26 }
 0x11f   :  { %v810_v50 = vmax.f32 %v781_v46, 0.0  ;;  %v751_v52 = vpop.f32.mrf.mxu0  ;;  %v680_v49 = vadd.f32 %v1082_v13, %v592_v11 }
 0x120   :  { %v978_v63 = vpack.c.bf16 %v802_v41, %v802_v41  ;;  %v752_v1 = vadd.f32 %v751_v52, %v664_v15  ;;  %v783_v2 = vpop.f32.mrf.mxu1  ;;  %v589_v42 = vadd.f32 %v1021_v39, %v1552_v59  ;;  %v1085_v52 = vadd.f32 %v1539_v37, %v1535_v35  ;;  %v1656_v39 = vld [vmem:[#allocation4_spill] sm:$0xff] }
 0x121   :  { %v986_v21 = vpack.c.bf16 %v810_v50, %v810_v50  ;;  %v784_v40 = vadd.f32 %v783_v2, %v696_v60  ;;  %v1129_v4 = vpop.f32.mrf.mxu0  ;;  %v597_v50 = vadd.f32 %v1027_v62, %v1552_v59  ;;  %v1654_v60 = vld [vmem:[#allocation3_spill] sm:$0xff] }
 0x122   :  { %869 = vst.msk [vmem:[%s1650_s3] sm:$0xf] %vm868_vm2, %v978_v63  ;;  %v803_v51 = vmax.f32 %v752_v1, 0.0  ;;  %v1145_v53 = vpop.f32.mrf.mxu1  ;;  %v677_v15 = vadd.f32 %v1079_v55, %v589_v42  ;;  %v1030_v63 = vadd.f32 %v1654_v60, %v1541_v38 }
 0x123   :  { %877 = vst.msk [vmem:[%s1650_s3 + $0x20] sm:$0xf] %vm868_vm2, %v986_v21  ;;  %v811_v5 = vmax.f32 %v784_v40, 0.0  ;;  %v756_v6 = vpop.f32.mrf.mxu0 }
 0x124   :  { %v979_v26 = vpack.c.bf16 %v803_v51, %v803_v51  ;;  %v757_v28 = vadd.f32 %v756_v6, %v669_v22  ;;  %v788_v7 = vpop.f32.mrf.mxu1  ;;  %v600_v38 = vadd.f32 %v1030_v63, %v1552_v59  ;;  %v1088_v51 = vadd.f32 %v1656_v39, %v1655_v24 }
 0x125   :  { %v987_v9 = vpack.c.bf16 %v811_v5, %v811_v5  ;;  %v789_v10 = vadd.f32 %v788_v7, %v701_v54  ;;  %v1132_v12 = vpop.f32.mrf.mxu0  ;;  %v685_v54 = vadd.f32 %v1085_v52, %v597_v50 }
 0x126   :  { %870 = vst.msk [vmem:[%s1650_s3 + $0x4] sm:$0xf] %vm868_vm2, %v979_v26  ;;  %v804_v58 = vmax.f32 %v757_v28, 0.0  ;;  %v1148_v61 = vpop.f32.mrf.mxu1  ;;  %v688_v26 = vadd.f32 %v1088_v51, %v600_v38 }
 0x127   :  { %878 = vst.msk [vmem:[%s1650_s3 + $0x24] sm:$0xf] %vm868_vm2, %v987_v9  ;;  %v812_v32 = vmax.f32 %v789_v10, 0.0  ;;  %v759_v27 = vpop.f32.mrf.mxu0 }
 0x128   :  { %v980_v14 = vpack.c.bf16 %v804_v58, %v804_v58  ;;  %v760_v16 = vadd.f32 %v759_v27, %v672_v0  ;;  %v791_v57 = vpop.f32.mrf.mxu1 }
 0x129   :  { %v988_v43 = vpack.c.bf16 %v812_v32, %v812_v32  ;;  %v792_v45 = vadd.f32 %v791_v57, %v704_v29  ;;  %v1133_v46 = vpop.f32.mrf.mxu0 }
 0x12a   :  { %871 = vst.msk [vmem:[%s1650_s3 + $0x8] sm:$0xf] %vm868_vm2, %v980_v14  ;;  %v805_v3 = vmax.f32 %v760_v16, 0.0  ;;  %v1149_v48 = vpop.f32.mrf.mxu1 }
 0x12b   :  { %879 = vst.msk [vmem:[%s1650_s3 + $0x28] sm:$0xf] %vm868_vm2, %v988_v43  ;;  %v813_v31 = vmax.f32 %v792_v45, 0.0  ;;  %v764_v33 = vpop.f32.mrf.mxu0 }
 0x12c   :  { %v981_v18 = vpack.c.bf16 %v805_v3, %v805_v3  ;;  %v765_v20 = vadd.f32 %v764_v33, %v677_v15  ;;  %v796_v41 = vpop.f32.mrf.mxu1 }
 0x12d   :  { %v989_v34 = vpack.c.bf16 %v813_v31, %v813_v31  ;;  %v797_v36 = vadd.f32 %v796_v41, %v709_v17  ;;  %v1136_v47 = vpop.f32.mrf.mxu0 }
 0x12e   :  { %872 = vst.msk [vmem:[%s1650_s3 + $0xc] sm:$0xf] %vm868_vm2, %v981_v18  ;;  %v806_v1 = vmax.f32 %v765_v20, 0.0  ;;  %v1152_v2 = vpop.f32.mrf.mxu1 }
 0x12f   :  { %880 = vst.msk [vmem:[%s1650_s3 + $0x2c] sm:$0xf] %vm868_vm2, %v989_v34  ;;  %v814_v19 = vmax.f32 %v797_v36, 0.0  ;;  %v767_v21 = vpop.f32.mrf.mxu0 }
 0x130   :  { %v982_v40 = vpack.c.bf16 %v806_v1, %v806_v1  ;;  %v768_v4 = vadd.f32 %v767_v21, %v680_v49  ;;  %v799_v35 = vpop.f32.mrf.mxu1 }
 0x131   :  { %v990_v37 = vpack.c.bf16 %v814_v19, %v814_v19  ;;  %v1137_v22 = vpop.f32.mrf.mxu0 }
 0x132   :  { %873 = vst.msk [vmem:[%s1650_s3 + $0x10] sm:$0xf] %vm868_vm2, %v982_v40  ;;  %v807_v53 = vmax.f32 %v768_v4, 0.0  ;;  %v1153_v56 = vpop.f32.mrf.mxu1 }
 0x133   :  { %881 = vst.msk [vmem:[%s1650_s3 + $0x30] sm:$0xf] %vm868_vm2, %v990_v37  ;;  %v772_v23 = vpop.f32.mrf.mxu0 }
 0x134   :  { %v983_v25 = vpack.c.bf16 %v807_v53, %v807_v53  ;;  %v773_v5 = vadd.f32 %v772_v23, %v685_v54 }
 0x135   :  { %v1140_v59 = vpop.f32.mrf.mxu0 }
 0x136   :  { %874 = vst.msk [vmem:[%s1650_s3 + $0x14] sm:$0xf] %vm868_vm2, %v983_v25  ;;  %v808_v6 = vmax.f32 %v773_v5, 0.0 }
 0x137   :  { %v775_v28 = vpop.f32.mrf.mxu0 }
 0x138   :  { %v984_v7 = vpack.c.bf16 %v808_v6, %v808_v6  ;;  %v776_v8 = vadd.f32 %v775_v28, %v688_v26 }
 0x139   :  { %v1141_v9 = vpop.f32.mrf.mxu0 }
 0x13a   :  { %875 = vst.msk [vmem:[%s1650_s3 + $0x18] sm:$0xf] %vm868_vm2, %v984_v7  ;;  %v809_v10 = vmax.f32 %v776_v8, 0.0 }
 0x13c   :  { %v985_v12 = vpack.c.bf16 %v809_v10, %v809_v10 }
 0x13e   :  { %876 = vst.msk [vmem:[%s1650_s3 + $0x1c] sm:$0xf] %vm868_vm2, %v985_v12 }

// kernel: qnetwork_forward.7
= control target key start
LH: loop header
LB: loop body
LE: loop exit
PB: predicated region body
PF: predicated region fallthrough
CT: control target
= control target key end

     0   :  { %vm4873_vm0 = vcmask 523264   ;;  %vm6613_vm1 = vcmask 7168   ;;  %s9365_s17 = smov 127   ;;  %vm6996_vm3 = vcmask 48128   ;;  %s12480_s1 = inlined_call_operand.vmem [shape: bf16[3136,512], index: 1, kind: input, shape index: {}]   ;;  %s12481_s0 = inlined_call_operand.vmem [shape: bf16[8,3136], index: 0, kind: input, shape index: {}]   ;;  %s12482_s2 = inlined_call_operand.vmem [shape: f32[1,512], index: 2, kind: input, shape index: {}]   ;;  %s12483_s13 = inlined_call_operand.vmem [shape: f32[8,512], index: 13, kind: output, shape index: {1}]   ;;  %s12484_s3 = inlined_call_operand.vmem [shape: bf16[512,256], index: 3, kind: input, shape index: {}]   ;;  %s12485_s7 = inlined_call_operand.vmem [shape: bf16[512,6], index: 7, kind: input, shape index: {}]   ;;  %s12486_s5 = inlined_call_operand.vmem [shape: bf16[256,2], index: 5, kind: input, shape index: {}]   ;;  %s12487_s10 = inlined_call_operand.vmem [shape: f32[8,1], index: 10, kind: input, shape index: {}]   ;;  %s12488_s4 = inlined_call_operand.vmem [shape: f32[1,256], index: 4, kind: input, shape index: {}]   ;;  %s12489_s6 = inlined_call_operand.vmem [shape: f32[1,2], index: 6, kind: input, shape index: {}]   ;;  %s12490_s15 = inlined_call_operand.vmem [shape: f32[8,1], index: 15, kind: output, shape index: {3}]   ;;  %s12491_s11 = inlined_call_operand.vmem [shape: f32[8,1], index: 11, kind: input, shape index: {}]   ;;  %s12492_s14 = inlined_call_operand.vmem [shape: f32[8,1], index: 14, kind: output, shape index: {2}]   ;;  %s12493_s8 = inlined_call_operand.vmem [shape: f32[1,6], index: 8, kind: input, shape index: {}]   ;;  %s12494_s9 = inlined_call_operand.vmem [shape: f32[1,6], index: 9, kind: input, shape index: {}]   ;;  %s12495_s16 = inlined_call_operand.vmem [shape: f32[8,1], index: 16, kind: output, shape index: {4}]   ;;  %s12496_s12 = inlined_call_operand.vmem [shape: f32[8,6], index: 12, kind: output, shape index: {0}]  }
   0x1   :  { %12498 = sst [smem:[#allocation2_spill]] %s12480_s1  ;;  %v47_v46 = vld [vmem:[%s12481_s0] sm:$0xff]  ;;  %v48_v48 = vld [vmem:[%s12481_s0 + $0x8] sm:$0xff] }
   0x2   :  { %s12499_s23 = sld [smem:[#allocation2_spill]]  ;;  %v9592_v47 = vcombine.high %v47_v46, %v47_v46  ;;  %v9603_v51 = vcombine.high %v48_v48, %v48_v48 }
   0x4   :  { %4909 = vmatprep.mubr.bf16.mxu0 %v9592_v47  ;;  %4950 = vmatprep.mubr.bf16.mxu1 %v9603_v51 }
   0x8   :  { %v8015_v0 = vld [vmem:[%s12499_s23 + $0xe4] ss:$16 sps:$4 sm:$0xff]   ;;  %v8019_v2 = vld [vmem:[%s12499_s23 + $0xe0] ss:$16 sps:$4 sm:$0xff]  }
   0x9   :  { %v8017_v1 = vld [vmem:[%s12499_s23 + $0x2e4] ss:$16 sps:$4 sm:$0xff]   ;;  %4877 = vmatprep.subr.bf16.mxu0 %v8015_v0  ;;  %v8020_v3 = vld [vmem:[%s12499_s23 + $0x2e0] ss:$16 sps:$4 sm:$0xff]  }
   0xa   :  { %4918 = vmatprep.subr.bf16.mxu1 %v8017_v1  ;;  %v8021_v4 = vld [vmem:[%s12499_s23 + $0xc4] ss:$16 sps:$4 sm:$0xff]   ;;  %4878 = vmatpush1.bf16.msra.mxu0 %v8019_v2  ;;  %v8025_v6 = vld [vmem:[%s12499_s23 + $0xc0] ss:$16 sps:$4 sm:$0xff]  }
   0xb   :  { %4919 = vmatpush1.bf16.msra.mxu1 %v8020_v3  ;;  %v8023_v5 = vld [vmem:[%s12499_s23 + $0x2c4] ss:$16 sps:$4 sm:$0xff]   ;;  %4879 = vmatprep.subr.bf16.mxu0 %v8021_v4  ;;  %v8026_v7 = vld [vmem:[%s12499_s23 + $0x2c0] ss:$16 sps:$4 sm:$0xff]  }
   0xc   :  { %4920 = vmatprep.subr.bf16.mxu1 %v8023_v5  ;;  %v8027_v8 = vld [vmem:[%s12499_s23 + $0xa4] ss:$16 sps:$4 sm:$0xff]   ;;  %v8031_v10 = vld [vmem:[%s12499_s23 + $0xa0] ss:$16 sps:$4 sm:$0xff]  }
   0xd   :  { %v8029_v9 = vld [vmem:[%s12499_s23 + $0x2a4] ss:$16 sps:$4 sm:$0xff]   ;;  %v8032_v11 = vld [vmem:[%s12499_s23 + $0x2a0] ss:$16 sps:$4 sm:$0xff]  }
   0xe   :  { %4880 = vmatpush1.bf16.msra.mxu0 %v8025_v6  ;;  %v8033_v12 = vld [vmem:[%s12499_s23 + $0x84] ss:$16 sps:$4 sm:$0xff]   ;;  %v8037_v14 = vld [vmem:[%s12499_s23 + $0x80] ss:$16 sps:$4 sm:$0xff]   ;;  %v9661_v6 = vcombine.low %v47_v46, %v47_v46 }
   0xf   :  { %4921 = vmatpush1.bf16.msra.mxu1 %v8026_v7  ;;  %4881 = vmatprep.subr.bf16.mxu0 %v8027_v8  ;;  %v8035_v13 = vld [vmem:[%s12499_s23 + $0x284] ss:$16 sps:$4 sm:$0xff]   ;;  %v8038_v15 = vld [vmem:[%s12499_s23 + $0x280] ss:$16 sps:$4 sm:$0xff]   ;;  %v9663_v7 = vcombine.low %v48_v48, %v48_v48 }
  0x10   :  { %4922 = vmatprep.subr.bf16.mxu1 %v8029_v9  ;;  %v8039_v16 = vld [vmem:[%s12499_s23 + $0x64] ss:$16 sps:$4 sm:$0xff]   ;;  %v8043_v18 = vld [vmem:[%s12499_s23 + $0x60] ss:$16 sps:$4 sm:$0xff]  }
  0x11   :  { %v8041_v17 = vld [vmem:[%s12499_s23 + $0x264] ss:$16 sps:$4 sm:$0xff]   ;;  %v8044_v19 = vld [vmem:[%s12499_s23 + $0x260] ss:$16 sps:$4 sm:$0xff]  }
  0x12   :  { %4882 = vmatpush1.bf16.msra.mxu0 %v8031_v10  ;;  %v8045_v20 = vld [vmem:[%s12499_s23 + $0x44] ss:$16 sps:$4 sm:$0xff]   ;;  %v8049_v22 = vld [vmem:[%s12499_s23 + $0x40] ss:$16 sps:$4 sm:$0xff]  }
  0x13   :  { %4923 = vmatpush1.bf16.msra.mxu1 %v8032_v11  ;;  %4883 = vmatprep.subr.bf16.mxu0 %v8033_v12  ;;  %v8047_v21 = vld [vmem:[%s12499_s23 + $0x244] ss:$16 sps:$4 sm:$0xff]   ;;  %v8050_v23 = vld [vmem:[%s12499_s23 + $0x240] ss:$16 sps:$4 sm:$0xff]  }
  0x14   :  { %4924 = vmatprep.subr.bf16.mxu1 %v8035_v13  ;;  %v8051_v24 = vld [vmem:[%s12499_s23 + $0x24] ss:$16 sps:$4 sm:$0xff]   ;;  %v8055_v26 = vld [vmem:[%s12499_s23 + $0x20] ss:$16 sps:$4 sm:$0xff]  }
  0x15   :  { %v8053_v25 = vld [vmem:[%s12499_s23 + $0x224] ss:$16 sps:$4 sm:$0xff]   ;;  %v8056_v27 = vld [vmem:[%s12499_s23 + $0x220] ss:$16 sps:$4 sm:$0xff]  }
  0x16   :  { %4884 = vmatpush1.bf16.msra.mxu0 %v8037_v14  ;;  %v8057_v28 = vld [vmem:[%s12499_s23 + $0x4] ss:$16 sps:$4 sm:$0xff]   ;;  %v8061_v30 = vld [vmem:[%s12499_s23] ss:$16 sps:$4 sm:$0xff]  }
  0x17   :  { %4925 = vmatpush1.bf16.msra.mxu1 %v8038_v15  ;;  %4885 = vmatprep.subr.bf16.mxu0 %v8039_v16  ;;  %v8059_v29 = vld [vmem:[%s12499_s23 + $0x204] ss:$16 sps:$4 sm:$0xff]   ;;  %v8062_v31 = vld [vmem:[%s12499_s23 + $0x200] ss:$16 sps:$4 sm:$0xff]  }
  0x18   :  { %4926 = vmatprep.subr.bf16.mxu1 %v8041_v17  ;;  %v8063_v32 = vld [vmem:[%s12499_s23 + $0x1e4] ss:$16 sps:$4 sm:$0xff]   ;;  %v8067_v34 = vld [vmem:[%s12499_s23 + $0x1e0] ss:$16 sps:$4 sm:$0xff]  }
  0x19   :  { %v8065_v33 = vld [vmem:[%s12499_s23 + $0x3e4] ss:$16 sps:$4 sm:$0xff]   ;;  %v8068_v35 = vld [vmem:[%s12499_s23 + $0x3e0] ss:$16 sps:$4 sm:$0xff]  }
  0x1a   :  { %4886 = vmatpush1.bf16.msra.mxu0 %v8043_v18  ;;  %v8069_v36 = vld [vmem:[%s12499_s23 + $0x1c4] ss:$16 sps:$4 sm:$0xff]   ;;  %v8073_v38 = vld [vmem:[%s12499_s23 + $0x1c0] ss:$16 sps:$4 sm:$0xff]  }
  0x1b   :  { %4927 = vmatpush1.bf16.msra.mxu1 %v8044_v19  ;;  %4887 = vmatprep.subr.bf16.mxu0 %v8045_v20  ;;  %v8071_v37 = vld [vmem:[%s12499_s23 + $0x3c4] ss:$16 sps:$4 sm:$0xff]   ;;  %v8074_v39 = vld [vmem:[%s12499_s23 + $0x3c0] ss:$16 sps:$4 sm:$0xff]  }
  0x1c   :  { %4928 = vmatprep.subr.bf16.mxu1 %v8047_v21  ;;  %v8075_v40 = vld [vmem:[%s12499_s23 + $0x1a4] ss:$16 sps:$4 sm:$0xff]   ;;  %v8079_v42 = vld [vmem:[%s12499_s23 + $0x1a0] ss:$16 sps:$4 sm:$0xff]  }
  0x1d   :  { %v8077_v41 = vld [vmem:[%s12499_s23 + $0x3a4] ss:$16 sps:$4 sm:$0xff]   ;;  %v8080_v43 = vld [vmem:[%s12499_s23 + $0x3a0] ss:$16 sps:$4 sm:$0xff]  }
  0x1e   :  { %4888 = vmatpush1.bf16.msra.mxu0 %v8049_v22  ;;  %v8081_v44 = vld [vmem:[%s12499_s23 + $0x184] ss:$16 sps:$4 sm:$0xff]   ;;  %v8085_v49 = vld [vmem:[%s12499_s23 + $0x180] ss:$16 sps:$4 sm:$0xff]  }
  0x1f   :  { %4929 = vmatpush1.bf16.msra.mxu1 %v8050_v23  ;;  %4889 = vmatprep.subr.bf16.mxu0 %v8051_v24  ;;  %v8083_v45 = vld [vmem:[%s12499_s23 + $0x384] ss:$16 sps:$4 sm:$0xff]   ;;  %v8086_v50 = vld [vmem:[%s12499_s23 + $0x380] ss:$16 sps:$4 sm:$0xff]  }
  0x20   :  { %4930 = vmatprep.subr.bf16.mxu1 %v8053_v25  ;;  %v8087_v52 = vld [vmem:[%s12499_s23 + $0x164] ss:$16 sps:$4 sm:$0xff]   ;;  %v8091_v54 = vld [vmem:[%s12499_s23 + $0x160] ss:$16 sps:$4 sm:$0xff]  }
  0x21   :  { %v8089_v53 = vld [vmem:[%s12499_s23 + $0x364] ss:$16 sps:$4 sm:$0xff]   ;;  %v8092_v55 = vld [vmem:[%s12499_s23 + $0x360] ss:$16 sps:$4 sm:$0xff]  }
  0x22   :  { %4890 = vmatpush1.bf16.msra.mxu0 %v8055_v26  ;;  %v8093_v56 = vld [vmem:[%s12499_s23 + $0x144] ss:$16 sps:$4 sm:$0xff]   ;;  %v8097_v58 = vld [vmem:[%s12499_s23 + $0x140] ss:$16 sps:$4 sm:$0xff]  }
  0x23   :  { %4931 = vmatpush1.bf16.msra.mxu1 %v8056_v27  ;;  %4891 = vmatprep.subr.bf16.mxu0 %v8057_v28  ;;  %v8095_v57 = vld [vmem:[%s12499_s23 + $0x344] ss:$16 sps:$4 sm:$0xff]   ;;  %v8098_v59 = vld [vmem:[%s12499_s23 + $0x340] ss:$16 sps:$4 sm:$0xff]  }
  0x24   :  { %4932 = vmatprep.subr.bf16.mxu1 %v8059_v29  ;;  %v8099_v60 = vld [vmem:[%s12499_s23 + $0x124] ss:$16 sps:$4 sm:$0xff]   ;;  %v8103_v62 = vld [vmem:[%s12499_s23 + $0x120] ss:$16 sps:$4 sm:$0xff]  }
  0x25   :  { %v8101_v61 = vld [vmem:[%s12499_s23 + $0x324] ss:$16 sps:$4 sm:$0xff]   ;;  %v8104_v63 = vld [vmem:[%s12499_s23 + $0x320] ss:$16 sps:$4 sm:$0xff]  }
  0x26   :  { %4892 = vmatpush1.bf16.msra.mxu0 %v8061_v30  ;;  %v8105_v0 = vld [vmem:[%s12499_s23 + $0x104] ss:$16 sps:$4 sm:$0xff]   ;;  %v8109_v2 = vld [vmem:[%s12499_s23 + $0x100] ss:$16 sps:$4 sm:$0xff]  }
  0x27   :  { %4933 = vmatpush1.bf16.msra.mxu1 %v8062_v31  ;;  %4893 = vmatprep.subr.bf16.mxu0 %v8063_v32  ;;  %v8107_v1 = vld [vmem:[%s12499_s23 + $0x304] ss:$16 sps:$4 sm:$0xff]   ;;  %v8110_v3 = vld [vmem:[%s12499_s23 + $0x300] ss:$16 sps:$4 sm:$0xff]  }
  0x28   :  { %4934 = vmatprep.subr.bf16.mxu1 %v8065_v33  ;;  %v8117_v4 = vld [vmem:[%s12499_s23 + $0x4e4] ss:$16 sps:$4 sm:$0xff]   ;;  %v8115_v8 = vld [vmem:[%s12499_s23 + $0x4e0] ss:$16 sps:$4 sm:$0xff]   ;;  %v9747_v33 = vld [vmem:[%s12481_s0 + $0x18] sm:$0xff] }
  0x29   :  { %v8120_v5 = vld [vmem:[%s12499_s23 + $0x6e4] ss:$16 sps:$4 sm:$0xff]   ;;  %v8118_v9 = vld [vmem:[%s12499_s23 + $0x6e0] ss:$16 sps:$4 sm:$0xff]  }
  0x2a   :  { %4894 = vmatpush2.bf16.msra.mxu0 %v8067_v34  ;;  %v8123_v10 = vld [vmem:[%s12499_s23 + $0x4c4] ss:$16 sps:$4 sm:$0xff]   ;;  %v8121_v12 = vld [vmem:[%s12499_s23 + $0x4c0] ss:$16 sps:$4 sm:$0xff]  }
  0x2b   :  { %4935 = vmatpush2.bf16.msra.mxu1 %v8068_v35  ;;  %4895 = vmatprep.subr.bf16.mxu0 %v8069_v36  ;;  %v8126_v11 = vld [vmem:[%s12499_s23 + $0x6c4] ss:$16 sps:$4 sm:$0xff]   ;;  %v8124_v13 = vld [vmem:[%s12499_s23 + $0x6c0] ss:$16 sps:$4 sm:$0xff]  }
  0x2c   :  { %4936 = vmatprep.subr.bf16.mxu1 %v8071_v37  ;;  %v8129_v14 = vld [vmem:[%s12499_s23 + $0x4a4] ss:$16 sps:$4 sm:$0xff]   ;;  %v8127_v16 = vld [vmem:[%s12499_s23 + $0x4a0] ss:$16 sps:$4 sm:$0xff]   ;;  %v9761_v37 = vcombine.high %v9747_v33, %v9747_v33 }
  0x2d   :  { %v8132_v15 = vld [vmem:[%s12499_s23 + $0x6a4] ss:$16 sps:$4 sm:$0xff]   ;;  %v8130_v17 = vld [vmem:[%s12499_s23 + $0x6a0] ss:$16 sps:$4 sm:$0xff]  }
  0x2e   :  { %4896 = vmatpush2.bf16.msra.mxu0 %v8073_v38  ;;  %v8135_v18 = vld [vmem:[%s12499_s23 + $0x484] ss:$16 sps:$4 sm:$0xff]   ;;  %v8133_v20 = vld [vmem:[%s12499_s23 + $0x480] ss:$16 sps:$4 sm:$0xff]  }
  0x2f   :  { %4937 = vmatpush2.bf16.msra.mxu1 %v8074_v39  ;;  %4897 = vmatprep.subr.bf16.mxu0 %v8075_v40  ;;  %v8138_v19 = vld [vmem:[%s12499_s23 + $0x684] ss:$16 sps:$4 sm:$0xff]   ;;  %v8136_v21 = vld [vmem:[%s12499_s23 + $0x680] ss:$16 sps:$4 sm:$0xff]  }
  0x30   :  { %4938 = vmatprep.subr.bf16.mxu1 %v8077_v41  ;;  %v8141_v22 = vld [vmem:[%s12499_s23 + $0x464] ss:$16 sps:$4 sm:$0xff]   ;;  %v8139_v24 = vld [vmem:[%s12499_s23 + $0x460] ss:$16 sps:$4 sm:$0xff]  }
  0x31   :  { %v8144_v23 = vld [vmem:[%s12499_s23 + $0x664] ss:$16 sps:$4 sm:$0xff]   ;;  %v8142_v25 = vld [vmem:[%s12499_s23 + $0x660] ss:$16 sps:$4 sm:$0xff]  }
  0x32   :  { %4898 = vmatpush2.bf16.msra.mxu0 %v8079_v42  ;;  %v8147_v26 = vld [vmem:[%s12499_s23 + $0x444] ss:$16 sps:$4 sm:$0xff]   ;;  %v8145_v28 = vld [vmem:[%s12499_s23 + $0x440] ss:$16 sps:$4 sm:$0xff]  }
  0x33   :  { %4939 = vmatpush2.bf16.msra.mxu1 %v8080_v43  ;;  %4899 = vmatprep.subr.bf16.mxu0 %v8081_v44  ;;  %v8150_v27 = vld [vmem:[%s12499_s23 + $0x644] ss:$16 sps:$4 sm:$0xff]   ;;  %v8148_v29 = vld [vmem:[%s12499_s23 + $0x640] ss:$16 sps:$4 sm:$0xff]  }
  0x34   :  { %4940 = vmatprep.subr.bf16.mxu1 %v8083_v45  ;;  %v8153_v30 = vld [vmem:[%s12499_s23 + $0x424] ss:$16 sps:$4 sm:$0xff]   ;;  %v8151_v34 = vld [vmem:[%s12499_s23 + $0x420] ss:$16 sps:$4 sm:$0xff]  }
  0x35   :  { %v8156_v31 = vld [vmem:[%s12499_s23 + $0x624] ss:$16 sps:$4 sm:$0xff]   ;;  %v8154_v35 = vld [vmem:[%s12499_s23 + $0x620] ss:$16 sps:$4 sm:$0xff]  }
  0x36   :  { %4900 = vmatpush2.bf16.msra.mxu0 %v8085_v49  ;;  %v9742_v32 = vld [vmem:[%s12481_s0 + $0x10] sm:$0xff] }
  0x37   :  { %4941 = vmatpush2.bf16.msra.mxu1 %v8086_v50  ;;  %4901 = vmatprep.subr.bf16.mxu0 %v8087_v52  ;;  %v9757_v36 = vcombine.high %v9742_v32, %v9742_v32  ;;  %v8159_v38 = vld [vmem:[%s12499_s23 + $0x404] ss:$16 sps:$4 sm:$0xff]   ;;  %v8157_v40 = vld [vmem:[%s12499_s23 + $0x400] ss:$16 sps:$4 sm:$0xff]  }
  0x38   :  { %4942 = vmatprep.subr.bf16.mxu1 %v8089_v53  ;;  %v8162_v39 = vld [vmem:[%s12499_s23 + $0x604] ss:$16 sps:$4 sm:$0xff]   ;;  %v8160_v41 = vld [vmem:[%s12499_s23 + $0x600] ss:$16 sps:$4 sm:$0xff]  }
  0x39   :  { %v8165_v42 = vld [vmem:[%s12499_s23 + $0x5e4] ss:$16 sps:$4 sm:$0xff]   ;;  %v8163_v44 = vld [vmem:[%s12499_s23 + $0x5e0] ss:$16 sps:$4 sm:$0xff]  }
  0x3a   :  { %4902 = vmatpush2.bf16.msra.mxu0 %v8091_v54  ;;  %v8168_v43 = vld [vmem:[%s12499_s23 + $0x7e4] ss:$16 sps:$4 sm:$0xff]   ;;  %v8166_v45 = vld [vmem:[%s12499_s23 + $0x7e0] ss:$16 sps:$4 sm:$0xff]  }
  0x3b   :  { %4943 = vmatpush2.bf16.msra.mxu1 %v8092_v55  ;;  %4903 = vmatprep.subr.bf16.mxu0 %v8093_v56  ;;  %v8171_v46 = vld [vmem:[%s12499_s23 + $0x5c4] ss:$16 sps:$4 sm:$0xff]   ;;  %v8169_v49 = vld [vmem:[%s12499_s23 + $0x5c0] ss:$16 sps:$4 sm:$0xff]  }
  0x3c   :  { %4944 = vmatprep.subr.bf16.mxu1 %v8095_v57  ;;  %v8174_v48 = vld [vmem:[%s12499_s23 + $0x7c4] ss:$16 sps:$4 sm:$0xff]   ;;  %v8172_v50 = vld [vmem:[%s12499_s23 + $0x7c0] ss:$16 sps:$4 sm:$0xff]  }
  0x3d   :  { %v8177_v52 = vld [vmem:[%s12499_s23 + $0x5a4] ss:$16 sps:$4 sm:$0xff]   ;;  %v8175_v54 = vld [vmem:[%s12499_s23 + $0x5a0] ss:$16 sps:$4 sm:$0xff]  }
  0x3e   :  { %4904 = vmatpush2.bf16.msra.mxu0 %v8097_v58  ;;  %v8180_v53 = vld [vmem:[%s12499_s23 + $0x7a4] ss:$16 sps:$4 sm:$0xff]   ;;  %v8178_v55 = vld [vmem:[%s12499_s23 + $0x7a0] ss:$16 sps:$4 sm:$0xff]  }
  0x3f   :  { %4945 = vmatpush2.bf16.msra.mxu1 %v8098_v59  ;;  %4905 = vmatprep.subr.bf16.mxu0 %v8099_v60  ;;  %v8183_v56 = vld [vmem:[%s12499_s23 + $0x584] ss:$16 sps:$4 sm:$0xff]   ;;  %v8181_v58 = vld [vmem:[%s12499_s23 + $0x580] ss:$16 sps:$4 sm:$0xff]  }
  0x40   :  { %4946 = vmatprep.subr.bf16.mxu1 %v8101_v61  ;;  %v8186_v57 = vld [vmem:[%s12499_s23 + $0x784] ss:$16 sps:$4 sm:$0xff]   ;;  %v8184_v59 = vld [vmem:[%s12499_s23 + $0x780] ss:$16 sps:$4 sm:$0xff]  }
  0x41   :  { %v8189_v60 = vld [vmem:[%s12499_s23 + $0x564] ss:$16 sps:$4 sm:$0xff]  }
  0x42   :  { %4906 = vmatpush2.bf16.msra.mxu0 %v8103_v62  ;;  %v8192_v61 = vld [vmem:[%s12499_s23 + $0x764] ss:$16 sps:$4 sm:$0xff]   ;;  %v8187_v62 = vld [vmem:[%s12499_s23 + $0x560] ss:$16 sps:$4 sm:$0xff]  }
  0x43   :  { %4947 = vmatpush2.bf16.msra.mxu1 %v8104_v63  ;;  %4907 = vmatprep.subr.bf16.mxu0 %v8105_v0  ;;  %v8190_v63 = vld [vmem:[%s12499_s23 + $0x760] ss:$16 sps:$4 sm:$0xff]   ;;  %v8195_v0 = vld [vmem:[%s12499_s23 + $0x544] ss:$16 sps:$4 sm:$0xff]  }
  0x44   :  { %4948 = vmatprep.subr.bf16.mxu1 %v8107_v1  ;;  %v8198_v1 = vld [vmem:[%s12499_s23 + $0x744] ss:$16 sps:$4 sm:$0xff]  }
  0x46   :  { %4908 = vmatpush2.bf16.msra.mxu0 %v8109_v2  ;;  %v8193_v2 = vld [vmem:[%s12499_s23 + $0x540] ss:$16 sps:$4 sm:$0xff]  }
  0x47   :  { %4949 = vmatpush2.bf16.msra.mxu1 %v8110_v3  ;;  %4959 = vmatprep.subr.bf16.mxu0 %v8117_v4  ;;  %v8196_v3 = vld [vmem:[%s12499_s23 + $0x740] ss:$16 sps:$4 sm:$0xff]   ;;  %v8201_v4 = vld [vmem:[%s12499_s23 + $0x524] ss:$16 sps:$4 sm:$0xff]  }
  0x48   :  { %5000 = vmatprep.subr.bf16.mxu1 %v8120_v5  ;;  %v8204_v5 = vld [vmem:[%s12499_s23 + $0x724] ss:$16 sps:$4 sm:$0xff]  }
  0x49   :  { %4910 = vmatmul.mubr.bf16.vlgmr.msra.gmra.mxu0 %v9661_v6 }
  0x4a   :  { %4951 = vmatmul.mubr.bf16.vlgmr.msra.gmra.mxu1 %v9663_v7  ;;  %4960 = vmatpush1.bf16.msra.mxu0 %v8115_v8  ;;  %v8199_v8 = vld [vmem:[%s12499_s23 + $0x520] ss:$16 sps:$4 sm:$0xff]  }
  0x4b   :  { %5001 = vmatpush1.bf16.msra.mxu1 %v8118_v9  ;;  %4961 = vmatprep.subr.bf16.mxu0 %v8123_v10  ;;  %v8202_v9 = vld [vmem:[%s12499_s23 + $0x720] ss:$16 sps:$4 sm:$0xff]   ;;  %v8207_v10 = vld [vmem:[%s12499_s23 + $0x504] ss:$16 sps:$4 sm:$0xff]  }
  0x4c   :  { %5002 = vmatprep.subr.bf16.mxu1 %v8126_v11  ;;  %4991 = vmatprep.mubr.bf16.mxu0 %v9757_v36  ;;  %v8210_v11 = vld [vmem:[%s12499_s23 + $0x704] ss:$16 sps:$4 sm:$0xff]  }
  0x4d   :  { %5032 = vmatprep.mubr.bf16.mxu1 %v9761_v37 }
  0x4e   :  { %4962 = vmatpush1.bf16.msra.mxu0 %v8121_v12  ;;  %v8205_v12 = vld [vmem:[%s12499_s23 + $0x500] ss:$16 sps:$4 sm:$0xff]  }
  0x4f   :  { %5003 = vmatpush1.bf16.msra.mxu1 %v8124_v13  ;;  %4963 = vmatprep.subr.bf16.mxu0 %v8129_v14  ;;  %v8208_v13 = vld [vmem:[%s12499_s23 + $0x700] ss:$16 sps:$4 sm:$0xff]   ;;  %v8217_v14 = vld [vmem:[%s12499_s23 + $0x8e4] ss:$16 sps:$4 sm:$0xff]  }
  0x50   :  { %5004 = vmatprep.subr.bf16.mxu1 %v8132_v15  ;;  %v8220_v15 = vld [vmem:[%s12499_s23 + $0xae4] ss:$16 sps:$4 sm:$0xff]  }
  0x52   :  { %4964 = vmatpush1.bf16.msra.mxu0 %v8127_v16  ;;  %v9881_v16 = vcombine.low %v9742_v32, %v9742_v32  ;;  %v8235_v32 = vld [vmem:[%s12499_s23 + $0x884] ss:$16 sps:$4 sm:$0xff]  }
  0x53   :  { %5005 = vmatpush1.bf16.msra.mxu1 %v8130_v17  ;;  %4965 = vmatprep.subr.bf16.mxu0 %v8135_v18  ;;  %v9885_v17 = vcombine.low %v9747_v33, %v9747_v33  ;;  %v8215_v18 = vld [vmem:[%s12499_s23 + $0x8e0] ss:$16 sps:$4 sm:$0xff]   ;;  %v8238_v33 = vld [vmem:[%s12499_s23 + $0xa84] ss:$16 sps:$4 sm:$0xff]  }
  0x54   :  { %5006 = vmatprep.subr.bf16.mxu1 %v8138_v19  ;;  %v8218_v19 = vld [vmem:[%s12499_s23 + $0xae0] ss:$16 sps:$4 sm:$0xff]  }
  0x56   :  { %4966 = vmatpush1.bf16.msra.mxu0 %v8133_v20  ;;  %v8223_v20 = vld [vmem:[%s12499_s23 + $0x8c4] ss:$16 sps:$4 sm:$0xff]  }
  0x57   :  { %5007 = vmatpush1.bf16.msra.mxu1 %v8136_v21  ;;  %4967 = vmatprep.subr.bf16.mxu0 %v8141_v22  ;;  %v8226_v21 = vld [vmem:[%s12499_s23 + $0xac4] ss:$16 sps:$4 sm:$0xff]  }
  0x58   :  { %5008 = vmatprep.subr.bf16.mxu1 %v8144_v23  ;;  %v9902_v22 = vld [vmem:[%s12481_s0 + $0x20] sm:$0xff]  ;;  %v9907_v23 = vld [vmem:[%s12481_s0 + $0x28] sm:$0xff] }
  0x5a   :  { %4968 = vmatpush1.bf16.msra.mxu0 %v8139_v24  ;;  %v9911_v24 = vcombine.high %v9902_v22, %v9902_v22 }
  0x5b   :  { %5009 = vmatpush1.bf16.msra.mxu1 %v8142_v25  ;;  %4969 = vmatprep.subr.bf16.mxu0 %v8147_v26  ;;  %v9915_v25 = vcombine.high %v9907_v23, %v9907_v23  ;;  %v8221_v26 = vld [vmem:[%s12499_s23 + $0x8c0] ss:$16 sps:$4 sm:$0xff]  }
  0x5c   :  { %5010 = vmatprep.subr.bf16.mxu1 %v8150_v27  ;;  %v8224_v27 = vld [vmem:[%s12499_s23 + $0xac0] ss:$16 sps:$4 sm:$0xff]  }
  0x5e   :  { %4970 = vmatpush1.bf16.msra.mxu0 %v8145_v28  ;;  %v8229_v28 = vld [vmem:[%s12499_s23 + $0x8a4] ss:$16 sps:$4 sm:$0xff]  }
  0x5f   :  { %5011 = vmatpush1.bf16.msra.mxu1 %v8148_v29  ;;  %4971 = vmatprep.subr.bf16.mxu0 %v8153_v30  ;;  %v8232_v29 = vld [vmem:[%s12499_s23 + $0xaa4] ss:$16 sps:$4 sm:$0xff]   ;;  %v8227_v30 = vld [vmem:[%s12499_s23 + $0x8a0] ss:$16 sps:$4 sm:$0xff]  }
  0x60   :  { %5012 = vmatprep.subr.bf16.mxu1 %v8156_v31  ;;  %v8230_v31 = vld [vmem:[%s12499_s23 + $0xaa0] ss:$16 sps:$4 sm:$0xff]  }
  0x62   :  { %4972 = vmatpush1.bf16.msra.mxu0 %v8151_v34  ;;  %v8233_v34 = vld [vmem:[%s12499_s23 + $0x880] ss:$16 sps:$4 sm:$0xff]  }
  0x63   :  { %5013 = vmatpush1.bf16.msra.mxu1 %v8154_v35  ;;  %4973 = vmatprep.subr.bf16.mxu0 %v8159_v38  ;;  %v8236_v35 = vld [vmem:[%s12499_s23 + $0xa80] ss:$16 sps:$4 sm:$0xff]   ;;  %v8241_v38 = vld [vmem:[%s12499_s23 + $0x864] ss:$16 sps:$4 sm:$0xff]  }
  0x64   :  { %5014 = vmatprep.subr.bf16.mxu1 %v8162_v39  ;;  %v8244_v39 = vld [vmem:[%s12499_s23 + $0xa64] ss:$16 sps:$4 sm:$0xff]  }
  0x66   :  { %4974 = vmatpush1.bf16.msra.mxu0 %v8157_v40  ;;  %v8239_v40 = vld [vmem:[%s12499_s23 + $0x860] ss:$16 sps:$4 sm:$0xff]  }
  0x67   :  { %5015 = vmatpush1.bf16.msra.mxu1 %v8160_v41  ;;  %4975 = vmatprep.subr.bf16.mxu0 %v8165_v42  ;;  %v8242_v41 = vld [vmem:[%s12499_s23 + $0xa60] ss:$16 sps:$4 sm:$0xff]   ;;  %v8247_v42 = vld [vmem:[%s12499_s23 + $0x844] ss:$16 sps:$4 sm:$0xff]  }
  0x68   :  { %5016 = vmatprep.subr.bf16.mxu1 %v8168_v43  ;;  %v8250_v43 = vld [vmem:[%s12499_s23 + $0xa44] ss:$16 sps:$4 sm:$0xff]  }
  0x6a   :  { %4976 = vmatpush2.bf16.msra.mxu0 %v8163_v44  ;;  %v8245_v44 = vld [vmem:[%s12499_s23 + $0x840] ss:$16 sps:$4 sm:$0xff]  }
  0x6b   :  { %5017 = vmatpush2.bf16.msra.mxu1 %v8166_v45  ;;  %4977 = vmatprep.subr.bf16.mxu0 %v8171_v46  ;;  %v8248_v45 = vld [vmem:[%s12499_s23 + $0xa40] ss:$16 sps:$4 sm:$0xff]   ;;  %v8253_v46 = vld [vmem:[%s12499_s23 + $0x824] ss:$16 sps:$4 sm:$0xff]  }
  0x6c   :  { %5018 = vmatprep.subr.bf16.mxu1 %v8174_v48  ;;  %v8256_v48 = vld [vmem:[%s12499_s23 + $0xa24] ss:$16 sps:$4 sm:$0xff]  }
  0x6e   :  { %4978 = vmatpush2.bf16.msra.mxu0 %v8169_v49  ;;  %v8251_v49 = vld [vmem:[%s12499_s23 + $0x820] ss:$16 sps:$4 sm:$0xff]  }
  0x6f   :  { %5019 = vmatpush2.bf16.msra.mxu1 %v8172_v50  ;;  %4979 = vmatprep.subr.bf16.mxu0 %v8177_v52  ;;  %v8254_v50 = vld [vmem:[%s12499_s23 + $0xa20] ss:$16 sps:$4 sm:$0xff]   ;;  %v8259_v52 = vld [vmem:[%s12499_s23 + $0x804] ss:$16 sps:$4 sm:$0xff]  }
  0x70   :  { %5020 = vmatprep.subr.bf16.mxu1 %v8180_v53  ;;  %v8262_v53 = vld [vmem:[%s12499_s23 + $0xa04] ss:$16 sps:$4 sm:$0xff]  }
  0x72   :  { %4980 = vmatpush2.bf16.msra.mxu0 %v8175_v54  ;;  %v8257_v54 = vld [vmem:[%s12499_s23 + $0x800] ss:$16 sps:$4 sm:$0xff]  }
  0x73   :  { %5021 = vmatpush2.bf16.msra.mxu1 %v8178_v55  ;;  %4981 = vmatprep.subr.bf16.mxu0 %v8183_v56  ;;  %v8260_v55 = vld [vmem:[%s12499_s23 + $0xa00] ss:$16 sps:$4 sm:$0xff]   ;;  %v8265_v56 = vld [vmem:[%s12499_s23 + $0x9e4] ss:$16 sps:$4 sm:$0xff]  }
  0x74   :  { %5022 = vmatprep.subr.bf16.mxu1 %v8186_v57  ;;  %v8268_v57 = vld [vmem:[%s12499_s23 + $0xbe4] ss:$16 sps:$4 sm:$0xff]  }
  0x76   :  { %4982 = vmatpush2.bf16.msra.mxu0 %v8181_v58  ;;  %v8263_v58 = vld [vmem:[%s12499_s23 + $0x9e0] ss:$16 sps:$4 sm:$0xff]  }
  0x77   :  { %5023 = vmatpush2.bf16.msra.mxu1 %v8184_v59  ;;  %4983 = vmatprep.subr.bf16.mxu0 %v8189_v60  ;;  %v8266_v59 = vld [vmem:[%s12499_s23 + $0xbe0] ss:$16 sps:$4 sm:$0xff]   ;;  %v8271_v60 = vld [vmem:[%s12499_s23 + $0x9c4] ss:$16 sps:$4 sm:$0xff]  }
  0x78   :  { %5024 = vmatprep.subr.bf16.mxu1 %v8192_v61  ;;  %v8274_v61 = vld [vmem:[%s12499_s23 + $0xbc4] ss:$16 sps:$4 sm:$0xff]  }
  0x7a   :  { %4984 = vmatpush2.bf16.msra.mxu0 %v8187_v62  ;;  %v8269_v62 = vld [vmem:[%s12499_s23 + $0x9c0] ss:$16 sps:$4 sm:$0xff]  }
  0x7b   :  { %5025 = vmatpush2.bf16.msra.mxu1 %v8190_v63  ;;  %4985 = vmatprep.subr.bf16.mxu0 %v8195_v0  ;;  %v8272_v63 = vld [vmem:[%s12499_s23 + $0xbc0] ss:$16 sps:$4 sm:$0xff]   ;;  %v8277_v0 = vld [vmem:[%s12499_s23 + $0x9a4] ss:$16 sps:$4 sm:$0xff]  }
  0x7c   :  { %5026 = vmatprep.subr.bf16.mxu1 %v8198_v1  ;;  %v8280_v1 = vld [vmem:[%s12499_s23 + $0xba4] ss:$16 sps:$4 sm:$0xff]  }
  0x7e   :  { %4986 = vmatpush2.bf16.msra.mxu0 %v8193_v2  ;;  %v8275_v2 = vld [vmem:[%s12499_s23 + $0x9a0] ss:$16 sps:$4 sm:$0xff]  }
  0x7f   :  { %5027 = vmatpush2.bf16.msra.mxu1 %v8196_v3  ;;  %4987 = vmatprep.subr.bf16.mxu0 %v8201_v4  ;;  %v8278_v3 = vld [vmem:[%s12499_s23 + $0xba0] ss:$16 sps:$4 sm:$0xff]   ;;  %v8283_v4 = vld [vmem:[%s12499_s23 + $0x984] ss:$16 sps:$4 sm:$0xff]  }
  0x80   :  { %5028 = vmatprep.subr.bf16.mxu1 %v8204_v5  ;;  %v8286_v5 = vld [vmem:[%s12499_s23 + $0xb84] ss:$16 sps:$4 sm:$0xff]  }
  0x82   :  { %4988 = vmatpush2.bf16.msra.mxu0 %v8199_v8  ;;  %v8281_v8 = vld [vmem:[%s12499_s23 + $0x980] ss:$16 sps:$4 sm:$0xff]  }
  0x83   :  { %5029 = vmatpush2.bf16.msra.mxu1 %v8202_v9  ;;  %4989 = vmatprep.subr.bf16.mxu0 %v8207_v10  ;;  %v8284_v9 = vld [vmem:[%s12499_s23 + $0xb80] ss:$16 sps:$4 sm:$0xff]   ;;  %v8289_v10 = vld [vmem:[%s12499_s23 + $0x964] ss:$16 sps:$4 sm:$0xff]  }
  0x84   :  { %5030 = vmatprep.subr.bf16.mxu1 %v8210_v11  ;;  %v8292_v11 = vld [vmem:[%s12499_s23 + $0xb64] ss:$16 sps:$4 sm:$0xff]  }
  0x86   :  { %4990 = vmatpush2.bf16.msra.mxu0 %v8205_v12  ;;  %v8287_v12 = vld [vmem:[%s12499_s23 + $0x960] ss:$16 sps:$4 sm:$0xff]  }
  0x87   :  { %5031 = vmatpush2.bf16.msra.mxu1 %v8208_v13  ;;  %5041 = vmatprep.subr.bf16.mxu0 %v8217_v14  ;;  %v8290_v13 = vld [vmem:[%s12499_s23 + $0xb60] ss:$16 sps:$4 sm:$0xff]   ;;  %v8295_v14 = vld [vmem:[%s12499_s23 + $0x944] ss:$16 sps:$4 sm:$0xff]  }
  0x88   :  { %5082 = vmatprep.subr.bf16.mxu1 %v8220_v15  ;;  %v8298_v15 = vld [vmem:[%s12499_s23 + $0xb44] ss:$16 sps:$4 sm:$0xff]  }
  0x89   :  { %4992 = vmatmul.mubr.bf16.vlgmr.msra.gmra.mxu0 %v9881_v16 }
  0x8a   :  { %5033 = vmatmul.mubr.bf16.vlgmr.msra.gmra.mxu1 %v9885_v17  ;;  %5042 = vmatpush1.bf16.msra.mxu0 %v8215_v18  ;;  %v8293_v18 = vld [vmem:[%s12499_s23 + $0x940] ss:$16 sps:$4 sm:$0xff]  }
  0x8b   :  { %5083 = vmatpush1.bf16.msra.mxu1 %v8218_v19  ;;  %5043 = vmatprep.subr.bf16.mxu0 %v8223_v20  ;;  %v8296_v19 = vld [vmem:[%s12499_s23 + $0xb40] ss:$16 sps:$4 sm:$0xff]   ;;  %v8301_v20 = vld [vmem:[%s12499_s23 + $0x924] ss:$16 sps:$4 sm:$0xff]  }
  0x8c   :  { %5084 = vmatprep.subr.bf16.mxu1 %v8226_v21  ;;  %5073 = vmatprep.mubr.bf16.mxu0 %v9911_v24  ;;  %v8304_v21 = vld [vmem:[%s12499_s23 + $0xb24] ss:$16 sps:$4 sm:$0xff]  }
  0x8d   :  { %5114 = vmatprep.mubr.bf16.mxu1 %v9915_v25 }
  0x8e   :  { %5044 = vmatpush1.bf16.msra.mxu0 %v8221_v26  ;;  %v8299_v26 = vld [vmem:[%s12499_s23 + $0x920] ss:$16 sps:$4 sm:$0xff]  }
  0x8f   :  { %5085 = vmatpush1.bf16.msra.mxu1 %v8224_v27  ;;  %5045 = vmatprep.subr.bf16.mxu0 %v8229_v28  ;;  %v8302_v27 = vld [vmem:[%s12499_s23 + $0xb20] ss:$16 sps:$4 sm:$0xff]   ;;  %v8307_v28 = vld [vmem:[%s12499_s23 + $0x904] ss:$16 sps:$4 sm:$0xff]  }
  0x90   :  { %5086 = vmatprep.subr.bf16.mxu1 %v8232_v29  ;;  %v8310_v29 = vld [vmem:[%s12499_s23 + $0xb04] ss:$16 sps:$4 sm:$0xff]  }
  0x92   :  { %5046 = vmatpush1.bf16.msra.mxu0 %v8227_v30  ;;  %v8305_v30 = vld [vmem:[%s12499_s23 + $0x900] ss:$16 sps:$4 sm:$0xff]  }
  0x93   :  { %5087 = vmatpush1.bf16.msra.mxu1 %v8230_v31  ;;  %5047 = vmatprep.subr.bf16.mxu0 %v8235_v32  ;;  %v8308_v31 = vld [vmem:[%s12499_s23 + $0xb00] ss:$16 sps:$4 sm:$0xff]   ;;  %v8317_v32 = vld [vmem:[%s12499_s23 + $0xce4] ss:$16 sps:$4 sm:$0xff]  }
  0x94   :  { %5088 = vmatprep.subr.bf16.mxu1 %v8238_v33  ;;  %v8320_v33 = vld [vmem:[%s12499_s23 + $0xee4] ss:$16 sps:$4 sm:$0xff]  }
  0x96   :  { %5048 = vmatpush1.bf16.msra.mxu0 %v8233_v34  ;;  %v8315_v34 = vld [vmem:[%s12499_s23 + $0xce0] ss:$16 sps:$4 sm:$0xff]  }
  0x97   :  { %5089 = vmatpush1.bf16.msra.mxu1 %v8236_v35  ;;  %5049 = vmatprep.subr.bf16.mxu0 %v8241_v38  ;;  %v10107_v35 = vld [vmem:[%s12481_s0 + $0x30] sm:$0xff]  ;;  %v10111_v38 = vcombine.low %v9902_v22, %v9902_v22 }
  0x98   :  { %5090 = vmatprep.subr.bf16.mxu1 %v8244_v39  ;;  %v10115_v39 = vcombine.low %v9907_v23, %v9907_v23  ;;  %v8323_v22 = vld [vmem:[%s12499_s23 + $0xcc4] ss:$16 sps:$4 sm:$0xff]  }
  0x99   :  { %v8326_v23 = vld [vmem:[%s12499_s23 + $0xec4] ss:$16 sps:$4 sm:$0xff]  }
  0x9a   :  { %5050 = vmatpush1.bf16.msra.mxu0 %v8239_v40  ;;  %v10120_v40 = vld [vmem:[%s12481_s0 + $0x38] sm:$0xff] }
  0x9b   :  { %5091 = vmatpush1.bf16.msra.mxu1 %v8242_v41  ;;  %5051 = vmatprep.subr.bf16.mxu0 %v8247_v42  ;;  %v8318_v41 = vld [vmem:[%s12499_s23 + $0xee0] ss:$16 sps:$4 sm:$0xff]   ;;  %v10133_v42 = vcombine.high %v10107_v35, %v10107_v35 }
  0x9c   :  { %5092 = vmatprep.subr.bf16.mxu1 %v8250_v43  ;;  %v10137_v43 = vcombine.high %v10120_v40, %v10120_v40 }
  0x9e   :  { %5052 = vmatpush1.bf16.msra.mxu0 %v8245_v44  ;;  %v8321_v44 = vld [vmem:[%s12499_s23 + $0xcc0] ss:$16 sps:$4 sm:$0xff]  }
  0x9f   :  { %5093 = vmatpush1.bf16.msra.mxu1 %v8248_v45  ;;  %5053 = vmatprep.subr.bf16.mxu0 %v8253_v46  ;;  %v8324_v45 = vld [vmem:[%s12499_s23 + $0xec0] ss:$16 sps:$4 sm:$0xff]   ;;  %v8329_v46 = vld [vmem:[%s12499_s23 + $0xca4] ss:$16 sps:$4 sm:$0xff]  }
  0xa0   :  { %5094 = vmatprep.subr.bf16.mxu1 %v8256_v48  ;;  %v8332_v48 = vld [vmem:[%s12499_s23 + $0xea4] ss:$16 sps:$4 sm:$0xff]  }
  0xa2   :  { %5054 = vmatpush1.bf16.msra.mxu0 %v8251_v49  ;;  %v8327_v49 = vld [vmem:[%s12499_s23 + $0xca0] ss:$16 sps:$4 sm:$0xff]  }
  0xa3   :  { %5095 = vmatpush1.bf16.msra.mxu1 %v8254_v50  ;;  %5055 = vmatprep.subr.bf16.mxu0 %v8259_v52  ;;  %v8330_v50 = vld [vmem:[%s12499_s23 + $0xea0] ss:$16 sps:$4 sm:$0xff]   ;;  %v8335_v52 = vld [vmem:[%s12499_s23 + $0xc84] ss:$16 sps:$4 sm:$0xff]  }
  0xa4   :  { %5096 = vmatprep.subr.bf16.mxu1 %v8262_v53  ;;  %v8338_v53 = vld [vmem:[%s12499_s23 + $0xe84] ss:$16 sps:$4 sm:$0xff]  }
  0xa6   :  { %5056 = vmatpush1.bf16.msra.mxu0 %v8257_v54  ;;  %v8333_v54 = vld [vmem:[%s12499_s23 + $0xc80] ss:$16 sps:$4 sm:$0xff]  }
  0xa7   :  { %5097 = vmatpush1.bf16.msra.mxu1 %v8260_v55  ;;  %5057 = vmatprep.subr.bf16.mxu0 %v8265_v56  ;;  %v8336_v55 = vld [vmem:[%s12499_s23 + $0xe80] ss:$16 sps:$4 sm:$0xff]   ;;  %v8341_v56 = vld [vmem:[%s12499_s23 + $0xc64] ss:$16 sps:$4 sm:$0xff]  }
  0xa8   :  { %5098 = vmatprep.subr.bf16.mxu1 %v8268_v57  ;;  %v8344_v57 = vld [vmem:[%s12499_s23 + $0xe64] ss:$16 sps:$4 sm:$0xff]  }
  0xaa   :  { %5058 = vmatpush2.bf16.msra.mxu0 %v8263_v58  ;;  %v8339_v58 = vld [vmem:[%s12499_s23 + $0xc60] ss:$16 sps:$4 sm:$0xff]  }
  0xab   :  { %5099 = vmatpush2.bf16.msra.mxu1 %v8266_v59  ;;  %5059 = vmatprep.subr.bf16.mxu0 %v8271_v60  ;;  %v8342_v59 = vld [vmem:[%s12499_s23 + $0xe60] ss:$16 sps:$4 sm:$0xff]   ;;  %v8347_v60 = vld [vmem:[%s12499_s23 + $0xc44] ss:$16 sps:$4 sm:$0xff]  }
  0xac   :  { %5100 = vmatprep.subr.bf16.mxu1 %v8274_v61  ;;  %v8350_v61 = vld [vmem:[%s12499_s23 + $0xe44] ss:$16 sps:$4 sm:$0xff]  }
  0xae   :  { %5060 = vmatpush2.bf16.msra.mxu0 %v8269_v62  ;;  %v8345_v62 = vld [vmem:[%s12499_s23 + $0xc40] ss:$16 sps:$4 sm:$0xff]  }
  0xaf   :  { %5101 = vmatpush2.bf16.msra.mxu1 %v8272_v63  ;;  %5061 = vmatprep.subr.bf16.mxu0 %v8277_v0  ;;  %v8348_v63 = vld [vmem:[%s12499_s23 + $0xe40] ss:$16 sps:$4 sm:$0xff]   ;;  %v8353_v0 = vld [vmem:[%s12499_s23 + $0xc24] ss:$16 sps:$4 sm:$0xff]  }
  0xb0   :  { %5102 = vmatprep.subr.bf16.mxu1 %v8280_v1  ;;  %v8356_v1 = vld [vmem:[%s12499_s23 + $0xe24] ss:$16 sps:$4 sm:$0xff]  }
  0xb2   :  { %5062 = vmatpush2.bf16.msra.mxu0 %v8275_v2  ;;  %v8351_v2 = vld [vmem:[%s12499_s23 + $0xc20] ss:$16 sps:$4 sm:$0xff]  }
  0xb3   :  { %5103 = vmatpush2.bf16.msra.mxu1 %v8278_v3  ;;  %5063 = vmatprep.subr.bf16.mxu0 %v8283_v4  ;;  %v8354_v3 = vld [vmem:[%s12499_s23 + $0xe20] ss:$16 sps:$4 sm:$0xff]   ;;  %v8359_v4 = vld [vmem:[%s12499_s23 + $0xc04] ss:$16 sps:$4 sm:$0xff]  }
  0xb4   :  { %5104 = vmatprep.subr.bf16.mxu1 %v8286_v5  ;;  %v8362_v5 = vld [vmem:[%s12499_s23 + $0xe04] ss:$16 sps:$4 sm:$0xff]  }
  0xb6   :  { %5064 = vmatpush2.bf16.msra.mxu0 %v8281_v8  ;;  %v8357_v8 = vld [vmem:[%s12499_s23 + $0xc00] ss:$16 sps:$4 sm:$0xff]  }
  0xb7   :  { %5105 = vmatpush2.bf16.msra.mxu1 %v8284_v9  ;;  %5065 = vmatprep.subr.bf16.mxu0 %v8289_v10  ;;  %v8360_v9 = vld [vmem:[%s12499_s23 + $0xe00] ss:$16 sps:$4 sm:$0xff]   ;;  %v8365_v10 = vld [vmem:[%s12499_s23 + $0xde4] ss:$16 sps:$4 sm:$0xff]  }
  0xb8   :  { %5106 = vmatprep.subr.bf16.mxu1 %v8292_v11  ;;  %v8368_v11 = vld [vmem:[%s12499_s23 + $0xfe4] ss:$16 sps:$4 sm:$0xff]  }
  0xba   :  { %5066 = vmatpush2.bf16.msra.mxu0 %v8287_v12  ;;  %v8363_v12 = vld [vmem:[%s12499_s23 + $0xde0] ss:$16 sps:$4 sm:$0xff]  }
  0xbb   :  { %5107 = vmatpush2.bf16.msra.mxu1 %v8290_v13  ;;  %5067 = vmatprep.subr.bf16.mxu0 %v8295_v14  ;;  %v8366_v13 = vld [vmem:[%s12499_s23 + $0xfe0] ss:$16 sps:$4 sm:$0xff]   ;;  %v8371_v14 = vld [vmem:[%s12499_s23 + $0xdc4] ss:$16 sps:$4 sm:$0xff]  }
  0xbc   :  { %5108 = vmatprep.subr.bf16.mxu1 %v8298_v15  ;;  %v8374_v15 = vld [vmem:[%s12499_s23 + $0xfc4] ss:$16 sps:$4 sm:$0xff]  }
  0xbe   :  { %5068 = vmatpush2.bf16.msra.mxu0 %v8293_v18  ;;  %v8369_v18 = vld [vmem:[%s12499_s23 + $0xdc0] ss:$16 sps:$4 sm:$0xff]  }
  0xbf   :  { %5109 = vmatpush2.bf16.msra.mxu1 %v8296_v19  ;;  %5069 = vmatprep.subr.bf16.mxu0 %v8301_v20  ;;  %v8372_v19 = vld [vmem:[%s12499_s23 + $0xfc0] ss:$16 sps:$4 sm:$0xff]   ;;  %v8377_v20 = vld [vmem:[%s12499_s23 + $0xda4] ss:$16 sps:$4 sm:$0xff]  }
  0xc0   :  { %5110 = vmatprep.subr.bf16.mxu1 %v8304_v21  ;;  %v8380_v21 = vld [vmem:[%s12499_s23 + $0xfa4] ss:$16 sps:$4 sm:$0xff]  }
  0xc2   :  { %5070 = vmatpush2.bf16.msra.mxu0 %v8299_v26  ;;  %v8375_v26 = vld [vmem:[%s12499_s23 + $0xda0] ss:$16 sps:$4 sm:$0xff]  }
  0xc3   :  { %5111 = vmatpush2.bf16.msra.mxu1 %v8302_v27  ;;  %5071 = vmatprep.subr.bf16.mxu0 %v8307_v28  ;;  %v8378_v27 = vld [vmem:[%s12499_s23 + $0xfa0] ss:$16 sps:$4 sm:$0xff]   ;;  %v8383_v28 = vld [vmem:[%s12499_s23 + $0xd84] ss:$16 sps:$4 sm:$0xff]  }
  0xc4   :  { %5112 = vmatprep.subr.bf16.mxu1 %v8310_v29  ;;  %v8386_v29 = vld [vmem:[%s12499_s23 + $0xf84] ss:$16 sps:$4 sm:$0xff]  }
  0xc6   :  { %5072 = vmatpush2.bf16.msra.mxu0 %v8305_v30  ;;  %v8381_v30 = vld [vmem:[%s12499_s23 + $0xd80] ss:$16 sps:$4 sm:$0xff]  }
  0xc7   :  { %5113 = vmatpush2.bf16.msra.mxu1 %v8308_v31  ;;  %5123 = vmatprep.subr.bf16.mxu0 %v8317_v32  ;;  %v8384_v31 = vld [vmem:[%s12499_s23 + $0xf80] ss:$16 sps:$4 sm:$0xff]   ;;  %v8389_v32 = vld [vmem:[%s12499_s23 + $0xd64] ss:$16 sps:$4 sm:$0xff]  }
  0xc8   :  { %5164 = vmatprep.subr.bf16.mxu1 %v8320_v33  ;;  %v8392_v33 = vld [vmem:[%s12499_s23 + $0xf64] ss:$16 sps:$4 sm:$0xff]  }
  0xc9   :  { %5074 = vmatmul.mubr.bf16.vlgmr.msra.gmra.mxu0 %v10111_v38 }
  0xca   :  { %5115 = vmatmul.mubr.bf16.vlgmr.msra.gmra.mxu1 %v10115_v39  ;;  %5124 = vmatpush1.bf16.msra.mxu0 %v8315_v34  ;;  %v8387_v34 = vld [vmem:[%s12499_s23 + $0xd60] ss:$16 sps:$4 sm:$0xff]  }
  0xcb   :  { %5165 = vmatpush1.bf16.msra.mxu1 %v8318_v41  ;;  %5125 = vmatprep.subr.bf16.mxu0 %v8323_v22  ;;  %v8390_v41 = vld [vmem:[%s12499_s23 + $0xf60] ss:$16 sps:$4 sm:$0xff]   ;;  %v8395_v22 = vld [vmem:[%s12499_s23 + $0xd44] ss:$16 sps:$4 sm:$0xff]  }
  0xcc   :  { %5166 = vmatprep.subr.bf16.mxu1 %v8326_v23  ;;  %5155 = vmatprep.mubr.bf16.mxu0 %v10133_v42  ;;  %v8398_v23 = vld [vmem:[%s12499_s23 + $0xf44] ss:$16 sps:$4 sm:$0xff]  }
  0xcd   :  { %5196 = vmatprep.mubr.bf16.mxu1 %v10137_v43 }
  0xce   :  { %5126 = vmatpush1.bf16.msra.mxu0 %v8321_v44  ;;  %v8393_v44 = vld [vmem:[%s12499_s23 + $0xd40] ss:$16 sps:$4 sm:$0xff]  }
  0xcf   :  { %5167 = vmatpush1.bf16.msra.mxu1 %v8324_v45  ;;  %5127 = vmatprep.subr.bf16.mxu0 %v8329_v46  ;;  %v8396_v45 = vld [vmem:[%s12499_s23 + $0xf40] ss:$16 sps:$4 sm:$0xff]   ;;  %v8401_v46 = vld [vmem:[%s12499_s23 + $0xd24] ss:$16 sps:$4 sm:$0xff]  }
  0xd0   :  { %5168 = vmatprep.subr.bf16.mxu1 %v8332_v48  ;;  %v846_v48 = vlaneseq }
  0xd2   :  { %5128 = vmatpush1.bf16.msra.mxu0 %v8327_v49  ;;  %v8404_v49 = vld [vmem:[%s12499_s23 + $0xf24] ss:$16 sps:$4 sm:$0xff]  }
  0xd3   :  { %5169 = vmatpush1.bf16.msra.mxu1 %v8330_v50  ;;  %5129 = vmatprep.subr.bf16.mxu0 %v8335_v52  ;;  %v8399_v50 = vld [vmem:[%s12499_s23 + $0xd20] ss:$16 sps:$4 sm:$0xff]  }
  0xd4   :  { %5170 = vmatprep.subr.bf16.mxu1 %v8338_v53  ;;  %v8402_v52 = vld [vmem:[%s12499_s23 + $0xf20] ss:$16 sps:$4 sm:$0xff]   ;;  %v8407_v53 = vld [vmem:[%s12499_s23 + $0xd04] ss:$16 sps:$4 sm:$0xff]  }
  0xd6   :  { %5130 = vmatpush1.bf16.msra.mxu0 %v8333_v54  ;;  %v10308_v54 = vshrl.u32 %v846_v48, 7  ;;  %v8439_v48 = vld [vmem:[%s12499_s23 + $0x1060] ss:$16 sps:$4 sm:$0xff]  }
  0xd7   :  { %5171 = vmatpush1.bf16.msra.mxu1 %v8336_v55  ;;  %5131 = vmatprep.subr.bf16.mxu0 %v8341_v56  ;;  %v8410_v55 = vld [vmem:[%s12499_s23 + $0xf04] ss:$16 sps:$4 sm:$0xff]   ;;  %v8405_v56 = vld [vmem:[%s12499_s23 + $0xd00] ss:$16 sps:$4 sm:$0xff]  }
  0xd8   :  { %5172 = vmatprep.subr.bf16.mxu1 %v8344_v57  ;;  %v8408_v57 = vld [vmem:[%s12499_s23 + $0xf00] ss:$16 sps:$4 sm:$0xff]  }
  0xda   :  { %5132 = vmatpush1.bf16.msra.mxu0 %v8339_v58  ;;  %v844_v58 = vld [vmem:[%s12482_s2] sm:$0xf] }
  0xdb   :  { %5173 = vmatpush1.bf16.msra.mxu1 %v8342_v59  ;;  %5133 = vmatprep.subr.bf16.mxu0 %v8347_v60  ;;  %v848_v59 = vsub.s32 0, %v10308_v54  ;;  %v8417_v60 = vld [vmem:[%s12499_s23 + $0x10e4] ss:$16 sps:$4 sm:$0xff]  }
  0xdc   :  { %5174 = vmatprep.subr.bf16.mxu1 %v8350_v61  ;;  %v8420_v61 = vld [vmem:[%s12499_s23 + $0x12e4] ss:$16 sps:$4 sm:$0xff]  }
  0xde   :  { %5134 = vmatpush1.bf16.msra.mxu0 %v8345_v62  ;;  %v8415_v62 = vld [vmem:[%s12499_s23 + $0x10e0] ss:$16 sps:$4 sm:$0xff]  }
  0xdf   :  { %5175 = vmatpush1.bf16.msra.mxu1 %v8348_v63  ;;  %5135 = vmatprep.subr.bf16.mxu0 %v8353_v0  ;;  %v852_v63 = vsub.s32 1, %v10308_v54  ;;  %v10335_v0 = vcombine.low %v10107_v35, %v10107_v35  ;;  %v849_v35 = vrot.slane %v844_v58, %v848_v59 }
  0xe0   :  { %5176 = vmatprep.subr.bf16.mxu1 %v8356_v1  ;;  %v10339_v1 = vcombine.low %v10120_v40, %v10120_v40  ;;  %v8418_v40 = vld [vmem:[%s12499_s23 + $0x12e0] ss:$16 sps:$4 sm:$0xff]  }
  0xe2   :  { %5136 = vmatpush1.bf16.msra.mxu0 %v8351_v2  ;;  %v10344_v2 = vld [vmem:[%s12481_s0 + $0x40] sm:$0xff] }
  0xe3   :  { %5177 = vmatpush1.bf16.msra.mxu1 %v8354_v3  ;;  %5137 = vmatprep.subr.bf16.mxu0 %v8359_v4  ;;  %v10349_v3 = vld [vmem:[%s12481_s0 + $0x48] sm:$0xff]  ;;  %v8423_v4 = vld [vmem:[%s12499_s23 + $0x10c4] ss:$16 sps:$4 sm:$0xff]  }
  0xe4   :  { %5178 = vmatprep.subr.bf16.mxu1 %v8362_v5  ;;  %v8426_v5 = vld [vmem:[%s12499_s23 + $0x12c4] ss:$16 sps:$4 sm:$0xff]  }
  0xe6   :  { %5138 = vmatpush1.bf16.msra.mxu0 %v8357_v8  ;;  %v853_v8 = vrot.slane %v844_v58, %v852_v63  ;;  %v8456_v58 = vld [vmem:[%s12499_s23 + $0x1224] ss:$16 sps:$4 sm:$0xff]  }
  0xe7   :  { %5179 = vmatpush1.bf16.msra.mxu1 %v8360_v9  ;;  %5139 = vmatprep.subr.bf16.mxu0 %v8365_v10  ;;  %v10366_v9 = vcombine.high %v10344_v2, %v10344_v2  ;;  %v10370_v10 = vcombine.high %v10349_v3, %v10349_v3 }
  0xe8   :  { %5180 = vmatprep.subr.bf16.mxu1 %v8368_v11 }
  0xea   :  { %5140 = vmatpush2.bf16.msra.mxu0 %v8363_v12 }
  0xeb   :  { %5181 = vmatpush2.bf16.msra.mxu1 %v8366_v13  ;;  %5141 = vmatprep.subr.bf16.mxu0 %v8371_v14  ;;  %v8421_v13 = vld [vmem:[%s12499_s23 + $0x10c0] ss:$16 sps:$4 sm:$0xff]  }
  0xec   :  { %5182 = vmatprep.subr.bf16.mxu1 %v8374_v15  ;;  %v8424_v15 = vld [vmem:[%s12499_s23 + $0x12c0] ss:$16 sps:$4 sm:$0xff]  }
  0xee   :  { %5142 = vmatpush2.bf16.msra.mxu0 %v8369_v18 }
  0xef   :  { %5183 = vmatpush2.bf16.msra.mxu1 %v8372_v19  ;;  %5143 = vmatprep.subr.bf16.mxu0 %v8377_v20  ;;  %v8429_v20 = vld [vmem:[%s12499_s23 + $0x10a4] ss:$16 sps:$4 sm:$0xff]  }
  0xf0   :  { %5184 = vmatprep.subr.bf16.mxu1 %v8380_v21  ;;  %v8432_v21 = vld [vmem:[%s12499_s23 + $0x12a4] ss:$16 sps:$4 sm:$0xff]  }
  0xf2   :  { %5144 = vmatpush2.bf16.msra.mxu0 %v8375_v26 }
  0xf3   :  { %5185 = vmatpush2.bf16.msra.mxu1 %v8378_v27  ;;  %5145 = vmatprep.subr.bf16.mxu0 %v8383_v28 }
  0xf4   :  { %5186 = vmatprep.subr.bf16.mxu1 %v8386_v29  ;;  %v8427_v29 = vld [vmem:[%s12499_s23 + $0x10a0] ss:$16 sps:$4 sm:$0xff]  }
  0xf6   :  { %5146 = vmatpush2.bf16.msra.mxu0 %v8381_v30 }
  0xf7   :  { %5187 = vmatpush2.bf16.msra.mxu1 %v8384_v31  ;;  %5147 = vmatprep.subr.bf16.mxu0 %v8389_v32  ;;  %v8430_v32 = vld [vmem:[%s12499_s23 + $0x12a0] ss:$16 sps:$4 sm:$0xff]  }
  0xf8   :  { %5188 = vmatprep.subr.bf16.mxu1 %v8392_v33 }
  0xfa   :  { %5148 = vmatpush2.bf16.msra.mxu0 %v8387_v34  ;;  %v8435_v34 = vld [vmem:[%s12499_s23 + $0x1084] ss:$16 sps:$4 sm:$0xff]  }
  0xfb   :  { %5189 = vmatpush2.bf16.msra.mxu1 %v8390_v41  ;;  %5149 = vmatprep.subr.bf16.mxu0 %v8395_v22  ;;  %v8438_v41 = vld [vmem:[%s12499_s23 + $0x1284] ss:$16 sps:$4 sm:$0xff]  }
  0xfc   :  { %5190 = vmatprep.subr.bf16.mxu1 %v8398_v23  ;;  %v8433_v23 = vld [vmem:[%s12499_s23 + $0x1080] ss:$16 sps:$4 sm:$0xff]  }
  0xfe   :  { %5150 = vmatpush2.bf16.msra.mxu0 %v8393_v44  ;;  %v8436_v44 = vld [vmem:[%s12499_s23 + $0x1280] ss:$16 sps:$4 sm:$0xff]  }
  0xff   :  { %5191 = vmatpush2.bf16.msra.mxu1 %v8396_v45  ;;  %5151 = vmatprep.subr.bf16.mxu0 %v8401_v46  ;;  %v8441_v45 = vld [vmem:[%s12499_s23 + $0x1064] ss:$16 sps:$4 sm:$0xff]  }
 0x100   :  { %5192 = vmatprep.subr.bf16.mxu1 %v8404_v49  ;;  %v8444_v46 = vld [vmem:[%s12499_s23 + $0x1264] ss:$16 sps:$4 sm:$0xff]   ;;  %v8442_v49 = vld [vmem:[%s12499_s23 + $0x1260] ss:$16 sps:$4 sm:$0xff]  }
 0x102   :  { %5152 = vmatpush2.bf16.msra.mxu0 %v8399_v50  ;;  %v8447_v50 = vld [vmem:[%s12499_s23 + $0x1044] ss:$16 sps:$4 sm:$0xff]  }
 0x103   :  { %5193 = vmatpush2.bf16.msra.mxu1 %v8402_v52  ;;  %5153 = vmatprep.subr.bf16.mxu0 %v8407_v53  ;;  %v8450_v52 = vld [vmem:[%s12499_s23 + $0x1244] ss:$16 sps:$4 sm:$0xff]   ;;  %v9363_v53 = vmov 0  }
 0x104   :  { %5194 = vmatprep.subr.bf16.mxu1 %v8410_v55  ;;  %8013 = vset.pattern.permute.xlu1 %v9363_v53  ;;  %v8445_v55 = vld [vmem:[%s12499_s23 + $0x1040] ss:$16 sps:$4 sm:$0xff]  }
 0x105   :  { %8014 = vset.pattern.permute.xlu0 %v9363_v53 }
 0x106   :  { %5154 = vmatpush2.bf16.msra.mxu0 %v8405_v56  ;;  %v8448_v56 = vld [vmem:[%s12499_s23 + $0x1240] ss:$16 sps:$4 sm:$0xff]  }
 0x107   :  { %5195 = vmatpush2.bf16.msra.mxu1 %v8408_v57  ;;  %5205 = vmatprep.subr.bf16.mxu0 %v8417_v60  ;;  %v8453_v57 = vld [vmem:[%s12499_s23 + $0x1024] ss:$16 sps:$4 sm:$0xff]   ;;  %v8451_v60 = vld [vmem:[%s12499_s23 + $0x1020] ss:$16 sps:$4 sm:$0xff]  }
 0x108   :  { %5246 = vmatprep.subr.bf16.mxu1 %v8420_v61  ;;  %v8454_v61 = vld [vmem:[%s12499_s23 + $0x1220] ss:$16 sps:$4 sm:$0xff]  }
 0x109   :  { %v4911_v11 = vpop.f32.mrf.mxu0  ;;  %5156 = vmatmul.mubr.bf16.vlgmr.msra.gmra.mxu0 %v10335_v0 }
 0x10a   :  { %v4952_v12 = vpop.f32.mrf.mxu1  ;;  %5197 = vmatmul.mubr.bf16.vlgmr.msra.gmra.mxu1 %v10339_v1  ;;  %v4912_v14 = vadd.f32 %v4911_v11, %v849_v35  ;;  %5206 = vmatpush1.bf16.msra.mxu0 %v8415_v62  ;;  %v8459_v62 = vld [vmem:[%s12499_s23 + $0x1004] ss:$16 sps:$4 sm:$0xff]   ;;  %v8463_v11 = vld [vmem:[%s12499_s23 + $0x11e0] ss:$16 sps:$4 sm:$0xff]  }
 0x10b   :  { %5247 = vmatpush1.bf16.msra.mxu1 %v8418_v40  ;;  %v4913_v18 = vpop.f32.mrf.mxu0  ;;  %5207 = vmatprep.subr.bf16.mxu0 %v8423_v4  ;;  %v8462_v35 = vld [vmem:[%s12499_s23 + $0x1204] ss:$16 sps:$4 sm:$0xff]   ;;  %v8457_v40 = vld [vmem:[%s12499_s23 + $0x1000] ss:$16 sps:$4 sm:$0xff]  }
 0x10c   :  { %v4954_v19 = vpop.f32.mrf.mxu1  ;;  %5248 = vmatprep.subr.bf16.mxu1 %v8426_v5  ;;  %v10386_v26 = vadd.f32 %v4952_v12, %v4912_v14  ;;  %v4914_v27 = vadd.f32 %v4913_v18, %v853_v8  ;;  %5237 = vmatprep.mubr.bf16.mxu0 %v10366_v9  ;;  %v8460_v4 = vld [vmem:[%s12499_s23 + $0x1200] ss:$16 sps:$4 sm:$0xff]   ;;  %v8465_v5 = vld [vmem:[%s12499_s23 + $0x11e4] ss:$16 sps:$4 sm:$0xff]  }
 0x10d   :  { %5278 = vmatprep.mubr.bf16.mxu1 %v10370_v10  ;;  %v4915_v30 = vpop.f32.mrf.mxu0  ;;  %v8468_v8 = vld [vmem:[%s12499_s23 + $0x13e4] ss:$16 sps:$4 sm:$0xff]   ;;  %v8466_v12 = vld [vmem:[%s12499_s23 + $0x13e0] ss:$16 sps:$4 sm:$0xff]  }
 0x10e   :  { %v4956_v28 = vpop.f32.mrf.mxu1  ;;  %v10393_v31 = vadd.f32 %v4954_v19, %v4914_v27  ;;  %5208 = vmatpush1.bf16.msra.mxu0 %v8421_v13  ;;  %v8471_v13 = vld [vmem:[%s12499_s23 + $0x11c4] ss:$16 sps:$4 sm:$0xff]   ;;  %v8472_v18 = vld [vmem:[%s12499_s23 + $0x13c0] ss:$16 sps:$4 sm:$0xff]  }
 0x10f   :  { %5249 = vmatpush1.bf16.msra.mxu1 %v8424_v15  ;;  %5209 = vmatprep.subr.bf16.mxu0 %v8429_v20  ;;  %v4916_v22 = vpop.f32.mrf.mxu0  ;;  %v8474_v14 = vld [vmem:[%s12499_s23 + $0x13c4] ss:$16 sps:$4 sm:$0xff]   ;;  %v8469_v15 = vld [vmem:[%s12499_s23 + $0x11c0] ss:$16 sps:$4 sm:$0xff]  }
 0x110   :  { %v4957_v33 = vpop.f32.mrf.mxu1  ;;  %5250 = vmatprep.subr.bf16.mxu1 %v8432_v21  ;;  %v8477_v19 = vld [vmem:[%s12499_s23 + $0x11a4] ss:$16 sps:$4 sm:$0xff]   ;;  %v8475_v21 = vld [vmem:[%s12499_s23 + $0x11a0] ss:$16 sps:$4 sm:$0xff]  }
 0x111   :  { %v8480_v20 = vld [vmem:[%s12499_s23 + $0x13a4] ss:$16 sps:$4 sm:$0xff]   ;;  %v8478_v27 = vld [vmem:[%s12499_s23 + $0x13a0] ss:$16 sps:$4 sm:$0xff]  }
 0x112   :  { %5210 = vmatpush1.bf16.msra.mxu0 %v8427_v29  ;;  %v8483_v28 = vld [vmem:[%s12499_s23 + $0x1184] ss:$16 sps:$4 sm:$0xff]   ;;  %v8481_v30 = vld [vmem:[%s12499_s23 + $0x1180] ss:$16 sps:$4 sm:$0xff]  }
 0x113   :  { %5251 = vmatpush1.bf16.msra.mxu1 %v8430_v32  ;;  %5211 = vmatprep.subr.bf16.mxu0 %v8435_v34  ;;  %v8486_v29 = vld [vmem:[%s12499_s23 + $0x1384] ss:$16 sps:$4 sm:$0xff]   ;;  %v8484_v32 = vld [vmem:[%s12499_s23 + $0x1380] ss:$16 sps:$4 sm:$0xff]  }
 0x114   :  { %5252 = vmatprep.subr.bf16.mxu1 %v8438_v41  ;;  %v8489_v33 = vld [vmem:[%s12499_s23 + $0x1164] ss:$16 sps:$4 sm:$0xff]   ;;  %v8487_v41 = vld [vmem:[%s12499_s23 + $0x1160] ss:$16 sps:$4 sm:$0xff]  }
 0x115   :  { %v8492_v34 = vld [vmem:[%s12499_s23 + $0x1364] ss:$16 sps:$4 sm:$0xff]   ;;  %v8490_v22 = vld [vmem:[%s12499_s23 + $0x1360] ss:$16 sps:$4 sm:$0xff]  }
 0x116   :  { %5212 = vmatpush1.bf16.msra.mxu0 %v8433_v23  ;;  %v8495_v23 = vld [vmem:[%s12499_s23 + $0x1144] ss:$16 sps:$4 sm:$0xff]  }
 0x117   :  { %5253 = vmatpush1.bf16.msra.mxu1 %v8436_v44  ;;  %5213 = vmatprep.subr.bf16.mxu0 %v8441_v45  ;;  %v8498_v44 = vld [vmem:[%s12499_s23 + $0x1344] ss:$16 sps:$4 sm:$0xff]   ;;  %v8493_v45 = vld [vmem:[%s12499_s23 + $0x1140] ss:$16 sps:$4 sm:$0xff]  }
 0x118   :  { %5254 = vmatprep.subr.bf16.mxu1 %v8444_v46  ;;  %v8496_v46 = vld [vmem:[%s12499_s23 + $0x1340] ss:$16 sps:$4 sm:$0xff]  }
 0x11a   :  { %5214 = vmatpush1.bf16.msra.mxu0 %v8439_v48  ;;  %v8501_v48 = vld [vmem:[%s12499_s23 + $0x1124] ss:$16 sps:$4 sm:$0xff]  }
 0x11b   :  { %5255 = vmatpush1.bf16.msra.mxu1 %v8442_v49  ;;  %5215 = vmatprep.subr.bf16.mxu0 %v8447_v50  ;;  %v8504_v49 = vld [vmem:[%s12499_s23 + $0x1324] ss:$16 sps:$4 sm:$0xff]   ;;  %v8499_v50 = vld [vmem:[%s12499_s23 + $0x1120] ss:$16 sps:$4 sm:$0xff]  }
 0x11c   :  { %5256 = vmatprep.subr.bf16.mxu1 %v8450_v52  ;;  %v8502_v52 = vld [vmem:[%s12499_s23 + $0x1320] ss:$16 sps:$4 sm:$0xff]  }
 0x11e   :  { %5216 = vmatpush1.bf16.msra.mxu0 %v8445_v55  ;;  %v8507_v55 = vld [vmem:[%s12499_s23 + $0x1104] ss:$16 sps:$4 sm:$0xff]  }
 0x11f   :  { %5257 = vmatpush1.bf16.msra.mxu1 %v8448_v56  ;;  %5217 = vmatprep.subr.bf16.mxu0 %v8453_v57  ;;  %v8510_v56 = vld [vmem:[%s12499_s23 + $0x1304] ss:$16 sps:$4 sm:$0xff]   ;;  %v8505_v57 = vld [vmem:[%s12499_s23 + $0x1100] ss:$16 sps:$4 sm:$0xff]  }
 0x120   :  { %5258 = vmatprep.subr.bf16.mxu1 %v8456_v58  ;;  %v8508_v58 = vld [vmem:[%s12499_s23 + $0x1300] ss:$16 sps:$4 sm:$0xff]  }
 0x122   :  { %5218 = vmatpush1.bf16.msra.mxu0 %v8451_v60  ;;  %v8517_v60 = vld [vmem:[%s12499_s23 + $0x14e4] ss:$16 sps:$4 sm:$0xff]  }
 0x123   :  { %5259 = vmatpush1.bf16.msra.mxu1 %v8454_v61  ;;  %5219 = vmatprep.subr.bf16.mxu0 %v8459_v62  ;;  %v8520_v61 = vld [vmem:[%s12499_s23 + $0x16e4] ss:$16 sps:$4 sm:$0xff]  }
 0x124   :  { %5260 = vmatprep.subr.bf16.mxu1 %v8462_v35  ;;  %v10565_v62 = vld [vmem:[%s12481_s0 + $0x50] sm:$0xff]  ;;  %v10570_v35 = vld [vmem:[%s12481_s0 + $0x58] sm:$0xff] }
 0x126   :  { %5220 = vmatpush1.bf16.msra.mxu0 %v8457_v40  ;;  %v8515_v40 = vld [vmem:[%s12499_s23 + $0x14e0] ss:$16 sps:$4 sm:$0xff]  }
 0x127   :  { %5261 = vmatpush1.bf16.msra.mxu1 %v8460_v4  ;;  %5221 = vmatprep.subr.bf16.mxu0 %v8465_v5  ;;  %v8518_v4 = vld [vmem:[%s12499_s23 + $0x16e0] ss:$16 sps:$4 sm:$0xff]   ;;  %v10580_v5 = vcombine.low %v10344_v2, %v10344_v2 }
 0x128   :  { %5262 = vmatprep.subr.bf16.mxu1 %v8468_v8  ;;  %v10584_v8 = vcombine.low %v10349_v3, %v10349_v3  ;;  %v8521_v2 = vld [vmem:[%s12499_s23 + $0x14c0] ss:$16 sps:$4 sm:$0xff]  }
 0x129   :  { %v8524_v3 = vld [vmem:[%s12499_s23 + $0x16c0] ss:$16 sps:$4 sm:$0xff]  }
 0x12a   :  { %5222 = vmatpush2.bf16.msra.mxu0 %v8463_v11  ;;  %v8523_v11 = vld [vmem:[%s12499_s23 + $0x14c4] ss:$16 sps:$4 sm:$0xff]  }
 0x12b   :  { %5263 = vmatpush2.bf16.msra.mxu1 %v8466_v12  ;;  %5223 = vmatprep.subr.bf16.mxu0 %v8471_v13  ;;  %v8526_v12 = vld [vmem:[%s12499_s23 + $0x16c4] ss:$16 sps:$4 sm:$0xff]   ;;  %v10600_v13 = vcombine.high %v10565_v62, %v10565_v62 }
 0x12c   :  { %5264 = vmatprep.subr.bf16.mxu1 %v8474_v14  ;;  %v10604_v14 = vcombine.high %v10570_v35, %v10570_v35 }
 0x12e   :  { %5224 = vmatpush2.bf16.msra.mxu0 %v8469_v15 }
 0x12f   :  { %5265 = vmatpush2.bf16.msra.mxu1 %v8472_v18  ;;  %5225 = vmatprep.subr.bf16.mxu0 %v8477_v19 }
 0x130   :  { %5266 = vmatprep.subr.bf16.mxu1 %v8480_v20 }
 0x132   :  { %5226 = vmatpush2.bf16.msra.mxu0 %v8475_v21 }
 0x133   :  { %5267 = vmatpush2.bf16.msra.mxu1 %v8478_v27  ;;  %5227 = vmatprep.subr.bf16.mxu0 %v8483_v28  ;;  %v8529_v27 = vld [vmem:[%s12499_s23 + $0x14a4] ss:$16 sps:$4 sm:$0xff]  }
 0x134   :  { %5268 = vmatprep.subr.bf16.mxu1 %v8486_v29  ;;  %v8532_v28 = vld [vmem:[%s12499_s23 + $0x16a4] ss:$16 sps:$4 sm:$0xff]  }
 0x136   :  { %5228 = vmatpush2.bf16.msra.mxu0 %v8481_v30 }
 0x137   :  { %5269 = vmatpush2.bf16.msra.mxu1 %v8484_v32  ;;  %5229 = vmatprep.subr.bf16.mxu0 %v8489_v33  ;;  %v8530_v32 = vld [vmem:[%s12499_s23 + $0x16a0] ss:$16 sps:$4 sm:$0xff]  }
 0x138   :  { %5270 = vmatprep.subr.bf16.mxu1 %v8492_v34 }
 0x13a   :  { %5230 = vmatpush2.bf16.msra.mxu0 %v8487_v41 }
 0x13b   :  { %5271 = vmatpush2.bf16.msra.mxu1 %v8490_v22  ;;  %5231 = vmatprep.subr.bf16.mxu0 %v8495_v23  ;;  %v8538_v23 = vld [vmem:[%s12499_s23 + $0x1684] ss:$16 sps:$4 sm:$0xff]  }
 0x13c   :  { %5272 = vmatprep.subr.bf16.mxu1 %v8498_v44 }
 0x13e   :  { %5232 = vmatpush2.bf16.msra.mxu0 %v8493_v45  ;;  %v8533_v45 = vld [vmem:[%s12499_s23 + $0x1480] ss:$16 sps:$4 sm:$0xff]  }
 0x13f   :  { %5273 = vmatpush2.bf16.msra.mxu1 %v8496_v46  ;;  %5233 = vmatprep.subr.bf16.mxu0 %v8501_v48  ;;  %v8536_v46 = vld [vmem:[%s12499_s23 + $0x1680] ss:$16 sps:$4 sm:$0xff]   ;;  %v8541_v48 = vld [vmem:[%s12499_s23 + $0x1464] ss:$16 sps:$4 sm:$0xff]  }
 0x140   :  { %5274 = vmatprep.subr.bf16.mxu1 %v8504_v49  ;;  %v8544_v49 = vld [vmem:[%s12499_s23 + $0x1664] ss:$16 sps:$4 sm:$0xff]  }
 0x142   :  { %5234 = vmatpush2.bf16.msra.mxu0 %v8499_v50  ;;  %v8539_v50 = vld [vmem:[%s12499_s23 + $0x1460] ss:$16 sps:$4 sm:$0xff]  }
 0x143   :  { %5275 = vmatpush2.bf16.msra.mxu1 %v8502_v52  ;;  %5235 = vmatprep.subr.bf16.mxu0 %v8507_v55  ;;  %v8542_v52 = vld [vmem:[%s12499_s23 + $0x1660] ss:$16 sps:$4 sm:$0xff]   ;;  %v8547_v55 = vld [vmem:[%s12499_s23 + $0x1444] ss:$16 sps:$4 sm:$0xff]  }
 0x144   :  { %5276 = vmatprep.subr.bf16.mxu1 %v8510_v56  ;;  %v8550_v56 = vld [vmem:[%s12499_s23 + $0x1644] ss:$16 sps:$4 sm:$0xff]  }
 0x146   :  { %5236 = vmatpush2.bf16.msra.mxu0 %v8505_v57  ;;  %v8545_v57 = vld [vmem:[%s12499_s23 + $0x1440] ss:$16 sps:$4 sm:$0xff]  }
 0x147   :  { %5277 = vmatpush2.bf16.msra.mxu1 %v8508_v58  ;;  %5287 = vmatprep.subr.bf16.mxu0 %v8517_v60  ;;  %v8548_v58 = vld [vmem:[%s12499_s23 + $0x1640] ss:$16 sps:$4 sm:$0xff]   ;;  %v8553_v60 = vld [vmem:[%s12499_s23 + $0x1424] ss:$16 sps:$4 sm:$0xff]  }
 0x148   :  { %5328 = vmatprep.subr.bf16.mxu1 %v8520_v61  ;;  %v8556_v61 = vld [vmem:[%s12499_s23 + $0x1624] ss:$16 sps:$4 sm:$0xff]  }
 0x149   :  { %v4993_v15 = vpop.f32.mrf.mxu0  ;;  %5238 = vmatmul.mubr.bf16.vlgmr.msra.gmra.mxu0 %v10580_v5 }
 0x14a   :  { %v5034_v18 = vpop.f32.mrf.mxu1  ;;  %5279 = vmatmul.mubr.bf16.vlgmr.msra.gmra.mxu1 %v10584_v8  ;;  %v4994_v19 = vadd.f32 %v4993_v15, %v10386_v26  ;;  %5288 = vmatpush1.bf16.msra.mxu0 %v8515_v40  ;;  %v8527_v26 = vld [vmem:[%s12499_s23 + $0x14a0] ss:$16 sps:$4 sm:$0xff]   ;;  %v8565_v15 = vld [vmem:[%s12499_s23 + $0x15e4] ss:$16 sps:$4 sm:$0xff]  }
 0x14b   :  { %5329 = vmatpush1.bf16.msra.mxu1 %v8518_v4  ;;  %v4995_v20 = vpop.f32.mrf.mxu0  ;;  %5289 = vmatprep.subr.bf16.mxu0 %v8523_v11  ;;  %v8551_v40 = vld [vmem:[%s12499_s23 + $0x1420] ss:$16 sps:$4 sm:$0xff]   ;;  %v8559_v11 = vld [vmem:[%s12499_s23 + $0x1404] ss:$16 sps:$4 sm:$0xff]  }
 0x14c   :  { %v5036_v21 = vpop.f32.mrf.mxu1  ;;  %5330 = vmatprep.subr.bf16.mxu1 %v8526_v12  ;;  %v10615_v29 = vadd.f32 %v5034_v18, %v4994_v19  ;;  %v4996_v30 = vadd.f32 %v4995_v20, %v10393_v31  ;;  %5319 = vmatprep.mubr.bf16.mxu0 %v10600_v13  ;;  %v8535_v31 = vld [vmem:[%s12499_s23 + $0x1484] ss:$16 sps:$4 sm:$0xff]   ;;  %v8554_v4 = vld [vmem:[%s12499_s23 + $0x1620] ss:$16 sps:$4 sm:$0xff]  }
 0x14d   :  { %5360 = vmatprep.mubr.bf16.mxu1 %v10604_v14  ;;  %v4997_v34 = vpop.f32.mrf.mxu0  ;;  %v8562_v12 = vld [vmem:[%s12499_s23 + $0x1604] ss:$16 sps:$4 sm:$0xff]   ;;  %v8563_v19 = vld [vmem:[%s12499_s23 + $0x15e0] ss:$16 sps:$4 sm:$0xff]  }
 0x14e   :  { %v5038_v33 = vpop.f32.mrf.mxu1  ;;  %v10626_v41 = vadd.f32 %v5036_v21, %v4996_v30  ;;  %5290 = vmatpush1.bf16.msra.mxu0 %v8521_v2  ;;  %v8557_v2 = vld [vmem:[%s12499_s23 + $0x1400] ss:$16 sps:$4 sm:$0xff]   ;;  %v8568_v18 = vld [vmem:[%s12499_s23 + $0x17e4] ss:$16 sps:$4 sm:$0xff]  }
 0x14f   :  { %5331 = vmatpush1.bf16.msra.mxu1 %v8524_v3  ;;  %5291 = vmatprep.subr.bf16.mxu0 %v8529_v27  ;;  %v4998_v44 = vpop.f32.mrf.mxu0  ;;  %v8560_v3 = vld [vmem:[%s12499_s23 + $0x1600] ss:$16 sps:$4 sm:$0xff]   ;;  %v8571_v21 = vld [vmem:[%s12499_s23 + $0x15c4] ss:$16 sps:$4 sm:$0xff]  }
 0x150   :  { %v5039_v22 = vpop.f32.mrf.mxu1  ;;  %5332 = vmatprep.subr.bf16.mxu1 %v8532_v28  ;;  %v8566_v20 = vld [vmem:[%s12499_s23 + $0x17e0] ss:$16 sps:$4 sm:$0xff]   ;;  %v8574_v27 = vld [vmem:[%s12499_s23 + $0x17c4] ss:$16 sps:$4 sm:$0xff]  }
 0x151   :  { %v8569_v28 = vld [vmem:[%s12499_s23 + $0x15c0] ss:$16 sps:$4 sm:$0xff]   ;;  %v8583_v22 = vld [vmem:[%s12499_s23 + $0x1584] ss:$16 sps:$4 sm:$0xff]  }
 0x152   :  { %5292 = vmatpush1.bf16.msra.mxu0 %v8527_v26  ;;  %v8572_v30 = vld [vmem:[%s12499_s23 + $0x17c0] ss:$16 sps:$4 sm:$0xff]   ;;  %v8577_v26 = vld [vmem:[%s12499_s23 + $0x15a4] ss:$16 sps:$4 sm:$0xff]  }
 0x153   :  { %5333 = vmatpush1.bf16.msra.mxu1 %v8530_v32  ;;  %5293 = vmatprep.subr.bf16.mxu0 %v8535_v31  ;;  %v8580_v32 = vld [vmem:[%s12499_s23 + $0x17a4] ss:$16 sps:$4 sm:$0xff]   ;;  %v8575_v33 = vld [vmem:[%s12499_s23 + $0x15a0] ss:$16 sps:$4 sm:$0xff]  }
 0x154   :  { %5334 = vmatprep.subr.bf16.mxu1 %v8538_v23  ;;  %v8578_v34 = vld [vmem:[%s12499_s23 + $0x17a0] ss:$16 sps:$4 sm:$0xff]   ;;  %v8586_v31 = vld [vmem:[%s12499_s23 + $0x1784] ss:$16 sps:$4 sm:$0xff]  }
 0x155   :  { %v8581_v23 = vld [vmem:[%s12499_s23 + $0x1580] ss:$16 sps:$4 sm:$0xff]  }
 0x156   :  { %5294 = vmatpush1.bf16.msra.mxu0 %v8533_v45  ;;  %v8584_v44 = vld [vmem:[%s12499_s23 + $0x1780] ss:$16 sps:$4 sm:$0xff]   ;;  %v8589_v45 = vld [vmem:[%s12499_s23 + $0x1564] ss:$16 sps:$4 sm:$0xff]  }
 0x157   :  { %5335 = vmatpush1.bf16.msra.mxu1 %v8536_v46  ;;  %5295 = vmatprep.subr.bf16.mxu0 %v8541_v48  ;;  %v8592_v46 = vld [vmem:[%s12499_s23 + $0x1764] ss:$16 sps:$4 sm:$0xff]   ;;  %v8587_v48 = vld [vmem:[%s12499_s23 + $0x1560] ss:$16 sps:$4 sm:$0xff]  }
 0x158   :  { %5336 = vmatprep.subr.bf16.mxu1 %v8544_v49  ;;  %v8590_v49 = vld [vmem:[%s12499_s23 + $0x1760] ss:$16 sps:$4 sm:$0xff]  }
 0x15a   :  { %5296 = vmatpush1.bf16.msra.mxu0 %v8539_v50  ;;  %v8595_v50 = vld [vmem:[%s12499_s23 + $0x1544] ss:$16 sps:$4 sm:$0xff]  }
 0x15b   :  { %5337 = vmatpush1.bf16.msra.mxu1 %v8542_v52  ;;  %5297 = vmatprep.subr.bf16.mxu0 %v8547_v55  ;;  %v8598_v52 = vld [vmem:[%s12499_s23 + $0x1744] ss:$16 sps:$4 sm:$0xff]   ;;  %v8593_v55 = vld [vmem:[%s12499_s23 + $0x1540] ss:$16 sps:$4 sm:$0xff]  }
 0x15c   :  { %5338 = vmatprep.subr.bf16.mxu1 %v8550_v56  ;;  %v8596_v56 = vld [vmem:[%s12499_s23 + $0x1740] ss:$16 sps:$4 sm:$0xff]  }
 0x15e   :  { %5298 = vmatpush1.bf16.msra.mxu0 %v8545_v57  ;;  %v8601_v57 = vld [vmem:[%s12499_s23 + $0x1524] ss:$16 sps:$4 sm:$0xff]  }
 0x15f   :  { %5339 = vmatpush1.bf16.msra.mxu1 %v8548_v58  ;;  %5299 = vmatprep.subr.bf16.mxu0 %v8553_v60  ;;  %v8604_v58 = vld [vmem:[%s12499_s23 + $0x1724] ss:$16 sps:$4 sm:$0xff]   ;;  %v8599_v60 = vld [vmem:[%s12499_s23 + $0x1520] ss:$16 sps:$4 sm:$0xff]  }
 0x160   :  { %5340 = vmatprep.subr.bf16.mxu1 %v8556_v61  ;;  %v8602_v61 = vld [vmem:[%s12499_s23 + $0x1720] ss:$16 sps:$4 sm:$0xff]  }
 0x162   :  { %5300 = vmatpush1.bf16.msra.mxu0 %v8551_v40  ;;  %v8607_v40 = vld [vmem:[%s12499_s23 + $0x1504] ss:$16 sps:$4 sm:$0xff]  }
 0x163   :  { %5341 = vmatpush1.bf16.msra.mxu1 %v8554_v4  ;;  %5301 = vmatprep.subr.bf16.mxu0 %v8559_v11  ;;  %v8610_v4 = vld [vmem:[%s12499_s23 + $0x1704] ss:$16 sps:$4 sm:$0xff]   ;;  %v8605_v11 = vld [vmem:[%s12499_s23 + $0x1500] ss:$16 sps:$4 sm:$0xff]  }
 0x164   :  { %5342 = vmatprep.subr.bf16.mxu1 %v8562_v12  ;;  %v8608_v12 = vld [vmem:[%s12499_s23 + $0x1700] ss:$16 sps:$4 sm:$0xff]  }
 0x166   :  { %5302 = vmatpush1.bf16.msra.mxu0 %v8557_v2  ;;  %v8617_v2 = vld [vmem:[%s12499_s23 + $0x1864] ss:$16 sps:$4 sm:$0xff]  }
 0x167   :  { %5343 = vmatpush1.bf16.msra.mxu1 %v8560_v3  ;;  %5303 = vmatprep.subr.bf16.mxu0 %v8565_v15  ;;  %v8620_v3 = vld [vmem:[%s12499_s23 + $0x2ec] ss:$16 sps:$4 sm:$0xff]   ;;  %v8615_v15 = vld [vmem:[%s12499_s23 + $0x1860] ss:$16 sps:$4 sm:$0xff]  }
 0x168   :  { %5344 = vmatprep.subr.bf16.mxu1 %v8568_v18  ;;  %v8618_v18 = vld [vmem:[%s12499_s23 + $0x2e8] ss:$16 sps:$4 sm:$0xff]  }
 0x16a   :  { %5304 = vmatpush2.bf16.msra.mxu0 %v8563_v19  ;;  %v10798_v19 = vcombine.low %v10565_v62, %v10565_v62  ;;  %v8621_v62 = vld [vmem:[%s12499_s23 + $0x1840] ss:$16 sps:$4 sm:$0xff]  }
 0x16b   :  { %5345 = vmatpush2.bf16.msra.mxu1 %v8566_v20  ;;  %5305 = vmatprep.subr.bf16.mxu0 %v8571_v21  ;;  %v10802_v20 = vcombine.low %v10570_v35, %v10570_v35  ;;  %v8623_v21 = vld [vmem:[%s12499_s23 + $0x1844] ss:$16 sps:$4 sm:$0xff]   ;;  %v8624_v35 = vld [vmem:[%s12499_s23 + $0x2c8] ss:$16 sps:$4 sm:$0xff]  }
 0x16c   :  { %5346 = vmatprep.subr.bf16.mxu1 %v8574_v27  ;;  %v8626_v27 = vld [vmem:[%s12499_s23 + $0x2cc] ss:$16 sps:$4 sm:$0xff]  }
 0x16e   :  { %5306 = vmatpush2.bf16.msra.mxu0 %v8569_v28 }
 0x16f   :  { %5347 = vmatpush2.bf16.msra.mxu1 %v8572_v30  ;;  %5307 = vmatprep.subr.bf16.mxu0 %v8577_v26 }
 0x170   :  { %5348 = vmatprep.subr.bf16.mxu1 %v8580_v32 }
 0x172   :  { %5308 = vmatpush2.bf16.msra.mxu0 %v8575_v33 }
 0x173   :  { %5349 = vmatpush2.bf16.msra.mxu1 %v8578_v34  ;;  %5309 = vmatprep.subr.bf16.mxu0 %v8583_v22  ;;  %v8629_v34 = vld [vmem:[%s12499_s23 + $0x1824] ss:$16 sps:$4 sm:$0xff]   ;;  %v8632_v22 = vld [vmem:[%s12499_s23 + $0x2ac] ss:$16 sps:$4 sm:$0xff]  }
 0x174   :  { %5350 = vmatprep.subr.bf16.mxu1 %v8586_v31 }
 0x176   :  { %5310 = vmatpush2.bf16.msra.mxu0 %v8581_v23 }
 0x177   :  { %5351 = vmatpush2.bf16.msra.mxu1 %v8584_v44  ;;  %5311 = vmatprep.subr.bf16.mxu0 %v8589_v45  ;;  %v8630_v44 = vld [vmem:[%s12499_s23 + $0x2a8] ss:$16 sps:$4 sm:$0xff]  }
 0x178   :  { %5352 = vmatprep.subr.bf16.mxu1 %v8592_v46 }
 0x17a   :  { %5312 = vmatpush2.bf16.msra.mxu0 %v8587_v48 }
 0x17b   :  { %5353 = vmatpush2.bf16.msra.mxu1 %v8590_v49  ;;  %5313 = vmatprep.subr.bf16.mxu0 %v8595_v50  ;;  %v8638_v50 = vld [vmem:[%s12499_s23 + $0x28c] ss:$16 sps:$4 sm:$0xff]  }
 0x17c   :  { %5354 = vmatprep.subr.bf16.mxu1 %v8598_v52 }
 0x17e   :  { %5314 = vmatpush2.bf16.msra.mxu0 %v8593_v55  ;;  %v8636_v55 = vld [vmem:[%s12499_s23 + $0x288] ss:$16 sps:$4 sm:$0xff]  }
 0x17f   :  { %5355 = vmatpush2.bf16.msra.mxu1 %v8596_v56  ;;  %5315 = vmatprep.subr.bf16.mxu0 %v8601_v57  ;;  %v8639_v56 = vld [vmem:[%s12481_s0 + $0x60] ss:$0 sps:$4 sm:$0xff]   ;;  %v8642_v57 = vld [vmem:[%s12499_s23 + $0xec] ss:$16 sps:$4 sm:$0xff]  }
 0x180   :  { %5356 = vmatprep.subr.bf16.mxu1 %v8604_v58  ;;  %v8645_v58 = vld [vmem:[%s12499_s23 + $0x26c] ss:$16 sps:$4 sm:$0xff]  }
 0x182   :  { %5316 = vmatpush2.bf16.msra.mxu0 %v8599_v60  ;;  %v8640_v60 = vld [vmem:[%s12499_s23 + $0xe8] ss:$16 sps:$4 sm:$0xff]  }
 0x183   :  { %5357 = vmatpush2.bf16.msra.mxu1 %v8602_v61  ;;  %5317 = vmatprep.subr.bf16.mxu0 %v8607_v40  ;;  %v8643_v61 = vld [vmem:[%s12499_s23 + $0x268] ss:$16 sps:$4 sm:$0xff]   ;;  %v8648_v40 = vld [vmem:[%s12499_s23 + $0xcc] ss:$16 sps:$4 sm:$0xff]  }
 0x184   :  { %5358 = vmatprep.subr.bf16.mxu1 %v8610_v4  ;;  %v8651_v4 = vld [vmem:[%s12499_s23 + $0x24c] ss:$16 sps:$4 sm:$0xff]  }
 0x186   :  { %5318 = vmatpush2.bf16.msra.mxu0 %v8605_v11  ;;  %v8646_v11 = vld [vmem:[%s12499_s23 + $0xc8] ss:$16 sps:$4 sm:$0xff]  }
 0x187   :  { %5359 = vmatpush2.bf16.msra.mxu1 %v8608_v12  ;;  %5451 = vmatprep.subr.bf16.mxu0 %v8620_v3  ;;  %v8649_v12 = vld [vmem:[%s12499_s23 + $0x248] ss:$16 sps:$4 sm:$0xff]   ;;  %v8657_v3 = vld [vmem:[%s12499_s23 + $0x22c] ss:$16 sps:$4 sm:$0xff]  }
 0x188   :  { %5377 = vmatprep.subr.bf16.mxu1 %v8617_v2  ;;  %v8654_v2 = vld [vmem:[%s12499_s23 + $0xac] ss:$16 sps:$4 sm:$0xff]  }
 0x189   :  { %v5075_v28 = vpop.f32.mrf.mxu0  ;;  %5320 = vmatmul.mubr.bf16.vlgmr.msra.gmra.mxu0 %v10798_v19 }
 0x18a   :  { %v5116_v30 = vpop.f32.mrf.mxu1  ;;  %5361 = vmatmul.mubr.bf16.vlgmr.msra.gmra.mxu1 %v10802_v20  ;;  %v5076_v26 = vadd.f32 %v5075_v28, %v10615_v29  ;;  %5452 = vmatpush1.bf16.msra.mxu0 %v8618_v18  ;;  %v8627_v29 = vld [vmem:[%s12499_s23 + $0x1820] ss:$16 sps:$4 sm:$0xff]   ;;  %v8655_v18 = vld [vmem:[%s12499_s23 + $0x228] ss:$16 sps:$4 sm:$0xff]   ;;  %v8669_v28 = vld [vmem:[%s12499_s23 + $0x3ec] ss:$16 sps:$4 sm:$0xff]  }
 0x18b   :  { %5378 = vmatpush1.bf16.msra.mxu1 %v8615_v15  ;;  %v5077_v32 = vpop.f32.mrf.mxu0  ;;  %5453 = vmatprep.subr.bf16.mxu0 %v8626_v27  ;;  %v8652_v15 = vld [vmem:[%s12499_s23 + $0xa8] ss:$16 sps:$4 sm:$0xff]  }
 0x18c   :  { %v5118_v33 = vpop.f32.mrf.mxu1  ;;  %5379 = vmatprep.subr.bf16.mxu1 %v8623_v21  ;;  %v10825_v31 = vadd.f32 %v5116_v30, %v5076_v26  ;;  %v5078_v23 = vadd.f32 %v5077_v32, %v10626_v41  ;;  %5401 = vmatprep.mubr.bf16.mxu1 %v9363_v53  ;;  %v8635_v41 = vld [vmem:[%s12499_s23 + $0x1804] ss:$16 sps:$4 sm:$0xff]   ;;  %v8660_v21 = vld [vmem:[%s12499_s23 + $0x8c] ss:$16 sps:$4 sm:$0xff]   ;;  %v8658_v27 = vld [vmem:[%s12499_s23 + $0x88] ss:$16 sps:$4 sm:$0xff]  }
 0x18d   :  { %5483 = vmatprep.mubr.bf16.mxu0 %v9603_v51  ;;  %v5079_v46 = vpop.f32.mrf.mxu0  ;;  %v8633_v51 = vld [vmem:[%s12499_s23 + $0x1800] ss:$16 sps:$4 sm:$0xff]   ;;  %v8664_v30 = vld [vmem:[%s12499_s23 + $0x68] ss:$16 sps:$4 sm:$0xff]   ;;  %v8672_v32 = vld [vmem:[%s12499_s23 + $0x4c] ss:$16 sps:$4 sm:$0xff]  }
 0x18e   :  { %v5120_v45 = vpop.f32.mrf.mxu1  ;;  %v10836_v48 = vadd.f32 %v5118_v33, %v5078_v23  ;;  %5454 = vmatpush1.bf16.msra.mxu0 %v8624_v35  ;;  %v8666_v35 = vld [vmem:[%s12499_s23 + $0x6c] ss:$16 sps:$4 sm:$0xff]   ;;  %v8667_v26 = vld [vmem:[%s12499_s23 + $0x3e8] ss:$16 sps:$4 sm:$0xff]  }
 0x18f   :  { %5380 = vmatpush1.bf16.msra.mxu1 %v8621_v62  ;;  %5455 = vmatprep.subr.bf16.mxu0 %v8632_v22  ;;  %v5080_v52 = vpop.f32.mrf.mxu0  ;;  %v8661_v62 = vld [vmem:[%s12499_s23 + $0x208] ss:$16 sps:$4 sm:$0xff]   ;;  %v8675_v33 = vld [vmem:[%s12499_s23 + $0x3cc] ss:$16 sps:$4 sm:$0xff]  }
 0x190   :  { %v5121_v49 = vpop.f32.mrf.mxu1  ;;  %5381 = vmatprep.subr.bf16.mxu1 %v8629_v34  ;;  %v8670_v34 = vld [vmem:[%s12499_s23 + $0x48] ss:$16 sps:$4 sm:$0xff]   ;;  %v8678_v23 = vld [vmem:[%s12499_s23 + $0x2c] ss:$16 sps:$4 sm:$0xff]  }
 0x191   :  { %v8673_v22 = vld [vmem:[%s12499_s23 + $0x3c8] ss:$16 sps:$4 sm:$0xff]   ;;  %v8684_v46 = vld [vmem:[%s12499_s23 + $0xc] ss:$16 sps:$4 sm:$0xff]  }
 0x192   :  { %5456 = vmatpush1.bf16.msra.mxu0 %v8630_v44  ;;  %v8676_v44 = vld [vmem:[%s12499_s23 + $0x28] ss:$16 sps:$4 sm:$0xff]   ;;  %v8687_v49 = vld [vmem:[%s12499_s23 + $0x38c] ss:$16 sps:$4 sm:$0xff]  }
 0x193   :  { %5382 = vmatpush1.bf16.msra.mxu1 %v8627_v29  ;;  %5457 = vmatprep.subr.bf16.mxu0 %v8638_v50  ;;  %v8681_v29 = vld [vmem:[%s12499_s23 + $0x3ac] ss:$16 sps:$4 sm:$0xff]   ;;  %v8679_v45 = vld [vmem:[%s12499_s23 + $0x3a8] ss:$16 sps:$4 sm:$0xff]  }
 0x194   :  { %5383 = vmatprep.subr.bf16.mxu1 %v8635_v41  ;;  %v8682_v41 = vld [vmem:[%s12499_s23 + $0x8] ss:$16 sps:$4 sm:$0xff]   ;;  %v8690_v52 = vld [vmem:[%s12499_s23 + $0x1ec] ss:$16 sps:$4 sm:$0xff]  }
 0x195   :  { %v8685_v50 = vld [vmem:[%s12499_s23 + $0x388] ss:$16 sps:$4 sm:$0xff]  }
 0x196   :  { %5458 = vmatpush1.bf16.msra.mxu0 %v8636_v55  ;;  %v8688_v55 = vld [vmem:[%s12499_s23 + $0x1e8] ss:$16 sps:$4 sm:$0xff]  }
 0x197   :  { %5384 = vmatpush1.bf16.msra.mxu1 %v8633_v51  ;;  %5459 = vmatprep.subr.bf16.mxu0 %v8645_v58  ;;  %v8693_v51 = vld [vmem:[%s12499_s23 + $0x36c] ss:$16 sps:$4 sm:$0xff]  }
 0x198   :  { %5410 = vmatprep.subr.bf16.mxu1 %v8642_v57  ;;  %v8696_v57 = vld [vmem:[%s12499_s23 + $0x1cc] ss:$16 sps:$4 sm:$0xff]  }
 0x199   :  { %v8699_v58 = vld [vmem:[%s12499_s23 + $0x34c] ss:$16 sps:$4 sm:$0xff]  }
 0x19a   :  { %7827 = vmatmul.mubr.msk.bf16.vlgmr.msra.gmra.mxu1 %vm4873_vm0, %v8639_v56  ;;  %5460 = vmatpush1.bf16.msra.mxu0 %v8643_v61  ;;  %v8691_v56 = vld [vmem:[%s12499_s23 + $0x368] ss:$16 sps:$4 sm:$0xff]  }
 0x19b   :  { %5411 = vmatpush1.bf16.msra.mxu1 %v8640_v60  ;;  %5461 = vmatprep.subr.bf16.mxu0 %v8651_v4  ;;  %v8694_v60 = vld [vmem:[%s12499_s23 + $0x1c8] ss:$16 sps:$4 sm:$0xff]   ;;  %v8705_v4 = vld [vmem:[%s12499_s23 + $0x32c] ss:$16 sps:$4 sm:$0xff]  }
 0x19c   :  { %5412 = vmatprep.subr.bf16.mxu1 %v8648_v40  ;;  %5442 = vmatprep.mubr.bf16.mxu1 %v9592_v47  ;;  %v8663_v47 = vld [vmem:[%s12499_s23 + $0x20c] ss:$16 sps:$4 sm:$0xff]   ;;  %v8697_v61 = vld [vmem:[%s12499_s23 + $0x348] ss:$16 sps:$4 sm:$0xff]  }
 0x19d   :  { %v8702_v40 = vld [vmem:[%s12499_s23 + $0x1ac] ss:$16 sps:$4 sm:$0xff]  }
 0x19e   :  { %5462 = vmatpush1.bf16.msra.mxu0 %v8649_v12  ;;  %v8703_v12 = vld [vmem:[%s12499_s23 + $0x328] ss:$16 sps:$4 sm:$0xff]  }
 0x19f   :  { %5413 = vmatpush1.bf16.msra.mxu1 %v8646_v11  ;;  %5463 = vmatprep.subr.bf16.mxu0 %v8657_v3  ;;  %v8700_v11 = vld [vmem:[%s12499_s23 + $0x1a8] ss:$16 sps:$4 sm:$0xff]   ;;  %v8711_v3 = vld [vmem:[%s12499_s23 + $0x30c] ss:$16 sps:$4 sm:$0xff]  }
 0x1a0   :  { %5414 = vmatprep.subr.bf16.mxu1 %v8654_v2  ;;  %v8708_v2 = vld [vmem:[%s12499_s23 + $0x18c] ss:$16 sps:$4 sm:$0xff]  }
 0x1a2   :  { %5464 = vmatpush1.bf16.msra.mxu0 %v8655_v18  ;;  %v8709_v18 = vld [vmem:[%s12499_s23 + $0x308] ss:$16 sps:$4 sm:$0xff]  }
 0x1a3   :  { %5415 = vmatpush1.bf16.msra.mxu1 %v8652_v15  ;;  %5465 = vmatprep.subr.bf16.mxu0 %v8663_v47  ;;  %v8706_v15 = vld [vmem:[%s12499_s23 + $0x188] ss:$16 sps:$4 sm:$0xff]   ;;  %v8717_v47 = vld [vmem:[%s12499_s23 + $0x6ec] ss:$16 sps:$4 sm:$0xff]  }
 0x1a4   :  { %5416 = vmatprep.subr.bf16.mxu1 %v8660_v21  ;;  %v8714_v21 = vld [vmem:[%s12499_s23 + $0x16c] ss:$16 sps:$4 sm:$0xff]  }
 0x1a6   :  { %5466 = vmatpush1.bf16.msra.mxu0 %v8661_v62  ;;  %v8715_v62 = vld [vmem:[%s12499_s23 + $0x6e8] ss:$16 sps:$4 sm:$0xff]  }
 0x1a7   :  { %5417 = vmatpush1.bf16.msra.mxu1 %v8658_v27  ;;  %5467 = vmatprep.subr.bf16.mxu0 %v8669_v28  ;;  %v8712_v27 = vld [vmem:[%s12499_s23 + $0x168] ss:$16 sps:$4 sm:$0xff]   ;;  %v8723_v28 = vld [vmem:[%s12499_s23 + $0x6cc] ss:$16 sps:$4 sm:$0xff]  }
 0x1a8   :  { %5418 = vmatprep.subr.bf16.mxu1 %v8666_v35  ;;  %v8720_v35 = vld [vmem:[%s12499_s23 + $0x14c] ss:$16 sps:$4 sm:$0xff]  }
 0x1aa   :  { %5468 = vmatpush2.bf16.msra.mxu0 %v8667_v26  ;;  %v8721_v26 = vld [vmem:[%s12499_s23 + $0x6c8] ss:$16 sps:$4 sm:$0xff]  }
 0x1ab   :  { %5419 = vmatpush1.bf16.msra.mxu1 %v8664_v30  ;;  %5469 = vmatprep.subr.bf16.mxu0 %v8675_v33  ;;  %v8718_v30 = vld [vmem:[%s12499_s23 + $0x148] ss:$16 sps:$4 sm:$0xff]  }
 0x1ac   :  { %5420 = vmatprep.subr.bf16.mxu1 %v8672_v32 }
 0x1ae   :  { %5470 = vmatpush2.bf16.msra.mxu0 %v8673_v22 }
 0x1af   :  { %5421 = vmatpush1.bf16.msra.mxu1 %v8670_v34  ;;  %5471 = vmatprep.subr.bf16.mxu0 %v8681_v29  ;;  %v8726_v29 = vld [vmem:[%s12499_s23 + $0x12c] ss:$16 sps:$4 sm:$0xff]  }
 0x1b0   :  { %5422 = vmatprep.subr.bf16.mxu1 %v8678_v23 }
 0x1b2   :  { %5472 = vmatpush2.bf16.msra.mxu0 %v8679_v45 }
 0x1b3   :  { %5423 = vmatpush1.bf16.msra.mxu1 %v8676_v44  ;;  %5473 = vmatprep.subr.bf16.mxu0 %v8687_v49  ;;  %v8729_v44 = vld [vmem:[%s12499_s23 + $0x6ac] ss:$16 sps:$4 sm:$0xff]  }
 0x1b4   :  { %5424 = vmatprep.subr.bf16.mxu1 %v8684_v46  ;;  %v8727_v46 = vld [vmem:[%s12499_s23 + $0x6a8] ss:$16 sps:$4 sm:$0xff]  }
 0x1b6   :  { %5474 = vmatpush2.bf16.msra.mxu0 %v8685_v50 }
 0x1b7   :  { %5425 = vmatpush1.bf16.msra.mxu1 %v8682_v41  ;;  %5475 = vmatprep.subr.bf16.mxu0 %v8693_v51  ;;  %v8735_v51 = vld [vmem:[%s12499_s23 + $0x68c] ss:$16 sps:$4 sm:$0xff]  }
 0x1b8   :  { %5426 = vmatprep.subr.bf16.mxu1 %v8690_v52 }
 0x1ba   :  { %5476 = vmatpush2.bf16.msra.mxu0 %v8691_v56  ;;  %v8733_v56 = vld [vmem:[%s12499_s23 + $0x688] ss:$16 sps:$4 sm:$0xff]  }
 0x1bb   :  { %5427 = vmatpush2.bf16.msra.mxu1 %v8688_v55  ;;  %5477 = vmatprep.subr.bf16.mxu0 %v8699_v58  ;;  %v8741_v58 = vld [vmem:[%s12499_s23 + $0x66c] ss:$16 sps:$4 sm:$0xff]  }
 0x1bc   :  { %5428 = vmatprep.subr.bf16.mxu1 %v8696_v57  ;;  %v8738_v57 = vld [vmem:[%s12499_s23 + $0x4ec] ss:$16 sps:$4 sm:$0xff]  }
 0x1be   :  { %5478 = vmatpush2.bf16.msra.mxu0 %v8697_v61  ;;  %v8739_v61 = vld [vmem:[%s12499_s23 + $0x668] ss:$16 sps:$4 sm:$0xff]  }
 0x1bf   :  { %5429 = vmatpush2.bf16.msra.mxu1 %v8694_v60  ;;  %5479 = vmatprep.subr.bf16.mxu0 %v8705_v4  ;;  %v8736_v60 = vld [vmem:[%s12499_s23 + $0x4e8] ss:$16 sps:$4 sm:$0xff]   ;;  %v8747_v4 = vld [vmem:[%s12499_s23 + $0x64c] ss:$16 sps:$4 sm:$0xff]  }
 0x1c0   :  { %5430 = vmatprep.subr.bf16.mxu1 %v8702_v40  ;;  %v8744_v40 = vld [vmem:[%s12499_s23 + $0x4cc] ss:$16 sps:$4 sm:$0xff]  }
 0x1c2   :  { %5480 = vmatpush2.bf16.msra.mxu0 %v8703_v12  ;;  %v8745_v12 = vld [vmem:[%s12499_s23 + $0x648] ss:$16 sps:$4 sm:$0xff]  }
 0x1c3   :  { %5431 = vmatpush2.bf16.msra.mxu1 %v8700_v11  ;;  %5481 = vmatprep.subr.bf16.mxu0 %v8711_v3  ;;  %v8742_v11 = vld [vmem:[%s12499_s23 + $0x4c8] ss:$16 sps:$4 sm:$0xff]  }
 0x1c4   :  { %5432 = vmatprep.subr.bf16.mxu1 %v8708_v2  ;;  %v8750_v2 = vld [vmem:[%s12499_s23 + $0x4ac] ss:$16 sps:$4 sm:$0xff]   ;;  %v8748_v3 = vld [vmem:[%s12499_s23 + $0x4a8] ss:$16 sps:$4 sm:$0xff]  }
 0x1c6   :  { %5482 = vmatpush2.bf16.msra.mxu0 %v8709_v18  ;;  %v8756_v18 = vld [vmem:[%s12499_s23 + $0x48c] ss:$16 sps:$4 sm:$0xff]  }
 0x1c7   :  { %5433 = vmatpush2.bf16.msra.mxu1 %v8706_v15  ;;  %5533 = vmatprep.subr.bf16.mxu0 %v8717_v47  ;;  %v8751_v15 = vld [vmem:[%s12499_s23 + $0x628] ss:$16 sps:$4 sm:$0xff]  }
 0x1c8   :  { %5434 = vmatprep.subr.bf16.mxu1 %v8714_v21  ;;  %v8754_v21 = vld [vmem:[%s12499_s23 + $0x488] ss:$16 sps:$4 sm:$0xff]  }
 0x1c9   :  { %v5157_v32 = vpop.f32.mrf.mxu0  ;;  %5484 = vmatmul.mubr.bf16.vlgmr.msra.gmra.mxu0 %v9663_v7  ;;  %v8757_v47 = vld [vmem:[%s12499_s23 + $0x608] ss:$16 sps:$4 sm:$0xff]  }
 0x1ca   :  { %v5198_v33 = vpop.f32.mrf.mxu1  ;;  %v5158_v34 = vadd.f32 %v5157_v32, %v10825_v31  ;;  %5534 = vmatpush1.bf16.msra.mxu0 %v8715_v62  ;;  %v8724_v31 = vld [vmem:[%s12499_s23 + $0x128] ss:$16 sps:$4 sm:$0xff]   ;;  %5565 = vmatprep.mubr.bf16.mxu0 %v9761_v37  ;;  %v8765_v62 = vld [vmem:[%s12499_s23 + $0x7ec] ss:$16 sps:$4 sm:$0xff]  }
 0x1cb   :  { %5435 = vmatpush2.bf16.msra.mxu1 %v8712_v27  ;;  %v5159_v22 = vpop.f32.mrf.mxu0  ;;  %5535 = vmatprep.subr.bf16.mxu0 %v8723_v28  ;;  %v8730_v37 = vld [vmem:[%s12499_s23 + $0x108] ss:$16 sps:$4 sm:$0xff]   ;;  %v8762_v27 = vld [vmem:[%s12499_s23 + $0x46c] ss:$16 sps:$4 sm:$0xff]  }
 0x1cc   :  { %v5200_v23 = vpop.f32.mrf.mxu1  ;;  %5436 = vmatprep.subr.bf16.mxu1 %v8720_v35  ;;  %v11031_v45 = vadd.f32 %v5198_v33, %v5158_v34  ;;  %v5160_v7 = vadd.f32 %v5159_v22, %v10836_v48  ;;  %v8732_v48 = vld [vmem:[%s12499_s23 + $0x10c] ss:$16 sps:$4 sm:$0xff]   ;;  %v8760_v35 = vld [vmem:[%s12499_s23 + $0x468] ss:$16 sps:$4 sm:$0xff]  }
 0x1cd   :  { %v5161_v41 = vpop.f32.mrf.mxu0  ;;  %v8763_v28 = vld [vmem:[%s12499_s23 + $0x7e8] ss:$16 sps:$4 sm:$0xff]   ;;  %v8774_v34 = vld [vmem:[%s12499_s23 + $0x42c] ss:$16 sps:$4 sm:$0xff]  }
 0x1ce   :  { %v5202_v49 = vpop.f32.mrf.mxu1  ;;  %v11041_v50 = vadd.f32 %v5200_v23, %v5160_v7  ;;  %5536 = vmatpush1.bf16.msra.mxu0 %v8721_v26  ;;  %v8771_v26 = vld [vmem:[%s12499_s23 + $0x7cc] ss:$16 sps:$4 sm:$0xff]   ;;  %v8766_v32 = vld [vmem:[%s12499_s23 + $0x448] ss:$16 sps:$4 sm:$0xff]  }
 0x1cf   :  { %5437 = vmatpush2.bf16.msra.mxu1 %v8718_v30  ;;  %5537 = vmatprep.subr.bf16.mxu0 %v8729_v44  ;;  %v5162_v55 = vpop.f32.mrf.mxu0  ;;  %v8768_v30 = vld [vmem:[%s12499_s23 + $0x44c] ss:$16 sps:$4 sm:$0xff]   ;;  %v8769_v33 = vld [vmem:[%s12499_s23 + $0x7c8] ss:$16 sps:$4 sm:$0xff]  }
 0x1d0   :  { %v5203_v52 = vpop.f32.mrf.mxu1  ;;  %5438 = vmatprep.subr.bf16.mxu1 %v8726_v29  ;;  %v8777_v22 = vld [vmem:[%s12499_s23 + $0x7ac] ss:$16 sps:$4 sm:$0xff]   ;;  %v8772_v23 = vld [vmem:[%s12499_s23 + $0x428] ss:$16 sps:$4 sm:$0xff]  }
 0x1d1   :  { %v8775_v29 = vld [vmem:[%s12499_s23 + $0x7a8] ss:$16 sps:$4 sm:$0xff]   ;;  %v8780_v44 = vld [vmem:[%s12499_s23 + $0x40c] ss:$16 sps:$4 sm:$0xff]  }
 0x1d2   :  { %5538 = vmatpush1.bf16.msra.mxu0 %v8727_v46  ;;  %v8783_v7 = vld [vmem:[%s12499_s23 + $0x78c] ss:$16 sps:$4 sm:$0xff]   ;;  %v8781_v46 = vld [vmem:[%s12499_s23 + $0x788] ss:$16 sps:$4 sm:$0xff]  }
 0x1d3   :  { %5439 = vmatpush2.bf16.msra.mxu1 %v8724_v31  ;;  %5539 = vmatprep.subr.bf16.mxu0 %v8735_v51  ;;  %v8778_v31 = vld [vmem:[%s12499_s23 + $0x408] ss:$16 sps:$4 sm:$0xff]   ;;  %v8786_v49 = vld [vmem:[%s12499_s23 + $0x5ec] ss:$16 sps:$4 sm:$0xff]  }
 0x1d4   :  { %5440 = vmatprep.subr.bf16.mxu1 %v8732_v48  ;;  %v8789_v41 = vld [vmem:[%s12499_s23 + $0x76c] ss:$16 sps:$4 sm:$0xff]   ;;  %v8784_v52 = vld [vmem:[%s12499_s23 + $0x5e8] ss:$16 sps:$4 sm:$0xff]  }
 0x1d5   :  { %v8787_v48 = vld [vmem:[%s12499_s23 + $0x768] ss:$16 sps:$4 sm:$0xff]   ;;  %v8792_v51 = vld [vmem:[%s12499_s23 + $0x5cc] ss:$16 sps:$4 sm:$0xff]  }
 0x1d6   :  { %5540 = vmatpush1.bf16.msra.mxu0 %v8733_v56  ;;  %v8795_v55 = vld [vmem:[%s12499_s23 + $0x74c] ss:$16 sps:$4 sm:$0xff]   ;;  %v8793_v56 = vld [vmem:[%s12499_s23 + $0x748] ss:$16 sps:$4 sm:$0xff]  }
 0x1d7   :  { %5441 = vmatpush2.bf16.msra.mxu1 %v8730_v37  ;;  %5541 = vmatprep.subr.bf16.mxu0 %v8741_v58  ;;  %v8790_v37 = vld [vmem:[%s12499_s23 + $0x5c8] ss:$16 sps:$4 sm:$0xff]   ;;  %v8801_v58 = vld [vmem:[%s12499_s23 + $0x72c] ss:$16 sps:$4 sm:$0xff]  }
 0x1d8   :  { %5492 = vmatprep.subr.bf16.mxu1 %v8738_v57  ;;  %v8798_v57 = vld [vmem:[%s12499_s23 + $0x5ac] ss:$16 sps:$4 sm:$0xff]  }
 0x1da   :  { %5443 = vmatmul.mubr.bf16.vlgmr.msra.gmra.mxu1 %v9661_v6  ;;  %5542 = vmatpush1.bf16.msra.mxu0 %v8739_v61  ;;  %v8753_v6 = vld [vmem:[%s12499_s23 + $0x62c] ss:$16 sps:$4 sm:$0xff]   ;;  %v8799_v61 = vld [vmem:[%s12499_s23 + $0x728] ss:$16 sps:$4 sm:$0xff]  }
 0x1db   :  { %5493 = vmatpush1.bf16.msra.mxu1 %v8736_v60  ;;  %5543 = vmatprep.subr.bf16.mxu0 %v8747_v4  ;;  %v8796_v60 = vld [vmem:[%s12499_s23 + $0x5a8] ss:$16 sps:$4 sm:$0xff]   ;;  %v8807_v4 = vld [vmem:[%s12499_s23 + $0x70c] ss:$16 sps:$4 sm:$0xff]  }
 0x1dc   :  { %5494 = vmatprep.subr.bf16.mxu1 %v8744_v40  ;;  %5524 = vmatprep.mubr.bf16.mxu1 %v9757_v36  ;;  %v8759_v36 = vld [vmem:[%s12499_s23 + $0x60c] ss:$16 sps:$4 sm:$0xff]  }
 0x1dd   :  { %v8804_v40 = vld [vmem:[%s12499_s23 + $0x58c] ss:$16 sps:$4 sm:$0xff]  }
 0x1de   :  { %5544 = vmatpush1.bf16.msra.mxu0 %v8745_v12  ;;  %v8805_v12 = vld [vmem:[%s12499_s23 + $0x708] ss:$16 sps:$4 sm:$0xff]  }
 0x1df   :  { %5495 = vmatpush1.bf16.msra.mxu1 %v8742_v11  ;;  %5545 = vmatprep.subr.bf16.mxu0 %v8753_v6  ;;  %v8802_v11 = vld [vmem:[%s12499_s23 + $0x588] ss:$16 sps:$4 sm:$0xff]   ;;  %v8813_v6 = vld [vmem:[%s12499_s23 + $0xaec] ss:$16 sps:$4 sm:$0xff]  }
 0x1e0   :  { %5496 = vmatprep.subr.bf16.mxu1 %v8750_v2  ;;  %v8810_v2 = vld [vmem:[%s12499_s23 + $0x56c] ss:$16 sps:$4 sm:$0xff]  }
 0x1e2   :  { %5546 = vmatpush1.bf16.msra.mxu0 %v8751_v15  ;;  %v8811_v15 = vld [vmem:[%s12499_s23 + $0xae8] ss:$16 sps:$4 sm:$0xff]  }
 0x1e3   :  { %5497 = vmatpush1.bf16.msra.mxu1 %v8748_v3  ;;  %5547 = vmatprep.subr.bf16.mxu0 %v8759_v36  ;;  %v8808_v3 = vld [vmem:[%s12499_s23 + $0x568] ss:$16 sps:$4 sm:$0xff]   ;;  %v8819_v36 = vld [vmem:[%s12499_s23 + $0xacc] ss:$16 sps:$4 sm:$0xff]  }
 0x1e4   :  { %5498 = vmatprep.subr.bf16.mxu1 %v8756_v18  ;;  %v8816_v18 = vld [vmem:[%s12499_s23 + $0x54c] ss:$16 sps:$4 sm:$0xff]  }
 0x1e6   :  { %5548 = vmatpush1.bf16.msra.mxu0 %v8757_v47 }
 0x1e7   :  { %5499 = vmatpush1.bf16.msra.mxu1 %v8754_v21  ;;  %5549 = vmatprep.subr.bf16.mxu0 %v8765_v62  ;;  %v8814_v62 = vld [vmem:[%s12499_s23 + $0x548] ss:$16 sps:$4 sm:$0xff]  }
 0x1e8   :  { %5500 = vmatprep.subr.bf16.mxu1 %v8762_v27 }
 0x1ea   :  { %5550 = vmatpush2.bf16.msra.mxu0 %v8763_v28 }
 0x1eb   :  { %5501 = vmatpush1.bf16.msra.mxu1 %v8760_v35  ;;  %5551 = vmatprep.subr.bf16.mxu0 %v8771_v26  ;;  %v8817_v35 = vld [vmem:[%s12499_s23 + $0xac8] ss:$16 sps:$4 sm:$0xff]  }
 0x1ec   :  { %5502 = vmatprep.subr.bf16.mxu1 %v8768_v30 }
 0x1ee   :  { %5552 = vmatpush2.bf16.msra.mxu0 %v8769_v33 }
 0x1ef   :  { %5503 = vmatpush1.bf16.msra.mxu1 %v8766_v32  ;;  %5553 = vmatprep.subr.bf16.mxu0 %v8777_v22 }
 0x1f0   :  { %5504 = vmatprep.subr.bf16.mxu1 %v8774_v34 }
 0x1f2   :  { %5554 = vmatpush2.bf16.msra.mxu0 %v8775_v29  ;;  %v8823_v29 = vld [vmem:[%s12499_s23 + $0xaa8] ss:$16 sps:$4 sm:$0xff]  }
 0x1f3   :  { %5505 = vmatpush1.bf16.msra.mxu1 %v8772_v23  ;;  %5555 = vmatprep.subr.bf16.mxu0 %v8783_v7  ;;  %v8820_v23 = vld [vmem:[%s12499_s23 + $0x528] ss:$16 sps:$4 sm:$0xff]  }
 0x1f4   :  { %5506 = vmatprep.subr.bf16.mxu1 %v8780_v44 }
 0x1f6   :  { %5556 = vmatpush2.bf16.msra.mxu0 %v8781_v46  ;;  %v8829_v46 = vld [vmem:[%s12499_s23 + $0xa88] ss:$16 sps:$4 sm:$0xff]  }
 0x1f7   :  { %5507 = vmatpush1.bf16.msra.mxu1 %v8778_v31  ;;  %5557 = vmatprep.subr.bf16.mxu0 %v8789_v41  ;;  %v8826_v31 = vld [vmem:[%s12499_s23 + $0x508] ss:$16 sps:$4 sm:$0xff]   ;;  %v8837_v41 = vld [vmem:[%s12499_s23 + $0xa6c] ss:$16 sps:$4 sm:$0xff]  }
 0x1f8   :  { %5508 = vmatprep.subr.bf16.mxu1 %v8786_v49  ;;  %v8834_v49 = vld [vmem:[%s12499_s23 + $0x8ec] ss:$16 sps:$4 sm:$0xff]  }
 0x1fa   :  { %5558 = vmatpush2.bf16.msra.mxu0 %v8787_v48  ;;  %v8835_v48 = vld [vmem:[%s12499_s23 + $0xa68] ss:$16 sps:$4 sm:$0xff]  }
 0x1fb   :  { %5509 = vmatpush2.bf16.msra.mxu1 %v8784_v52  ;;  %5559 = vmatprep.subr.bf16.mxu0 %v8795_v55  ;;  %v8832_v52 = vld [vmem:[%s12499_s23 + $0x8e8] ss:$16 sps:$4 sm:$0xff]   ;;  %v8843_v55 = vld [vmem:[%s12499_s23 + $0xa4c] ss:$16 sps:$4 sm:$0xff]  }
 0x1fc   :  { %5510 = vmatprep.subr.bf16.mxu1 %v8792_v51  ;;  %v8840_v51 = vld [vmem:[%s12499_s23 + $0x8cc] ss:$16 sps:$4 sm:$0xff]  }
 0x1fe   :  { %5560 = vmatpush2.bf16.msra.mxu0 %v8793_v56  ;;  %v8841_v56 = vld [vmem:[%s12499_s23 + $0xa48] ss:$16 sps:$4 sm:$0xff]  }
 0x1ff   :  { %5511 = vmatpush2.bf16.msra.mxu1 %v8790_v37  ;;  %5561 = vmatprep.subr.bf16.mxu0 %v8801_v58  ;;  %v8838_v37 = vld [vmem:[%s12499_s23 + $0x8c8] ss:$16 sps:$4 sm:$0xff]  }
 0x200   :  { %5512 = vmatprep.subr.bf16.mxu1 %v8798_v57  ;;  %v8846_v57 = vld [vmem:[%s12499_s23 + $0x8ac] ss:$16 sps:$4 sm:$0xff]   ;;  %v8844_v58 = vld [vmem:[%s12499_s23 + $0x8a8] ss:$16 sps:$4 sm:$0xff]  }
 0x202   :  { %5562 = vmatpush2.bf16.msra.mxu0 %v8799_v61  ;;  %v8852_v61 = vld [vmem:[%s12499_s23 + $0x88c] ss:$16 sps:$4 sm:$0xff]  }
 0x203   :  { %5513 = vmatpush2.bf16.msra.mxu1 %v8796_v60  ;;  %5563 = vmatprep.subr.bf16.mxu0 %v8807_v4  ;;  %v8847_v60 = vld [vmem:[%s12499_s23 + $0xa28] ss:$16 sps:$4 sm:$0xff]  }
 0x204   :  { %5514 = vmatprep.subr.bf16.mxu1 %v8804_v40  ;;  %v8850_v40 = vld [vmem:[%s12499_s23 + $0x888] ss:$16 sps:$4 sm:$0xff]  }
 0x205   :  { %v8853_v4 = vld [vmem:[%s12499_s23 + $0xa08] ss:$16 sps:$4 sm:$0xff]  }
 0x206   :  { %5564 = vmatpush2.bf16.msra.mxu0 %v8805_v12  ;;  %v8861_v12 = vld [vmem:[%s12499_s23 + $0xbec] ss:$16 sps:$4 sm:$0xff]  }
 0x207   :  { %5515 = vmatpush2.bf16.msra.mxu1 %v8802_v11  ;;  %5615 = vmatprep.subr.bf16.mxu0 %v8813_v6  ;;  %v8858_v11 = vld [vmem:[%s12499_s23 + $0x86c] ss:$16 sps:$4 sm:$0xff]   ;;  %v8859_v6 = vld [vmem:[%s12499_s23 + $0xbe8] ss:$16 sps:$4 sm:$0xff]  }
 0x208   :  { %5516 = vmatprep.subr.bf16.mxu1 %v8810_v2  ;;  %v8856_v2 = vld [vmem:[%s12499_s23 + $0x868] ss:$16 sps:$4 sm:$0xff]  }
 0x209   :  { %v5239_v21 = vpop.f32.mrf.mxu0  ;;  %5566 = vmatmul.mubr.bf16.vlgmr.msra.gmra.mxu0 %v9885_v17  ;;  %v8822_v17 = vld [vmem:[%s12499_s23 + $0x52c] ss:$16 sps:$4 sm:$0xff]  }
 0x20a   :  { %v5280_v47 = vpop.f32.mrf.mxu1  ;;  %v5240_v27 = vadd.f32 %v5239_v21, %v11031_v45  ;;  %5616 = vmatpush1.bf16.msra.mxu0 %v8811_v15  ;;  %v8825_v45 = vld [vmem:[%s12499_s23 + $0xaac] ss:$16 sps:$4 sm:$0xff]   ;;  %5647 = vmatprep.mubr.bf16.mxu0 %v9915_v25 }
 0x20b   :  { %5517 = vmatpush2.bf16.msra.mxu1 %v8808_v3  ;;  %v5241_v28 = vpop.f32.mrf.mxu0  ;;  %5617 = vmatprep.subr.bf16.mxu0 %v8819_v36  ;;  %v8828_v25 = vld [vmem:[%s12499_s23 + $0x50c] ss:$16 sps:$4 sm:$0xff]   ;;  %v8865_v36 = vld [vmem:[%s12499_s23 + $0xbc8] ss:$16 sps:$4 sm:$0xff]  }
 0x20c   :  { %v5282_v30 = vpop.f32.mrf.mxu1  ;;  %5518 = vmatprep.subr.bf16.mxu1 %v8816_v18  ;;  %v11233_v26 = vadd.f32 %v5280_v47, %v5240_v27  ;;  %v5242_v32 = vadd.f32 %v5241_v28, %v11041_v50  ;;  %v8831_v50 = vld [vmem:[%s12499_s23 + $0xa8c] ss:$16 sps:$4 sm:$0xff]   ;;  %v8862_v18 = vld [vmem:[%s12499_s23 + $0x848] ss:$16 sps:$4 sm:$0xff]  }
 0x20d   :  { %v5243_v34 = vpop.f32.mrf.mxu0  ;;  %v8864_v3 = vld [vmem:[%s12499_s23 + $0x84c] ss:$16 sps:$4 sm:$0xff]   ;;  %v8868_v27 = vld [vmem:[%s12499_s23 + $0x828] ss:$16 sps:$4 sm:$0xff]  }
 0x20e   :  { %v5284_v33 = vpop.f32.mrf.mxu1  ;;  %v11237_v22 = vadd.f32 %v5282_v30, %v5242_v32  ;;  %5618 = vmatpush1.bf16.msra.mxu0 %v8817_v35  ;;  %v8867_v15 = vld [vmem:[%s12499_s23 + $0xbcc] ss:$16 sps:$4 sm:$0xff]   ;;  %v8874_v30 = vld [vmem:[%s12499_s23 + $0x808] ss:$16 sps:$4 sm:$0xff]  }
 0x20f   :  { %5519 = vmatpush2.bf16.msra.mxu1 %v8814_v62  ;;  %5619 = vmatprep.subr.bf16.mxu0 %v8825_v45  ;;  %v5244_v7 = vpop.f32.mrf.mxu0  ;;  %v8870_v21 = vld [vmem:[%s12499_s23 + $0x82c] ss:$16 sps:$4 sm:$0xff]   ;;  %v8871_v62 = vld [vmem:[%s12499_s23 + $0xba8] ss:$16 sps:$4 sm:$0xff]  }
 0x210   :  { %v5285_v44 = vpop.f32.mrf.mxu1  ;;  %5520 = vmatprep.subr.bf16.mxu1 %v8822_v17  ;;  %v8873_v47 = vld [vmem:[%s12499_s23 + $0xbac] ss:$16 sps:$4 sm:$0xff]   ;;  %v8877_v17 = vld [vmem:[%s12499_s23 + $0xb88] ss:$16 sps:$4 sm:$0xff]  }
 0x211   :  { %v8876_v35 = vld [vmem:[%s12499_s23 + $0x80c] ss:$16 sps:$4 sm:$0xff]   ;;  %v8880_v33 = vld [vmem:[%s12499_s23 + $0x9e8] ss:$16 sps:$4 sm:$0xff]  }
 0x212   :  { %5620 = vmatpush1.bf16.msra.mxu0 %v8823_v29  ;;  %v8879_v28 = vld [vmem:[%s12499_s23 + $0xb8c] ss:$16 sps:$4 sm:$0xff]   ;;  %v8883_v34 = vld [vmem:[%s12499_s23 + $0xb68] ss:$16 sps:$4 sm:$0xff]  }
 0x213   :  { %5521 = vmatpush2.bf16.msra.mxu1 %v8820_v23  ;;  %5621 = vmatprep.subr.bf16.mxu0 %v8831_v50  ;;  %v8882_v45 = vld [vmem:[%s12499_s23 + $0x9ec] ss:$16 sps:$4 sm:$0xff]   ;;  %v8886_v44 = vld [vmem:[%s12499_s23 + $0x9c8] ss:$16 sps:$4 sm:$0xff]  }
 0x214   :  { %5522 = vmatprep.subr.bf16.mxu1 %v8828_v25  ;;  %v8885_v32 = vld [vmem:[%s12499_s23 + $0xb6c] ss:$16 sps:$4 sm:$0xff]   ;;  %v8889_v25 = vld [vmem:[%s12499_s23 + $0xb48] ss:$16 sps:$4 sm:$0xff]  }
 0x215   :  { %v8888_v23 = vld [vmem:[%s12499_s23 + $0x9cc] ss:$16 sps:$4 sm:$0xff]  }
 0x216   :  { %5622 = vmatpush1.bf16.msra.mxu0 %v8829_v46  ;;  %v8891_v29 = vld [vmem:[%s12499_s23 + $0xb4c] ss:$16 sps:$4 sm:$0xff]   ;;  %v8895_v46 = vld [vmem:[%s12499_s23 + $0xb28] ss:$16 sps:$4 sm:$0xff]  }
 0x217   :  { %5523 = vmatpush2.bf16.msra.mxu1 %v8826_v31  ;;  %5623 = vmatprep.subr.bf16.mxu0 %v8837_v41  ;;  %v8894_v50 = vld [vmem:[%s12499_s23 + $0x9ac] ss:$16 sps:$4 sm:$0xff]   ;;  %v8892_v31 = vld [vmem:[%s12499_s23 + $0x9a8] ss:$16 sps:$4 sm:$0xff]  }
 0x218   :  { %5574 = vmatprep.subr.bf16.mxu1 %v8834_v49  ;;  %v8897_v7 = vld [vmem:[%s12499_s23 + $0xb2c] ss:$16 sps:$4 sm:$0xff]  }
 0x219   :  { %v8900_v49 = vld [vmem:[%s12499_s23 + $0x98c] ss:$16 sps:$4 sm:$0xff]  }
 0x21a   :  { %5525 = vmatmul.mubr.bf16.vlgmr.msra.gmra.mxu1 %v9881_v16  ;;  %5624 = vmatpush1.bf16.msra.mxu0 %v8835_v48  ;;  %v8849_v16 = vld [vmem:[%s12499_s23 + $0xa2c] ss:$16 sps:$4 sm:$0xff]   ;;  %v8901_v48 = vld [vmem:[%s12499_s23 + $0xb08] ss:$16 sps:$4 sm:$0xff]  }
 0x21b   :  { %5575 = vmatpush1.bf16.msra.mxu1 %v8832_v52  ;;  %5625 = vmatprep.subr.bf16.mxu0 %v8843_v55  ;;  %v8903_v41 = vld [vmem:[%s12499_s23 + $0xb0c] ss:$16 sps:$4 sm:$0xff]   ;;  %v8898_v52 = vld [vmem:[%s12499_s23 + $0x988] ss:$16 sps:$4 sm:$0xff]  }
 0x21c   :  { %5576 = vmatprep.subr.bf16.mxu1 %v8840_v51  ;;  %5606 = vmatprep.mubr.bf16.mxu1 %v9911_v24  ;;  %v8855_v24 = vld [vmem:[%s12499_s23 + $0xa0c] ss:$16 sps:$4 sm:$0xff]  }
 0x21d   :  { %v8906_v51 = vld [vmem:[%s12499_s23 + $0x96c] ss:$16 sps:$4 sm:$0xff]  }
 0x21e   :  { %5626 = vmatpush1.bf16.msra.mxu0 %v8841_v56  ;;  %v8909_v55 = vld [vmem:[%s12499_s23 + $0xeec] ss:$16 sps:$4 sm:$0xff]   ;;  %v8907_v56 = vld [vmem:[%s12499_s23 + $0xee8] ss:$16 sps:$4 sm:$0xff]  }
 0x21f   :  { %5577 = vmatpush1.bf16.msra.mxu1 %v8838_v37  ;;  %5627 = vmatprep.subr.bf16.mxu0 %v8849_v16  ;;  %v8904_v37 = vld [vmem:[%s12499_s23 + $0x968] ss:$16 sps:$4 sm:$0xff]   ;;  %v8915_v16 = vld [vmem:[%s12499_s23 + $0xecc] ss:$16 sps:$4 sm:$0xff]  }
 0x220   :  { %5578 = vmatprep.subr.bf16.mxu1 %v8846_v57  ;;  %v8912_v57 = vld [vmem:[%s12499_s23 + $0x94c] ss:$16 sps:$4 sm:$0xff]  }
 0x222   :  { %5628 = vmatpush1.bf16.msra.mxu0 %v8847_v60 }
 0x223   :  { %5579 = vmatpush1.bf16.msra.mxu1 %v8844_v58  ;;  %5629 = vmatprep.subr.bf16.mxu0 %v8855_v24  ;;  %v8913_v24 = vld [vmem:[%s12499_s23 + $0xec8] ss:$16 sps:$4 sm:$0xff]  }
 0x224   :  { %5580 = vmatprep.subr.bf16.mxu1 %v8852_v61  ;;  %v8910_v61 = vld [vmem:[%s12499_s23 + $0x948] ss:$16 sps:$4 sm:$0xff]  }
 0x226   :  { %5630 = vmatpush1.bf16.msra.mxu0 %v8853_v4 }
 0x227   :  { %5581 = vmatpush1.bf16.msra.mxu1 %v8850_v40  ;;  %5631 = vmatprep.subr.bf16.mxu0 %v8861_v12 }
 0x228   :  { %5582 = vmatprep.subr.bf16.mxu1 %v8858_v11  ;;  %v8918_v11 = vld [vmem:[%s12499_s23 + $0x92c] ss:$16 sps:$4 sm:$0xff]  }
 0x22a   :  { %5632 = vmatpush2.bf16.msra.mxu0 %v8859_v6  ;;  %v8916_v6 = vld [vmem:[%s12499_s23 + $0x928] ss:$16 sps:$4 sm:$0xff]  }
 0x22b   :  { %5583 = vmatpush1.bf16.msra.mxu1 %v8856_v2  ;;  %5633 = vmatprep.subr.bf16.mxu0 %v8867_v15 }
 0x22c   :  { %5584 = vmatprep.subr.bf16.mxu1 %v8864_v3  ;;  %v8919_v3 = vld [vmem:[%s12499_s23 + $0xea8] ss:$16 sps:$4 sm:$0xff]  }
 0x22e   :  { %5634 = vmatpush2.bf16.msra.mxu0 %v8865_v36 }
 0x22f   :  { %5585 = vmatpush1.bf16.msra.mxu1 %v8862_v18  ;;  %5635 = vmatprep.subr.bf16.mxu0 %v8873_v47  ;;  %v8924_v18 = vld [vmem:[%s12499_s23 + $0x90c] ss:$16 sps:$4 sm:$0xff]   ;;  %v8925_v47 = vld [vmem:[%s12499_s23 + $0xe88] ss:$16 sps:$4 sm:$0xff]  }
 0x230   :  { %5586 = vmatprep.subr.bf16.mxu1 %v8870_v21  ;;  %v8922_v21 = vld [vmem:[%s12499_s23 + $0x908] ss:$16 sps:$4 sm:$0xff]  }
 0x232   :  { %5636 = vmatpush2.bf16.msra.mxu0 %v8871_v62  ;;  %v8933_v62 = vld [vmem:[%s12499_s23 + $0xe6c] ss:$16 sps:$4 sm:$0xff]  }
 0x233   :  { %5587 = vmatpush1.bf16.msra.mxu1 %v8868_v27  ;;  %5637 = vmatprep.subr.bf16.mxu0 %v8879_v28  ;;  %v8930_v27 = vld [vmem:[%s12499_s23 + $0xcec] ss:$16 sps:$4 sm:$0xff]  }
 0x234   :  { %5588 = vmatprep.subr.bf16.mxu1 %v8876_v35 }
 0x236   :  { %5638 = vmatpush2.bf16.msra.mxu0 %v8877_v17  ;;  %v8931_v17 = vld [vmem:[%s12499_s23 + $0xe68] ss:$16 sps:$4 sm:$0xff]  }
 0x237   :  { %5589 = vmatpush1.bf16.msra.mxu1 %v8874_v30  ;;  %5639 = vmatprep.subr.bf16.mxu0 %v8885_v32  ;;  %v8928_v30 = vld [vmem:[%s12499_s23 + $0xce8] ss:$16 sps:$4 sm:$0xff]  }
 0x238   :  { %5590 = vmatprep.subr.bf16.mxu1 %v8882_v45  ;;  %v8936_v45 = vld [vmem:[%s12499_s23 + $0xccc] ss:$16 sps:$4 sm:$0xff]  }
 0x23a   :  { %5640 = vmatpush2.bf16.msra.mxu0 %v8883_v34 }
 0x23b   :  { %5591 = vmatpush2.bf16.msra.mxu1 %v8880_v33  ;;  %5641 = vmatprep.subr.bf16.mxu0 %v8891_v29  ;;  %v8937_v29 = vld [vmem:[%s12499_s23 + $0xe48] ss:$16 sps:$4 sm:$0xff]  }
 0x23c   :  { %5592 = vmatprep.subr.bf16.mxu1 %v8888_v23  ;;  %v8934_v23 = vld [vmem:[%s12499_s23 + $0xcc8] ss:$16 sps:$4 sm:$0xff]  }
 0x23e   :  { %5642 = vmatpush2.bf16.msra.mxu0 %v8889_v25  ;;  %v8942_v25 = vld [vmem:[%s12499_s23 + $0xcac] ss:$16 sps:$4 sm:$0xff]  }
 0x23f   :  { %5593 = vmatpush2.bf16.msra.mxu1 %v8886_v44  ;;  %5643 = vmatprep.subr.bf16.mxu0 %v8897_v7 }
 0x240   :  { %5594 = vmatprep.subr.bf16.mxu1 %v8894_v50 }
 0x242   :  { %5644 = vmatpush2.bf16.msra.mxu0 %v8895_v46 }
 0x243   :  { %5595 = vmatpush2.bf16.msra.mxu1 %v8892_v31  ;;  %5645 = vmatprep.subr.bf16.mxu0 %v8903_v41  ;;  %v8943_v41 = vld [vmem:[%s12499_s23 + $0xe28] ss:$16 sps:$4 sm:$0xff]  }
 0x244   :  { %5596 = vmatprep.subr.bf16.mxu1 %v8900_v49  ;;  %v8940_v49 = vld [vmem:[%s12499_s23 + $0xca8] ss:$16 sps:$4 sm:$0xff]  }
 0x246   :  { %5646 = vmatpush2.bf16.msra.mxu0 %v8901_v48  ;;  %v8951_v48 = vld [vmem:[%s12499_s23 + $0xe0c] ss:$16 sps:$4 sm:$0xff]  }
 0x247   :  { %5597 = vmatpush2.bf16.msra.mxu1 %v8898_v52  ;;  %5697 = vmatprep.subr.bf16.mxu0 %v8909_v55  ;;  %v8949_v55 = vld [vmem:[%s12499_s23 + $0xe08] ss:$16 sps:$4 sm:$0xff]  }
 0x248   :  { %5598 = vmatprep.subr.bf16.mxu1 %v8906_v51  ;;  %v8946_v51 = vld [vmem:[%s12499_s23 + $0xc88] ss:$16 sps:$4 sm:$0xff]  }
 0x249   :  { %v5321_v58 = vpop.f32.mrf.mxu0  ;;  %5648 = vmatmul.mubr.bf16.vlgmr.msra.gmra.mxu0 %v10115_v39  ;;  %v8921_v39 = vld [vmem:[%s12499_s23 + $0xeac] ss:$16 sps:$4 sm:$0xff]  }
 0x24a   :  { %v5362_v60 = vpop.f32.mrf.mxu1  ;;  %5698 = vmatpush1.bf16.msra.mxu0 %v8907_v56  ;;  %5729 = vmatprep.mubr.bf16.mxu0 %v10137_v43  ;;  %v8927_v43 = vld [vmem:[%s12499_s23 + $0xe8c] ss:$16 sps:$4 sm:$0xff]   ;;  %v5322_v35 = vadd.f32 %v5321_v58, %v11233_v26 }
 0x24b   :  { %5599 = vmatpush2.bf16.msra.mxu1 %v8904_v37  ;;  %v5323_v40 = vpop.f32.mrf.mxu0  ;;  %5699 = vmatprep.subr.bf16.mxu0 %v8915_v16  ;;  %v8939_v26 = vld [vmem:[%s12499_s23 + $0xe4c] ss:$16 sps:$4 sm:$0xff]   ;;  %v8955_v16 = vld [vmem:[%s12499_s23 + $0xfe8] ss:$16 sps:$4 sm:$0xff]  }
 0x24c   :  { %v5364_v4 = vpop.f32.mrf.mxu1  ;;  %5600 = vmatprep.subr.bf16.mxu1 %v8912_v57  ;;  %v5324_v28 = vadd.f32 %v5323_v40, %v11237_v22  ;;  %v5363_v22 = vadd.f32 %v5362_v60, %v5322_v35  ;;  %v8954_v37 = vld [vmem:[%s12499_s23 + $0xc6c] ss:$16 sps:$4 sm:$0xff]   ;;  %v8952_v57 = vld [vmem:[%s12499_s23 + $0xc68] ss:$16 sps:$4 sm:$0xff]  }
 0x24d   :  { %v5325_v2 = vpop.f32.mrf.mxu0  ;;  %v8957_v56 = vld [vmem:[%s12499_s23 + $0xfec] ss:$16 sps:$4 sm:$0xff]  }
 0x24e   :  { %v5366_v12 = vpop.f32.mrf.mxu1  ;;  %5700 = vmatpush1.bf16.msra.mxu0 %v8913_v24  ;;  %v5365_v33 = vadd.f32 %v5364_v4, %v5324_v28  ;;  %v8960_v58 = vld [vmem:[%s12499_s23 + $0xc4c] ss:$16 sps:$4 sm:$0xff]   ;;  %v8961_v24 = vld [vmem:[%s12499_s23 + $0xfc8] ss:$16 sps:$4 sm:$0xff]  }
 0x24f   :  { %5601 = vmatpush2.bf16.msra.mxu1 %v8910_v61  ;;  %5701 = vmatprep.subr.bf16.mxu0 %v8921_v39  ;;  %v5326_v36 = vpop.f32.mrf.mxu0  ;;  %v8963_v60 = vld [vmem:[%s12499_s23 + $0xfcc] ss:$16 sps:$4 sm:$0xff]   ;;  %v8958_v61 = vld [vmem:[%s12499_s23 + $0xc48] ss:$16 sps:$4 sm:$0xff]  }
 0x250   :  { %v5367_v15 = vpop.f32.mrf.mxu1  ;;  %5602 = vmatprep.subr.bf16.mxu1 %v8918_v11  ;;  %v8966_v40 = vld [vmem:[%s12499_s23 + $0xc2c] ss:$16 sps:$4 sm:$0xff]   ;;  %v8964_v11 = vld [vmem:[%s12499_s23 + $0xc28] ss:$16 sps:$4 sm:$0xff]  }
 0x251   :  { %v8969_v4 = vld [vmem:[%s12499_s23 + $0xfac] ss:$16 sps:$4 sm:$0xff]   ;;  %v8967_v39 = vld [vmem:[%s12499_s23 + $0xfa8] ss:$16 sps:$4 sm:$0xff]  }
 0x252   :  { %5702 = vmatpush1.bf16.msra.mxu0 %v8919_v3  ;;  %v8972_v12 = vld [vmem:[%s12499_s23 + $0xc0c] ss:$16 sps:$4 sm:$0xff]   ;;  %v8973_v3 = vld [vmem:[%s12499_s23 + $0xf88] ss:$16 sps:$4 sm:$0xff]  }
 0x253   :  { %5603 = vmatpush2.bf16.msra.mxu1 %v8916_v6  ;;  %5703 = vmatprep.subr.bf16.mxu0 %v8927_v43  ;;  %v8975_v2 = vld [vmem:[%s12499_s23 + $0xf8c] ss:$16 sps:$4 sm:$0xff]   ;;  %v8970_v6 = vld [vmem:[%s12499_s23 + $0xc08] ss:$16 sps:$4 sm:$0xff]  }
 0x254   :  { %5604 = vmatprep.subr.bf16.mxu1 %v8924_v18  ;;  %v8978_v15 = vld [vmem:[%s12499_s23 + $0xdec] ss:$16 sps:$4 sm:$0xff]   ;;  %v8976_v43 = vld [vmem:[%s12499_s23 + $0xde8] ss:$16 sps:$4 sm:$0xff]  }
 0x255   :  { %v8981_v18 = vld [vmem:[%s12499_s23 + $0xf6c] ss:$16 sps:$4 sm:$0xff]   ;;  %v8979_v36 = vld [vmem:[%s12499_s23 + $0xf68] ss:$16 sps:$4 sm:$0xff]  }
 0x256   :  { %5704 = vmatpush1.bf16.msra.mxu0 %v8925_v47  ;;  %v8987_v47 = vld [vmem:[%s12499_s23 + $0xf4c] ss:$16 sps:$4 sm:$0xff]  }
 0x257   :  { %5605 = vmatpush2.bf16.msra.mxu1 %v8922_v21  ;;  %5705 = vmatprep.subr.bf16.mxu0 %v8933_v62  ;;  %v8984_v21 = vld [vmem:[%s12499_s23 + $0xdcc] ss:$16 sps:$4 sm:$0xff]   ;;  %v8985_v62 = vld [vmem:[%s12499_s23 + $0xf48] ss:$16 sps:$4 sm:$0xff]  }
 0x258   :  { %5656 = vmatprep.subr.bf16.mxu1 %v8930_v27  ;;  %v8982_v27 = vld [vmem:[%s12499_s23 + $0xdc8] ss:$16 sps:$4 sm:$0xff]   ;;  %v8990_v35 = vld [vmem:[%s12499_s23 + $0xdac] ss:$16 sps:$4 sm:$0xff]  }
 0x259   :  { %v8993_v28 = vld [vmem:[%s12499_s23 + $0xf2c] ss:$16 sps:$4 sm:$0xff]  }
 0x25a   :  { %v5403_v32 = vpop.f32.mrf.mxu1  ;;  %5607 = vmatmul.mubr.bf16.vlgmr.msra.gmra.mxu1 %v10111_v38  ;;  %5706 = vmatpush1.bf16.msra.mxu0 %v8931_v17  ;;  %v8945_v38 = vld [vmem:[%s12499_s23 + $0xe2c] ss:$16 sps:$4 sm:$0xff]   ;;  %v8991_v17 = vld [vmem:[%s12499_s23 + $0xf28] ss:$16 sps:$4 sm:$0xff]  }
 0x25b   :  { %v5404_v34 = vadd.f32 %v5403_v32, %v5363_v22  ;;  %5657 = vmatpush1.bf16.msra.mxu1 %v8928_v30  ;;  %5707 = vmatprep.subr.bf16.mxu0 %v8939_v26  ;;  %v8988_v30 = vld [vmem:[%s12499_s23 + $0xda8] ss:$16 sps:$4 sm:$0xff]   ;;  %v8999_v26 = vld [vmem:[%s12499_s23 + $0xf0c] ss:$16 sps:$4 sm:$0xff]  }
 0x25c   :  { %v5405_v44 = vpop.f32.mrf.mxu1  ;;  %5658 = vmatprep.subr.bf16.mxu1 %v8936_v45  ;;  %5688 = vmatprep.mubr.bf16.mxu1 %v10133_v42  ;;  %v8948_v42 = vld [vmem:[%s12499_s23 + $0xc8c] ss:$16 sps:$4 sm:$0xff]   ;;  %v8994_v22 = vld [vmem:[%s12499_s23 + $0xd88] ss:$16 sps:$4 sm:$0xff]  }
 0x25d   :  { %v5943_v50 = vmax.f32 %v5404_v34, 0.0  ;;  %v5406_v7 = vadd.f32 %v5405_v44, %v5365_v33  ;;  %v8996_v45 = vld [vmem:[%s12499_s23 + $0xd8c] ss:$16 sps:$4 sm:$0xff]   ;;  %v8997_v32 = vld [vmem:[%s12499_s23 + $0xf08] ss:$16 sps:$4 sm:$0xff]  }
 0x25e   :  { %v5407_v31 = vpop.f32.mrf.mxu1  ;;  %5708 = vmatpush1.bf16.msra.mxu0 %v8937_v29  ;;  %v9002_v33 = vld [vmem:[%s12499_s23 + $0xd6c] ss:$16 sps:$4 sm:$0xff]   ;;  %v9003_v29 = vld [vmem:[%s12499_s23 + $0x12e8] ss:$16 sps:$4 sm:$0xff]  }
 0x25f   :  { %5947 = vst [vmem:[%s12483_s13] sm:$0xff] %v5943_v50  ;;  %v11490_v46 = vmax.f32 %v5406_v7, 0.0  ;;  %5659 = vmatpush1.bf16.msra.mxu1 %v8934_v23  ;;  %5709 = vmatprep.subr.bf16.mxu0 %v8945_v38  ;;  %v9005_v34 = vld [vmem:[%s12499_s23 + $0x12ec] ss:$16 sps:$4 sm:$0xff]   ;;  %v9000_v23 = vld [vmem:[%s12499_s23 + $0xd68] ss:$16 sps:$4 sm:$0xff]  }
 0x260   :  { %v5408_v52 = vpop.f32.mrf.mxu1  ;;  %5660 = vmatprep.subr.bf16.mxu1 %v8942_v25  ;;  %v9008_v44 = vld [vmem:[%s12499_s23 + $0xd4c] ss:$16 sps:$4 sm:$0xff]   ;;  %v9006_v38 = vld [vmem:[%s12499_s23 + $0xd48] ss:$16 sps:$4 sm:$0xff]  }
 0x261   :  { %5948 = vst [vmem:[%s12483_s13 + $0x8] sm:$0xff] %v11490_v46  ;;  %v9011_v25 = vld [vmem:[%s12499_s23 + $0x12cc] ss:$16 sps:$4 sm:$0xff]   ;;  %v9009_v50 = vld [vmem:[%s12499_s23 + $0x12c8] ss:$16 sps:$4 sm:$0xff]  }
 0x262   :  { %5710 = vmatpush1.bf16.msra.mxu0 %v8943_v41  ;;  %v9014_v31 = vld [vmem:[%s12499_s23 + $0xd2c] ss:$16 sps:$4 sm:$0xff]  }
 0x263   :  { %5661 = vmatpush1.bf16.msra.mxu1 %v8940_v49  ;;  %5711 = vmatprep.subr.bf16.mxu0 %v8951_v48  ;;  %v9017_v49 = vld [vmem:[%s12499_s23 + $0x12ac] ss:$16 sps:$4 sm:$0xff]  }
 0x264   :  { %5662 = vmatprep.subr.bf16.mxu1 %v8948_v42  ;;  %v9015_v42 = vld [vmem:[%s12499_s23 + $0x12a8] ss:$16 sps:$4 sm:$0xff]   ;;  %v9020_v48 = vld [vmem:[%s12499_s23 + $0xd0c] ss:$16 sps:$4 sm:$0xff]  }
 0x266   :  { %5712 = vmatpush1.bf16.msra.mxu0 %v8949_v55  ;;  %v9018_v55 = vld [vmem:[%s12499_s23 + $0xd08] ss:$16 sps:$4 sm:$0xff]  }
 0x267   :  { %5663 = vmatpush1.bf16.msra.mxu1 %v8946_v51  ;;  %5713 = vmatprep.subr.bf16.mxu0 %v8957_v56  ;;  %v856_v56 = vsub.s32 2, %v10308_v54 }
 0x268   :  { %5664 = vmatprep.subr.bf16.mxu1 %v8954_v37  ;;  %v9021_v37 = vld [vmem:[%s12499_s23 + $0x1288] ss:$16 sps:$4 sm:$0xff]  }
 0x26a   :  { %5714 = vmatpush2.bf16.msra.mxu0 %v8955_v16  ;;  %v9029_v16 = vld [vmem:[%s12499_s23 + $0x126c] ss:$16 sps:$4 sm:$0xff]  }
 0x26b   :  { %5665 = vmatpush1.bf16.msra.mxu1 %v8952_v57  ;;  %5715 = vmatprep.subr.bf16.mxu0 %v8963_v60  ;;  %v9026_v57 = vld [vmem:[%s12499_s23 + $0x10ec] ss:$16 sps:$4 sm:$0xff]   ;;  %v9027_v60 = vld [vmem:[%s12499_s23 + $0x1268] ss:$16 sps:$4 sm:$0xff]  }
 0x26c   :  { %5666 = vmatprep.subr.bf16.mxu1 %v8960_v58  ;;  %v9024_v58 = vld [vmem:[%s12499_s23 + $0x10e8] ss:$16 sps:$4 sm:$0xff]  }
 0x26e   :  { %5716 = vmatpush2.bf16.msra.mxu0 %v8961_v24  ;;  %v9032_v24 = vld [vmem:[%s12499_s23 + $0x10cc] ss:$16 sps:$4 sm:$0xff]  }
 0x26f   :  { %5667 = vmatpush1.bf16.msra.mxu1 %v8958_v61  ;;  %5717 = vmatprep.subr.bf16.mxu0 %v8969_v4  ;;  %v860_v61 = vsub.s32 3, %v10308_v54  ;;  %v9360_v4 = vld [vmem:[%s12482_s2] sm:$0xf]  ;;  %v9346_v54 = vld [vmem:[%s12485_s7 + $0xf0] sm:$0xff]  }
 0x270   :  { %5668 = vmatprep.subr.bf16.mxu1 %v8966_v40  ;;  %v9035_v40 = vld [vmem:[%s12499_s23 + $0x124c] ss:$16 sps:$4 sm:$0xff]  }
 0x272   :  { %5718 = vmatpush2.bf16.msra.mxu0 %v8967_v39  ;;  %v861_v39 = vrot.slane %v9360_v4, %v860_v61  ;;  %v9095_v61 = vld [vmem:[%s12499_s23 + $0x130c] ss:$16 sps:$4 sm:$0xff]  }
 0x273   :  { %5669 = vmatpush1.bf16.msra.mxu1 %v8964_v11  ;;  %5719 = vmatprep.subr.bf16.mxu0 %v8975_v2  ;;  %v857_v11 = vrot.slane %v9360_v4, %v856_v56  ;;  %v9033_v2 = vld [vmem:[%s12499_s23 + $0x1248] ss:$16 sps:$4 sm:$0xff]   ;;  %v9086_v56 = vld [vmem:[%s12499_s23 + $0x11ac] ss:$16 sps:$4 sm:$0xff]  }
 0x274   :  { %5670 = vmatprep.subr.bf16.mxu1 %v8972_v12  ;;  %v9030_v12 = vld [vmem:[%s12499_s23 + $0x10c8] ss:$16 sps:$4 sm:$0xff]   ;;  %v9098_v4 = vld [vmem:[%s12499_s23 + $0x116c] ss:$16 sps:$4 sm:$0xff]  }
 0x276   :  { %5720 = vmatpush2.bf16.msra.mxu0 %v8973_v3  ;;  %v9038_v3 = vld [vmem:[%s12499_s23 + $0x10ac] ss:$16 sps:$4 sm:$0xff]  }
 0x277   :  { %5671 = vmatpush1.bf16.msra.mxu1 %v8970_v6  ;;  %5721 = vmatprep.subr.bf16.mxu0 %v8981_v18 }
 0x278   :  { %5672 = vmatprep.subr.bf16.mxu1 %v8978_v15  ;;  %v9041_v15 = vld [vmem:[%s12499_s23 + $0x122c] ss:$16 sps:$4 sm:$0xff]  }
 0x27a   :  { %5722 = vmatpush2.bf16.msra.mxu0 %v8979_v36 }
 0x27b   :  { %5673 = vmatpush2.bf16.msra.mxu1 %v8976_v43  ;;  %5723 = vmatprep.subr.bf16.mxu0 %v8987_v47  ;;  %v9036_v47 = vld [vmem:[%s12499_s23 + $0x10a8] ss:$16 sps:$4 sm:$0xff]  }
 0x27c   :  { %5674 = vmatprep.subr.bf16.mxu1 %v8984_v21 }
 0x27e   :  { %5724 = vmatpush2.bf16.msra.mxu0 %v8985_v62 }
 0x27f   :  { %5675 = vmatpush2.bf16.msra.mxu1 %v8982_v27  ;;  %5725 = vmatprep.subr.bf16.mxu0 %v8993_v28  ;;  %v9039_v27 = vld [vmem:[%s12499_s23 + $0x1228] ss:$16 sps:$4 sm:$0xff]   ;;  %v9047_v28 = vld [vmem:[%s12499_s23 + $0x120c] ss:$16 sps:$4 sm:$0xff]  }
 0x280   :  { %5676 = vmatprep.subr.bf16.mxu1 %v8990_v35 }
 0x282   :  { %5726 = vmatpush2.bf16.msra.mxu0 %v8991_v17  ;;  %v9045_v17 = vld [vmem:[%s12499_s23 + $0x1208] ss:$16 sps:$4 sm:$0xff]  }
 0x283   :  { %5677 = vmatpush2.bf16.msra.mxu1 %v8988_v30  ;;  %5727 = vmatprep.subr.bf16.mxu0 %v8999_v26  ;;  %v9042_v30 = vld [vmem:[%s12499_s23 + $0x1088] ss:$16 sps:$4 sm:$0xff]   ;;  %v9053_v26 = vld [vmem:[%s12499_s23 + $0x13ec] ss:$16 sps:$4 sm:$0xff]  }
 0x284   :  { %5678 = vmatprep.subr.bf16.mxu1 %v8996_v45  ;;  %v9050_v45 = vld [vmem:[%s12499_s23 + $0x106c] ss:$16 sps:$4 sm:$0xff]  }
 0x286   :  { %5728 = vmatpush2.bf16.msra.mxu0 %v8997_v32  ;;  %v9051_v32 = vld [vmem:[%s12499_s23 + $0x13e8] ss:$16 sps:$4 sm:$0xff]  }
 0x287   :  { %5679 = vmatpush2.bf16.msra.mxu1 %v8994_v22  ;;  %5779 = vmatprep.subr.bf16.mxu0 %v9005_v34  ;;  %v9048_v22 = vld [vmem:[%s12499_s23 + $0x1068] ss:$16 sps:$4 sm:$0xff]   ;;  %v9059_v34 = vld [vmem:[%s12499_s23 + $0x13cc] ss:$16 sps:$4 sm:$0xff]  }
 0x288   :  { %5680 = vmatprep.subr.bf16.mxu1 %v9002_v33  ;;  %v9056_v33 = vld [vmem:[%s12499_s23 + $0x104c] ss:$16 sps:$4 sm:$0xff]  }
 0x289   :  { %5730 = vmatmul.mubr.bf16.vlgmr.msra.gmra.mxu0 %v10339_v1  ;;  %v5485_v7 = vpop.f32.mrf.mxu0  ;;  %v9012_v1 = vld [vmem:[%s12499_s23 + $0xd28] ss:$16 sps:$4 sm:$0xff]  }
 0x28a   :  { %5780 = vmatpush1.bf16.msra.mxu0 %v9003_v29  ;;  %5811 = vmatprep.mubr.bf16.mxu0 %v10370_v10  ;;  %v9023_v10 = vld [vmem:[%s12499_s23 + $0x128c] ss:$16 sps:$4 sm:$0xff]   ;;  %v9057_v29 = vld [vmem:[%s12499_s23 + $0x13c8] ss:$16 sps:$4 sm:$0xff]  }
 0x28b   :  { %5681 = vmatpush2.bf16.msra.mxu1 %v9000_v23  ;;  %5781 = vmatprep.subr.bf16.mxu0 %v9011_v25  ;;  %v5487_v41 = vpop.f32.mrf.mxu0  ;;  %v9054_v23 = vld [vmem:[%s12499_s23 + $0x1048] ss:$16 sps:$4 sm:$0xff]   ;;  %v9065_v25 = vld [vmem:[%s12499_s23 + $0x13ac] ss:$16 sps:$4 sm:$0xff]  }
 0x28c   :  { %5682 = vmatprep.subr.bf16.mxu1 %v9008_v44  ;;  %v9062_v44 = vld [vmem:[%s12499_s23 + $0x102c] ss:$16 sps:$4 sm:$0xff]  }
 0x28d   :  { %v5489_v52 = vpop.f32.mrf.mxu0 }
 0x28e   :  { %5782 = vmatpush1.bf16.msra.mxu0 %v9009_v50  ;;  %v9063_v50 = vld [vmem:[%s12499_s23 + $0x13a8] ss:$16 sps:$4 sm:$0xff]   ;;  %v9074_v52 = vld [vmem:[%s12499_s23 + $0x11ec] ss:$16 sps:$4 sm:$0xff]  }
 0x28f   :  { %5683 = vmatpush2.bf16.msra.mxu1 %v9006_v38  ;;  %5783 = vmatprep.subr.bf16.mxu0 %v9017_v49  ;;  %v5490_v51 = vpop.f32.mrf.mxu0  ;;  %v9060_v38 = vld [vmem:[%s12499_s23 + $0x1028] ss:$16 sps:$4 sm:$0xff]  }
 0x290   :  { %5684 = vmatprep.subr.bf16.mxu1 %v9014_v31  ;;  %v9071_v31 = vld [vmem:[%s12499_s23 + $0x138c] ss:$16 sps:$4 sm:$0xff]   ;;  %v9066_v49 = vld [vmem:[%s12499_s23 + $0x1008] ss:$16 sps:$4 sm:$0xff]  }
 0x291   :  { %v9083_v51 = vld [vmem:[%s12499_s23 + $0x134c] ss:$16 sps:$4 sm:$0xff]  }
 0x292   :  { %5784 = vmatpush1.bf16.msra.mxu0 %v9015_v42  ;;  %v9072_v42 = vld [vmem:[%s12499_s23 + $0x11e8] ss:$16 sps:$4 sm:$0xff]  }
 0x293   :  { %5685 = vmatpush2.bf16.msra.mxu1 %v9012_v1  ;;  %5785 = vmatprep.subr.bf16.mxu0 %v9023_v10  ;;  %v9077_v1 = vld [vmem:[%s12499_s23 + $0x136c] ss:$16 sps:$4 sm:$0xff]  }
 0x294   :  { %5686 = vmatprep.subr.bf16.mxu1 %v9020_v48  ;;  %v9075_v48 = vld [vmem:[%s12499_s23 + $0x1368] ss:$16 sps:$4 sm:$0xff]   ;;  %v9080_v10 = vld [vmem:[%s12499_s23 + $0x11cc] ss:$16 sps:$4 sm:$0xff]  }
 0x296   :  { %5786 = vmatpush1.bf16.msra.mxu0 %v9021_v37  ;;  %v9081_v37 = vld [vmem:[%s12499_s23 + $0x1348] ss:$16 sps:$4 sm:$0xff]  }
 0x297   :  { %5687 = vmatpush2.bf16.msra.mxu1 %v9018_v55  ;;  %5787 = vmatprep.subr.bf16.mxu0 %v9029_v16  ;;  %v9078_v55 = vld [vmem:[%s12499_s23 + $0x11c8] ss:$16 sps:$4 sm:$0xff]  }
 0x298   :  { %5738 = vmatprep.subr.bf16.mxu1 %v9026_v57  ;;  %v9089_v57 = vld [vmem:[%s12499_s23 + $0x132c] ss:$16 sps:$4 sm:$0xff]   ;;  %v9084_v16 = vld [vmem:[%s12499_s23 + $0x11a8] ss:$16 sps:$4 sm:$0xff]  }
 0x29a   :  { %v5444_v6 = vpop.f32.mrf.mxu1  ;;  %5689 = vmatmul.mubr.bf16.vlgmr.msra.gmra.mxu1 %v10335_v0  ;;  %5788 = vmatpush1.bf16.msra.mxu0 %v9027_v60  ;;  %v9092_v60 = vld [vmem:[%s12499_s23 + $0x118c] ss:$16 sps:$4 sm:$0xff]  }
 0x29b   :  { %v5445_v18 = vadd.f32 %v5444_v6, %v857_v11  ;;  %5739 = vmatpush1.bf16.msra.mxu1 %v9024_v58  ;;  %5789 = vmatprep.subr.bf16.mxu0 %v9035_v40  ;;  %v9087_v58 = vld [vmem:[%s12499_s23 + $0x1328] ss:$16 sps:$4 sm:$0xff]   ;;  %v9101_v11 = vld [vmem:[%s12499_s23 + $0x16ec] ss:$16 sps:$4 sm:$0xff]  }
 0x29c   :  { %v5446_v43 = vpop.f32.mrf.mxu1  ;;  %5740 = vmatprep.subr.bf16.mxu1 %v9032_v24  ;;  %5770 = vmatprep.mubr.bf16.mxu1 %v10366_v9  ;;  %v9044_v9 = vld [vmem:[%s12499_s23 + $0x108c] ss:$16 sps:$4 sm:$0xff]   ;;  %v9090_v24 = vld [vmem:[%s12499_s23 + $0x1188] ss:$16 sps:$4 sm:$0xff]  }
 0x29d   :  { %v5447_v36 = vadd.f32 %v5446_v43, %v861_v39  ;;  %v11696_v21 = vadd.f32 %v5485_v7, %v5445_v18  ;;  %v9068_v7 = vld [vmem:[%s12499_s23 + $0x100c] ss:$16 sps:$4 sm:$0xff]   ;;  %v9093_v40 = vld [vmem:[%s12499_s23 + $0x1308] ss:$16 sps:$4 sm:$0xff]  }
 0x29e   :  { %v5448_v0 = vpop.f32.mrf.mxu1  ;;  %5790 = vmatpush1.bf16.msra.mxu0 %v9033_v2  ;;  %v9096_v39 = vld [vmem:[%s12499_s23 + $0x1168] ss:$16 sps:$4 sm:$0xff]   ;;  %v9104_v2 = vld [vmem:[%s12499_s23 + $0x114c] ss:$16 sps:$4 sm:$0xff]  }
 0x29f   :  { %v11705_v62 = vadd.f32 %v5487_v41, %v5447_v36  ;;  %5741 = vmatpush1.bf16.msra.mxu1 %v9030_v12  ;;  %5791 = vmatprep.subr.bf16.mxu0 %v9041_v15  ;;  %v9069_v41 = vld [vmem:[%s12499_s23 + $0x1388] ss:$16 sps:$4 sm:$0xff]   ;;  %v9107_v6 = vld [vmem:[%s12499_s23 + $0x16cc] ss:$16 sps:$4 sm:$0xff]  }
 0x2a0   :  { %v5449_v35 = vpop.f32.mrf.mxu1  ;;  %5742 = vmatprep.subr.bf16.mxu1 %v9038_v3  ;;  %v9099_v12 = vld [vmem:[%s12499_s23 + $0x16e8] ss:$16 sps:$4 sm:$0xff]   ;;  %v9110_v43 = vld [vmem:[%s12499_s23 + $0x112c] ss:$16 sps:$4 sm:$0xff]  }
 0x2a1   :  { %v9102_v15 = vld [vmem:[%s12499_s23 + $0x1148] ss:$16 sps:$4 sm:$0xff]   ;;  %v9116_v35 = vld [vmem:[%s12499_s23 + $0x110c] ss:$16 sps:$4 sm:$0xff]  }
 0x2a2   :  { %5792 = vmatpush1.bf16.msra.mxu0 %v9039_v27  ;;  %v9105_v18 = vld [vmem:[%s12499_s23 + $0x16c8] ss:$16 sps:$4 sm:$0xff]  }
 0x2a3   :  { %5743 = vmatpush1.bf16.msra.mxu1 %v9036_v47  ;;  %5793 = vmatprep.subr.bf16.mxu0 %v9047_v28  ;;  %v9108_v47 = vld [vmem:[%s12499_s23 + $0x1128] ss:$16 sps:$4 sm:$0xff]  }
 0x2a4   :  { %5744 = vmatprep.subr.bf16.mxu1 %v9044_v9  ;;  %v9111_v27 = vld [vmem:[%s12499_s23 + $0x16a8] ss:$16 sps:$4 sm:$0xff]  }
 0x2a5   :  { %v9114_v28 = vld [vmem:[%s12499_s23 + $0x1108] ss:$16 sps:$4 sm:$0xff]  }
 0x2a6   :  { %5794 = vmatpush1.bf16.msra.mxu0 %v9045_v17  ;;  %v9122_v17 = vld [vmem:[%s12499_s23 + $0x14ec] ss:$16 sps:$4 sm:$0xff]  }
 0x2a7   :  { %5745 = vmatpush1.bf16.msra.mxu1 %v9042_v30  ;;  %5795 = vmatprep.subr.bf16.mxu0 %v9053_v26  ;;  %v9117_v30 = vld [vmem:[%s12499_s23 + $0x1688] ss:$16 sps:$4 sm:$0xff]  }
 0x2a8   :  { %5746 = vmatprep.subr.bf16.mxu1 %v9050_v45  ;;  %v9125_v45 = vld [vmem:[%s12499_s23 + $0x166c] ss:$16 sps:$4 sm:$0xff]   ;;  %v9120_v26 = vld [vmem:[%s12499_s23 + $0x14e8] ss:$16 sps:$4 sm:$0xff]  }
 0x2aa   :  { %5796 = vmatpush2.bf16.msra.mxu0 %v9051_v32  ;;  %v9128_v32 = vld [vmem:[%s12499_s23 + $0x14cc] ss:$16 sps:$4 sm:$0xff]  }
 0x2ab   :  { %5747 = vmatpush1.bf16.msra.mxu1 %v9048_v22  ;;  %5797 = vmatprep.subr.bf16.mxu0 %v9059_v34  ;;  %v9123_v22 = vld [vmem:[%s12499_s23 + $0x1668] ss:$16 sps:$4 sm:$0xff]  }
 0x2ac   :  { %5748 = vmatprep.subr.bf16.mxu1 %v9056_v33  ;;  %v9131_v33 = vld [vmem:[%s12499_s23 + $0x164c] ss:$16 sps:$4 sm:$0xff]  }
 0x2ae   :  { %5798 = vmatpush2.bf16.msra.mxu0 %v9057_v29  ;;  %v9126_v29 = vld [vmem:[%s12499_s23 + $0x14c8] ss:$16 sps:$4 sm:$0xff]  }
 0x2af   :  { %5749 = vmatpush1.bf16.msra.mxu1 %v9054_v23  ;;  %5799 = vmatprep.subr.bf16.mxu0 %v9065_v25 }
 0x2b0   :  { %5750 = vmatprep.subr.bf16.mxu1 %v9062_v44  ;;  %v9129_v44 = vld [vmem:[%s12499_s23 + $0x1648] ss:$16 sps:$4 sm:$0xff]  }
 0x2b2   :  { %5800 = vmatpush2.bf16.msra.mxu0 %v9063_v50 }
 0x2b3   :  { %5751 = vmatpush1.bf16.msra.mxu1 %v9060_v38  ;;  %5801 = vmatprep.subr.bf16.mxu0 %v9071_v31  ;;  %v9134_v38 = vld [vmem:[%s12499_s23 + $0x14ac] ss:$16 sps:$4 sm:$0xff]  }
 0x2b4   :  { %5752 = vmatprep.subr.bf16.mxu1 %v9068_v7 }
 0x2b6   :  { %5802 = vmatpush2.bf16.msra.mxu0 %v9069_v41  ;;  %v9135_v41 = vld [vmem:[%s12499_s23 + $0x1628] ss:$16 sps:$4 sm:$0xff]  }
 0x2b7   :  { %5753 = vmatpush1.bf16.msra.mxu1 %v9066_v49  ;;  %5803 = vmatprep.subr.bf16.mxu0 %v9077_v1  ;;  %v9132_v49 = vld [vmem:[%s12499_s23 + $0x14a8] ss:$16 sps:$4 sm:$0xff]  }
 0x2b8   :  { %5754 = vmatprep.subr.bf16.mxu1 %v9074_v52  ;;  %v9138_v1 = vld [vmem:[%s12499_s23 + $0x1488] ss:$16 sps:$4 sm:$0xff]  }
 0x2ba   :  { %5804 = vmatpush2.bf16.msra.mxu0 %v9075_v48  ;;  %v9146_v48 = vld [vmem:[%s12499_s23 + $0x146c] ss:$16 sps:$4 sm:$0xff]  }
 0x2bb   :  { %5755 = vmatpush2.bf16.msra.mxu1 %v9072_v42  ;;  %5805 = vmatprep.subr.bf16.mxu0 %v9083_v51  ;;  %v9141_v42 = vld [vmem:[%s12499_s23 + $0x1608] ss:$16 sps:$4 sm:$0xff]  }
 0x2bc   :  { %5756 = vmatprep.subr.bf16.mxu1 %v9080_v10  ;;  %v9149_v10 = vld [vmem:[%s12499_s23 + $0x17ec] ss:$16 sps:$4 sm:$0xff]   ;;  %v9144_v51 = vld [vmem:[%s12499_s23 + $0x1468] ss:$16 sps:$4 sm:$0xff]  }
 0x2be   :  { %5806 = vmatpush2.bf16.msra.mxu0 %v9081_v37  ;;  %v9152_v37 = vld [vmem:[%s12499_s23 + $0x144c] ss:$16 sps:$4 sm:$0xff]  }
 0x2bf   :  { %5757 = vmatpush2.bf16.msra.mxu1 %v9078_v55  ;;  %5807 = vmatprep.subr.bf16.mxu0 %v9089_v57  ;;  %v9147_v55 = vld [vmem:[%s12499_s23 + $0x17e8] ss:$16 sps:$4 sm:$0xff]  }
 0x2c0   :  { %5758 = vmatprep.subr.bf16.mxu1 %v9086_v56  ;;  %v9155_v56 = vld [vmem:[%s12499_s23 + $0x17cc] ss:$16 sps:$4 sm:$0xff]   ;;  %v9150_v57 = vld [vmem:[%s12499_s23 + $0x1448] ss:$16 sps:$4 sm:$0xff]  }
 0x2c2   :  { %5808 = vmatpush2.bf16.msra.mxu0 %v9087_v58  ;;  %v9158_v58 = vld [vmem:[%s12499_s23 + $0x142c] ss:$16 sps:$4 sm:$0xff]  }
 0x2c3   :  { %5759 = vmatpush2.bf16.msra.mxu1 %v9084_v16  ;;  %5809 = vmatprep.subr.bf16.mxu0 %v9095_v61  ;;  %v9153_v16 = vld [vmem:[%s12499_s23 + $0x17c8] ss:$16 sps:$4 sm:$0xff]  }
 0x2c4   :  { %5760 = vmatprep.subr.bf16.mxu1 %v9092_v60  ;;  %v9161_v60 = vld [vmem:[%s12499_s23 + $0x17ac] ss:$16 sps:$4 sm:$0xff]   ;;  %v9156_v61 = vld [vmem:[%s12499_s23 + $0x1428] ss:$16 sps:$4 sm:$0xff]  }
 0x2c6   :  { %5810 = vmatpush2.bf16.msra.mxu0 %v9093_v40  ;;  %v9164_v40 = vld [vmem:[%s12499_s23 + $0x140c] ss:$16 sps:$4 sm:$0xff]  }
 0x2c7   :  { %5761 = vmatpush2.bf16.msra.mxu1 %v9090_v24  ;;  %5861 = vmatprep.subr.bf16.mxu0 %v9101_v11  ;;  %v9159_v24 = vld [vmem:[%s12499_s23 + $0x17a8] ss:$16 sps:$4 sm:$0xff]  }
 0x2c8   :  { %5762 = vmatprep.subr.bf16.mxu1 %v9098_v4  ;;  %v9167_v4 = vld [vmem:[%s12499_s23 + $0x178c] ss:$16 sps:$4 sm:$0xff]   ;;  %v9162_v11 = vld [vmem:[%s12499_s23 + $0x1408] ss:$16 sps:$4 sm:$0xff]  }
 0x2c9   :  { %5812 = vmatmul.mubr.bf16.vlgmr.msra.gmra.mxu0 %v10584_v8  ;;  %v5567_v3 = vpop.f32.mrf.mxu0  ;;  %v9113_v8 = vld [vmem:[%s12499_s23 + $0x16ac] ss:$16 sps:$4 sm:$0xff]  }
 0x2ca   :  { %5862 = vmatpush1.bf16.msra.mxu0 %v9099_v12  ;;  %5893 = vmatprep.mubr.bf16.mxu0 %v10604_v14  ;;  %v9119_v14 = vld [vmem:[%s12499_s23 + $0x168c] ss:$16 sps:$4 sm:$0xff]  }
 0x2cb   :  { %5763 = vmatpush2.bf16.msra.mxu1 %v9096_v39  ;;  %5863 = vmatprep.subr.bf16.mxu0 %v9107_v6  ;;  %v5569_v36 = vpop.f32.mrf.mxu0  ;;  %v9165_v39 = vld [vmem:[%s12499_s23 + $0x1788] ss:$16 sps:$4 sm:$0xff]   ;;  %v9170_v12 = vld [vmem:[%s12499_s23 + $0x15ec] ss:$16 sps:$4 sm:$0xff]  }
 0x2cc   :  { %5764 = vmatprep.subr.bf16.mxu1 %v9104_v2  ;;  %v9173_v2 = vld [vmem:[%s12499_s23 + $0x176c] ss:$16 sps:$4 sm:$0xff]   ;;  %v9168_v6 = vld [vmem:[%s12499_s23 + $0x15e8] ss:$16 sps:$4 sm:$0xff]  }
 0x2cd   :  { %v5571_v0 = vpop.f32.mrf.mxu0 }
 0x2ce   :  { %5864 = vmatpush1.bf16.msra.mxu0 %v9105_v18  ;;  %v9179_v18 = vld [vmem:[%s12499_s23 + $0x174c] ss:$16 sps:$4 sm:$0xff]  }
 0x2cf   :  { %5765 = vmatpush2.bf16.msra.mxu1 %v9102_v15  ;;  %5865 = vmatprep.subr.bf16.mxu0 %v9113_v8  ;;  %v5572_v9 = vpop.f32.mrf.mxu0  ;;  %v9176_v15 = vld [vmem:[%s12499_s23 + $0x15cc] ss:$16 sps:$4 sm:$0xff]   ;;  %v9177_v8 = vld [vmem:[%s12499_s23 + $0x1748] ss:$16 sps:$4 sm:$0xff]  }
 0x2d0   :  { %5766 = vmatprep.subr.bf16.mxu1 %v9110_v43  ;;  %v9174_v43 = vld [vmem:[%s12499_s23 + $0x15c8] ss:$16 sps:$4 sm:$0xff]   ;;  %v9185_v0 = vld [vmem:[%s12499_s23 + $0x172c] ss:$16 sps:$4 sm:$0xff]  }
 0x2d1   :  { %v9186_v9 = vld [vmem:[%s12499_s23 + $0x1588] ss:$16 sps:$4 sm:$0xff]  }
 0x2d2   :  { %5866 = vmatpush1.bf16.msra.mxu0 %v9111_v27  ;;  %v9183_v27 = vld [vmem:[%s12499_s23 + $0x1728] ss:$16 sps:$4 sm:$0xff]  }
 0x2d3   :  { %5767 = vmatpush2.bf16.msra.mxu1 %v9108_v47  ;;  %5867 = vmatprep.subr.bf16.mxu0 %v9119_v14  ;;  %v9180_v47 = vld [vmem:[%s12499_s23 + $0x15a8] ss:$16 sps:$4 sm:$0xff]   ;;  %v9191_v14 = vld [vmem:[%s12499_s23 + $0x170c] ss:$16 sps:$4 sm:$0xff]  }
 0x2d4   :  { %5768 = vmatprep.subr.bf16.mxu1 %v9116_v35  ;;  %v9188_v35 = vld [vmem:[%s12499_s23 + $0x158c] ss:$16 sps:$4 sm:$0xff]  }
 0x2d6   :  { %5868 = vmatpush1.bf16.msra.mxu0 %v9117_v30  ;;  %v9194_v30 = vld [vmem:[%s12499_s23 + $0x156c] ss:$16 sps:$4 sm:$0xff]  }
 0x2d7   :  { %5769 = vmatpush2.bf16.msra.mxu1 %v9114_v28  ;;  %5869 = vmatprep.subr.bf16.mxu0 %v9125_v45  ;;  %v9189_v28 = vld [vmem:[%s12499_s23 + $0x1708] ss:$16 sps:$4 sm:$0xff]  }
 0x2d8   :  { %5820 = vmatprep.subr.bf16.mxu1 %v9122_v17  ;;  %v9197_v17 = vld [vmem:[%s12484_s3 + $0x74] ss:$8 sps:$4 sm:$0xff]   ;;  %v9192_v45 = vld [vmem:[%s12499_s23 + $0x1568] ss:$16 sps:$4 sm:$0xff]  }
 0x2da   :  { %v5526_v34 = vpop.f32.mrf.mxu1  ;;  %5771 = vmatmul.mubr.bf16.vlgmr.msra.gmra.mxu1 %v10580_v5  ;;  %5870 = vmatpush1.bf16.msra.mxu0 %v9123_v22  ;;  %v9137_v5 = vld [vmem:[%s12499_s23 + $0x162c] ss:$16 sps:$4 sm:$0xff]  }
 0x2db   :  { %v5527_v23 = vadd.f32 %v5526_v34, %v11696_v21  ;;  %5821 = vmatpush1.bf16.msra.mxu1 %v9120_v26  ;;  %5871 = vmatprep.subr.bf16.mxu0 %v9131_v33  ;;  %v9195_v26 = vld [vmem:[%s12484_s3 + $0x70] ss:$8 sps:$4 sm:$0xff]   ;;  %v9200_v22 = vld [vmem:[%s12499_s23 + $0x154c] ss:$16 sps:$4 sm:$0xff]   ;;  %v12037_v33 = vpack.c.bf16 %v11490_v46, %v11490_v46 }
 0x2dc   :  { %v5528_v25 = vpop.f32.mrf.mxu1  ;;  %5822 = vmatprep.subr.bf16.mxu1 %v9128_v32  ;;  %5852 = vmatprep.mubr.bf16.mxu1 %v10600_v13  ;;  %v9140_v13 = vld [vmem:[%s12499_s23 + $0x148c] ss:$16 sps:$4 sm:$0xff]  }
 0x2dd   :  { %v5529_v21 = vadd.f32 %v5528_v25, %v11705_v62  ;;  %v11898_v50 = vadd.f32 %v5567_v3, %v5527_v23  ;;  %v9143_v62 = vld [vmem:[%s12499_s23 + $0x160c] ss:$16 sps:$4 sm:$0xff]   ;;  %v9171_v3 = vld [vmem:[%s12499_s23 + $0x1768] ss:$16 sps:$4 sm:$0xff]  }
 0x2de   :  { %v5530_v7 = vpop.f32.mrf.mxu1  ;;  %5872 = vmatpush1.bf16.msra.mxu0 %v9129_v44  ;;  %v9203_v32 = vld [vmem:[%s12484_s3 + $0x64] ss:$8 sps:$4 sm:$0xff]   ;;  %v9198_v23 = vld [vmem:[%s12499_s23 + $0x1548] ss:$16 sps:$4 sm:$0xff]  }
 0x2df   :  { %v11901_v31 = vadd.f32 %v5569_v36, %v5529_v21  ;;  %5823 = vmatpush1.bf16.msra.mxu1 %v9126_v29  ;;  %5873 = vmatprep.subr.bf16.mxu0 %v9137_v5  ;;  %v9182_v36 = vld [vmem:[%s12499_s23 + $0x15ac] ss:$16 sps:$4 sm:$0xff]   ;;  %v9201_v29 = vld [vmem:[%s12484_s3 + $0x60] ss:$8 sps:$4 sm:$0xff]   ;;  %v9207_v5 = vld [vmem:[%s12484_s3 + $0x50] ss:$8 sps:$4 sm:$0xff]  }
 0x2e0   :  { %v5531_v52 = vpop.f32.mrf.mxu1  ;;  %5824 = vmatprep.subr.bf16.mxu1 %v9134_v38  ;;  %v9206_v46 = vld [vmem:[%s12499_s23 + $0x152c] ss:$16 sps:$4 sm:$0xff]   ;;  %v9204_v38 = vld [vmem:[%s12499_s23 + $0x1528] ss:$16 sps:$4 sm:$0xff]  }
 0x2e1   :  { %v9212_v21 = vld [vmem:[%s12499_s23 + $0x150c] ss:$16 sps:$4 sm:$0xff]   ;;  %v9213_v52 = vld [vmem:[%s12484_s3 + $0x40] ss:$8 sps:$4 sm:$0xff]  }
 0x2e2   :  { %5874 = vmatpush1.bf16.msra.mxu0 %v9135_v41  ;;  %v9215_v7 = vld [vmem:[%s12484_s3 + $0x44] ss:$8 sps:$4 sm:$0xff]   ;;  %v9210_v41 = vld [vmem:[%s12499_s23 + $0x1508] ss:$16 sps:$4 sm:$0xff]  }
 0x2e3   :  { %5825 = vmatpush1.bf16.msra.mxu1 %v9132_v49  ;;  %5875 = vmatprep.subr.bf16.mxu0 %v9143_v62  ;;  %v9221_v62 = vld [vmem:[%s12484_s3 + $0x34] ss:$8 sps:$4 sm:$0xff]  }
 0x2e4   :  { %5826 = vmatprep.subr.bf16.mxu1 %v9140_v13  ;;  %v9218_v13 = vld [vmem:[%s12499_s23 + $0x186c] ss:$16 sps:$4 sm:$0xff]  }
 0x2e6   :  { %5876 = vmatpush1.bf16.msra.mxu0 %v9141_v42  ;;  %v9219_v42 = vld [vmem:[%s12484_s3 + $0x30] ss:$8 sps:$4 sm:$0xff]  }
 0x2e7   :  { %5827 = vmatpush1.bf16.msra.mxu1 %v9138_v1  ;;  %5877 = vmatprep.subr.bf16.mxu0 %v9149_v10  ;;  %v9216_v1 = vld [vmem:[%s12499_s23 + $0x1868] ss:$16 sps:$4 sm:$0xff]   ;;  %v9227_v10 = vld [vmem:[%s12484_s3 + $0x24] ss:$8 sps:$4 sm:$0xff]  }
 0x2e8   :  { %5828 = vmatprep.subr.bf16.mxu1 %v9146_v48  ;;  %v9224_v48 = vld [vmem:[%s12499_s23 + $0x184c] ss:$16 sps:$4 sm:$0xff]  }
 0x2ea   :  { %5878 = vmatpush2.bf16.msra.mxu0 %v9147_v55 }
 0x2eb   :  { %5829 = vmatpush1.bf16.msra.mxu1 %v9144_v51  ;;  %5879 = vmatprep.subr.bf16.mxu0 %v9155_v56  ;;  %v9225_v56 = vld [vmem:[%s12484_s3 + $0x20] ss:$8 sps:$4 sm:$0xff]  }
 0x2ec   :  { %5830 = vmatprep.subr.bf16.mxu1 %v9152_v37  ;;  %v9222_v37 = vld [vmem:[%s12499_s23 + $0x1848] ss:$16 sps:$4 sm:$0xff]  }
 0x2ee   :  { %5880 = vmatpush2.bf16.msra.mxu0 %v9153_v16  ;;  %v9230_v16 = vld [vmem:[%s12499_s23 + $0x182c] ss:$16 sps:$4 sm:$0xff]  }
 0x2ef   :  { %5831 = vmatpush1.bf16.msra.mxu1 %v9150_v57  ;;  %5881 = vmatprep.subr.bf16.mxu0 %v9161_v60 }
 0x2f0   :  { %5832 = vmatprep.subr.bf16.mxu1 %v9158_v58 }
 0x2f2   :  { %5882 = vmatpush2.bf16.msra.mxu0 %v9159_v24  ;;  %v9228_v24 = vld [vmem:[%s12499_s23 + $0x1828] ss:$16 sps:$4 sm:$0xff]  }
 0x2f3   :  { %5833 = vmatpush1.bf16.msra.mxu1 %v9156_v61  ;;  %5883 = vmatprep.subr.bf16.mxu0 %v9167_v4 }
 0x2f4   :  { %5834 = vmatprep.subr.bf16.mxu1 %v9164_v40  ;;  %v9231_v40 = vld [vmem:[%s12484_s3 + $0x10] ss:$8 sps:$4 sm:$0xff]  }
 0x2f6   :  { %5884 = vmatpush2.bf16.msra.mxu0 %v9165_v39  ;;  %v9237_v39 = vld [vmem:[%s12484_s3] ss:$8 sps:$4 sm:$0xff]  }
 0x2f7   :  { %5835 = vmatpush1.bf16.msra.mxu1 %v9162_v11  ;;  %5885 = vmatprep.subr.bf16.mxu0 %v9173_v2  ;;  %v9234_v11 = vld [vmem:[%s12499_s23 + $0x1808] ss:$16 sps:$4 sm:$0xff]   ;;  %v9266_v2 = vld [vmem:[%s12484_s3 + $0x174] ss:$8 sps:$4 sm:$0xff]  }
 0x2f8   :  { %5836 = vmatprep.subr.bf16.mxu1 %v9170_v12  ;;  %v9242_v12 = vld [vmem:[%s12484_s3 + $0xf4] ss:$8 sps:$4 sm:$0xff]  }
 0x2fa   :  { %5886 = vmatpush2.bf16.msra.mxu0 %v9171_v3  ;;  %v9264_v3 = vld [vmem:[%s12484_s3 + $0x170] ss:$8 sps:$4 sm:$0xff]  }
 0x2fb   :  { %5837 = vmatpush2.bf16.msra.mxu1 %v9168_v6  ;;  %5887 = vmatprep.subr.bf16.mxu0 %v9179_v18  ;;  %v9240_v6 = vld [vmem:[%s12484_s3 + $0xf0] ss:$8 sps:$4 sm:$0xff]   ;;  %v9269_v18 = vld [vmem:[%s12484_s3 + $0x164] ss:$8 sps:$4 sm:$0xff]  }
 0x2fc   :  { %5838 = vmatprep.subr.bf16.mxu1 %v9176_v15  ;;  %v9245_v15 = vld [vmem:[%s12484_s3 + $0xe4] ss:$8 sps:$4 sm:$0xff]  }
 0x2fe   :  { %5888 = vmatpush2.bf16.msra.mxu0 %v9177_v8  ;;  %v9243_v8 = vld [vmem:[%s12484_s3 + $0xe0] ss:$8 sps:$4 sm:$0xff]  }
 0x2ff   :  { %5839 = vmatpush2.bf16.msra.mxu1 %v9174_v43  ;;  %5889 = vmatprep.subr.bf16.mxu0 %v9185_v0  ;;  %v9361_v43 = vld [vmem:[%s12481_s0 + $0x60] ss:$0 sps:$4 sm:$0xff]   ;;  %v9248_v0 = vld [vmem:[%s12484_s3 + $0xd4] ss:$8 sps:$4 sm:$0xff]  }
 0x300   :  { %5840 = vmatprep.subr.bf16.mxu1 %v9182_v36  ;;  %v9267_v36 = vld [vmem:[%s12484_s3 + $0x160] ss:$8 sps:$4 sm:$0xff]  }
 0x302   :  { %5890 = vmatpush2.bf16.msra.mxu0 %v9183_v27  ;;  %v9246_v27 = vld [vmem:[%s12484_s3 + $0xd0] ss:$8 sps:$4 sm:$0xff]  }
 0x303   :  { %5841 = vmatpush2.bf16.msra.mxu1 %v9180_v47  ;;  %5891 = vmatprep.subr.bf16.mxu0 %v9191_v14  ;;  %v9272_v47 = vld [vmem:[%s12484_s3 + $0x154] ss:$8 sps:$4 sm:$0xff]   ;;  %v9251_v14 = vld [vmem:[%s12484_s3 + $0xc4] ss:$8 sps:$4 sm:$0xff]  }
 0x304   :  { %5842 = vmatprep.subr.bf16.mxu1 %v9188_v35  ;;  %v9270_v35 = vld [vmem:[%s12484_s3 + $0x150] ss:$8 sps:$4 sm:$0xff]  }
 0x306   :  { %5892 = vmatpush2.bf16.msra.mxu0 %v9189_v28  ;;  %v9249_v28 = vld [vmem:[%s12484_s3 + $0xc0] ss:$8 sps:$4 sm:$0xff]  }
 0x307   :  { %5843 = vmatpush2.bf16.msra.mxu1 %v9186_v9  ;;  %6351 = vmatprep.subr.bf16.mxu0 %v9197_v17  ;;  %v9275_v9 = vld [vmem:[%s12484_s3 + $0x144] ss:$8 sps:$4 sm:$0xff]   ;;  %v9254_v17 = vld [vmem:[%s12484_s3 + $0xb4] ss:$8 sps:$4 sm:$0xff]  }
 0x308   :  { %5844 = vmatprep.subr.bf16.mxu1 %v9194_v30  ;;  %v9273_v30 = vld [vmem:[%s12484_s3 + $0x140] ss:$8 sps:$4 sm:$0xff]  }
 0x309   :  { %5894 = vmatmul.mubr.bf16.vlgmr.msra.gmra.mxu0 %v10802_v20  ;;  %v5649_v34 = vpop.f32.mrf.mxu0  ;;  %v9209_v20 = vld [vmem:[%s12484_s3 + $0x54] ss:$8 sps:$4 sm:$0xff]  }
 0x30a   :  { %6352 = vmatpush1.bf16.msra.mxu0 %v9195_v26  ;;  %6383 = vmatprep.mubr.bf16.mxu0 %v12037_v33  ;;  %v9252_v26 = vld [vmem:[%s12484_s3 + $0xb0] ss:$8 sps:$4 sm:$0xff]  }
 0x30b   :  { %5845 = vmatpush2.bf16.msra.mxu1 %v9192_v45  ;;  %v5651_v44 = vpop.f32.mrf.mxu0  ;;  %6353 = vmatprep.subr.bf16.mxu0 %v9203_v32  ;;  %v9278_v45 = vld [vmem:[%s12484_s3 + $0x134] ss:$8 sps:$4 sm:$0xff]   ;;  %v9257_v32 = vld [vmem:[%s12484_s3 + $0xa4] ss:$8 sps:$4 sm:$0xff]  }
 0x30c   :  { %5846 = vmatprep.subr.bf16.mxu1 %v9200_v22  ;;  %v9276_v22 = vld [vmem:[%s12484_s3 + $0x130] ss:$8 sps:$4 sm:$0xff]  }
 0x30d   :  { %v5653_v25 = vpop.f32.mrf.mxu0 }
 0x30e   :  { %6354 = vmatpush1.bf16.msra.mxu0 %v9201_v29  ;;  %v9279_v29 = vld [vmem:[%s12484_s3 + $0x120] ss:$8 sps:$4 sm:$0xff]   ;;  %v9282_v25 = vld [vmem:[%s12484_s3 + $0x110] ss:$8 sps:$4 sm:$0xff]  }
 0x30f   :  { %5847 = vmatpush2.bf16.msra.mxu1 %v9198_v23  ;;  %6355 = vmatprep.subr.bf16.mxu0 %v9209_v20  ;;  %v5654_v49 = vpop.f32.mrf.mxu0  ;;  %v9255_v23 = vld [vmem:[%s12484_s3 + $0xa0] ss:$8 sps:$4 sm:$0xff]   ;;  %v9284_v20 = vld [vmem:[%s12484_s3 + $0x114] ss:$8 sps:$4 sm:$0xff]  }
 0x310   :  { %5848 = vmatprep.subr.bf16.mxu1 %v9206_v46  ;;  %v9260_v46 = vld [vmem:[%s12484_s3 + $0x94] ss:$8 sps:$4 sm:$0xff]  }
 0x311   :  { %v9290_v49 = vld [vmem:[%s12484_s3 + $0x1f4] ss:$8 sps:$4 sm:$0xff]  }
 0x312   :  { %6356 = vmatpush1.bf16.msra.mxu0 %v9207_v5  ;;  %v9287_v5 = vld [vmem:[%s12484_s3 + $0x104] ss:$8 sps:$4 sm:$0xff]  }
 0x313   :  { %5849 = vmatpush2.bf16.msra.mxu1 %v9204_v38  ;;  %6357 = vmatprep.subr.bf16.mxu0 %v9215_v7  ;;  %v9263_v38 = vld [vmem:[%s12484_s3 + $0x84] ss:$8 sps:$4 sm:$0xff]   ;;  %v9285_v7 = vld [vmem:[%s12484_s3 + $0x100] ss:$8 sps:$4 sm:$0xff]  }
 0x314   :  { %5850 = vmatprep.subr.bf16.mxu1 %v9212_v21  ;;  %v9261_v21 = vld [vmem:[%s12484_s3 + $0x80] ss:$8 sps:$4 sm:$0xff]  }
 0x316   :  { %6358 = vmatpush1.bf16.msra.mxu0 %v9213_v52  ;;  %v9362_v52 = vld [vmem:[%s12483_s13] sm:$0xff] }
 0x317   :  { %5851 = vmatpush2.bf16.msra.mxu1 %v9210_v41  ;;  %6359 = vmatprep.subr.bf16.mxu0 %v9221_v62  ;;  %v9288_v41 = vld [vmem:[%s12484_s3 + $0x1f0] ss:$8 sps:$4 sm:$0xff]   ;;  %v9293_v62 = vld [vmem:[%s12484_s3 + $0x1e4] ss:$8 sps:$4 sm:$0xff]  }
 0x318   :  { %5910 = vmatprep.subr.bf16.mxu1 %v9218_v13  ;;  %v12236_v13 = vpack.c.bf16 %v9362_v52, %v9362_v52 }
 0x31a   :  { %v5608_v51 = vpop.f32.mrf.mxu1  ;;  %5853 = vmatmul.mubr.bf16.vlgmr.msra.gmra.mxu1 %v10798_v19  ;;  %6360 = vmatpush1.bf16.msra.mxu0 %v9219_v42  ;;  %v9233_v19 = vld [vmem:[%s12484_s3 + $0x14] ss:$8 sps:$4 sm:$0xff]   ;;  %v9291_v42 = vld [vmem:[%s12484_s3 + $0x1e0] ss:$8 sps:$4 sm:$0xff]  }
 0x31b   :  { %v5609_v55 = vadd.f32 %v5608_v51, %v11898_v50  ;;  %5911 = vmatpush1.bf16.msra.mxu1 %v9216_v1  ;;  %6361 = vmatprep.subr.bf16.mxu0 %v9227_v10 }
 0x31c   :  { %v5610_v57 = vpop.f32.mrf.mxu1  ;;  %5912 = vmatprep.subr.bf16.mxu1 %v9224_v48  ;;  %5934 = vmatprep.mubr.bf16.mxu1 %v9363_v53  ;;  %v9236_v53 = vld [vmem:[%s12499_s23 + $0x180c] ss:$16 sps:$4 sm:$0xff]  }
 0x31d   :  { %v5611_v50 = vadd.f32 %v5610_v57, %v11901_v31  ;;  %v12104_v58 = vadd.f32 %v5649_v34, %v5609_v55  ;;  %v9239_v31 = vld [vmem:[%s12484_s3 + $0x4] ss:$8 sps:$4 sm:$0xff]   ;;  %v9294_v57 = vld [vmem:[%s12484_s3 + $0x1d0] ss:$8 sps:$4 sm:$0xff]  }
 0x31e   :  { %v5612_v60 = vpop.f32.mrf.mxu1  ;;  %6362 = vmatpush1.bf16.msra.mxu0 %v9225_v56  ;;  %v9281_v34 = vld [vmem:[%s12484_s3 + $0x124] ss:$8 sps:$4 sm:$0xff]  }
 0x31f   :  { %v12107_v61 = vadd.f32 %v5651_v44, %v5611_v50  ;;  %5913 = vmatpush1.bf16.msra.mxu1 %v9222_v37  ;;  %6363 = vmatprep.subr.bf16.mxu0 %v9233_v19  ;;  %v9258_v44 = vld [vmem:[%s12484_s3 + $0x90] ss:$8 sps:$4 sm:$0xff]   ;;  %v9296_v37 = vld [vmem:[%s12484_s3 + $0x1d4] ss:$8 sps:$4 sm:$0xff]  }
 0x320   :  { %v5613_v4 = vpop.f32.mrf.mxu1  ;;  %5914 = vmatprep.subr.bf16.mxu1 %v9230_v16 }
 0x322   :  { %6364 = vmatpush1.bf16.msra.mxu0 %v9231_v40 }
 0x323   :  { %5915 = vmatpush1.bf16.msra.mxu1 %v9228_v24  ;;  %6365 = vmatprep.subr.bf16.mxu0 %v9239_v31  ;;  %v9299_v24 = vld [vmem:[%s12484_s3 + $0x1c4] ss:$8 sps:$4 sm:$0xff]  }
 0x324   :  { %5916 = vmatprep.subr.bf16.mxu1 %v9236_v53  ;;  %v9302_v53 = vld [vmem:[%s12484_s3 + $0x1b4] ss:$8 sps:$4 sm:$0xff]   ;;  %v9305_v31 = vld [vmem:[%s12484_s3 + $0x1a4] ss:$8 sps:$4 sm:$0xff]  }
 0x326   :  { %6366 = vmatpush1.bf16.msra.mxu0 %v9237_v39  ;;  %v9308_v39 = vld [vmem:[%s12484_s3 + $0x194] ss:$8 sps:$4 sm:$0xff]  }
 0x327   :  { %5917 = vmatpush1.bf16.msra.mxu1 %v9234_v11  ;;  %6367 = vmatprep.subr.bf16.mxu0 %v9242_v12  ;;  %v9303_v11 = vld [vmem:[%s12484_s3 + $0x1a0] ss:$8 sps:$4 sm:$0xff]   ;;  %v9306_v12 = vld [vmem:[%s12484_s3 + $0x190] ss:$8 sps:$4 sm:$0xff]  }
 0x328   :  { %6392 = vmatprep.subr.bf16.mxu1 %v9266_v2  ;;  %v9311_v2 = vld [vmem:[%s12484_s3 + $0x184] ss:$8 sps:$4 sm:$0xff]  }
 0x32a   :  { %7828 = vmatmul.mubr.msk.bf16.vlgmr.msra.gmra.mxu1 %vm4873_vm0, %v9361_v43  ;;  %6368 = vmatpush2.bf16.msra.mxu0 %v9240_v6  ;;  %v9309_v6 = vld [vmem:[%s12484_s3 + $0x180] ss:$8 sps:$4 sm:$0xff]  }
 0x32b   :  { %6393 = vmatpush1.bf16.msra.mxu1 %v9264_v3  ;;  %6369 = vmatprep.subr.bf16.mxu0 %v9245_v15  ;;  %v9312_v3 = vld [vmem:[%s12485_s7 + $0x78] sm:$0xff]  }
 0x32c   :  { %6394 = vmatprep.subr.bf16.mxu1 %v9269_v18 }
 0x32e   :  { %6370 = vmatpush2.bf16.msra.mxu0 %v9243_v8 }
 0x32f   :  { %6395 = vmatpush1.bf16.msra.mxu1 %v9267_v36  ;;  %6371 = vmatprep.subr.bf16.mxu0 %v9248_v0  ;;  %v9328_v36 = vld [vmem:[%s12486_s5 + $0x78] sm:$0xff]  }
 0x330   :  { %6396 = vmatprep.subr.bf16.mxu1 %v9272_v47  ;;  %v9329_v0 = vld [vmem:[%s12486_s5 + $0x38] sm:$0xff]   ;;  %v9330_v47 = vld [vmem:[%s12486_s5 + $0x70] sm:$0xff]  }
 0x332   :  { %6372 = vmatpush2.bf16.msra.mxu0 %v9246_v27  ;;  %v9331_v27 = vld [vmem:[%s12486_s5 + $0x30] sm:$0xff]  }
 0x333   :  { %6397 = vmatpush1.bf16.msra.mxu1 %v9270_v35  ;;  %6373 = vmatprep.subr.bf16.mxu0 %v9251_v14  ;;  %v9332_v35 = vld [vmem:[%s12486_s5 + $0x68] sm:$0xff]  }
 0x334   :  { %6398 = vmatprep.subr.bf16.mxu1 %v9275_v9 }
 0x336   :  { %6374 = vmatpush2.bf16.msra.mxu0 %v9249_v28 }
 0x337   :  { %6399 = vmatpush1.bf16.msra.mxu1 %v9273_v30  ;;  %6375 = vmatprep.subr.bf16.mxu0 %v9254_v17  ;;  %v9333_v30 = vld [vmem:[%s12486_s5 + $0x28] sm:$0xff]  }
 0x338   :  { %6400 = vmatprep.subr.bf16.mxu1 %v9278_v45 }
 0x33a   :  { %6376 = vmatpush2.bf16.msra.mxu0 %v9252_v26  ;;  %v9334_v26 = vld [vmem:[%s12486_s5 + $0x60] sm:$0xff]  }
 0x33b   :  { %6401 = vmatpush1.bf16.msra.mxu1 %v9276_v22  ;;  %6377 = vmatprep.subr.bf16.mxu0 %v9257_v32 }
 0x33c   :  { %6402 = vmatprep.subr.bf16.mxu1 %v9281_v34  ;;  %v9335_v34 = vld [vmem:[%s12486_s5 + $0x20] sm:$0xff]  }
 0x33e   :  { %6378 = vmatpush2.bf16.msra.mxu0 %v9255_v23 }
 0x33f   :  { %6403 = vmatpush1.bf16.msra.mxu1 %v9279_v29  ;;  %6379 = vmatprep.subr.bf16.mxu0 %v9260_v46  ;;  %v9336_v29 = vld [vmem:[%s12486_s5 + $0x58] sm:$0xff]  }
 0x340   :  { %6404 = vmatprep.subr.bf16.mxu1 %v9284_v20  ;;  %v9337_v46 = vld [vmem:[%s12486_s5 + $0x18] sm:$0xff]   ;;  %v9338_v20 = vld [vmem:[%s12486_s5 + $0x50] sm:$0xff]  }
 0x342   :  { %6380 = vmatpush2.bf16.msra.mxu0 %v9258_v44  ;;  %v9339_v44 = vld [vmem:[%s12486_s5 + $0x10] sm:$0xff]  }
 0x343   :  { %6405 = vmatpush1.bf16.msra.mxu1 %v9282_v25  ;;  %6381 = vmatprep.subr.bf16.mxu0 %v9263_v38 }
 0x344   :  { %6406 = vmatprep.subr.bf16.mxu1 %v9287_v5 }
 0x346   :  { %6382 = vmatpush2.bf16.msra.mxu0 %v9261_v21 }
 0x347   :  { %6407 = vmatpush1.bf16.msra.mxu1 %v9285_v7  ;;  %7944 = vmatprep.subr.bf16.mxu0 %v9328_v36 }
 0x348   :  { %6408 = vmatprep.subr.bf16.mxu1 %v9290_v49 }
 0x349   :  { %6384 = vmatmul.mubr.bf16.vlgmr.msra.gmra.mxu0 %v12236_v13  ;;  %v5731_v1 = vpop.f32.mrf.mxu0 }
 0x34a   :  { %7945 = vmatpush3.bf16.msra.mxu0 %v9329_v0  ;;  %v9340_v0 = vld [vmem:[%s12486_s5 + $0x48] sm:$0xff]  }
 0x34b   :  { %6409 = vmatpush2.bf16.msra.mxu1 %v9288_v41  ;;  %v5733_v48 = vpop.f32.mrf.mxu0  ;;  %7946 = vmatprep.subr.bf16.mxu0 %v9330_v47  ;;  %v9341_v47 = vld [vmem:[%s12486_s5 + $0x8] sm:$0xff]  }
 0x34c   :  { %6410 = vmatprep.subr.bf16.mxu1 %v9293_v62 }
 0x34d   :  { %v5735_v10 = vpop.f32.mrf.mxu0 }
 0x34e   :  { %7947 = vmatpush3.bf16.msra.mxu0 %v9331_v27  ;;  %v9342_v27 = vld [vmem:[%s12486_s5 + $0x40] sm:$0xff]  }
 0x34f   :  { %6411 = vmatpush2.bf16.msra.mxu1 %v9291_v42  ;;  %v5736_v51 = vpop.f32.mrf.mxu0  ;;  %7948 = vmatprep.subr.bf16.mxu0 %v9332_v35  ;;  %v9343_v35 = vld [vmem:[%s12486_s5] sm:$0xff]  }
 0x350   :  { %6412 = vmatprep.subr.bf16.mxu1 %v9296_v37 }
 0x352   :  { %7949 = vmatpush3.bf16.msra.mxu0 %v9333_v30 }
 0x353   :  { %6413 = vmatpush2.bf16.msra.mxu1 %v9294_v57  ;;  %7950 = vmatprep.subr.bf16.mxu0 %v9334_v26 }
 0x354   :  { %6414 = vmatprep.subr.bf16.mxu1 %v9299_v24 }
 0x356   :  { %7951 = vmatpush3.bf16.msra.mxu0 %v9335_v34 }
 0x357   :  { %7952 = vmatprep.subr.bf16.mxu0 %v9336_v29 }
 0x35a   :  { %v5690_v55 = vpop.f32.mrf.mxu1  ;;  %7953 = vmatpush3.bf16.msra.mxu0 %v9337_v46 }
 0x35b   :  { %v5691_v56 = vadd.f32 %v5690_v55, %v12104_v58  ;;  %v9297_v58 = vld [vmem:[%s12484_s3 + $0x1c0] ss:$8 sps:$4 sm:$0xff]   ;;  %7954 = vmatprep.subr.bf16.mxu0 %v9338_v20 }
 0x35c   :  { %v5692_v16 = vpop.f32.mrf.mxu1  ;;  %6415 = vmatpush2.bf16.msra.mxu1 %v9297_v58  ;;  %v9315_v58 = vld [vmem:[%s12485_s7 + $0x30] sm:$0xff]  }
 0x35d   :  { %v5693_v19 = vadd.f32 %v5692_v16, %v12107_v61  ;;  %v5732_v50 = vadd.f32 %v5731_v1, %v5691_v56  ;;  %v9300_v61 = vld [vmem:[%s12484_s3 + $0x1b0] ss:$8 sps:$4 sm:$0xff]   ;;  %6416 = vmatprep.subr.bf16.mxu1 %v9302_v53  ;;  %v9317_v53 = vld [vmem:[%s12485_s7 + $0x28] sm:$0xff]  }
 0x35e   :  { %v5694_v60 = vpop.f32.mrf.mxu1  ;;  %7955 = vmatpush3.bf16.msra.mxu0 %v9339_v44 }
 0x35f   :  { %v5734_v40 = vadd.f32 %v5733_v48, %v5693_v19  ;;  %v9313_v60 = vld [vmem:[%s12485_s7 + $0x38] sm:$0xff]   ;;  %7956 = vmatprep.subr.bf16.mxu0 %v9340_v0  ;;  %v7910_v0 = vld [vmem:[%s12493_s8] ss:$0 sm:$0xff] }
 0x360   :  { %v5695_v4 = vpop.f32.mrf.mxu1  ;;  %6417 = vmatpush2.bf16.msra.mxu1 %v9300_v61  ;;  %v9318_v61 = vld [vmem:[%s12485_s7 + $0x60] sm:$0xff]  }
 0x361   :  { %6418 = vmatprep.subr.bf16.mxu1 %v9305_v31  ;;  %v9316_v4 = vld [vmem:[%s12485_s7 + $0x68] sm:$0xff]   ;;  %v9320_v31 = vld [vmem:[%s12485_s7 + $0x58] sm:$0xff]  }
 0x362   :  { %7957 = vmatpush3.bf16.msra.mxu0 %v9341_v47 }
 0x363   :  { %7958 = vmatprep.subr.bf16.mxu0 %v9342_v27 }
 0x364   :  { %6419 = vmatpush2.bf16.msra.mxu1 %v9303_v11  ;;  %v9321_v11 = vld [vmem:[%s12485_s7 + $0x18] sm:$0xff]  }
 0x365   :  { %6420 = vmatprep.subr.bf16.mxu1 %v9308_v39  ;;  %v9322_v39 = vld [vmem:[%s12485_s7 + $0x50] sm:$0xff]  }
 0x366   :  { %7959 = vmatpush3.bf16.msra.mxu0 %v9343_v35 }
 0x368   :  { %6421 = vmatpush2.bf16.msra.mxu1 %v9306_v12  ;;  %v9323_v12 = vld [vmem:[%s12485_s7 + $0x10] sm:$0xff]  }
 0x369   :  { %6422 = vmatprep.subr.bf16.mxu1 %v9311_v2  ;;  %v9324_v2 = vld [vmem:[%s12485_s7 + $0x48] sm:$0xff]  }
 0x36c   :  { %6423 = vmatpush2.bf16.msra.mxu1 %v9309_v6  ;;  %v9325_v6 = vld [vmem:[%s12485_s7 + $0x8] sm:$0xff]  }
 0x36d   :  { %7966 = vmatprep.subr.bf16.mxu1 %v9312_v3 }
 0x389   :  { %v5813_v15 = vpop.f32.mrf.mxu0 }
 0x38b   :  { %v5815_v18 = vpop.f32.mrf.mxu0 }
 0x38d   :  { %v5817_v43 = vpop.f32.mrf.mxu0 }
 0x38e   :  { %v9327_v43 = vld [vmem:[%s12485_s7] sm:$0xff]  }
 0x38f   :  { %v5818_v8 = vpop.f32.mrf.mxu0 }
 0x39a   :  { %v5772_v14 = vpop.f32.mrf.mxu1 }
 0x39b   :  { %v5773_v9 = vadd.f32 %v5772_v14, %v5732_v50  ;;  %v6624_v14 = vld [vmem:[%s12487_s10] sm:$0xff] }
 0x39c   :  { %v5774_v28 = vpop.f32.mrf.mxu1 }
 0x39d   :  { %v5775_v17 = vadd.f32 %v5774_v28, %v5734_v40  ;;  %v5814_v45 = vadd.f32 %v5813_v15, %v5773_v9  ;;  %v9314_v40 = vld [vmem:[%s12485_s7 + $0x70] sm:$0xff]   ;;  %v9326_v15 = vld [vmem:[%s12485_s7 + $0x40] sm:$0xff]  }
 0x39e   :  { %v5776_v22 = vpop.f32.mrf.mxu1  ;;  %v6019_v9 = vld [vmem:[%s12488_s4] sm:$0x3] }
 0x39f   :  { %v5816_v32 = vadd.f32 %v5815_v18, %v5775_v17  ;;  %v6024_v28 = vrot.slane %v6019_v9, %v848_v59  ;;  %v6028_v30 = vrot.slane %v6019_v9, %v852_v63  ;;  %v9347_v59 = vld [vmem:[%s12485_s7 + $0xb0] sm:$0xff]   ;;  %v9348_v63 = vld [vmem:[%s12485_s7 + $0xe8] sm:$0xff]  }
 0x3a0   :  { %v5777_v23 = vpop.f32.mrf.mxu1 }
 0x3c9   :  { %v5895_v25 = vpop.f32.mrf.mxu0 }
 0x3cb   :  { %v5897_v38 = vpop.f32.mrf.mxu0 }
 0x3cd   :  { %v5899_v5 = vpop.f32.mrf.mxu0 }
 0x3ce   :  { %v9349_v5 = vld [vmem:[%s12485_s7 + $0xa8] sm:$0xff]  }
 0x3cf   :  { %v5900_v21 = vpop.f32.mrf.mxu0 }
 0x3d0   :  { %v9350_v21 = vld [vmem:[%s12485_s7 + $0xe0] sm:$0xff]  }
 0x3da   :  { %v5854_v7 = vpop.f32.mrf.mxu1 }
 0x3db   :  { %v5855_v62 = vadd.f32 %v5854_v7, %v5814_v45  ;;  %v9351_v7 = vld [vmem:[%s12485_s7 + $0xa0] sm:$0xff]  }
 0x3dc   :  { %v5856_v49 = vpop.f32.mrf.mxu1 }
 0x3dd   :  { %v5857_v1 = vadd.f32 %v5856_v49, %v5816_v32  ;;  %v5896_v42 = vadd.f32 %v5895_v25, %v5855_v62  ;;  %v9345_v25 = vld [vmem:[%s12485_s7 + $0xb8] sm:$0xff]   ;;  %v9355_v62 = vld [vmem:[%s12485_s7 + $0x90] sm:$0xff]  }
 0x3de   :  { %v5858_v41 = vpop.f32.mrf.mxu1  ;;  %v9352_v49 = vld [vmem:[%s12485_s7 + $0xd8] sm:$0xff]  }
 0x3df   :  { %v5898_v10 = vadd.f32 %v5897_v38, %v5857_v1  ;;  %v9353_v41 = vld [vmem:[%s12485_s7 + $0x98] sm:$0xff]   ;;  %v9356_v1 = vld [vmem:[%s12485_s7 + $0xc8] sm:$0xff]  }
 0x3e0   :  { %v5859_v52 = vpop.f32.mrf.mxu1 }
 0x3e1   :  { %v9354_v52 = vld [vmem:[%s12485_s7 + $0xd0] sm:$0xff]  }
 0x3ea   :  { %v5936_v48 = vpop.f32.mrf.mxu1 }
 0x3eb   :  { %v5937_v51 = vadd.f32 %v5936_v48, %v5896_v42  ;;  %v9357_v42 = vld [vmem:[%s12485_s7 + $0x88] sm:$0xff]  }
 0x3ec   :  { %v5938_v55 = vpop.f32.mrf.mxu1 }
 0x3ed   :  { %v5945_v37 = vmax.f32 %v5937_v51, 0.0  ;;  %v5939_v56 = vadd.f32 %v5938_v55, %v5898_v10  ;;  %v9358_v10 = vld [vmem:[%s12485_s7 + $0xc0] sm:$0xff]  }
 0x3ee   :  { %v5940_v57 = vpop.f32.mrf.mxu1 }
 0x3ef   :  { %5949 = vst [vmem:[%s12483_s13 + $0x10] sm:$0xff] %v5945_v37  ;;  %v5946_v16 = vmax.f32 %v5939_v56, 0.0  ;;  %v12333_v24 = vpack.c.bf16 %v5945_v37, %v5945_v37  ;;  %v9359_v37 = vld [vmem:[%s12485_s7 + $0x80] sm:$0xff]  }
 0x3f0   :  { %v5941_v19 = vpop.f32.mrf.mxu1 }
 0x3f1   :  { %5950 = vst [vmem:[%s12483_s13 + $0x18] sm:$0xff] %v5946_v16  ;;  %v12328_v50 = vpack.c.bf16 %v5946_v16, %v5946_v16  ;;  %s9364_s13 = smov 1   ;;  %v7893_v19 = vld [vmem:[%s12489_s6] ss:$0 sm:$0xff] }
 0x3f2   :  { %6626 = vrot.lane.b32.xlu0 %v6624_v14, %s9364_s13 }
 0x3f3   :  { %6424 = vmatprep.mubr.bf16.mxu1 %v12328_v50 }
 0x3f4   :  { %6425 = vmatmul.mubr.bf16.vlgmr.msra.gmra.mxu1 %v12333_v24 }
 0x3f5   :  { %7967 = vmatpush3.bf16.msra.mxu1 %v9313_v60  ;;  %6940 = vmatprep.mubr.bf16.mxu1 %v12037_v33  ;;  %v9319_v33 = vld [vmem:[%s12485_s7 + $0x20] sm:$0xff]  }
 0x3f6   :  { %7968 = vmatprep.subr.bf16.mxu1 %v9314_v40 }
 0x3f9   :  { %7969 = vmatpush3.bf16.msra.mxu1 %v9315_v58 }
 0x3fa   :  { %7970 = vmatprep.subr.bf16.mxu1 %v9316_v4 }
 0x3fd   :  { %7971 = vmatpush3.bf16.msra.mxu1 %v9317_v53 }
 0x3fe   :  { %7972 = vmatprep.subr.bf16.mxu1 %v9318_v61 }
 0x401   :  { %7973 = vmatpush3.bf16.msra.mxu1 %v9319_v33 }
 0x402   :  { %7974 = vmatprep.subr.bf16.mxu1 %v9320_v31 }
 0x405   :  { %7975 = vmatpush3.bf16.msra.mxu1 %v9321_v11 }
 0x406   :  { %7976 = vmatprep.subr.bf16.mxu1 %v9322_v39 }
 0x409   :  { %7977 = vmatpush3.bf16.msra.mxu1 %v9323_v12  ;;  %v6385_v3 = vpop.f32.mrf.mxu0 }
 0x40a   :  { %7978 = vmatprep.subr.bf16.mxu1 %v9324_v2  ;;  %v6386_v17 = vadd.f32 %v6385_v3, %v6024_v28 }
 0x40b   :  { %v6387_v18 = vpop.f32.mrf.mxu0 }
 0x40c   :  { %v6388_v26 = vadd.f32 %v6387_v18, %v6028_v30 }
 0x40d   :  { %7979 = vmatpush3.bf16.msra.mxu1 %v9325_v6  ;;  %v6389_v8 = vpop.f32.mrf.mxu0 }
 0x40e   :  { %7980 = vmatprep.subr.bf16.mxu1 %v9326_v15  ;;  %v6635_v15 = vld [vmem:[%s12491_s11] sm:$0xff] }
 0x40f   :  { %v6390_v36 = vpop.f32.mrf.mxu0  ;;  %vm6636_vm2 = vcmp.gt.f32.partialorder %v6635_v15, 0.0 }
 0x411   :  { %7981 = vmatpush3.bf16.msra.mxu1 %v9327_v43 }
 0x414   :  { %6941 = vmatmul.mubr.bf16.vlgmr.msra.gmra.mxu1 %v12236_v13  ;;  %v9344_v13 = vld [vmem:[%s12485_s7 + $0xf8] sm:$0xff]  }
 0x415   :  { %7988 = vmatprep.subr.bf16.mxu0 %v9344_v13  ;;  %v7943_v13 = vld [vmem:[%s12494_s9] ss:$0 sm:$0xff] }
 0x464   :  { %v6627_v33 = vpop.permute.xlu0 %6626 }
 0x4b4   :  { %v6426_v45 = vpop.f32.mrf.mxu1 }
 0x4b5   :  { %v6427_v22 = vadd.f32 %v6426_v45, %v6386_v17 }
 0x4b6   :  { %v6428_v32 = vpop.f32.mrf.mxu1 }
 0x4b7   :  { %v6429_v34 = vadd.f32 %v6428_v32, %v6388_v26  ;;  %v6433_v23 = vmax.f32 %v6427_v22, 0.0 }
 0x4b8   :  { %v6430_v29 = vpop.f32.mrf.mxu1 }
 0x4b9   :  { %v6434_v46 = vmax.f32 %v6429_v34, 0.0  ;;  %v6435_v38 = vpack.c.bf16 %v6433_v23, %v6433_v23 }
 0x4ba   :  { %v6431_v20 = vpop.f32.mrf.mxu1 }
 0x4bb   :  { %v6436_v44 = vpack.c.bf16 %v6434_v46, %v6434_v46 }
 0x4bd   :  { %6604 = vmatprep.mubr.bf16.mxu0 %v6436_v44 }
 0x4be   :  { %6605 = vmatmul.mubr.bf16.vlgmr.msra.gmra.mxu0 %v6435_v38 }
 0x4bf   :  { %7989 = vmatpush3.bf16.msra.mxu0 %v9345_v25  ;;  %6980 = vmatprep.mubr.bf16.mxu0 %v12328_v50 }
 0x4c0   :  { %7990 = vmatprep.subr.bf16.mxu0 %v9346_v54 }
 0x4c3   :  { %7991 = vmatpush3.bf16.msra.mxu0 %v9347_v59 }
 0x4c4   :  { %7992 = vmatprep.subr.bf16.mxu0 %v9348_v63 }
 0x4c7   :  { %7993 = vmatpush3.bf16.msra.mxu0 %v9349_v5 }
 0x4c8   :  { %7994 = vmatprep.subr.bf16.mxu0 %v9350_v21 }
 0x4cb   :  { %7995 = vmatpush3.bf16.msra.mxu0 %v9351_v7 }
 0x4cc   :  { %7996 = vmatprep.subr.bf16.mxu0 %v9352_v49 }
 0x4cf   :  { %7997 = vmatpush3.bf16.msra.mxu0 %v9353_v41 }
 0x4d0   :  { %7998 = vmatprep.subr.bf16.mxu0 %v9354_v52 }
 0x4d3   :  { %7999 = vmatpush3.bf16.msra.mxu0 %v9355_v62 }
 0x4d4   :  { %v7982_v48 = vpop.f32.mrf.mxu1  ;;  %8000 = vmatprep.subr.bf16.mxu0 %v9356_v1 }
 0x4d6   :  { %v7983_v51 = vpop.f32.mrf.mxu1 }
 0x4d7   :  { %v7984_v55 = vadd.f32 %v7983_v51, %v7982_v48  ;;  %8001 = vmatpush3.bf16.msra.mxu0 %v9357_v42 }
 0x4d8   :  { %v7985_v56 = vpop.f32.mrf.mxu1  ;;  %8002 = vmatprep.subr.bf16.mxu0 %v9358_v10 }
 0x4da   :  { %v7986_v57 = vpop.f32.mrf.mxu1 }
 0x4db   :  { %8003 = vmatpush3.bf16.msra.mxu0 %v9359_v37 }
 0x4de   :  { %6981 = vmatmul.mubr.bf16.vlgmr.msra.gmra.mxu0 %v12333_v24 }
 0x57e   :  { %v7960_v16 = vpop.f32.mrf.mxu0 }
 0x580   :  { %v7961_v50 = vpop.f32.mrf.mxu0 }
 0x581   :  { %v7962_v60 = vadd.f32 %v7961_v50, %v7960_v16 }
 0x582   :  { %v7963_v40 = vpop.f32.mrf.mxu0 }
 0x583   :  { %v6607_v58 = vadd.f32 %v7962_v60, %v7893_v19 }
 0x584   :  { %v7964_v4 = vpop.f32.mrf.mxu0 }
 0x585   :  { %v6612_v53 = vmax.f32 %v6607_v58, 0.0 }
 0x587   :  { %v6622_v61 = vmax.f32 %v6612_v53, 1e-05  ;;  %6614 = vst.msk [vmem:[%s12490_s15] sm:$0xff] %vm6613_vm1, %v6612_v53  ;;  %v6620_v3 = vmax.f32 %v6612_v53, 1.0 }
 0x589   :  { %v6623_v24 = vmin.f32 %v6622_v61, 100.0  ;;  %v6621_v18 = vmin.f32 %v6620_v3, 10.0 }
 0x58b   :  { %v6629_v31 = vmul.f32 %v6627_v33, %v6623_v24 }
 0x58d   :  { %6631 = vrot.lane.b32.xlu0 %v6629_v31, %s9365_s17 }
 0x59e   :  { %v8004_v11 = vpop.f32.mrf.mxu0 }
 0x5a0   :  { %v8005_v39 = vpop.f32.mrf.mxu0 }
 0x5a1   :  { %v8006_v12 = vadd.f32 %v8005_v39, %v8004_v11 }
 0x5a2   :  { %v8007_v2 = vpop.f32.mrf.mxu0 }
 0x5a4   :  { %v8008_v6 = vpop.f32.mrf.mxu0 }
 0x5ff   :  { %v6632_v43 = vpop.permute.xlu0 %6631 }
 0x600   :  { %v6634_v8 = vadd.f32 %v6632_v43, %v6621_v18 }
 0x602   :  { %v6637_v36 = vsel %vm6636_vm2, %v6635_v15, %v6634_v8 }
 0x603   :  { %6706 = vperm.xlu1 %8013, %v6637_v36   ;;  %6638 = vst.msk [vmem:[%s12492_s14] sm:$0xff] %vm6613_vm1, %v6637_v36 }
 0x607   :  { %6616 = vrot.lane.b32.xlu1 %v6612_v53, %s9365_s17 }
 0x67e   :  { %v6707_v47 = vpop.permute.xlu1 %6706 }
 0x67f   :  { %v6715_v27 = vmul.f32 %v7910_v0, %v6707_v47 }
 0x681   :  { %v6943_v35 = vadd.f32 %v7984_v55, %v6715_v27 }
 0x682   :  { %v6617_v14 = vpop.permute.xlu1 %6616 }
 0x683   :  { %v6983_v9 = vadd.f32 %v8006_v12, %v6943_v35  ;;  %6619 = vst.msk [vmem:[%s12495_s16] sm:$0xff] %vm6613_vm1, %v6617_v14 }
 0x685   :  { %v6995_v28 = vadd.f32 %v7943_v13, %v6983_v9 }
 0x687   :  { %6997 = vst.msk [vmem:[%s12496_s12] sm:$0xff] %vm6996_vm3, %v6995_v28 }

</bundles_post_ra>
